<compile_context>
chip_gen: v7x
topology: tpu7x:2x2x1
jax: 0.10.0
libtpu: 0.0.40
codegen_flags: <defaults>
</compile_context>

<pallas_src>
import functools
import math

import jax
import jax.numpy as jnp
from jax import lax
from jax.experimental import pallas as pl
from jax.experimental.pallas import tpu as pltpu


def _round_up(a, b):
    return (a + b - 1) // b * b


def _nbytes(shape, dtype):
    return math.prod(shape) * jnp.dtype(dtype).itemsize


def _sigmoid_tanh(x):
    # sigmoid(x) = 0.5 * (tanh(0.5 x) + 1): a single EUP transcendental.
    return 0.5 * (jnp.tanh(0.5 * x) + 1.0)


def _lstm_decoder_kernel(x_ref, wihT_ref, whhT_ref, b_ref, h0_ref, c0_ref,
                         *rest, t_blk, valid_last, hidden_p, apply_dropout,
                         drop_scale, tail_guard, unroll):
    if apply_dropout:
        mask_ref = rest[0]
        rest = rest[1:]
    else:
        mask_ref = None
    out_ref, hT_ref, cT_ref, gx_sc, h_sc, c_sc = rest

    t_idx = pl.program_id(1)            # time-block index (serial axis)
    H = hidden_p
    B_blk = h_sc.shape[0]
    G_p = 4 * H

    # Initialize the carried state at the first time block of each batch block.
    @pl.when(t_idx == 0)
    def _():
        h_sc[...] = h0_ref[...]
        c_sc[...] = c0_ref[...]

    # ---- Input projection for the whole time block: one big MXU matmul. ----
    wihT = wihT_ref[...]
    x_blk = x_ref[...].reshape(t_blk * B_blk, -1).astype(wihT.dtype)
    gx = jnp.dot(x_blk, wihT, preferred_element_type=jnp.float32) + b_ref[...]
    gx_sc[...] = gx.reshape(t_blk, B_blk, G_p)

    whhT = whhT_ref[...]

    # ---- Serial recurrence over the (valid) steps of this time block. ----
    def run_steps(n_steps):
        def step(t, carry):
            h_prev, c_prev = carry
            gates = gx_sc[t] + jnp.dot(h_prev, whhT,
                                       preferred_element_type=jnp.float32)

            # PyTorch LSTMCell gate order: i, f, g, o (each 128-lane aligned).
            i_g = _sigmoid_tanh(gates[:, 0 * H:1 * H])
            f_g = _sigmoid_tanh(gates[:, 1 * H:2 * H])
            g_g = jnp.tanh(gates[:, 2 * H:3 * H])
            o_g = _sigmoid_tanh(gates[:, 3 * H:4 * H])

            c_new = f_g * c_prev + i_g * g_g
            h_new = o_g * jnp.tanh(c_new)

            if apply_dropout:
                h_out = h_new * (mask_ref[t].astype(jnp.float32) * drop_scale)
            else:
                h_out = h_new
            out_ref[t] = h_out.astype(out_ref.dtype)
            return h_new.astype(h_sc.dtype), c_new

        u = max(1, min(n_steps, unroll))
        h, c = lax.fori_loop(0, n_steps, step, (h_sc[...], c_sc[...]),
                             unroll=u)
        h_sc[...] = h
        c_sc[...] = c

    if tail_guard:
        # Padding only exists in the final time block: run a statically
        # shortened loop there, the unguarded full loop everywhere else.
        is_last_t = t_idx == pl.num_programs(1) - 1

        @pl.when(t_idx < pl.num_programs(1) - 1)
        def _():
            run_steps(t_blk)

        @pl.when(is_last_t)
        def _():
            run_steps(valid_last)
    else:
        run_steps(t_blk)

    # Final states written once, on the last time block only.
    @pl.when(t_idx == pl.num_programs(1) - 1)
    def _():
        hT_ref[...] = h_sc[...].astype(hT_ref.dtype)
        cT_ref[...] = c_sc[...].astype(cT_ref.dtype)


def rnn_decoder_forward(x, w_ih, w_hh, b_ih, b_hh, h0, c0,
                        dropout_p=0.0, training=False, seed=0,
                        time_block=32, compute_dtype=jnp.float32,
                        out_dtype=None):
    """LSTM decoder forward (torch.nn.LSTMCell semantics, unrolled over time).

    x: (T, B, I), h0/c0: (B, H), w_ih: (4H, I), w_hh: (4H, H), b_*: (4H,)
    Returns (outputs (T, B, H), h_T (B, H), c_T (B, H)).
    """
    T, B, I = x.shape
    H = h0.shape[1]
    if out_dtype is None:
        out_dtype = x.dtype
    compute_dtype = jnp.dtype(compute_dtype)
    out_dtype = jnp.dtype(out_dtype)

    # ---- Padded, lane-dense internal layout. ----
    two_byte = (jnp.dtype(x.dtype).itemsize <= 2
                or compute_dtype.itemsize <= 2 or out_dtype.itemsize <= 2)
    sublane = 16 if two_byte else 8
    H_p = _round_up(H, 128)
    B_p = _round_up(B, sublane)
    G_p = 4 * H_p
    T_BLK = max(1, min(int(time_block), T))
    T_pad = _round_up(T, T_BLK)
    num_t_blocks = T_pad // T_BLK
    tail = T_pad - T                      # padded steps (all in last block)

    # Batch blocking: split the batch across a "parallel" grid axis when it is
    # big enough (two sublane-aligned halves) so both TensorCores get work.
    if B_p >= 2 * sublane and (B_p // sublane) % 2 == 0:
        B_BLK = B_p // 2
    else:
        B_BLK = B_p
    num_b_blocks = B_p // B_BLK

    # Pack gate weights transposed into (in_dim, 4*H_p) slabs with each gate on
    # a 128-lane boundary.  Zero padding is exactly state-preserving (padded
    # gate pre-activations are 0 => i=f=o=0.5, g=0 => padded h/c stay 0).
    w_ih_t = jnp.transpose(w_ih).astype(compute_dtype)           # (I, 4H)
    w_hh_t = jnp.transpose(w_hh).astype(compute_dtype)           # (H, 4H)
    b_sum = (b_ih + b_hh).astype(jnp.float32)                    # (4H,)

    wihT = jnp.zeros((I, G_p), compute_dtype)
    whhT = jnp.zeros((H_p, G_p), compute_dtype)
    bias = jnp.zeros((1, G_p), jnp.float32)
    for g in range(4):
        wihT = wihT.at[:, g * H_p:g * H_p + H].set(w_ih_t[:, g * H:(g + 1) * H])
        whhT = whhT.at[:H, g * H_p:g * H_p + H].set(w_hh_t[:, g * H:(g + 1) * H])
        bias = bias.at[0, g * H_p:g * H_p + H].set(b_sum[g * H:(g + 1) * H])

    x_p = jnp.zeros((T_pad, B_p, I), x.dtype).at[:T, :B, :].set(x)
    h0_p = jnp.zeros((B_p, H_p), compute_dtype).at[:B, :H].set(
        h0.astype(compute_dtype))
    c0_p = jnp.zeros((B_p, H_p), jnp.float32).at[:B, :H].set(
        c0.astype(jnp.float32))

    # ---- Dropout: host-precomputed inverted-dropout keep mask. ----
    apply_dropout = bool(training) and float(dropout_p) > 0.0
    drop_scale = 1.0
    keep = None
    if apply_dropout:
        p = float(dropout_p)
        if p >= 1.0:
            keep = jnp.zeros((T_pad, B_p, H_p), jnp.bool_)
            drop_scale = 1.0
        else:
            keep = jax.random.bernoulli(jax.random.PRNGKey(int(seed)),
                                        1.0 - p, (T_pad, B_p, H_p))
            drop_scale = 1.0 / (1.0 - p)

    kernel = functools.partial(
        _lstm_decoder_kernel,
        t_blk=T_BLK, valid_last=T_BLK - tail, hidden_p=H_p,
        apply_dropout=apply_dropout, drop_scale=drop_scale,
        tail_guard=(tail > 0), unroll=min(T_BLK, 8))

    def run(fast):
        # fast: single-buffered loop-invariant weight slabs + int8 keep mask.
        # safe: default double-buffering + f32 mask (previously validated).
        weight_kw = dict(pipeline_mode=pl.Buffered(1)) if fast else {}
        mask_dtype = jnp.int8 if fast else jnp.float32

        in_specs = [
            pl.BlockSpec((T_BLK, B_BLK, I), lambda b, t: (t, b, 0)),   # x
            pl.BlockSpec((I, G_p), lambda b, t: (0, 0), **weight_kw),  # W_ih^T
            pl.BlockSpec((H_p, G_p), lambda b, t: (0, 0), **weight_kw),  # W_hh^T
            pl.BlockSpec((1, G_p), lambda b, t: (0, 0), **weight_kw),  # bias
            pl.BlockSpec((B_BLK, H_p), lambda b, t: (b, 0)),           # h0
            pl.BlockSpec((B_BLK, H_p), lambda b, t: (b, 0)),           # c0
        ]
        inputs = [x_p, wihT, whhT, bias, h0_p, c0_p]
        if apply_dropout:
            inputs.append(keep.astype(mask_dtype))
            in_specs.append(
                pl.BlockSpec((T_BLK, B_BLK, H_p), lambda b, t: (t, b, 0)))

        out_specs = [
            pl.BlockSpec((T_BLK, B_BLK, H_p), lambda b, t: (t, b, 0)),  # out
            pl.BlockSpec((B_BLK, H_p), lambda b, t: (b, 0)),            # h_T
            pl.BlockSpec((B_BLK, H_p), lambda b, t: (b, 0)),            # c_T
        ]
        out_shape = (
            jax.ShapeDtypeStruct((T_pad, B_p, H_p), out_dtype),
            jax.ShapeDtypeStruct((B_p, H_p), out_dtype),
            jax.ShapeDtypeStruct((B_p, H_p), out_dtype),
        )
        scratch_shapes = [
            pltpu.VMEM((T_BLK, B_BLK, G_p), jnp.float32),   # input-proj slab
            pltpu.VMEM((B_BLK, H_p), compute_dtype),        # h carry
            pltpu.VMEM((B_BLK, H_p), jnp.float32),          # c carry
        ]

        # Explicit VMEM budget: weights (1 or 2 buffers) + streamed blocks
        # (double-buffered) + scratch, with headroom.
        wbuf = 1 if fast else 2
        vmem = wbuf * (_nbytes((I, G_p), compute_dtype)
                       + _nbytes((H_p, G_p), compute_dtype)
                       + _nbytes((1, G_p), jnp.float32))
        vmem += 2 * (_nbytes((B_BLK, H_p), compute_dtype)
                     + _nbytes((B_BLK, H_p), jnp.float32))
        vmem += 2 * _nbytes((T_BLK, B_BLK, I), x.dtype)
        if apply_dropout:
            vmem += 2 * _nbytes((T_BLK, B_BLK, H_p), mask_dtype)
        vmem += 2 * (_nbytes((T_BLK, B_BLK, H_p), out_dtype)
                     + 2 * _nbytes((B_BLK, H_p), out_dtype))
        vmem += (_nbytes((T_BLK, B_BLK, G_p), jnp.float32)
                 + _nbytes((B_BLK, H_p), compute_dtype)
                 + _nbytes((B_BLK, H_p), jnp.float32))
        vmem_limit = min(128 << 20, max(32 << 20, int(vmem * 1.5) + (8 << 20)))

        grid_spec = pltpu.PrefetchScalarGridSpec(
            num_scalar_prefetch=0,
            grid=(num_b_blocks, num_t_blocks),
            in_specs=in_specs,
            out_specs=out_specs,
            scratch_shapes=scratch_shapes,
        )
        return pl.pallas_call(
            kernel,
            out_shape=out_shape,
            grid_spec=grid_spec,
            compiler_params=pltpu.CompilerParams(
                # batch axis independent (megacore); time axis carries state.
                dimension_semantics=("parallel", "arbitrary"),
                vmem_limit_bytes=vmem_limit),
        )(*inputs)

    try:
        out_p, hT_p, cT_p = run(fast=True)
    except Exception:
        # Fallback if this Pallas/Mosaic build rejects Buffered(1) weights or
        # the int8 mask layout — identical semantics, previously validated.
        out_p, hT_p, cT_p = run(fast=False)

    return out_p[:T, :B, :H], hT_p[:B, :H], cT_p[:B, :H]


def lstm_reference(x, w_ih, w_hh, b_ih, b_hh, h0, c0):
    """Pure-JAX reference (torch.nn.LSTMCell semantics), no dropout."""
    H = h0.shape[1]

    def step(carry, x_t):
        h, c = carry
        gates = x_t @ w_ih.T + b_ih + h @ w_hh.T + b_hh
        i = jax.nn.sigmoid(gates[:, 0 * H:1 * H])
        f = jax.nn.sigmoid(gates[:, 1 * H:2 * H])
        g = jnp.tanh(gates[:, 2 * H:3 * H])
        o = jax.nn.sigmoid(gates[:, 3 * H:4 * H])
        c_new = f * c + i * g
        h_new = o * jnp.tanh(c_new)
        return (h_new, c_new), h_new

    (hT, cT), outs = lax.scan(step, (h0, c0), x)
    return outs, hT, cT


if __name__ == "__main__":
    key = jax.random.PRNGKey(0)
    ks = jax.random.split(key, 10)

    T, B, I, H = 12, 8, 32, 32     # T deliberately not a multiple of time_block
    x = jax.random.normal(ks[0], (T, B, I), jnp.float32)
    bound = 1.0 / (H ** 0.5)
    w_ih = jax.random.uniform(ks[1], (4 * H, I), jnp.float32, -bound, bound)
    w_hh = jax.random.uniform(ks[2], (4 * H, H), jnp.float32, -bound, bound)
    b_ih = jax.random.uniform(ks[3], (4 * H,), jnp.float32, -bound, bound)
    b_hh = jax.random.uniform(ks[4], (4 * H,), jnp.float32, -bound, bound)
    h0 = jax.random.normal(ks[5], (B, H), jnp.float32)
    c0 = jax.random.normal(ks[6], (B, H), jnp.float32)

    ref_out, ref_h, ref_c = lstm_reference(x, w_ih, w_hh, b_ih, b_hh, h0, c0)

    # 1) Eval-mode forward, small time block (exercises the padded-tail block).
    out, hT, cT = rnn_decoder_forward(x, w_ih, w_hh, b_ih, b_hh, h0, c0,
                                      dropout_p=0.1, training=False,
                                      time_block=8)
    jax.block_until_ready((out, hT, cT))
    assert out.shape == (T, B, H) and hT.shape == (B, H) and cT.shape == (B, H)
    assert jnp.allclose(out, ref_out, rtol=1e-2, atol=1e-2), "outputs mismatch"
    assert jnp.allclose(hT, ref_h, rtol=1e-2, atol=1e-2), "h_T mismatch"
    assert jnp.allclose(cT, ref_c, rtol=1e-2, atol=1e-2), "c_T mismatch"

    # 2) Default (large) time block and a batch big enough to split across the
    #    "parallel" batch grid axis (two batch blocks / both TensorCores).
    B2 = 16
    x2 = jax.random.normal(ks[7], (T, B2, I), jnp.float32)
    h02 = jax.random.normal(ks[8], (B2, H), jnp.float32)
    c02 = jax.random.normal(ks[9], (B2, H), jnp.float32)
    ref2_out, ref2_h, ref2_c = lstm_reference(x2, w_ih, w_hh, b_ih, b_hh,
                                              h02, c02)
    out2, hT2, cT2 = rnn_decoder_forward(x2, w_ih, w_hh, b_ih, b_hh, h02, c02)
    jax.block_until_ready((out2, hT2, cT2))
    assert jnp.allclose(out2, ref2_out, rtol=1e-2, atol=1e-2), "batch-split out"
    assert jnp.allclose(hT2, ref2_h, rtol=1e-2, atol=1e-2), "batch-split h_T"
    assert jnp.allclose(cT2, ref2_c, rtol=1e-2, atol=1e-2), "batch-split c_T"

    # 3) bf16 weight/matmul path (f32 gate math, f32 cell carry, bf16 h carry).
    out_bf, hT_bf, cT_bf = rnn_decoder_forward(
        x, w_ih, w_hh, b_ih, b_hh, h0, c0, compute_dtype=jnp.bfloat16)
    jax.block_until_ready((out_bf, hT_bf, cT_bf))
    assert float(jnp.max(jnp.abs(out_bf - ref_out))) < 0.25, "bf16 path drift"

    # 4) Training-mode forward (inverted dropout on per-step outputs only; the
    #    recurrent state is not dropped, so the final hidden state matches ref).
    out_tr, hT_tr, cT_tr = rnn_decoder_forward(
        x, w_ih, w_hh, b_ih, b_hh, h0, c0,
        dropout_p=0.1, training=True, seed=1234, time_block=8)
    jax.block_until_ready((out_tr, hT_tr, cT_tr))
    assert jnp.allclose(hT_tr, ref_h, rtol=1e-2, atol=1e-2), "train h_T mismatch"

    print("KERNEL_OK")
</pallas_src>

<mosaic_0001>
module attributes {stable_mosaic.version = 11 : i64} {
  func.func @_lstm_decoder_kernel(%arg0: i32, %arg1: i32, %arg2: memref<8x8x32xf32, #tpu.memory_space<vmem>>, %arg3: memref<32x512xf32, #tpu.memory_space<vmem>>, %arg4: memref<128x512xf32, #tpu.memory_space<vmem>>, %arg5: memref<1x512xf32, #tpu.memory_space<vmem>>, %arg6: memref<8x128xf32, #tpu.memory_space<vmem>>, %arg7: memref<8x128xf32, #tpu.memory_space<vmem>>, %arg8: memref<8x8x128xf32, #tpu.memory_space<vmem>>, %arg9: memref<8x128xf32, #tpu.memory_space<vmem>>, %arg10: memref<8x128xf32, #tpu.memory_space<vmem>>, %arg11: memref<8x8x512xf32, #tpu.memory_space<vmem>>, %arg12: memref<8x128xf32, #tpu.memory_space<vmem>>, %arg13: memref<8x128xf32, #tpu.memory_space<vmem>>) attributes {dimension_semantics = [#tpu.dimension_semantics<parallel>, #tpu.dimension_semantics<arbitrary>], iteration_bounds = array<i64: 1, 2>, scalar_prefetch = 0 : i64, scratch_operands = 3 : i64, tpu.core_type = #tpu.core_type<tc>, window_params = [{transform_indices = @transform_0, window_bounds = array<i64: 8, 8, 32>}, {pipeline_mode = #tpu.pipeline_mode<synchronous>, transform_indices = @transform_1, window_bounds = array<i64: 32, 512>}, {pipeline_mode = #tpu.pipeline_mode<synchronous>, transform_indices = @transform_2, window_bounds = array<i64: 128, 512>}, {pipeline_mode = #tpu.pipeline_mode<synchronous>, transform_indices = @transform_3, window_bounds = array<i64: 1, 512>}, {transform_indices = @transform_4, window_bounds = array<i64: 8, 128>}, {transform_indices = @transform_5, window_bounds = array<i64: 8, 128>}, {transform_indices = @transform_6, window_bounds = array<i64: 8, 8, 128>}, {transform_indices = @transform_7, window_bounds = array<i64: 8, 128>}, {transform_indices = @transform_8, window_bounds = array<i64: 8, 128>}]} {
    %c0_i32 = arith.constant 0 : i32
    %0 = arith.cmpi eq, %arg1, %c0_i32 : i32
    %1 = arith.extui %0 : i1 to i32
    %c0_i32_0 = arith.constant 0 : i32
    %2 = arith.cmpi ne, %1, %c0_i32_0 : i32
    scf.if %2 {
      %c0_17 = arith.constant 0 : index
      %c0_18 = arith.constant 0 : index
      %22 = vector.load %arg6[%c0_17, %c0_18] : memref<8x128xf32, #tpu.memory_space<vmem>>, vector<8x128xf32>
      %c0_19 = arith.constant 0 : index
      %c0_20 = arith.constant 0 : index
      %23 = vector.load %arg12[%c0_19, %c0_20] : memref<8x128xf32, #tpu.memory_space<vmem>>, vector<8x128xf32>
      tpu.vector_store %arg12[%c0_19, %c0_20], %22 {strides = array<i32>} : memref<8x128xf32, #tpu.memory_space<vmem>>, vector<8x128xf32>,
      %c0_21 = arith.constant 0 : index
      %c0_22 = arith.constant 0 : index
      %24 = vector.load %arg7[%c0_21, %c0_22] : memref<8x128xf32, #tpu.memory_space<vmem>>, vector<8x128xf32>
      %c0_23 = arith.constant 0 : index
      %c0_24 = arith.constant 0 : index
      %25 = vector.load %arg13[%c0_23, %c0_24] : memref<8x128xf32, #tpu.memory_space<vmem>>, vector<8x128xf32>
      tpu.vector_store %arg13[%c0_23, %c0_24], %24 {strides = array<i32>} : memref<8x128xf32, #tpu.memory_space<vmem>>, vector<8x128xf32>,
    } else {
    }
    %c0 = arith.constant 0 : index
    %c0_1 = arith.constant 0 : index
    %3 = vector.load %arg3[%c0, %c0_1] : memref<32x512xf32, #tpu.memory_space<vmem>>, vector<32x512xf32>
    %c0_2 = arith.constant 0 : index
    %c0_3 = arith.constant 0 : index
    %c0_4 = arith.constant 0 : index
    %4 = vector.load %arg2[%c0_2, %c0_3, %c0_4] : memref<8x8x32xf32, #tpu.memory_space<vmem>>, vector<8x8x32xf32>
    %5 = vector.shape_cast %4 : vector<8x8x32xf32> to vector<64x32xf32>
    %cst = arith.constant dense<0.000000e+00> : vector<64x512xf32>
    %6 = tpu.matmul %5, %3, %cst {dimension_numbers = #tpu.dot_dimension_numbers<[1], [0], [0], [1], [0, 0, 1, 1], [], []>} : vector<64x32xf32>, vector<32x512xf32>, vector<64x512xf32> -> vector<64x512xf32>
    %c0_5 = arith.constant 0 : index
    %c0_6 = arith.constant 0 : index
    %7 = vector.load %arg5[%c0_5, %c0_6] : memref<1x512xf32, #tpu.memory_space<vmem>>, vector<1x512xf32>
    %8 = vector.broadcast %7 : vector<1x512xf32> to vector<64x512xf32>
    %9 = arith.addf %6, %8 : vector<64x512xf32>
    %10 = vector.shape_cast %9 : vector<64x512xf32> to vector<8x8x512xf32>
    %c0_7 = arith.constant 0 : index
    %c0_8 = arith.constant 0 : index
    %c0_9 = arith.constant 0 : index
    %11 = vector.load %arg11[%c0_7, %c0_8, %c0_9] : memref<8x8x512xf32, #tpu.memory_space<vmem>>, vector<8x8x512xf32>
    tpu.vector_store %arg11[%c0_7, %c0_8, %c0_9], %10 {strides = array<i32>} : memref<8x8x512xf32, #tpu.memory_space<vmem>>, vector<8x8x512xf32>,
    %c0_10 = arith.constant 0 : index
    %c0_11 = arith.constant 0 : index
    %12 = vector.load %arg4[%c0_10, %c0_11] : memref<128x512xf32, #tpu.memory_space<vmem>>, vector<128x512xf32>
    %c1_i32 = arith.constant 1 : i32
    %13 = arith.cmpi eq, %arg1, %c1_i32 : i32
    %c1_i32_12 = arith.constant 1 : i32
    %14 = arith.cmpi slt, %arg1, %c1_i32_12 : i32
    %15 = arith.extui %14 : i1 to i32
    %c0_i32_13 = arith.constant 0 : i32
    %16 = arith.cmpi ne, %15, %c0_i32_13 : i32
    scf.if %16 {
      %c0_17 = arith.constant 0 : index
      %c0_18 = arith.constant 0 : index
      %22 = vector.load %arg12[%c0_17, %c0_18] : memref<8x128xf32, #tpu.memory_space<vmem>>, vector<8x128xf32>
      %c0_19 = arith.constant 0 : index
      %c0_20 = arith.constant 0 : index
      %23 = vector.load %arg13[%c0_19, %c0_20] : memref<8x128xf32, #tpu.memory_space<vmem>>, vector<8x128xf32>
      %c0_i32_21 = arith.constant 0 : i32
      %24 = arith.index_cast %c0_i32_21 : i32 to index
      %c0_22 = arith.constant 0 : index
      %c0_23 = arith.constant 0 : index
      %25 = vector.load %arg11[%24, %c0_22, %c0_23] : memref<8x8x512xf32, #tpu.memory_space<vmem>>, vector<1x8x512xf32>
      %26 = vector.shape_cast %25 : vector<1x8x512xf32> to vector<8x512xf32>
      %cst_24 = arith.constant dense<0.000000e+00> : vector<8x512xf32>
      %27 = tpu.matmul %22, %12, %cst_24 {dimension_numbers = #tpu.dot_dimension_numbers<[1], [0], [0], [1], [0, 0, 1, 1], [], []>} : vector<8x128xf32>, vector<128x512xf32>, vector<8x512xf32> -> vector<8x512xf32>
      %28 = arith.addf %26, %27 : vector<8x512xf32>
      %29 = vector.extract_strided_slice %28 {offsets = [0, 0], sizes = [8, 128], strides = [1, 1]} : vector<8x512xf32> to vector<8x128xf32>
      %cst_25 = arith.constant 5.000000e-01 : f32
      %30 = vector.broadcast %cst_25 : f32 to vector<8x128xf32>
      %31 = arith.mulf %30, %29 : vector<8x128xf32>
      %32 = math.tanh %31 : vector<8x128xf32>
      %cst_26 = arith.constant 1.000000e+00 : f32
      %33 = vector.broadcast %cst_26 : f32 to vector<8x128xf32>
      %34 = arith.addf %32, %33 : vector<8x128xf32>
      %cst_27 = arith.constant 5.000000e-01 : f32
      %35 = vector.broadcast %cst_27 : f32 to vector<8x128xf32>
      %36 = arith.mulf %35, %34 : vector<8x128xf32>
      %37 = vector.extract_strided_slice %28 {offsets = [0, 128], sizes = [8, 128], strides = [1, 1]} : vector<8x512xf32> to vector<8x128xf32>
      %cst_28 = arith.constant 5.000000e-01 : f32
      %38 = vector.broadcast %cst_28 : f32 to vector<8x128xf32>
      %39 = arith.mulf %38, %37 : vector<8x128xf32>
      %40 = math.tanh %39 : vector<8x128xf32>
      %cst_29 = arith.constant 1.000000e+00 : f32
      %41 = vector.broadcast %cst_29 : f32 to vector<8x128xf32>
      %42 = arith.addf %40, %41 : vector<8x128xf32>
      %cst_30 = arith.constant 5.000000e-01 : f32
      %43 = vector.broadcast %cst_30 : f32 to vector<8x128xf32>
      %44 = arith.mulf %43, %42 : vector<8x128xf32>
      %45 = vector.extract_strided_slice %28 {offsets = [0, 256], sizes = [8, 128], strides = [1, 1]} : vector<8x512xf32> to vector<8x128xf32>
      %46 = math.tanh %45 : vector<8x128xf32>
      %47 = vector.extract_strided_slice %28 {offsets = [0, 384], sizes = [8, 128], strides = [1, 1]} : vector<8x512xf32> to vector<8x128xf32>
      %cst_31 = arith.constant 5.000000e-01 : f32
      %48 = vector.broadcast %cst_31 : f32 to vector<8x128xf32>
      %49 = arith.mulf %48, %47 : vector<8x128xf32>
      %50 = math.tanh %49 : vector<8x128xf32>
      %cst_32 = arith.constant 1.000000e+00 : f32
      %51 = vector.broadcast %cst_32 : f32 to vector<8x128xf32>
      %52 = arith.addf %50, %51 : vector<8x128xf32>
      %cst_33 = arith.constant 5.000000e-01 : f32
      %53 = vector.broadcast %cst_33 : f32 to vector<8x128xf32>
      %54 = arith.mulf %53, %52 : vector<8x128xf32>
      %55 = arith.mulf %44, %23 : vector<8x128xf32>
      %56 = arith.mulf %36, %46 : vector<8x128xf32>
      %57 = arith.addf %55, %56 : vector<8x128xf32>
      %58 = math.tanh %57 : vector<8x128xf32>
      %59 = arith.mulf %54, %58 : vector<8x128xf32>
      %60 = arith.index_cast %c0_i32_21 : i32 to index
      %c0_34 = arith.constant 0 : index
      %c0_35 = arith.constant 0 : index
      %61 = vector.load %arg8[%60, %c0_34, %c0_35] : memref<8x8x128xf32, #tpu.memory_space<vmem>>, vector<1x8x128xf32>
      %62 = vector.shape_cast %61 : vector<1x8x128xf32> to vector<8x128xf32>
      %63 = vector.shape_cast %59 : vector<8x128xf32> to vector<1x8x128xf32>
      tpu.vector_store %arg8[%60, %c0_34, %c0_35], %63 {strides = array<i32>} : memref<8x8x128xf32, #tpu.memory_space<vmem>>, vector<1x8x128xf32>,
      %c1_i32_36 = arith.constant 1 : i32
      %64 = arith.index_cast %c1_i32_36 : i32 to index
      %c0_37 = arith.constant 0 : index
      %c0_38 = arith.constant 0 : index
      %65 = vector.load %arg11[%64, %c0_37, %c0_38] : memref<8x8x512xf32, #tpu.memory_space<vmem>>, vector<1x8x512xf32>
      %66 = vector.shape_cast %65 : vector<1x8x512xf32> to vector<8x512xf32>
      %cst_39 = arith.constant dense<0.000000e+00> : vector<8x512xf32>
      %67 = tpu.matmul %59, %12, %cst_39 {dimension_numbers = #tpu.dot_dimension_numbers<[1], [0], [0], [1], [0, 0, 1, 1], [], []>} : vector<8x128xf32>, vector<128x512xf32>, vector<8x512xf32> -> vector<8x512xf32>
      %68 = arith.addf %66, %67 : vector<8x512xf32>
      %69 = vector.extract_strided_slice %68 {offsets = [0, 0], sizes = [8, 128], strides = [1, 1]} : vector<8x512xf32> to vector<8x128xf32>
      %cst_40 = arith.constant 5.000000e-01 : f32
      %70 = vector.broadcast %cst_40 : f32 to vector<8x128xf32>
      %71 = arith.mulf %70, %69 : vector<8x128xf32>
      %72 = math.tanh %71 : vector<8x128xf32>
      %cst_41 = arith.constant 1.000000e+00 : f32
      %73 = vector.broadcast %cst_41 : f32 to vector<8x128xf32>
      %74 = arith.addf %72, %73 : vector<8x128xf32>
      %cst_42 = arith.constant 5.000000e-01 : f32
      %75 = vector.broadcast %cst_42 : f32 to vector<8x128xf32>
      %76 = arith.mulf %75, %74 : vector<8x128xf32>
      %77 = vector.extract_strided_slice %68 {offsets = [0, 128], sizes = [8, 128], strides = [1, 1]} : vector<8x512xf32> to vector<8x128xf32>
      %cst_43 = arith.constant 5.000000e-01 : f32
      %78 = vector.broadcast %cst_43 : f32 to vector<8x128xf32>
      %79 = arith.mulf %78, %77 : vector<8x128xf32>
      %80 = math.tanh %79 : vector<8x128xf32>
      %cst_44 = arith.constant 1.000000e+00 : f32
      %81 = vector.broadcast %cst_44 : f32 to vector<8x128xf32>
      %82 = arith.addf %80, %81 : vector<8x128xf32>
      %cst_45 = arith.constant 5.000000e-01 : f32
      %83 = vector.broadcast %cst_45 : f32 to vector<8x128xf32>
      %84 = arith.mulf %83, %82 : vector<8x128xf32>
      %85 = vector.extract_strided_slice %68 {offsets = [0, 256], sizes = [8, 128], strides = [1, 1]} : vector<8x512xf32> to vector<8x128xf32>
      %86 = math.tanh %85 : vector<8x128xf32>
      %87 = vector.extract_strided_slice %68 {offsets = [0, 384], sizes = [8, 128], strides = [1, 1]} : vector<8x512xf32> to vector<8x128xf32>
      %cst_46 = arith.constant 5.000000e-01 : f32
      %88 = vector.broadcast %cst_46 : f32 to vector<8x128xf32>
      %89 = arith.mulf %88, %87 : vector<8x128xf32>
      %90 = math.tanh %89 : vector<8x128xf32>
      %cst_47 = arith.constant 1.000000e+00 : f32
      %91 = vector.broadcast %cst_47 : f32 to vector<8x128xf32>
      %92 = arith.addf %90, %91 : vector<8x128xf32>
      %cst_48 = arith.constant 5.000000e-01 : f32
      %93 = vector.broadcast %cst_48 : f32 to vector<8x128xf32>
      %94 = arith.mulf %93, %92 : vector<8x128xf32>
      %95 = arith.mulf %84, %57 : vector<8x128xf32>
      %96 = arith.mulf %76, %86 : vector<8x128xf32>
      %97 = arith.addf %95, %96 : vector<8x128xf32>
      %98 = math.tanh %97 : vector<8x128xf32>
      %99 = arith.mulf %94, %98 : vector<8x128xf32>
      %100 = arith.index_cast %c1_i32_36 : i32 to index
      %c0_49 = arith.constant 0 : index
      %c0_50 = arith.constant 0 : index
      %101 = vector.load %arg8[%100, %c0_49, %c0_50] : memref<8x8x128xf32, #tpu.memory_space<vmem>>, vector<1x8x128xf32>
      %102 = vector.shape_cast %101 : vector<1x8x128xf32> to vector<8x128xf32>
      %103 = vector.shape_cast %99 : vector<8x128xf32> to vector<1x8x128xf32>
      tpu.vector_store %arg8[%100, %c0_49, %c0_50], %103 {strides = array<i32>} : memref<8x8x128xf32, #tpu.memory_space<vmem>>, vector<1x8x128xf32>,
      %c2_i32 = arith.constant 2 : i32
      %104 = arith.index_cast %c2_i32 : i32 to index
      %c0_51 = arith.constant 0 : index
      %c0_52 = arith.constant 0 : index
      %105 = vector.load %arg11[%104, %c0_51, %c0_52] : memref<8x8x512xf32, #tpu.memory_space<vmem>>, vector<1x8x512xf32>
      %106 = vector.shape_cast %105 : vector<1x8x512xf32> to vector<8x512xf32>
      %cst_53 = arith.constant dense<0.000000e+00> : vector<8x512xf32>
      %107 = tpu.matmul %99, %12, %cst_53 {dimension_numbers = #tpu.dot_dimension_numbers<[1], [0], [0], [1], [0, 0, 1, 1], [], []>} : vector<8x128xf32>, vector<128x512xf32>, vector<8x512xf32> -> vector<8x512xf32>
      %108 = arith.addf %106, %107 : vector<8x512xf32>
      %109 = vector.extract_strided_slice %108 {offsets = [0, 0], sizes = [8, 128], strides = [1, 1]} : vector<8x512xf32> to vector<8x128xf32>
      %cst_54 = arith.constant 5.000000e-01 : f32
      %110 = vector.broadcast %cst_54 : f32 to vector<8x128xf32>
      %111 = arith.mulf %110, %109 : vector<8x128xf32>
      %112 = math.tanh %111 : vector<8x128xf32>
      %cst_55 = arith.constant 1.000000e+00 : f32
      %113 = vector.broadcast %cst_55 : f32 to vector<8x128xf32>
      %114 = arith.addf %112, %113 : vector<8x128xf32>
      %cst_56 = arith.constant 5.000000e-01 : f32
      %115 = vector.broadcast %cst_56 : f32 to vector<8x128xf32>
      %116 = arith.mulf %115, %114 : vector<8x128xf32>
      %117 = vector.extract_strided_slice %108 {offsets = [0, 128], sizes = [8, 128], strides = [1, 1]} : vector<8x512xf32> to vector<8x128xf32>
      %cst_57 = arith.constant 5.000000e-01 : f32
      %118 = vector.broadcast %cst_57 : f32 to vector<8x128xf32>
      %119 = arith.mulf %118, %117 : vector<8x128xf32>
      %120 = math.tanh %119 : vector<8x128xf32>
      %cst_58 = arith.constant 1.000000e+00 : f32
      %121 = vector.broadcast %cst_58 : f32 to vector<8x128xf32>
      %122 = arith.addf %120, %121 : vector<8x128xf32>
      %cst_59 = arith.constant 5.000000e-01 : f32
      %123 = vector.broadcast %cst_59 : f32 to vector<8x128xf32>
      %124 = arith.mulf %123, %122 : vector<8x128xf32>
      %125 = vector.extract_strided_slice %108 {offsets = [0, 256], sizes = [8, 128], strides = [1, 1]} : vector<8x512xf32> to vector<8x128xf32>
      %126 = math.tanh %125 : vector<8x128xf32>
      %127 = vector.extract_strided_slice %108 {offsets = [0, 384], sizes = [8, 128], strides = [1, 1]} : vector<8x512xf32> to vector<8x128xf32>
      %cst_60 = arith.constant 5.000000e-01 : f32
      %128 = vector.broadcast %cst_60 : f32 to vector<8x128xf32>
      %129 = arith.mulf %128, %127 : vector<8x128xf32>
      %130 = math.tanh %129 : vector<8x128xf32>
      %cst_61 = arith.constant 1.000000e+00 : f32
      %131 = vector.broadcast %cst_61 : f32 to vector<8x128xf32>
      %132 = arith.addf %130, %131 : vector<8x128xf32>
      %cst_62 = arith.constant 5.000000e-01 : f32
      %133 = vector.broadcast %cst_62 : f32 to vector<8x128xf32>
      %134 = arith.mulf %133, %132 : vector<8x128xf32>
      %135 = arith.mulf %124, %97 : vector<8x128xf32>
      %136 = arith.mulf %116, %126 : vector<8x128xf32>
      %137 = arith.addf %135, %136 : vector<8x128xf32>
      %138 = math.tanh %137 : vector<8x128xf32>
      %139 = arith.mulf %134, %138 : vector<8x128xf32>
      %140 = arith.index_cast %c2_i32 : i32 to index
      %c0_63 = arith.constant 0 : index
      %c0_64 = arith.constant 0 : index
      %141 = vector.load %arg8[%140, %c0_63, %c0_64] : memref<8x8x128xf32, #tpu.memory_space<vmem>>, vector<1x8x128xf32>
      %142 = vector.shape_cast %141 : vector<1x8x128xf32> to vector<8x128xf32>
      %143 = vector.shape_cast %139 : vector<8x128xf32> to vector<1x8x128xf32>
      tpu.vector_store %arg8[%140, %c0_63, %c0_64], %143 {strides = array<i32>} : memref<8x8x128xf32, #tpu.memory_space<vmem>>, vector<1x8x128xf32>,
      %c3_i32 = arith.constant 3 : i32
      %144 = arith.index_cast %c3_i32 : i32 to index
      %c0_65 = arith.constant 0 : index
      %c0_66 = arith.constant 0 : index
      %145 = vector.load %arg11[%144, %c0_65, %c0_66] : memref<8x8x512xf32, #tpu.memory_space<vmem>>, vector<1x8x512xf32>
      %146 = vector.shape_cast %145 : vector<1x8x512xf32> to vector<8x512xf32>
      %cst_67 = arith.constant dense<0.000000e+00> : vector<8x512xf32>
      %147 = tpu.matmul %139, %12, %cst_67 {dimension_numbers = #tpu.dot_dimension_numbers<[1], [0], [0], [1], [0, 0, 1, 1], [], []>} : vector<8x128xf32>, vector<128x512xf32>, vector<8x512xf32> -> vector<8x512xf32>
      %148 = arith.addf %146, %147 : vector<8x512xf32>
      %149 = vector.extract_strided_slice %148 {offsets = [0, 0], sizes = [8, 128], strides = [1, 1]} : vector<8x512xf32> to vector<8x128xf32>
      %cst_68 = arith.constant 5.000000e-01 : f32
      %150 = vector.broadcast %cst_68 : f32 to vector<8x128xf32>
      %151 = arith.mulf %150, %149 : vector<8x128xf32>
      %152 = math.tanh %151 : vector<8x128xf32>
      %cst_69 = arith.constant 1.000000e+00 : f32
      %153 = vector.broadcast %cst_69 : f32 to vector<8x128xf32>
      %154 = arith.addf %152, %153 : vector<8x128xf32>
      %cst_70 = arith.constant 5.000000e-01 : f32
      %155 = vector.broadcast %cst_70 : f32 to vector<8x128xf32>
      %156 = arith.mulf %155, %154 : vector<8x128xf32>
      %157 = vector.extract_strided_slice %148 {offsets = [0, 128], sizes = [8, 128], strides = [1, 1]} : vector<8x512xf32> to vector<8x128xf32>
      %cst_71 = arith.constant 5.000000e-01 : f32
      %158 = vector.broadcast %cst_71 : f32 to vector<8x128xf32>
      %159 = arith.mulf %158, %157 : vector<8x128xf32>
      %160 = math.tanh %159 : vector<8x128xf32>
      %cst_72 = arith.constant 1.000000e+00 : f32
      %161 = vector.broadcast %cst_72 : f32 to vector<8x128xf32>
      %162 = arith.addf %160, %161 : vector<8x128xf32>
      %cst_73 = arith.constant 5.000000e-01 : f32
      %163 = vector.broadcast %cst_73 : f32 to vector<8x128xf32>
      %164 = arith.mulf %163, %162 : vector<8x128xf32>
      %165 = vector.extract_strided_slice %148 {offsets = [0, 256], sizes = [8, 128], strides = [1, 1]} : vector<8x512xf32> to vector<8x128xf32>
      %166 = math.tanh %165 : vector<8x128xf32>
      %167 = vector.extract_strided_slice %148 {offsets = [0, 384], sizes = [8, 128], strides = [1, 1]} : vector<8x512xf32> to vector<8x128xf32>
      %cst_74 = arith.constant 5.000000e-01 : f32
      %168 = vector.broadcast %cst_74 : f32 to vector<8x128xf32>
      %169 = arith.mulf %168, %167 : vector<8x128xf32>
      %170 = math.tanh %169 : vector<8x128xf32>
      %cst_75 = arith.constant 1.000000e+00 : f32
      %171 = vector.broadcast %cst_75 : f32 to vector<8x128xf32>
      %172 = arith.addf %170, %171 : vector<8x128xf32>
      %cst_76 = arith.constant 5.000000e-01 : f32
      %173 = vector.broadcast %cst_76 : f32 to vector<8x128xf32>
      %174 = arith.mulf %173, %172 : vector<8x128xf32>
      %175 = arith.mulf %164, %137 : vector<8x128xf32>
      %176 = arith.mulf %156, %166 : vector<8x128xf32>
      %177 = arith.addf %175, %176 : vector<8x128xf32>
      %178 = math.tanh %177 : vector<8x128xf32>
      %179 = arith.mulf %174, %178 : vector<8x128xf32>
      %180 = arith.index_cast %c3_i32 : i32 to index
      %c0_77 = arith.constant 0 : index
      %c0_78 = arith.constant 0 : index
      %181 = vector.load %arg8[%180, %c0_77, %c0_78] : memref<8x8x128xf32, #tpu.memory_space<vmem>>, vector<1x8x128xf32>
      %182 = vector.shape_cast %181 : vector<1x8x128xf32> to vector<8x128xf32>
      %183 = vector.shape_cast %179 : vector<8x128xf32> to vector<1x8x128xf32>
      tpu.vector_store %arg8[%180, %c0_77, %c0_78], %183 {strides = array<i32>} : memref<8x8x128xf32, #tpu.memory_space<vmem>>, vector<1x8x128xf32>,
      %c4_i32 = arith.constant 4 : i32
      %184 = arith.index_cast %c4_i32 : i32 to index
      %c0_79 = arith.constant 0 : index
      %c0_80 = arith.constant 0 : index
      %185 = vector.load %arg11[%184, %c0_79, %c0_80] : memref<8x8x512xf32, #tpu.memory_space<vmem>>, vector<1x8x512xf32>
      %186 = vector.shape_cast %185 : vector<1x8x512xf32> to vector<8x512xf32>
      %cst_81 = arith.constant dense<0.000000e+00> : vector<8x512xf32>
      %187 = tpu.matmul %179, %12, %cst_81 {dimension_numbers = #tpu.dot_dimension_numbers<[1], [0], [0], [1], [0, 0, 1, 1], [], []>} : vector<8x128xf32>, vector<128x512xf32>, vector<8x512xf32> -> vector<8x512xf32>
      %188 = arith.addf %186, %187 : vector<8x512xf32>
      %189 = vector.extract_strided_slice %188 {offsets = [0, 0], sizes = [8, 128], strides = [1, 1]} : vector<8x512xf32> to vector<8x128xf32>
      %cst_82 = arith.constant 5.000000e-01 : f32
      %190 = vector.broadcast %cst_82 : f32 to vector<8x128xf32>
      %191 = arith.mulf %190, %189 : vector<8x128xf32>
      %192 = math.tanh %191 : vector<8x128xf32>
      %cst_83 = arith.constant 1.000000e+00 : f32
      %193 = vector.broadcast %cst_83 : f32 to vector<8x128xf32>
      %194 = arith.addf %192, %193 : vector<8x128xf32>
      %cst_84 = arith.constant 5.000000e-01 : f32
      %195 = vector.broadcast %cst_84 : f32 to vector<8x128xf32>
      %196 = arith.mulf %195, %194 : vector<8x128xf32>
      %197 = vector.extract_strided_slice %188 {offsets = [0, 128], sizes = [8, 128], strides = [1, 1]} : vector<8x512xf32> to vector<8x128xf32>
      %cst_85 = arith.constant 5.000000e-01 : f32
      %198 = vector.broadcast %cst_85 : f32 to vector<8x128xf32>
      %199 = arith.mulf %198, %197 : vector<8x128xf32>
      %200 = math.tanh %199 : vector<8x128xf32>
      %cst_86 = arith.constant 1.000000e+00 : f32
      %201 = vector.broadcast %cst_86 : f32 to vector<8x128xf32>
      %202 = arith.addf %200, %201 : vector<8x128xf32>
      %cst_87 = arith.constant 5.000000e-01 : f32
      %203 = vector.broadcast %cst_87 : f32 to vector<8x128xf32>
      %204 = arith.mulf %203, %202 : vector<8x128xf32>
      %205 = vector.extract_strided_slice %188 {offsets = [0, 256], sizes = [8, 128], strides = [1, 1]} : vector<8x512xf32> to vector<8x128xf32>
      %206 = math.tanh %205 : vector<8x128xf32>
      %207 = vector.extract_strided_slice %188 {offsets = [0, 384], sizes = [8, 128], strides = [1, 1]} : vector<8x512xf32> to vector<8x128xf32>
      %cst_88 = arith.constant 5.000000e-01 : f32
      %208 = vector.broadcast %cst_88 : f32 to vector<8x128xf32>
      %209 = arith.mulf %208, %207 : vector<8x128xf32>
      %210 = math.tanh %209 : vector<8x128xf32>
      %cst_89 = arith.constant 1.000000e+00 : f32
      %211 = vector.broadcast %cst_89 : f32 to vector<8x128xf32>
      %212 = arith.addf %210, %211 : vector<8x128xf32>
      %cst_90 = arith.constant 5.000000e-01 : f32
      %213 = vector.broadcast %cst_90 : f32 to vector<8x128xf32>
      %214 = arith.mulf %213, %212 : vector<8x128xf32>
      %215 = arith.mulf %204, %177 : vector<8x128xf32>
      %216 = arith.mulf %196, %206 : vector<8x128xf32>
      %217 = arith.addf %215, %216 : vector<8x128xf32>
      %218 = math.tanh %217 : vector<8x128xf32>
      %219 = arith.mulf %214, %218 : vector<8x128xf32>
      %220 = arith.index_cast %c4_i32 : i32 to index
      %c0_91 = arith.constant 0 : index
      %c0_92 = arith.constant 0 : index
      %221 = vector.load %arg8[%220, %c0_91, %c0_92] : memref<8x8x128xf32, #tpu.memory_space<vmem>>, vector<1x8x128xf32>
      %222 = vector.shape_cast %221 : vector<1x8x128xf32> to vector<8x128xf32>
      %223 = vector.shape_cast %219 : vector<8x128xf32> to vector<1x8x128xf32>
      tpu.vector_store %arg8[%220, %c0_91, %c0_92], %223 {strides = array<i32>} : memref<8x8x128xf32, #tpu.memory_space<vmem>>, vector<1x8x128xf32>,
      %c5_i32 = arith.constant 5 : i32
      %224 = arith.index_cast %c5_i32 : i32 to index
      %c0_93 = arith.constant 0 : index
      %c0_94 = arith.constant 0 : index
      %225 = vector.load %arg11[%224, %c0_93, %c0_94] : memref<8x8x512xf32, #tpu.memory_space<vmem>>, vector<1x8x512xf32>
      %226 = vector.shape_cast %225 : vector<1x8x512xf32> to vector<8x512xf32>
      %cst_95 = arith.constant dense<0.000000e+00> : vector<8x512xf32>
      %227 = tpu.matmul %219, %12, %cst_95 {dimension_numbers = #tpu.dot_dimension_numbers<[1], [0], [0], [1], [0, 0, 1, 1], [], []>} : vector<8x128xf32>, vector<128x512xf32>, vector<8x512xf32> -> vector<8x512xf32>
      %228 = arith.addf %226, %227 : vector<8x512xf32>
      %229 = vector.extract_strided_slice %228 {offsets = [0, 0], sizes = [8, 128], strides = [1, 1]} : vector<8x512xf32> to vector<8x128xf32>
      %cst_96 = arith.constant 5.000000e-01 : f32
      %230 = vector.broadcast %cst_96 : f32 to vector<8x128xf32>
      %231 = arith.mulf %230, %229 : vector<8x128xf32>
      %232 = math.tanh %231 : vector<8x128xf32>
      %cst_97 = arith.constant 1.000000e+00 : f32
      %233 = vector.broadcast %cst_97 : f32 to vector<8x128xf32>
      %234 = arith.addf %232, %233 : vector<8x128xf32>
      %cst_98 = arith.constant 5.000000e-01 : f32
      %235 = vector.broadcast %cst_98 : f32 to vector<8x128xf32>
      %236 = arith.mulf %235, %234 : vector<8x128xf32>
      %237 = vector.extract_strided_slice %228 {offsets = [0, 128], sizes = [8, 128], strides = [1, 1]} : vector<8x512xf32> to vector<8x128xf32>
      %cst_99 = arith.constant 5.000000e-01 : f32
      %238 = vector.broadcast %cst_99 : f32 to vector<8x128xf32>
      %239 = arith.mulf %238, %237 : vector<8x128xf32>
      %240 = math.tanh %239 : vector<8x128xf32>
      %cst_100 = arith.constant 1.000000e+00 : f32
      %241 = vector.broadcast %cst_100 : f32 to vector<8x128xf32>
      %242 = arith.addf %240, %241 : vector<8x128xf32>
      %cst_101 = arith.constant 5.000000e-01 : f32
      %243 = vector.broadcast %cst_101 : f32 to vector<8x128xf32>
      %244 = arith.mulf %243, %242 : vector<8x128xf32>
      %245 = vector.extract_strided_slice %228 {offsets = [0, 256], sizes = [8, 128], strides = [1, 1]} : vector<8x512xf32> to vector<8x128xf32>
      %246 = math.tanh %245 : vector<8x128xf32>
      %247 = vector.extract_strided_slice %228 {offsets = [0, 384], sizes = [8, 128], strides = [1, 1]} : vector<8x512xf32> to vector<8x128xf32>
      %cst_102 = arith.constant 5.000000e-01 : f32
      %248 = vector.broadcast %cst_102 : f32 to vector<8x128xf32>
      %249 = arith.mulf %248, %247 : vector<8x128xf32>
      %250 = math.tanh %249 : vector<8x128xf32>
      %cst_103 = arith.constant 1.000000e+00 : f32
      %251 = vector.broadcast %cst_103 : f32 to vector<8x128xf32>
      %252 = arith.addf %250, %251 : vector<8x128xf32>
      %cst_104 = arith.constant 5.000000e-01 : f32
      %253 = vector.broadcast %cst_104 : f32 to vector<8x128xf32>
      %254 = arith.mulf %253, %252 : vector<8x128xf32>
      %255 = arith.mulf %244, %217 : vector<8x128xf32>
      %256 = arith.mulf %236, %246 : vector<8x128xf32>
      %257 = arith.addf %255, %256 : vector<8x128xf32>
      %258 = math.tanh %257 : vector<8x128xf32>
      %259 = arith.mulf %254, %258 : vector<8x128xf32>
      %260 = arith.index_cast %c5_i32 : i32 to index
      %c0_105 = arith.constant 0 : index
      %c0_106 = arith.constant 0 : index
      %261 = vector.load %arg8[%260, %c0_105, %c0_106] : memref<8x8x128xf32, #tpu.memory_space<vmem>>, vector<1x8x128xf32>
      %262 = vector.shape_cast %261 : vector<1x8x128xf32> to vector<8x128xf32>
      %263 = vector.shape_cast %259 : vector<8x128xf32> to vector<1x8x128xf32>
      tpu.vector_store %arg8[%260, %c0_105, %c0_106], %263 {strides = array<i32>} : memref<8x8x128xf32, #tpu.memory_space<vmem>>, vector<1x8x128xf32>,
      %c6_i32 = arith.constant 6 : i32
      %264 = arith.index_cast %c6_i32 : i32 to index
      %c0_107 = arith.constant 0 : index
      %c0_108 = arith.constant 0 : index
      %265 = vector.load %arg11[%264, %c0_107, %c0_108] : memref<8x8x512xf32, #tpu.memory_space<vmem>>, vector<1x8x512xf32>
      %266 = vector.shape_cast %265 : vector<1x8x512xf32> to vector<8x512xf32>
      %cst_109 = arith.constant dense<0.000000e+00> : vector<8x512xf32>
      %267 = tpu.matmul %259, %12, %cst_109 {dimension_numbers = #tpu.dot_dimension_numbers<[1], [0], [0], [1], [0, 0, 1, 1], [], []>} : vector<8x128xf32>, vector<128x512xf32>, vector<8x512xf32> -> vector<8x512xf32>
      %268 = arith.addf %266, %267 : vector<8x512xf32>
      %269 = vector.extract_strided_slice %268 {offsets = [0, 0], sizes = [8, 128], strides = [1, 1]} : vector<8x512xf32> to vector<8x128xf32>
      %cst_110 = arith.constant 5.000000e-01 : f32
      %270 = vector.broadcast %cst_110 : f32 to vector<8x128xf32>
      %271 = arith.mulf %270, %269 : vector<8x128xf32>
      %272 = math.tanh %271 : vector<8x128xf32>
      %cst_111 = arith.constant 1.000000e+00 : f32
      %273 = vector.broadcast %cst_111 : f32 to vector<8x128xf32>
      %274 = arith.addf %272, %273 : vector<8x128xf32>
      %cst_112 = arith.constant 5.000000e-01 : f32
      %275 = vector.broadcast %cst_112 : f32 to vector<8x128xf32>
      %276 = arith.mulf %275, %274 : vector<8x128xf32>
      %277 = vector.extract_strided_slice %268 {offsets = [0, 128], sizes = [8, 128], strides = [1, 1]} : vector<8x512xf32> to vector<8x128xf32>
      %cst_113 = arith.constant 5.000000e-01 : f32
      %278 = vector.broadcast %cst_113 : f32 to vector<8x128xf32>
      %279 = arith.mulf %278, %277 : vector<8x128xf32>
      %280 = math.tanh %279 : vector<8x128xf32>
      %cst_114 = arith.constant 1.000000e+00 : f32
      %281 = vector.broadcast %cst_114 : f32 to vector<8x128xf32>
      %282 = arith.addf %280, %281 : vector<8x128xf32>
      %cst_115 = arith.constant 5.000000e-01 : f32
      %283 = vector.broadcast %cst_115 : f32 to vector<8x128xf32>
      %284 = arith.mulf %283, %282 : vector<8x128xf32>
      %285 = vector.extract_strided_slice %268 {offsets = [0, 256], sizes = [8, 128], strides = [1, 1]} : vector<8x512xf32> to vector<8x128xf32>
      %286 = math.tanh %285 : vector<8x128xf32>
      %287 = vector.extract_strided_slice %268 {offsets = [0, 384], sizes = [8, 128], strides = [1, 1]} : vector<8x512xf32> to vector<8x128xf32>
      %cst_116 = arith.constant 5.000000e-01 : f32
      %288 = vector.broadcast %cst_116 : f32 to vector<8x128xf32>
      %289 = arith.mulf %288, %287 : vector<8x128xf32>
      %290 = math.tanh %289 : vector<8x128xf32>
      %cst_117 = arith.constant 1.000000e+00 : f32
      %291 = vector.broadcast %cst_117 : f32 to vector<8x128xf32>
      %292 = arith.addf %290, %291 : vector<8x128xf32>
      %cst_118 = arith.constant 5.000000e-01 : f32
      %293 = vector.broadcast %cst_118 : f32 to vector<8x128xf32>
      %294 = arith.mulf %293, %292 : vector<8x128xf32>
      %295 = arith.mulf %284, %257 : vector<8x128xf32>
      %296 = arith.mulf %276, %286 : vector<8x128xf32>
      %297 = arith.addf %295, %296 : vector<8x128xf32>
      %298 = math.tanh %297 : vector<8x128xf32>
      %299 = arith.mulf %294, %298 : vector<8x128xf32>
      %300 = arith.index_cast %c6_i32 : i32 to index
      %c0_119 = arith.constant 0 : index
      %c0_120 = arith.constant 0 : index
      %301 = vector.load %arg8[%300, %c0_119, %c0_120] : memref<8x8x128xf32, #tpu.memory_space<vmem>>, vector<1x8x128xf32>
      %302 = vector.shape_cast %301 : vector<1x8x128xf32> to vector<8x128xf32>
      %303 = vector.shape_cast %299 : vector<8x128xf32> to vector<1x8x128xf32>
      tpu.vector_store %arg8[%300, %c0_119, %c0_120], %303 {strides = array<i32>} : memref<8x8x128xf32, #tpu.memory_space<vmem>>, vector<1x8x128xf32>,
      %c7_i32 = arith.constant 7 : i32
      %304 = arith.index_cast %c7_i32 : i32 to index
      %c0_121 = arith.constant 0 : index
      %c0_122 = arith.constant 0 : index
      %305 = vector.load %arg11[%304, %c0_121, %c0_122] : memref<8x8x512xf32, #tpu.memory_space<vmem>>, vector<1x8x512xf32>
      %306 = vector.shape_cast %305 : vector<1x8x512xf32> to vector<8x512xf32>
      %cst_123 = arith.constant dense<0.000000e+00> : vector<8x512xf32>
      %307 = tpu.matmul %299, %12, %cst_123 {dimension_numbers = #tpu.dot_dimension_numbers<[1], [0], [0], [1], [0, 0, 1, 1], [], []>} : vector<8x128xf32>, vector<128x512xf32>, vector<8x512xf32> -> vector<8x512xf32>
      %308 = arith.addf %306, %307 : vector<8x512xf32>
      %309 = vector.extract_strided_slice %308 {offsets = [0, 0], sizes = [8, 128], strides = [1, 1]} : vector<8x512xf32> to vector<8x128xf32>
      %cst_124 = arith.constant 5.000000e-01 : f32
      %310 = vector.broadcast %cst_124 : f32 to vector<8x128xf32>
      %311 = arith.mulf %310, %309 : vector<8x128xf32>
      %312 = math.tanh %311 : vector<8x128xf32>
      %cst_125 = arith.constant 1.000000e+00 : f32
      %313 = vector.broadcast %cst_125 : f32 to vector<8x128xf32>
      %314 = arith.addf %312, %313 : vector<8x128xf32>
      %cst_126 = arith.constant 5.000000e-01 : f32
      %315 = vector.broadcast %cst_126 : f32 to vector<8x128xf32>
      %316 = arith.mulf %315, %314 : vector<8x128xf32>
      %317 = vector.extract_strided_slice %308 {offsets = [0, 128], sizes = [8, 128], strides = [1, 1]} : vector<8x512xf32> to vector<8x128xf32>
      %cst_127 = arith.constant 5.000000e-01 : f32
      %318 = vector.broadcast %cst_127 : f32 to vector<8x128xf32>
      %319 = arith.mulf %318, %317 : vector<8x128xf32>
      %320 = math.tanh %319 : vector<8x128xf32>
      %cst_128 = arith.constant 1.000000e+00 : f32
      %321 = vector.broadcast %cst_128 : f32 to vector<8x128xf32>
      %322 = arith.addf %320, %321 : vector<8x128xf32>
      %cst_129 = arith.constant 5.000000e-01 : f32
      %323 = vector.broadcast %cst_129 : f32 to vector<8x128xf32>
      %324 = arith.mulf %323, %322 : vector<8x128xf32>
      %325 = vector.extract_strided_slice %308 {offsets = [0, 256], sizes = [8, 128], strides = [1, 1]} : vector<8x512xf32> to vector<8x128xf32>
      %326 = math.tanh %325 : vector<8x128xf32>
      %327 = vector.extract_strided_slice %308 {offsets = [0, 384], sizes = [8, 128], strides = [1, 1]} : vector<8x512xf32> to vector<8x128xf32>
      %cst_130 = arith.constant 5.000000e-01 : f32
      %328 = vector.broadcast %cst_130 : f32 to vector<8x128xf32>
      %329 = arith.mulf %328, %327 : vector<8x128xf32>
      %330 = math.tanh %329 : vector<8x128xf32>
      %cst_131 = arith.constant 1.000000e+00 : f32
      %331 = vector.broadcast %cst_131 : f32 to vector<8x128xf32>
      %332 = arith.addf %330, %331 : vector<8x128xf32>
      %cst_132 = arith.constant 5.000000e-01 : f32
      %333 = vector.broadcast %cst_132 : f32 to vector<8x128xf32>
      %334 = arith.mulf %333, %332 : vector<8x128xf32>
      %335 = arith.mulf %324, %297 : vector<8x128xf32>
      %336 = arith.mulf %316, %326 : vector<8x128xf32>
      %337 = arith.addf %335, %336 : vector<8x128xf32>
      %338 = math.tanh %337 : vector<8x128xf32>
      %339 = arith.mulf %334, %338 : vector<8x128xf32>
      %340 = arith.index_cast %c7_i32 : i32 to index
      %c0_133 = arith.constant 0 : index
      %c0_134 = arith.constant 0 : index
      %341 = vector.load %arg8[%340, %c0_133, %c0_134] : memref<8x8x128xf32, #tpu.memory_space<vmem>>, vector<1x8x128xf32>
      %342 = vector.shape_cast %341 : vector<1x8x128xf32> to vector<8x128xf32>
      %343 = vector.shape_cast %339 : vector<8x128xf32> to vector<1x8x128xf32>
      tpu.vector_store %arg8[%340, %c0_133, %c0_134], %343 {strides = array<i32>} : memref<8x8x128xf32, #tpu.memory_space<vmem>>, vector<1x8x128xf32>,
      %c8_i32 = arith.constant 8 : i32
      %c0_135 = arith.constant 0 : index
      %c0_136 = arith.constant 0 : index
      %344 = vector.load %arg12[%c0_135, %c0_136] : memref<8x128xf32, #tpu.memory_space<vmem>>, vector<8x128xf32>
      tpu.vector_store %arg12[%c0_135, %c0_136], %339 {strides = array<i32>} : memref<8x128xf32, #tpu.memory_space<vmem>>, vector<8x128xf32>,
      %c0_137 = arith.constant 0 : index
      %c0_138 = arith.constant 0 : index
      %345 = vector.load %arg13[%c0_137, %c0_138] : memref<8x128xf32, #tpu.memory_space<vmem>>, vector<8x128xf32>
      tpu.vector_store %arg13[%c0_137, %c0_138], %337 {strides = array<i32>} : memref<8x128xf32, #tpu.memory_space<vmem>>, vector<8x128xf32>,
    } else {
    }
    %17 = arith.extui %13 : i1 to i32
    %c0_i32_14 = arith.constant 0 : i32
    %18 = arith.cmpi ne, %17, %c0_i32_14 : i32
    scf.if %18 {
      %c0_17 = arith.constant 0 : index
      %c0_18 = arith.constant 0 : index
      %22 = vector.load %arg12[%c0_17, %c0_18] : memref<8x128xf32, #tpu.memory_space<vmem>>, vector<8x128xf32>
      %c0_19 = arith.constant 0 : index
      %c0_20 = arith.constant 0 : index
      %23 = vector.load %arg13[%c0_19, %c0_20] : memref<8x128xf32, #tpu.memory_space<vmem>>, vector<8x128xf32>
      %c0_i32_21 = arith.constant 0 : i32
      %24 = arith.index_cast %c0_i32_21 : i32 to index
      %c0_22 = arith.constant 0 : index
      %c0_23 = arith.constant 0 : index
      %25 = vector.load %arg11[%24, %c0_22, %c0_23] : memref<8x8x512xf32, #tpu.memory_space<vmem>>, vector<1x8x512xf32>
      %26 = vector.shape_cast %25 : vector<1x8x512xf32> to vector<8x512xf32>
      %cst_24 = arith.constant dense<0.000000e+00> : vector<8x512xf32>
      %27 = tpu.matmul %22, %12, %cst_24 {dimension_numbers = #tpu.dot_dimension_numbers<[1], [0], [0], [1], [0, 0, 1, 1], [], []>} : vector<8x128xf32>, vector<128x512xf32>, vector<8x512xf32> -> vector<8x512xf32>
      %28 = arith.addf %26, %27 : vector<8x512xf32>
      %29 = vector.extract_strided_slice %28 {offsets = [0, 0], sizes = [8, 128], strides = [1, 1]} : vector<8x512xf32> to vector<8x128xf32>
      %cst_25 = arith.constant 5.000000e-01 : f32
      %30 = vector.broadcast %cst_25 : f32 to vector<8x128xf32>
      %31 = arith.mulf %30, %29 : vector<8x128xf32>
      %32 = math.tanh %31 : vector<8x128xf32>
      %cst_26 = arith.constant 1.000000e+00 : f32
      %33 = vector.broadcast %cst_26 : f32 to vector<8x128xf32>
      %34 = arith.addf %32, %33 : vector<8x128xf32>
      %cst_27 = arith.constant 5.000000e-01 : f32
      %35 = vector.broadcast %cst_27 : f32 to vector<8x128xf32>
      %36 = arith.mulf %35, %34 : vector<8x128xf32>
      %37 = vector.extract_strided_slice %28 {offsets = [0, 128], sizes = [8, 128], strides = [1, 1]} : vector<8x512xf32> to vector<8x128xf32>
      %cst_28 = arith.constant 5.000000e-01 : f32
      %38 = vector.broadcast %cst_28 : f32 to vector<8x128xf32>
      %39 = arith.mulf %38, %37 : vector<8x128xf32>
      %40 = math.tanh %39 : vector<8x128xf32>
      %cst_29 = arith.constant 1.000000e+00 : f32
      %41 = vector.broadcast %cst_29 : f32 to vector<8x128xf32>
      %42 = arith.addf %40, %41 : vector<8x128xf32>
      %cst_30 = arith.constant 5.000000e-01 : f32
      %43 = vector.broadcast %cst_30 : f32 to vector<8x128xf32>
      %44 = arith.mulf %43, %42 : vector<8x128xf32>
      %45 = vector.extract_strided_slice %28 {offsets = [0, 256], sizes = [8, 128], strides = [1, 1]} : vector<8x512xf32> to vector<8x128xf32>
      %46 = math.tanh %45 : vector<8x128xf32>
      %47 = vector.extract_strided_slice %28 {offsets = [0, 384], sizes = [8, 128], strides = [1, 1]} : vector<8x512xf32> to vector<8x128xf32>
      %cst_31 = arith.constant 5.000000e-01 : f32
      %48 = vector.broadcast %cst_31 : f32 to vector<8x128xf32>
      %49 = arith.mulf %48, %47 : vector<8x128xf32>
      %50 = math.tanh %49 : vector<8x128xf32>
      %cst_32 = arith.constant 1.000000e+00 : f32
      %51 = vector.broadcast %cst_32 : f32 to vector<8x128xf32>
      %52 = arith.addf %50, %51 : vector<8x128xf32>
      %cst_33 = arith.constant 5.000000e-01 : f32
      %53 = vector.broadcast %cst_33 : f32 to vector<8x128xf32>
      %54 = arith.mulf %53, %52 : vector<8x128xf32>
      %55 = arith.mulf %44, %23 : vector<8x128xf32>
      %56 = arith.mulf %36, %46 : vector<8x128xf32>
      %57 = arith.addf %55, %56 : vector<8x128xf32>
      %58 = math.tanh %57 : vector<8x128xf32>
      %59 = arith.mulf %54, %58 : vector<8x128xf32>
      %60 = arith.index_cast %c0_i32_21 : i32 to index
      %c0_34 = arith.constant 0 : index
      %c0_35 = arith.constant 0 : index
      %61 = vector.load %arg8[%60, %c0_34, %c0_35] : memref<8x8x128xf32, #tpu.memory_space<vmem>>, vector<1x8x128xf32>
      %62 = vector.shape_cast %61 : vector<1x8x128xf32> to vector<8x128xf32>
      %63 = vector.shape_cast %59 : vector<8x128xf32> to vector<1x8x128xf32>
      tpu.vector_store %arg8[%60, %c0_34, %c0_35], %63 {strides = array<i32>} : memref<8x8x128xf32, #tpu.memory_space<vmem>>, vector<1x8x128xf32>,
      %c1_i32_36 = arith.constant 1 : i32
      %64 = arith.index_cast %c1_i32_36 : i32 to index
      %c0_37 = arith.constant 0 : index
      %c0_38 = arith.constant 0 : index
      %65 = vector.load %arg11[%64, %c0_37, %c0_38] : memref<8x8x512xf32, #tpu.memory_space<vmem>>, vector<1x8x512xf32>
      %66 = vector.shape_cast %65 : vector<1x8x512xf32> to vector<8x512xf32>
      %cst_39 = arith.constant dense<0.000000e+00> : vector<8x512xf32>
      %67 = tpu.matmul %59, %12, %cst_39 {dimension_numbers = #tpu.dot_dimension_numbers<[1], [0], [0], [1], [0, 0, 1, 1], [], []>} : vector<8x128xf32>, vector<128x512xf32>, vector<8x512xf32> -> vector<8x512xf32>
      %68 = arith.addf %66, %67 : vector<8x512xf32>
      %69 = vector.extract_strided_slice %68 {offsets = [0, 0], sizes = [8, 128], strides = [1, 1]} : vector<8x512xf32> to vector<8x128xf32>
      %cst_40 = arith.constant 5.000000e-01 : f32
      %70 = vector.broadcast %cst_40 : f32 to vector<8x128xf32>
      %71 = arith.mulf %70, %69 : vector<8x128xf32>
      %72 = math.tanh %71 : vector<8x128xf32>
      %cst_41 = arith.constant 1.000000e+00 : f32
      %73 = vector.broadcast %cst_41 : f32 to vector<8x128xf32>
      %74 = arith.addf %72, %73 : vector<8x128xf32>
      %cst_42 = arith.constant 5.000000e-01 : f32
      %75 = vector.broadcast %cst_42 : f32 to vector<8x128xf32>
      %76 = arith.mulf %75, %74 : vector<8x128xf32>
      %77 = vector.extract_strided_slice %68 {offsets = [0, 128], sizes = [8, 128], strides = [1, 1]} : vector<8x512xf32> to vector<8x128xf32>
      %cst_43 = arith.constant 5.000000e-01 : f32
      %78 = vector.broadcast %cst_43 : f32 to vector<8x128xf32>
      %79 = arith.mulf %78, %77 : vector<8x128xf32>
      %80 = math.tanh %79 : vector<8x128xf32>
      %cst_44 = arith.constant 1.000000e+00 : f32
      %81 = vector.broadcast %cst_44 : f32 to vector<8x128xf32>
      %82 = arith.addf %80, %81 : vector<8x128xf32>
      %cst_45 = arith.constant 5.000000e-01 : f32
      %83 = vector.broadcast %cst_45 : f32 to vector<8x128xf32>
      %84 = arith.mulf %83, %82 : vector<8x128xf32>
      %85 = vector.extract_strided_slice %68 {offsets = [0, 256], sizes = [8, 128], strides = [1, 1]} : vector<8x512xf32> to vector<8x128xf32>
      %86 = math.tanh %85 : vector<8x128xf32>
      %87 = vector.extract_strided_slice %68 {offsets = [0, 384], sizes = [8, 128], strides = [1, 1]} : vector<8x512xf32> to vector<8x128xf32>
      %cst_46 = arith.constant 5.000000e-01 : f32
      %88 = vector.broadcast %cst_46 : f32 to vector<8x128xf32>
      %89 = arith.mulf %88, %87 : vector<8x128xf32>
      %90 = math.tanh %89 : vector<8x128xf32>
      %cst_47 = arith.constant 1.000000e+00 : f32
      %91 = vector.broadcast %cst_47 : f32 to vector<8x128xf32>
      %92 = arith.addf %90, %91 : vector<8x128xf32>
      %cst_48 = arith.constant 5.000000e-01 : f32
      %93 = vector.broadcast %cst_48 : f32 to vector<8x128xf32>
      %94 = arith.mulf %93, %92 : vector<8x128xf32>
      %95 = arith.mulf %84, %57 : vector<8x128xf32>
      %96 = arith.mulf %76, %86 : vector<8x128xf32>
      %97 = arith.addf %95, %96 : vector<8x128xf32>
      %98 = math.tanh %97 : vector<8x128xf32>
      %99 = arith.mulf %94, %98 : vector<8x128xf32>
      %100 = arith.index_cast %c1_i32_36 : i32 to index
      %c0_49 = arith.constant 0 : index
      %c0_50 = arith.constant 0 : index
      %101 = vector.load %arg8[%100, %c0_49, %c0_50] : memref<8x8x128xf32, #tpu.memory_space<vmem>>, vector<1x8x128xf32>
      %102 = vector.shape_cast %101 : vector<1x8x128xf32> to vector<8x128xf32>
      %103 = vector.shape_cast %99 : vector<8x128xf32> to vector<1x8x128xf32>
      tpu.vector_store %arg8[%100, %c0_49, %c0_50], %103 {strides = array<i32>} : memref<8x8x128xf32, #tpu.memory_space<vmem>>, vector<1x8x128xf32>,
      %c2_i32 = arith.constant 2 : i32
      %104 = arith.index_cast %c2_i32 : i32 to index
      %c0_51 = arith.constant 0 : index
      %c0_52 = arith.constant 0 : index
      %105 = vector.load %arg11[%104, %c0_51, %c0_52] : memref<8x8x512xf32, #tpu.memory_space<vmem>>, vector<1x8x512xf32>
      %106 = vector.shape_cast %105 : vector<1x8x512xf32> to vector<8x512xf32>
      %cst_53 = arith.constant dense<0.000000e+00> : vector<8x512xf32>
      %107 = tpu.matmul %99, %12, %cst_53 {dimension_numbers = #tpu.dot_dimension_numbers<[1], [0], [0], [1], [0, 0, 1, 1], [], []>} : vector<8x128xf32>, vector<128x512xf32>, vector<8x512xf32> -> vector<8x512xf32>
      %108 = arith.addf %106, %107 : vector<8x512xf32>
      %109 = vector.extract_strided_slice %108 {offsets = [0, 0], sizes = [8, 128], strides = [1, 1]} : vector<8x512xf32> to vector<8x128xf32>
      %cst_54 = arith.constant 5.000000e-01 : f32
      %110 = vector.broadcast %cst_54 : f32 to vector<8x128xf32>
      %111 = arith.mulf %110, %109 : vector<8x128xf32>
      %112 = math.tanh %111 : vector<8x128xf32>
      %cst_55 = arith.constant 1.000000e+00 : f32
      %113 = vector.broadcast %cst_55 : f32 to vector<8x128xf32>
      %114 = arith.addf %112, %113 : vector<8x128xf32>
      %cst_56 = arith.constant 5.000000e-01 : f32
      %115 = vector.broadcast %cst_56 : f32 to vector<8x128xf32>
      %116 = arith.mulf %115, %114 : vector<8x128xf32>
      %117 = vector.extract_strided_slice %108 {offsets = [0, 128], sizes = [8, 128], strides = [1, 1]} : vector<8x512xf32> to vector<8x128xf32>
      %cst_57 = arith.constant 5.000000e-01 : f32
      %118 = vector.broadcast %cst_57 : f32 to vector<8x128xf32>
      %119 = arith.mulf %118, %117 : vector<8x128xf32>
      %120 = math.tanh %119 : vector<8x128xf32>
      %cst_58 = arith.constant 1.000000e+00 : f32
      %121 = vector.broadcast %cst_58 : f32 to vector<8x128xf32>
      %122 = arith.addf %120, %121 : vector<8x128xf32>
      %cst_59 = arith.constant 5.000000e-01 : f32
      %123 = vector.broadcast %cst_59 : f32 to vector<8x128xf32>
      %124 = arith.mulf %123, %122 : vector<8x128xf32>
      %125 = vector.extract_strided_slice %108 {offsets = [0, 256], sizes = [8, 128], strides = [1, 1]} : vector<8x512xf32> to vector<8x128xf32>
      %126 = math.tanh %125 : vector<8x128xf32>
      %127 = vector.extract_strided_slice %108 {offsets = [0, 384], sizes = [8, 128], strides = [1, 1]} : vector<8x512xf32> to vector<8x128xf32>
      %cst_60 = arith.constant 5.000000e-01 : f32
      %128 = vector.broadcast %cst_60 : f32 to vector<8x128xf32>
      %129 = arith.mulf %128, %127 : vector<8x128xf32>
      %130 = math.tanh %129 : vector<8x128xf32>
      %cst_61 = arith.constant 1.000000e+00 : f32
      %131 = vector.broadcast %cst_61 : f32 to vector<8x128xf32>
      %132 = arith.addf %130, %131 : vector<8x128xf32>
      %cst_62 = arith.constant 5.000000e-01 : f32
      %133 = vector.broadcast %cst_62 : f32 to vector<8x128xf32>
      %134 = arith.mulf %133, %132 : vector<8x128xf32>
      %135 = arith.mulf %124, %97 : vector<8x128xf32>
      %136 = arith.mulf %116, %126 : vector<8x128xf32>
      %137 = arith.addf %135, %136 : vector<8x128xf32>
      %138 = math.tanh %137 : vector<8x128xf32>
      %139 = arith.mulf %134, %138 : vector<8x128xf32>
      %140 = arith.index_cast %c2_i32 : i32 to index
      %c0_63 = arith.constant 0 : index
      %c0_64 = arith.constant 0 : index
      %141 = vector.load %arg8[%140, %c0_63, %c0_64] : memref<8x8x128xf32, #tpu.memory_space<vmem>>, vector<1x8x128xf32>
      %142 = vector.shape_cast %141 : vector<1x8x128xf32> to vector<8x128xf32>
      %143 = vector.shape_cast %139 : vector<8x128xf32> to vector<1x8x128xf32>
      tpu.vector_store %arg8[%140, %c0_63, %c0_64], %143 {strides = array<i32>} : memref<8x8x128xf32, #tpu.memory_space<vmem>>, vector<1x8x128xf32>,
      %c3_i32 = arith.constant 3 : i32
      %144 = arith.index_cast %c3_i32 : i32 to index
      %c0_65 = arith.constant 0 : index
      %c0_66 = arith.constant 0 : index
      %145 = vector.load %arg11[%144, %c0_65, %c0_66] : memref<8x8x512xf32, #tpu.memory_space<vmem>>, vector<1x8x512xf32>
      %146 = vector.shape_cast %145 : vector<1x8x512xf32> to vector<8x512xf32>
      %cst_67 = arith.constant dense<0.000000e+00> : vector<8x512xf32>
      %147 = tpu.matmul %139, %12, %cst_67 {dimension_numbers = #tpu.dot_dimension_numbers<[1], [0], [0], [1], [0, 0, 1, 1], [], []>} : vector<8x128xf32>, vector<128x512xf32>, vector<8x512xf32> -> vector<8x512xf32>
      %148 = arith.addf %146, %147 : vector<8x512xf32>
      %149 = vector.extract_strided_slice %148 {offsets = [0, 0], sizes = [8, 128], strides = [1, 1]} : vector<8x512xf32> to vector<8x128xf32>
      %cst_68 = arith.constant 5.000000e-01 : f32
      %150 = vector.broadcast %cst_68 : f32 to vector<8x128xf32>
      %151 = arith.mulf %150, %149 : vector<8x128xf32>
      %152 = math.tanh %151 : vector<8x128xf32>
      %cst_69 = arith.constant 1.000000e+00 : f32
      %153 = vector.broadcast %cst_69 : f32 to vector<8x128xf32>
      %154 = arith.addf %152, %153 : vector<8x128xf32>
      %cst_70 = arith.constant 5.000000e-01 : f32
      %155 = vector.broadcast %cst_70 : f32 to vector<8x128xf32>
      %156 = arith.mulf %155, %154 : vector<8x128xf32>
      %157 = vector.extract_strided_slice %148 {offsets = [0, 128], sizes = [8, 128], strides = [1, 1]} : vector<8x512xf32> to vector<8x128xf32>
      %cst_71 = arith.constant 5.000000e-01 : f32
      %158 = vector.broadcast %cst_71 : f32 to vector<8x128xf32>
      %159 = arith.mulf %158, %157 : vector<8x128xf32>
      %160 = math.tanh %159 : vector<8x128xf32>
      %cst_72 = arith.constant 1.000000e+00 : f32
      %161 = vector.broadcast %cst_72 : f32 to vector<8x128xf32>
      %162 = arith.addf %160, %161 : vector<8x128xf32>
      %cst_73 = arith.constant 5.000000e-01 : f32
      %163 = vector.broadcast %cst_73 : f32 to vector<8x128xf32>
      %164 = arith.mulf %163, %162 : vector<8x128xf32>
      %165 = vector.extract_strided_slice %148 {offsets = [0, 256], sizes = [8, 128], strides = [1, 1]} : vector<8x512xf32> to vector<8x128xf32>
      %166 = math.tanh %165 : vector<8x128xf32>
      %167 = vector.extract_strided_slice %148 {offsets = [0, 384], sizes = [8, 128], strides = [1, 1]} : vector<8x512xf32> to vector<8x128xf32>
      %cst_74 = arith.constant 5.000000e-01 : f32
      %168 = vector.broadcast %cst_74 : f32 to vector<8x128xf32>
      %169 = arith.mulf %168, %167 : vector<8x128xf32>
      %170 = math.tanh %169 : vector<8x128xf32>
      %cst_75 = arith.constant 1.000000e+00 : f32
      %171 = vector.broadcast %cst_75 : f32 to vector<8x128xf32>
      %172 = arith.addf %170, %171 : vector<8x128xf32>
      %cst_76 = arith.constant 5.000000e-01 : f32
      %173 = vector.broadcast %cst_76 : f32 to vector<8x128xf32>
      %174 = arith.mulf %173, %172 : vector<8x128xf32>
      %175 = arith.mulf %164, %137 : vector<8x128xf32>
      %176 = arith.mulf %156, %166 : vector<8x128xf32>
      %177 = arith.addf %175, %176 : vector<8x128xf32>
      %178 = math.tanh %177 : vector<8x128xf32>
      %179 = arith.mulf %174, %178 : vector<8x128xf32>
      %180 = arith.index_cast %c3_i32 : i32 to index
      %c0_77 = arith.constant 0 : index
      %c0_78 = arith.constant 0 : index
      %181 = vector.load %arg8[%180, %c0_77, %c0_78] : memref<8x8x128xf32, #tpu.memory_space<vmem>>, vector<1x8x128xf32>
      %182 = vector.shape_cast %181 : vector<1x8x128xf32> to vector<8x128xf32>
      %183 = vector.shape_cast %179 : vector<8x128xf32> to vector<1x8x128xf32>
      tpu.vector_store %arg8[%180, %c0_77, %c0_78], %183 {strides = array<i32>} : memref<8x8x128xf32, #tpu.memory_space<vmem>>, vector<1x8x128xf32>,
      %c4_i32 = arith.constant 4 : i32
      %c0_79 = arith.constant 0 : index
      %c0_80 = arith.constant 0 : index
      %184 = vector.load %arg12[%c0_79, %c0_80] : memref<8x128xf32, #tpu.memory_space<vmem>>, vector<8x128xf32>
      tpu.vector_store %arg12[%c0_79, %c0_80], %179 {strides = array<i32>} : memref<8x128xf32, #tpu.memory_space<vmem>>, vector<8x128xf32>,
      %c0_81 = arith.constant 0 : index
      %c0_82 = arith.constant 0 : index
      %185 = vector.load %arg13[%c0_81, %c0_82] : memref<8x128xf32, #tpu.memory_space<vmem>>, vector<8x128xf32>
      tpu.vector_store %arg13[%c0_81, %c0_82], %177 {strides = array<i32>} : memref<8x128xf32, #tpu.memory_space<vmem>>, vector<8x128xf32>,
    } else {
    }
    %c1_i32_15 = arith.constant 1 : i32
    %19 = arith.cmpi eq, %arg1, %c1_i32_15 : i32
    %20 = arith.extui %19 : i1 to i32
    %c0_i32_16 = arith.constant 0 : i32
    %21 = arith.cmpi ne, %20, %c0_i32_16 : i32
    scf.if %21 {
      %c0_17 = arith.constant 0 : index
      %c0_18 = arith.constant 0 : index
      %22 = vector.load %arg12[%c0_17, %c0_18] : memref<8x128xf32, #tpu.memory_space<vmem>>, vector<8x128xf32>
      %c0_19 = arith.constant 0 : index
      %c0_20 = arith.constant 0 : index
      %23 = vector.load %arg9[%c0_19, %c0_20] : memref<8x128xf32, #tpu.memory_space<vmem>>, vector<8x128xf32>
      tpu.vector_store %arg9[%c0_19, %c0_20], %22 {strides = array<i32>} : memref<8x128xf32, #tpu.memory_space<vmem>>, vector<8x128xf32>,
      %c0_21 = arith.constant 0 : index
      %c0_22 = arith.constant 0 : index
      %24 = vector.load %arg13[%c0_21, %c0_22] : memref<8x128xf32, #tpu.memory_space<vmem>>, vector<8x128xf32>
      %c0_23 = arith.constant 0 : index
      %c0_24 = arith.constant 0 : index
      %25 = vector.load %arg10[%c0_23, %c0_24] : memref<8x128xf32, #tpu.memory_space<vmem>>, vector<8x128xf32>
      tpu.vector_store %arg10[%c0_23, %c0_24], %24 {strides = array<i32>} : memref<8x128xf32, #tpu.memory_space<vmem>>, vector<8x128xf32>,
    } else {
    }
    return
  }
  func.func @transform_0(%arg0: i32, %arg1: i32) -> (i32, i32, i32) {
    %c0_i32 = arith.constant 0 : i32
    %c0_i32_0 = arith.constant 0 : i32
    return %arg1, %arg0, %c0_i32 : i32, i32, i32
  }
  func.func @transform_1(%arg0: i32, %arg1: i32) -> (i32, i32) {
    %c0_i32 = arith.constant 0 : i32
    %c0_i32_0 = arith.constant 0 : i32
    %c0_i32_1 = arith.constant 0 : i32
    return %c0_i32, %c0_i32_0 : i32, i32
  }
  func.func @transform_2(%arg0: i32, %arg1: i32) -> (i32, i32) {
    %c0_i32 = arith.constant 0 : i32
    %c0_i32_0 = arith.constant 0 : i32
    %c0_i32_1 = arith.constant 0 : i32
    return %c0_i32, %c0_i32_0 : i32, i32
  }
  func.func @transform_3(%arg0: i32, %arg1: i32) -> (i32, i32) {
    %c0_i32 = arith.constant 0 : i32
    %c0_i32_0 = arith.constant 0 : i32
    %c0_i32_1 = arith.constant 0 : i32
    return %c0_i32, %c0_i32_0 : i32, i32
  }
  func.func @transform_4(%arg0: i32, %arg1: i32) -> (i32, i32) {
    %c0_i32 = arith.constant 0 : i32
    %c0_i32_0 = arith.constant 0 : i32
    return %arg0, %c0_i32 : i32, i32
  }
  func.func @transform_5(%arg0: i32, %arg1: i32) -> (i32, i32) {
    %c0_i32 = arith.constant 0 : i32
    %c0_i32_0 = arith.constant 0 : i32
    return %arg0, %c0_i32 : i32, i32
  }
  func.func @transform_6(%arg0: i32, %arg1: i32) -> (i32, i32, i32) {
    %c0_i32 = arith.constant 0 : i32
    %c0_i32_0 = arith.constant 0 : i32
    return %arg1, %arg0, %c0_i32 : i32, i32, i32
  }
  func.func @transform_7(%arg0: i32, %arg1: i32) -> (i32, i32) {
    %c0_i32 = arith.constant 0 : i32
    %c0_i32_0 = arith.constant 0 : i32
    return %arg0, %c0_i32 : i32, i32
  }
  func.func @transform_8(%arg0: i32, %arg1: i32) -> (i32, i32) {
    %c0_i32 = arith.constant 0 : i32
    %c0_i32_0 = arith.constant 0 : i32
    return %arg0, %c0_i32 : i32, i32
  }
}

module attributes {stable_mosaic.version = 11 : i64} {
  func.func @_lstm_decoder_kernel(%arg0: i32, %arg1: i32, %arg2: memref<8x8x32xf32, #tpu.memory_space<vmem>>, %arg3: memref<32x512xf32, #tpu.memory_space<vmem>>, %arg4: memref<128x512xf32, #tpu.memory_space<vmem>>, %arg5: memref<1x512xf32, #tpu.memory_space<vmem>>, %arg6: memref<8x128xf32, #tpu.memory_space<vmem>>, %arg7: memref<8x128xf32, #tpu.memory_space<vmem>>, %arg8: memref<8x8x128xf32, #tpu.memory_space<vmem>>, %arg9: memref<8x128xf32, #tpu.memory_space<vmem>>, %arg10: memref<8x128xf32, #tpu.memory_space<vmem>>, %arg11: memref<8x8x512xf32, #tpu.memory_space<vmem>>, %arg12: memref<8x128xf32, #tpu.memory_space<vmem>>, %arg13: memref<8x128xf32, #tpu.memory_space<vmem>>) attributes {dimension_semantics = [#tpu.dimension_semantics<parallel>, #tpu.dimension_semantics<arbitrary>], iteration_bounds = array<i64: 1, 2>, scalar_prefetch = 0 : i64, scratch_operands = 3 : i64, tpu.core_type = #tpu.core_type<tc>, window_params = [{transform_indices = @transform_0, window_bounds = array<i64: 8, 8, 32>}, {pipeline_mode = #tpu.pipeline_mode<synchronous>, transform_indices = @transform_1, window_bounds = array<i64: 32, 512>}, {pipeline_mode = #tpu.pipeline_mode<synchronous>, transform_indices = @transform_2, window_bounds = array<i64: 128, 512>}, {pipeline_mode = #tpu.pipeline_mode<synchronous>, transform_indices = @transform_3, window_bounds = array<i64: 1, 512>}, {transform_indices = @transform_4, window_bounds = array<i64: 8, 128>}, {transform_indices = @transform_5, window_bounds = array<i64: 8, 128>}, {transform_indices = @transform_6, window_bounds = array<i64: 8, 8, 128>}, {transform_indices = @transform_7, window_bounds = array<i64: 8, 128>}, {transform_indices = @transform_8, window_bounds = array<i64: 8, 128>}]} {
    %c0_i32 = arith.constant 0 : i32
    %0 = arith.cmpi eq, %arg1, %c0_i32 : i32
    %1 = arith.extui %0 : i1 to i32
    %c0_i32_0 = arith.constant 0 : i32
    %2 = arith.cmpi ne, %1, %c0_i32_0 : i32
    scf.if %2 {
      %c0_17 = arith.constant 0 : index
      %c0_18 = arith.constant 0 : index
      %22 = vector.load %arg6[%c0_17, %c0_18] : memref<8x128xf32, #tpu.memory_space<vmem>>, vector<8x128xf32>
      %c0_19 = arith.constant 0 : index
      %c0_20 = arith.constant 0 : index
      %23 = vector.load %arg12[%c0_19, %c0_20] : memref<8x128xf32, #tpu.memory_space<vmem>>, vector<8x128xf32>
      tpu.vector_store %arg12[%c0_19, %c0_20], %22 {strides = array<i32>} : memref<8x128xf32, #tpu.memory_space<vmem>>, vector<8x128xf32>,
      %c0_21 = arith.constant 0 : index
      %c0_22 = arith.constant 0 : index
      %24 = vector.load %arg7[%c0_21, %c0_22] : memref<8x128xf32, #tpu.memory_space<vmem>>, vector<8x128xf32>
      %c0_23 = arith.constant 0 : index
      %c0_24 = arith.constant 0 : index
      %25 = vector.load %arg13[%c0_23, %c0_24] : memref<8x128xf32, #tpu.memory_space<vmem>>, vector<8x128xf32>
      tpu.vector_store %arg13[%c0_23, %c0_24], %24 {strides = array<i32>} : memref<8x128xf32, #tpu.memory_space<vmem>>, vector<8x128xf32>,
    } else {
    }
    %c0 = arith.constant 0 : index
    %c0_1 = arith.constant 0 : index
    %3 = vector.load %arg3[%c0, %c0_1] : memref<32x512xf32, #tpu.memory_space<vmem>>, vector<32x512xf32>
    %c0_2 = arith.constant 0 : index
    %c0_3 = arith.constant 0 : index
    %c0_4 = arith.constant 0 : index
    %4 = vector.load %arg2[%c0_2, %c0_3, %c0_4] : memref<8x8x32xf32, #tpu.memory_space<vmem>>, vector<8x8x32xf32>
    %5 = vector.shape_cast %4 : vector<8x8x32xf32> to vector<64x32xf32>
    %cst = arith.constant dense<0.000000e+00> : vector<64x512xf32>
    %6 = tpu.matmul %5, %3, %cst {dimension_numbers = #tpu.dot_dimension_numbers<[1], [0], [0], [1], [0, 0, 1, 1], [], []>} : vector<64x32xf32>, vector<32x512xf32>, vector<64x512xf32> -> vector<64x512xf32>
    %c0_5 = arith.constant 0 : index
    %c0_6 = arith.constant 0 : index
    %7 = vector.load %arg5[%c0_5, %c0_6] : memref<1x512xf32, #tpu.memory_space<vmem>>, vector<1x512xf32>
    %8 = vector.broadcast %7 : vector<1x512xf32> to vector<64x512xf32>
    %9 = arith.addf %6, %8 : vector<64x512xf32>
    %10 = vector.shape_cast %9 : vector<64x512xf32> to vector<8x8x512xf32>
    %c0_7 = arith.constant 0 : index
    %c0_8 = arith.constant 0 : index
    %c0_9 = arith.constant 0 : index
    %11 = vector.load %arg11[%c0_7, %c0_8, %c0_9] : memref<8x8x512xf32, #tpu.memory_space<vmem>>, vector<8x8x512xf32>
    tpu.vector_store %arg11[%c0_7, %c0_8, %c0_9], %10 {strides = array<i32>} : memref<8x8x512xf32, #tpu.memory_space<vmem>>, vector<8x8x512xf32>,
    %c0_10 = arith.constant 0 : index
    %c0_11 = arith.constant 0 : index
    %12 = vector.load %arg4[%c0_10, %c0_11] : memref<128x512xf32, #tpu.memory_space<vmem>>, vector<128x512xf32>
    %c1_i32 = arith.constant 1 : i32
    %13 = arith.cmpi eq, %arg1, %c1_i32 : i32
    %c1_i32_12 = arith.constant 1 : i32
    %14 = arith.cmpi slt, %arg1, %c1_i32_12 : i32
    %15 = arith.extui %14 : i1 to i32
    %c0_i32_13 = arith.constant 0 : i32
    %16 = arith.cmpi ne, %15, %c0_i32_13 : i32
    scf.if %16 {
      %c0_17 = arith.constant 0 : index
      %c0_18 = arith.constant 0 : index
      %22 = vector.load %arg12[%c0_17, %c0_18] : memref<8x128xf32, #tpu.memory_space<vmem>>, vector<8x128xf32>
      %c0_19 = arith.constant 0 : index
      %c0_20 = arith.constant 0 : index
      %23 = vector.load %arg13[%c0_19, %c0_20] : memref<8x128xf32, #tpu.memory_space<vmem>>, vector<8x128xf32>
      %c0_i32_21 = arith.constant 0 : i32
      %24 = arith.index_cast %c0_i32_21 : i32 to index
      %c0_22 = arith.constant 0 : index
      %c0_23 = arith.constant 0 : index
      %25 = vector.load %arg11[%24, %c0_22, %c0_23] : memref<8x8x512xf32, #tpu.memory_space<vmem>>, vector<1x8x512xf32>
      %26 = vector.shape_cast %25 : vector<1x8x512xf32> to vector<8x512xf32>
      %cst_24 = arith.constant dense<0.000000e+00> : vector<8x512xf32>
      %27 = tpu.matmul %22, %12, %cst_24 {dimension_numbers = #tpu.dot_dimension_numbers<[1], [0], [0], [1], [0, 0, 1, 1], [], []>} : vector<8x128xf32>, vector<128x512xf32>, vector<8x512xf32> -> vector<8x512xf32>
      %28 = arith.addf %26, %27 : vector<8x512xf32>
      %29 = vector.extract_strided_slice %28 {offsets = [0, 0], sizes = [8, 128], strides = [1, 1]} : vector<8x512xf32> to vector<8x128xf32>
      %cst_25 = arith.constant 5.000000e-01 : f32
      %30 = vector.broadcast %cst_25 : f32 to vector<8x128xf32>
      %31 = arith.mulf %30, %29 : vector<8x128xf32>
      %32 = math.tanh %31 : vector<8x128xf32>
      %cst_26 = arith.constant 1.000000e+00 : f32
      %33 = vector.broadcast %cst_26 : f32 to vector<8x128xf32>
      %34 = arith.addf %32, %33 : vector<8x128xf32>
      %cst_27 = arith.constant 5.000000e-01 : f32
      %35 = vector.broadcast %cst_27 : f32 to vector<8x128xf32>
      %36 = arith.mulf %35, %34 : vector<8x128xf32>
      %37 = vector.extract_strided_slice %28 {offsets = [0, 128], sizes = [8, 128], strides = [1, 1]} : vector<8x512xf32> to vector<8x128xf32>
      %cst_28 = arith.constant 5.000000e-01 : f32
      %38 = vector.broadcast %cst_28 : f32 to vector<8x128xf32>
      %39 = arith.mulf %38, %37 : vector<8x128xf32>
      %40 = math.tanh %39 : vector<8x128xf32>
      %cst_29 = arith.constant 1.000000e+00 : f32
      %41 = vector.broadcast %cst_29 : f32 to vector<8x128xf32>
      %42 = arith.addf %40, %41 : vector<8x128xf32>
      %cst_30 = arith.constant 5.000000e-01 : f32
      %43 = vector.broadcast %cst_30 : f32 to vector<8x128xf32>
      %44 = arith.mulf %43, %42 : vector<8x128xf32>
      %45 = vector.extract_strided_slice %28 {offsets = [0, 256], sizes = [8, 128], strides = [1, 1]} : vector<8x512xf32> to vector<8x128xf32>
      %46 = math.tanh %45 : vector<8x128xf32>
      %47 = vector.extract_strided_slice %28 {offsets = [0, 384], sizes = [8, 128], strides = [1, 1]} : vector<8x512xf32> to vector<8x128xf32>
      %cst_31 = arith.constant 5.000000e-01 : f32
      %48 = vector.broadcast %cst_31 : f32 to vector<8x128xf32>
      %49 = arith.mulf %48, %47 : vector<8x128xf32>
      %50 = math.tanh %49 : vector<8x128xf32>
      %cst_32 = arith.constant 1.000000e+00 : f32
      %51 = vector.broadcast %cst_32 : f32 to vector<8x128xf32>
      %52 = arith.addf %50, %51 : vector<8x128xf32>
      %cst_33 = arith.constant 5.000000e-01 : f32
      %53 = vector.broadcast %cst_33 : f32 to vector<8x128xf32>
      %54 = arith.mulf %53, %52 : vector<8x128xf32>
      %55 = arith.mulf %44, %23 : vector<8x128xf32>
      %56 = arith.mulf %36, %46 : vector<8x128xf32>
      %57 = arith.addf %55, %56 : vector<8x128xf32>
      %58 = math.tanh %57 : vector<8x128xf32>
      %59 = arith.mulf %54, %58 : vector<8x128xf32>
      %60 = arith.index_cast %c0_i32_21 : i32 to index
      %c0_34 = arith.constant 0 : index
      %c0_35 = arith.constant 0 : index
      %61 = vector.load %arg8[%60, %c0_34, %c0_35] : memref<8x8x128xf32, #tpu.memory_space<vmem>>, vector<1x8x128xf32>
      %62 = vector.shape_cast %61 : vector<1x8x128xf32> to vector<8x128xf32>
      %63 = vector.shape_cast %59 : vector<8x128xf32> to vector<1x8x128xf32>
      tpu.vector_store %arg8[%60, %c0_34, %c0_35], %63 {strides = array<i32>} : memref<8x8x128xf32, #tpu.memory_space<vmem>>, vector<1x8x128xf32>,
      %c1_i32_36 = arith.constant 1 : i32
      %64 = arith.index_cast %c1_i32_36 : i32 to index
      %c0_37 = arith.constant 0 : index
      %c0_38 = arith.constant 0 : index
      %65 = vector.load %arg11[%64, %c0_37, %c0_38] : memref<8x8x512xf32, #tpu.memory_space<vmem>>, vector<1x8x512xf32>
      %66 = vector.shape_cast %65 : vector<1x8x512xf32> to vector<8x512xf32>
      %cst_39 = arith.constant dense<0.000000e+00> : vector<8x512xf32>
      %67 = tpu.matmul %59, %12, %cst_39 {dimension_numbers = #tpu.dot_dimension_numbers<[1], [0], [0], [1], [0, 0, 1, 1], [], []>} : vector<8x128xf32>, vector<128x512xf32>, vector<8x512xf32> -> vector<8x512xf32>
      %68 = arith.addf %66, %67 : vector<8x512xf32>
      %69 = vector.extract_strided_slice %68 {offsets = [0, 0], sizes = [8, 128], strides = [1, 1]} : vector<8x512xf32> to vector<8x128xf32>
      %cst_40 = arith.constant 5.000000e-01 : f32
      %70 = vector.broadcast %cst_40 : f32 to vector<8x128xf32>
      %71 = arith.mulf %70, %69 : vector<8x128xf32>
      %72 = math.tanh %71 : vector<8x128xf32>
      %cst_41 = arith.constant 1.000000e+00 : f32
      %73 = vector.broadcast %cst_41 : f32 to vector<8x128xf32>
      %74 = arith.addf %72, %73 : vector<8x128xf32>
      %cst_42 = arith.constant 5.000000e-01 : f32
      %75 = vector.broadcast %cst_42 : f32 to vector<8x128xf32>
      %76 = arith.mulf %75, %74 : vector<8x128xf32>
      %77 = vector.extract_strided_slice %68 {offsets = [0, 128], sizes = [8, 128], strides = [1, 1]} : vector<8x512xf32> to vector<8x128xf32>
      %cst_43 = arith.constant 5.000000e-01 : f32
      %78 = vector.broadcast %cst_43 : f32 to vector<8x128xf32>
      %79 = arith.mulf %78, %77 : vector<8x128xf32>
      %80 = math.tanh %79 : vector<8x128xf32>
      %cst_44 = arith.constant 1.000000e+00 : f32
      %81 = vector.broadcast %cst_44 : f32 to vector<8x128xf32>
      %82 = arith.addf %80, %81 : vector<8x128xf32>
      %cst_45 = arith.constant 5.000000e-01 : f32
      %83 = vector.broadcast %cst_45 : f32 to vector<8x128xf32>
      %84 = arith.mulf %83, %82 : vector<8x128xf32>
      %85 = vector.extract_strided_slice %68 {offsets = [0, 256], sizes = [8, 128], strides = [1, 1]} : vector<8x512xf32> to vector<8x128xf32>
      %86 = math.tanh %85 : vector<8x128xf32>
      %87 = vector.extract_strided_slice %68 {offsets = [0, 384], sizes = [8, 128], strides = [1, 1]} : vector<8x512xf32> to vector<8x128xf32>
      %cst_46 = arith.constant 5.000000e-01 : f32
      %88 = vector.broadcast %cst_46 : f32 to vector<8x128xf32>
      %89 = arith.mulf %88, %87 : vector<8x128xf32>
      %90 = math.tanh %89 : vector<8x128xf32>
      %cst_47 = arith.constant 1.000000e+00 : f32
      %91 = vector.broadcast %cst_47 : f32 to vector<8x128xf32>
      %92 = arith.addf %90, %91 : vector<8x128xf32>
      %cst_48 = arith.constant 5.000000e-01 : f32
      %93 = vector.broadcast %cst_48 : f32 to vector<8x128xf32>
      %94 = arith.mulf %93, %92 : vector<8x128xf32>
      %95 = arith.mulf %84, %57 : vector<8x128xf32>
      %96 = arith.mulf %76, %86 : vector<8x128xf32>
      %97 = arith.addf %95, %96 : vector<8x128xf32>
      %98 = math.tanh %97 : vector<8x128xf32>
      %99 = arith.mulf %94, %98 : vector<8x128xf32>
      %100 = arith.index_cast %c1_i32_36 : i32 to index
      %c0_49 = arith.constant 0 : index
      %c0_50 = arith.constant 0 : index
      %101 = vector.load %arg8[%100, %c0_49, %c0_50] : memref<8x8x128xf32, #tpu.memory_space<vmem>>, vector<1x8x128xf32>
      %102 = vector.shape_cast %101 : vector<1x8x128xf32> to vector<8x128xf32>
      %103 = vector.shape_cast %99 : vector<8x128xf32> to vector<1x8x128xf32>
      tpu.vector_store %arg8[%100, %c0_49, %c0_50], %103 {strides = array<i32>} : memref<8x8x128xf32, #tpu.memory_space<vmem>>, vector<1x8x128xf32>,
      %c2_i32 = arith.constant 2 : i32
      %104 = arith.index_cast %c2_i32 : i32 to index
      %c0_51 = arith.constant 0 : index
      %c0_52 = arith.constant 0 : index
      %105 = vector.load %arg11[%104, %c0_51, %c0_52] : memref<8x8x512xf32, #tpu.memory_space<vmem>>, vector<1x8x512xf32>
      %106 = vector.shape_cast %105 : vector<1x8x512xf32> to vector<8x512xf32>
      %cst_53 = arith.constant dense<0.000000e+00> : vector<8x512xf32>
      %107 = tpu.matmul %99, %12, %cst_53 {dimension_numbers = #tpu.dot_dimension_numbers<[1], [0], [0], [1], [0, 0, 1, 1], [], []>} : vector<8x128xf32>, vector<128x512xf32>, vector<8x512xf32> -> vector<8x512xf32>
      %108 = arith.addf %106, %107 : vector<8x512xf32>
      %109 = vector.extract_strided_slice %108 {offsets = [0, 0], sizes = [8, 128], strides = [1, 1]} : vector<8x512xf32> to vector<8x128xf32>
      %cst_54 = arith.constant 5.000000e-01 : f32
      %110 = vector.broadcast %cst_54 : f32 to vector<8x128xf32>
      %111 = arith.mulf %110, %109 : vector<8x128xf32>
      %112 = math.tanh %111 : vector<8x128xf32>
      %cst_55 = arith.constant 1.000000e+00 : f32
      %113 = vector.broadcast %cst_55 : f32 to vector<8x128xf32>
      %114 = arith.addf %112, %113 : vector<8x128xf32>
      %cst_56 = arith.constant 5.000000e-01 : f32
      %115 = vector.broadcast %cst_56 : f32 to vector<8x128xf32>
      %116 = arith.mulf %115, %114 : vector<8x128xf32>
      %117 = vector.extract_strided_slice %108 {offsets = [0, 128], sizes = [8, 128], strides = [1, 1]} : vector<8x512xf32> to vector<8x128xf32>
      %cst_57 = arith.constant 5.000000e-01 : f32
      %118 = vector.broadcast %cst_57 : f32 to vector<8x128xf32>
      %119 = arith.mulf %118, %117 : vector<8x128xf32>
      %120 = math.tanh %119 : vector<8x128xf32>
      %cst_58 = arith.constant 1.000000e+00 : f32
      %121 = vector.broadcast %cst_58 : f32 to vector<8x128xf32>
      %122 = arith.addf %120, %121 : vector<8x128xf32>
      %cst_59 = arith.constant 5.000000e-01 : f32
      %123 = vector.broadcast %cst_59 : f32 to vector<8x128xf32>
      %124 = arith.mulf %123, %122 : vector<8x128xf32>
      %125 = vector.extract_strided_slice %108 {offsets = [0, 256], sizes = [8, 128], strides = [1, 1]} : vector<8x512xf32> to vector<8x128xf32>
      %126 = math.tanh %125 : vector<8x128xf32>
      %127 = vector.extract_strided_slice %108 {offsets = [0, 384], sizes = [8, 128], strides = [1, 1]} : vector<8x512xf32> to vector<8x128xf32>
      %cst_60 = arith.constant 5.000000e-01 : f32
      %128 = vector.broadcast %cst_60 : f32 to vector<8x128xf32>
      %129 = arith.mulf %128, %127 : vector<8x128xf32>
      %130 = math.tanh %129 : vector<8x128xf32>
      %cst_61 = arith.constant 1.000000e+00 : f32
      %131 = vector.broadcast %cst_61 : f32 to vector<8x128xf32>
      %132 = arith.addf %130, %131 : vector<8x128xf32>
      %cst_62 = arith.constant 5.000000e-01 : f32
      %133 = vector.broadcast %cst_62 : f32 to vector<8x128xf32>
      %134 = arith.mulf %133, %132 : vector<8x128xf32>
      %135 = arith.mulf %124, %97 : vector<8x128xf32>
      %136 = arith.mulf %116, %126 : vector<8x128xf32>
      %137 = arith.addf %135, %136 : vector<8x128xf32>
      %138 = math.tanh %137 : vector<8x128xf32>
      %139 = arith.mulf %134, %138 : vector<8x128xf32>
      %140 = arith.index_cast %c2_i32 : i32 to index
      %c0_63 = arith.constant 0 : index
      %c0_64 = arith.constant 0 : index
      %141 = vector.load %arg8[%140, %c0_63, %c0_64] : memref<8x8x128xf32, #tpu.memory_space<vmem>>, vector<1x8x128xf32>
      %142 = vector.shape_cast %141 : vector<1x8x128xf32> to vector<8x128xf32>
      %143 = vector.shape_cast %139 : vector<8x128xf32> to vector<1x8x128xf32>
      tpu.vector_store %arg8[%140, %c0_63, %c0_64], %143 {strides = array<i32>} : memref<8x8x128xf32, #tpu.memory_space<vmem>>, vector<1x8x128xf32>,
      %c3_i32 = arith.constant 3 : i32
      %144 = arith.index_cast %c3_i32 : i32 to index
      %c0_65 = arith.constant 0 : index
      %c0_66 = arith.constant 0 : index
      %145 = vector.load %arg11[%144, %c0_65, %c0_66] : memref<8x8x512xf32, #tpu.memory_space<vmem>>, vector<1x8x512xf32>
      %146 = vector.shape_cast %145 : vector<1x8x512xf32> to vector<8x512xf32>
      %cst_67 = arith.constant dense<0.000000e+00> : vector<8x512xf32>
      %147 = tpu.matmul %139, %12, %cst_67 {dimension_numbers = #tpu.dot_dimension_numbers<[1], [0], [0], [1], [0, 0, 1, 1], [], []>} : vector<8x128xf32>, vector<128x512xf32>, vector<8x512xf32> -> vector<8x512xf32>
      %148 = arith.addf %146, %147 : vector<8x512xf32>
      %149 = vector.extract_strided_slice %148 {offsets = [0, 0], sizes = [8, 128], strides = [1, 1]} : vector<8x512xf32> to vector<8x128xf32>
      %cst_68 = arith.constant 5.000000e-01 : f32
      %150 = vector.broadcast %cst_68 : f32 to vector<8x128xf32>
      %151 = arith.mulf %150, %149 : vector<8x128xf32>
      %152 = math.tanh %151 : vector<8x128xf32>
      %cst_69 = arith.constant 1.000000e+00 : f32
      %153 = vector.broadcast %cst_69 : f32 to vector<8x128xf32>
      %154 = arith.addf %152, %153 : vector<8x128xf32>
      %cst_70 = arith.constant 5.000000e-01 : f32
      %155 = vector.broadcast %cst_70 : f32 to vector<8x128xf32>
      %156 = arith.mulf %155, %154 : vector<8x128xf32>
      %157 = vector.extract_strided_slice %148 {offsets = [0, 128], sizes = [8, 128], strides = [1, 1]} : vector<8x512xf32> to vector<8x128xf32>
      %cst_71 = arith.constant 5.000000e-01 : f32
      %158 = vector.broadcast %cst_71 : f32 to vector<8x128xf32>
      %159 = arith.mulf %158, %157 : vector<8x128xf32>
      %160 = math.tanh %159 : vector<8x128xf32>
      %cst_72 = arith.constant 1.000000e+00 : f32
      %161 = vector.broadcast %cst_72 : f32 to vector<8x128xf32>
      %162 = arith.addf %160, %161 : vector<8x128xf32>
      %cst_73 = arith.constant 5.000000e-01 : f32
      %163 = vector.broadcast %cst_73 : f32 to vector<8x128xf32>
      %164 = arith.mulf %163, %162 : vector<8x128xf32>
      %165 = vector.extract_strided_slice %148 {offsets = [0, 256], sizes = [8, 128], strides = [1, 1]} : vector<8x512xf32> to vector<8x128xf32>
      %166 = math.tanh %165 : vector<8x128xf32>
      %167 = vector.extract_strided_slice %148 {offsets = [0, 384], sizes = [8, 128], strides = [1, 1]} : vector<8x512xf32> to vector<8x128xf32>
      %cst_74 = arith.constant 5.000000e-01 : f32
      %168 = vector.broadcast %cst_74 : f32 to vector<8x128xf32>
      %169 = arith.mulf %168, %167 : vector<8x128xf32>
      %170 = math.tanh %169 : vector<8x128xf32>
      %cst_75 = arith.constant 1.000000e+00 : f32
      %171 = vector.broadcast %cst_75 : f32 to vector<8x128xf32>
      %172 = arith.addf %170, %171 : vector<8x128xf32>
      %cst_76 = arith.constant 5.000000e-01 : f32
      %173 = vector.broadcast %cst_76 : f32 to vector<8x128xf32>
      %174 = arith.mulf %173, %172 : vector<8x128xf32>
      %175 = arith.mulf %164, %137 : vector<8x128xf32>
      %176 = arith.mulf %156, %166 : vector<8x128xf32>
      %177 = arith.addf %175, %176 : vector<8x128xf32>
      %178 = math.tanh %177 : vector<8x128xf32>
      %179 = arith.mulf %174, %178 : vector<8x128xf32>
      %180 = arith.index_cast %c3_i32 : i32 to index
      %c0_77 = arith.constant 0 : index
      %c0_78 = arith.constant 0 : index
      %181 = vector.load %arg8[%180, %c0_77, %c0_78] : memref<8x8x128xf32, #tpu.memory_space<vmem>>, vector<1x8x128xf32>
      %182 = vector.shape_cast %181 : vector<1x8x128xf32> to vector<8x128xf32>
      %183 = vector.shape_cast %179 : vector<8x128xf32> to vector<1x8x128xf32>
      tpu.vector_store %arg8[%180, %c0_77, %c0_78], %183 {strides = array<i32>} : memref<8x8x128xf32, #tpu.memory_space<vmem>>, vector<1x8x128xf32>,
      %c4_i32 = arith.constant 4 : i32
      %184 = arith.index_cast %c4_i32 : i32 to index
      %c0_79 = arith.constant 0 : index
      %c0_80 = arith.constant 0 : index
      %185 = vector.load %arg11[%184, %c0_79, %c0_80] : memref<8x8x512xf32, #tpu.memory_space<vmem>>, vector<1x8x512xf32>
      %186 = vector.shape_cast %185 : vector<1x8x512xf32> to vector<8x512xf32>
      %cst_81 = arith.constant dense<0.000000e+00> : vector<8x512xf32>
      %187 = tpu.matmul %179, %12, %cst_81 {dimension_numbers = #tpu.dot_dimension_numbers<[1], [0], [0], [1], [0, 0, 1, 1], [], []>} : vector<8x128xf32>, vector<128x512xf32>, vector<8x512xf32> -> vector<8x512xf32>
      %188 = arith.addf %186, %187 : vector<8x512xf32>
      %189 = vector.extract_strided_slice %188 {offsets = [0, 0], sizes = [8, 128], strides = [1, 1]} : vector<8x512xf32> to vector<8x128xf32>
      %cst_82 = arith.constant 5.000000e-01 : f32
      %190 = vector.broadcast %cst_82 : f32 to vector<8x128xf32>
      %191 = arith.mulf %190, %189 : vector<8x128xf32>
      %192 = math.tanh %191 : vector<8x128xf32>
      %cst_83 = arith.constant 1.000000e+00 : f32
      %193 = vector.broadcast %cst_83 : f32 to vector<8x128xf32>
      %194 = arith.addf %192, %193 : vector<8x128xf32>
      %cst_84 = arith.constant 5.000000e-01 : f32
      %195 = vector.broadcast %cst_84 : f32 to vector<8x128xf32>
      %196 = arith.mulf %195, %194 : vector<8x128xf32>
      %197 = vector.extract_strided_slice %188 {offsets = [0, 128], sizes = [8, 128], strides = [1, 1]} : vector<8x512xf32> to vector<8x128xf32>
      %cst_85 = arith.constant 5.000000e-01 : f32
      %198 = vector.broadcast %cst_85 : f32 to vector<8x128xf32>
      %199 = arith.mulf %198, %197 : vector<8x128xf32>
      %200 = math.tanh %199 : vector<8x128xf32>
      %cst_86 = arith.constant 1.000000e+00 : f32
      %201 = vector.broadcast %cst_86 : f32 to vector<8x128xf32>
      %202 = arith.addf %200, %201 : vector<8x128xf32>
      %cst_87 = arith.constant 5.000000e-01 : f32
      %203 = vector.broadcast %cst_87 : f32 to vector<8x128xf32>
      %204 = arith.mulf %203, %202 : vector<8x128xf32>
      %205 = vector.extract_strided_slice %188 {offsets = [0, 256], sizes = [8, 128], strides = [1, 1]} : vector<8x512xf32> to vector<8x128xf32>
      %206 = math.tanh %205 : vector<8x128xf32>
      %207 = vector.extract_strided_slice %188 {offsets = [0, 384], sizes = [8, 128], strides = [1, 1]} : vector<8x512xf32> to vector<8x128xf32>
      %cst_88 = arith.constant 5.000000e-01 : f32
      %208 = vector.broadcast %cst_88 : f32 to vector<8x128xf32>
      %209 = arith.mulf %208, %207 : vector<8x128xf32>
      %210 = math.tanh %209 : vector<8x128xf32>
      %cst_89 = arith.constant 1.000000e+00 : f32
      %211 = vector.broadcast %cst_89 : f32 to vector<8x128xf32>
      %212 = arith.addf %210, %211 : vector<8x128xf32>
      %cst_90 = arith.constant 5.000000e-01 : f32
      %213 = vector.broadcast %cst_90 : f32 to vector<8x128xf32>
      %214 = arith.mulf %213, %212 : vector<8x128xf32>
      %215 = arith.mulf %204, %177 : vector<8x128xf32>
      %216 = arith.mulf %196, %206 : vector<8x128xf32>
      %217 = arith.addf %215, %216 : vector<8x128xf32>
      %218 = math.tanh %217 : vector<8x128xf32>
      %219 = arith.mulf %214, %218 : vector<8x128xf32>
      %220 = arith.index_cast %c4_i32 : i32 to index
      %c0_91 = arith.constant 0 : index
      %c0_92 = arith.constant 0 : index
      %221 = vector.load %arg8[%220, %c0_91, %c0_92] : memref<8x8x128xf32, #tpu.memory_space<vmem>>, vector<1x8x128xf32>
      %222 = vector.shape_cast %221 : vector<1x8x128xf32> to vector<8x128xf32>
      %223 = vector.shape_cast %219 : vector<8x128xf32> to vector<1x8x128xf32>
      tpu.vector_store %arg8[%220, %c0_91, %c0_92], %223 {strides = array<i32>} : memref<8x8x128xf32, #tpu.memory_space<vmem>>, vector<1x8x128xf32>,
      %c5_i32 = arith.constant 5 : i32
      %224 = arith.index_cast %c5_i32 : i32 to index
      %c0_93 = arith.constant 0 : index
      %c0_94 = arith.constant 0 : index
      %225 = vector.load %arg11[%224, %c0_93, %c0_94] : memref<8x8x512xf32, #tpu.memory_space<vmem>>, vector<1x8x512xf32>
      %226 = vector.shape_cast %225 : vector<1x8x512xf32> to vector<8x512xf32>
      %cst_95 = arith.constant dense<0.000000e+00> : vector<8x512xf32>
      %227 = tpu.matmul %219, %12, %cst_95 {dimension_numbers = #tpu.dot_dimension_numbers<[1], [0], [0], [1], [0, 0, 1, 1], [], []>} : vector<8x128xf32>, vector<128x512xf32>, vector<8x512xf32> -> vector<8x512xf32>
      %228 = arith.addf %226, %227 : vector<8x512xf32>
      %229 = vector.extract_strided_slice %228 {offsets = [0, 0], sizes = [8, 128], strides = [1, 1]} : vector<8x512xf32> to vector<8x128xf32>
      %cst_96 = arith.constant 5.000000e-01 : f32
      %230 = vector.broadcast %cst_96 : f32 to vector<8x128xf32>
      %231 = arith.mulf %230, %229 : vector<8x128xf32>
      %232 = math.tanh %231 : vector<8x128xf32>
      %cst_97 = arith.constant 1.000000e+00 : f32
      %233 = vector.broadcast %cst_97 : f32 to vector<8x128xf32>
      %234 = arith.addf %232, %233 : vector<8x128xf32>
      %cst_98 = arith.constant 5.000000e-01 : f32
      %235 = vector.broadcast %cst_98 : f32 to vector<8x128xf32>
      %236 = arith.mulf %235, %234 : vector<8x128xf32>
      %237 = vector.extract_strided_slice %228 {offsets = [0, 128], sizes = [8, 128], strides = [1, 1]} : vector<8x512xf32> to vector<8x128xf32>
      %cst_99 = arith.constant 5.000000e-01 : f32
      %238 = vector.broadcast %cst_99 : f32 to vector<8x128xf32>
      %239 = arith.mulf %238, %237 : vector<8x128xf32>
      %240 = math.tanh %239 : vector<8x128xf32>
      %cst_100 = arith.constant 1.000000e+00 : f32
      %241 = vector.broadcast %cst_100 : f32 to vector<8x128xf32>
      %242 = arith.addf %240, %241 : vector<8x128xf32>
      %cst_101 = arith.constant 5.000000e-01 : f32
      %243 = vector.broadcast %cst_101 : f32 to vector<8x128xf32>
      %244 = arith.mulf %243, %242 : vector<8x128xf32>
      %245 = vector.extract_strided_slice %228 {offsets = [0, 256], sizes = [8, 128], strides = [1, 1]} : vector<8x512xf32> to vector<8x128xf32>
      %246 = math.tanh %245 : vector<8x128xf32>
      %247 = vector.extract_strided_slice %228 {offsets = [0, 384], sizes = [8, 128], strides = [1, 1]} : vector<8x512xf32> to vector<8x128xf32>
      %cst_102 = arith.constant 5.000000e-01 : f32
      %248 = vector.broadcast %cst_102 : f32 to vector<8x128xf32>
      %249 = arith.mulf %248, %247 : vector<8x128xf32>
      %250 = math.tanh %249 : vector<8x128xf32>
      %cst_103 = arith.constant 1.000000e+00 : f32
      %251 = vector.broadcast %cst_103 : f32 to vector<8x128xf32>
      %252 = arith.addf %250, %251 : vector<8x128xf32>
      %cst_104 = arith.constant 5.000000e-01 : f32
      %253 = vector.broadcast %cst_104 : f32 to vector<8x128xf32>
      %254 = arith.mulf %253, %252 : vector<8x128xf32>
      %255 = arith.mulf %244, %217 : vector<8x128xf32>
      %256 = arith.mulf %236, %246 : vector<8x128xf32>
      %257 = arith.addf %255, %256 : vector<8x128xf32>
      %258 = math.tanh %257 : vector<8x128xf32>
      %259 = arith.mulf %254, %258 : vector<8x128xf32>
      %260 = arith.index_cast %c5_i32 : i32 to index
      %c0_105 = arith.constant 0 : index
      %c0_106 = arith.constant 0 : index
      %261 = vector.load %arg8[%260, %c0_105, %c0_106] : memref<8x8x128xf32, #tpu.memory_space<vmem>>, vector<1x8x128xf32>
      %262 = vector.shape_cast %261 : vector<1x8x128xf32> to vector<8x128xf32>
      %263 = vector.shape_cast %259 : vector<8x128xf32> to vector<1x8x128xf32>
      tpu.vector_store %arg8[%260, %c0_105, %c0_106], %263 {strides = array<i32>} : memref<8x8x128xf32, #tpu.memory_space<vmem>>, vector<1x8x128xf32>,
      %c6_i32 = arith.constant 6 : i32
      %264 = arith.index_cast %c6_i32 : i32 to index
      %c0_107 = arith.constant 0 : index
      %c0_108 = arith.constant 0 : index
      %265 = vector.load %arg11[%264, %c0_107, %c0_108] : memref<8x8x512xf32, #tpu.memory_space<vmem>>, vector<1x8x512xf32>
      %266 = vector.shape_cast %265 : vector<1x8x512xf32> to vector<8x512xf32>
      %cst_109 = arith.constant dense<0.000000e+00> : vector<8x512xf32>
      %267 = tpu.matmul %259, %12, %cst_109 {dimension_numbers = #tpu.dot_dimension_numbers<[1], [0], [0], [1], [0, 0, 1, 1], [], []>} : vector<8x128xf32>, vector<128x512xf32>, vector<8x512xf32> -> vector<8x512xf32>
      %268 = arith.addf %266, %267 : vector<8x512xf32>
      %269 = vector.extract_strided_slice %268 {offsets = [0, 0], sizes = [8, 128], strides = [1, 1]} : vector<8x512xf32> to vector<8x128xf32>
      %cst_110 = arith.constant 5.000000e-01 : f32
      %270 = vector.broadcast %cst_110 : f32 to vector<8x128xf32>
      %271 = arith.mulf %270, %269 : vector<8x128xf32>
      %272 = math.tanh %271 : vector<8x128xf32>
      %cst_111 = arith.constant 1.000000e+00 : f32
      %273 = vector.broadcast %cst_111 : f32 to vector<8x128xf32>
      %274 = arith.addf %272, %273 : vector<8x128xf32>
      %cst_112 = arith.constant 5.000000e-01 : f32
      %275 = vector.broadcast %cst_112 : f32 to vector<8x128xf32>
      %276 = arith.mulf %275, %274 : vector<8x128xf32>
      %277 = vector.extract_strided_slice %268 {offsets = [0, 128], sizes = [8, 128], strides = [1, 1]} : vector<8x512xf32> to vector<8x128xf32>
      %cst_113 = arith.constant 5.000000e-01 : f32
      %278 = vector.broadcast %cst_113 : f32 to vector<8x128xf32>
      %279 = arith.mulf %278, %277 : vector<8x128xf32>
      %280 = math.tanh %279 : vector<8x128xf32>
      %cst_114 = arith.constant 1.000000e+00 : f32
      %281 = vector.broadcast %cst_114 : f32 to vector<8x128xf32>
      %282 = arith.addf %280, %281 : vector<8x128xf32>
      %cst_115 = arith.constant 5.000000e-01 : f32
      %283 = vector.broadcast %cst_115 : f32 to vector<8x128xf32>
      %284 = arith.mulf %283, %282 : vector<8x128xf32>
      %285 = vector.extract_strided_slice %268 {offsets = [0, 256], sizes = [8, 128], strides = [1, 1]} : vector<8x512xf32> to vector<8x128xf32>
      %286 = math.tanh %285 : vector<8x128xf32>
      %287 = vector.extract_strided_slice %268 {offsets = [0, 384], sizes = [8, 128], strides = [1, 1]} : vector<8x512xf32> to vector<8x128xf32>
      %cst_116 = arith.constant 5.000000e-01 : f32
      %288 = vector.broadcast %cst_116 : f32 to vector<8x128xf32>
      %289 = arith.mulf %288, %287 : vector<8x128xf32>
      %290 = math.tanh %289 : vector<8x128xf32>
      %cst_117 = arith.constant 1.000000e+00 : f32
      %291 = vector.broadcast %cst_117 : f32 to vector<8x128xf32>
      %292 = arith.addf %290, %291 : vector<8x128xf32>
      %cst_118 = arith.constant 5.000000e-01 : f32
      %293 = vector.broadcast %cst_118 : f32 to vector<8x128xf32>
      %294 = arith.mulf %293, %292 : vector<8x128xf32>
      %295 = arith.mulf %284, %257 : vector<8x128xf32>
      %296 = arith.mulf %276, %286 : vector<8x128xf32>
      %297 = arith.addf %295, %296 : vector<8x128xf32>
      %298 = math.tanh %297 : vector<8x128xf32>
      %299 = arith.mulf %294, %298 : vector<8x128xf32>
      %300 = arith.index_cast %c6_i32 : i32 to index
      %c0_119 = arith.constant 0 : index
      %c0_120 = arith.constant 0 : index
      %301 = vector.load %arg8[%300, %c0_119, %c0_120] : memref<8x8x128xf32, #tpu.memory_space<vmem>>, vector<1x8x128xf32>
      %302 = vector.shape_cast %301 : vector<1x8x128xf32> to vector<8x128xf32>
      %303 = vector.shape_cast %299 : vector<8x128xf32> to vector<1x8x128xf32>
      tpu.vector_store %arg8[%300, %c0_119, %c0_120], %303 {strides = array<i32>} : memref<8x8x128xf32, #tpu.memory_space<vmem>>, vector<1x8x128xf32>,
      %c7_i32 = arith.constant 7 : i32
      %304 = arith.index_cast %c7_i32 : i32 to index
      %c0_121 = arith.constant 0 : index
      %c0_122 = arith.constant 0 : index
      %305 = vector.load %arg11[%304, %c0_121, %c0_122] : memref<8x8x512xf32, #tpu.memory_space<vmem>>, vector<1x8x512xf32>
      %306 = vector.shape_cast %305 : vector<1x8x512xf32> to vector<8x512xf32>
      %cst_123 = arith.constant dense<0.000000e+00> : vector<8x512xf32>
      %307 = tpu.matmul %299, %12, %cst_123 {dimension_numbers = #tpu.dot_dimension_numbers<[1], [0], [0], [1], [0, 0, 1, 1], [], []>} : vector<8x128xf32>, vector<128x512xf32>, vector<8x512xf32> -> vector<8x512xf32>
      %308 = arith.addf %306, %307 : vector<8x512xf32>
      %309 = vector.extract_strided_slice %308 {offsets = [0, 0], sizes = [8, 128], strides = [1, 1]} : vector<8x512xf32> to vector<8x128xf32>
      %cst_124 = arith.constant 5.000000e-01 : f32
      %310 = vector.broadcast %cst_124 : f32 to vector<8x128xf32>
      %311 = arith.mulf %310, %309 : vector<8x128xf32>
      %312 = math.tanh %311 : vector<8x128xf32>
      %cst_125 = arith.constant 1.000000e+00 : f32
      %313 = vector.broadcast %cst_125 : f32 to vector<8x128xf32>
      %314 = arith.addf %312, %313 : vector<8x128xf32>
      %cst_126 = arith.constant 5.000000e-01 : f32
      %315 = vector.broadcast %cst_126 : f32 to vector<8x128xf32>
      %316 = arith.mulf %315, %314 : vector<8x128xf32>
      %317 = vector.extract_strided_slice %308 {offsets = [0, 128], sizes = [8, 128], strides = [1, 1]} : vector<8x512xf32> to vector<8x128xf32>
      %cst_127 = arith.constant 5.000000e-01 : f32
      %318 = vector.broadcast %cst_127 : f32 to vector<8x128xf32>
      %319 = arith.mulf %318, %317 : vector<8x128xf32>
      %320 = math.tanh %319 : vector<8x128xf32>
      %cst_128 = arith.constant 1.000000e+00 : f32
      %321 = vector.broadcast %cst_128 : f32 to vector<8x128xf32>
      %322 = arith.addf %320, %321 : vector<8x128xf32>
      %cst_129 = arith.constant 5.000000e-01 : f32
      %323 = vector.broadcast %cst_129 : f32 to vector<8x128xf32>
      %324 = arith.mulf %323, %322 : vector<8x128xf32>
      %325 = vector.extract_strided_slice %308 {offsets = [0, 256], sizes = [8, 128], strides = [1, 1]} : vector<8x512xf32> to vector<8x128xf32>
      %326 = math.tanh %325 : vector<8x128xf32>
      %327 = vector.extract_strided_slice %308 {offsets = [0, 384], sizes = [8, 128], strides = [1, 1]} : vector<8x512xf32> to vector<8x128xf32>
      %cst_130 = arith.constant 5.000000e-01 : f32
      %328 = vector.broadcast %cst_130 : f32 to vector<8x128xf32>
      %329 = arith.mulf %328, %327 : vector<8x128xf32>
      %330 = math.tanh %329 : vector<8x128xf32>
      %cst_131 = arith.constant 1.000000e+00 : f32
      %331 = vector.broadcast %cst_131 : f32 to vector<8x128xf32>
      %332 = arith.addf %330, %331 : vector<8x128xf32>
      %cst_132 = arith.constant 5.000000e-01 : f32
      %333 = vector.broadcast %cst_132 : f32 to vector<8x128xf32>
      %334 = arith.mulf %333, %332 : vector<8x128xf32>
      %335 = arith.mulf %324, %297 : vector<8x128xf32>
      %336 = arith.mulf %316, %326 : vector<8x128xf32>
      %337 = arith.addf %335, %336 : vector<8x128xf32>
      %338 = math.tanh %337 : vector<8x128xf32>
      %339 = arith.mulf %334, %338 : vector<8x128xf32>
      %340 = arith.index_cast %c7_i32 : i32 to index
      %c0_133 = arith.constant 0 : index
      %c0_134 = arith.constant 0 : index
      %341 = vector.load %arg8[%340, %c0_133, %c0_134] : memref<8x8x128xf32, #tpu.memory_space<vmem>>, vector<1x8x128xf32>
      %342 = vector.shape_cast %341 : vector<1x8x128xf32> to vector<8x128xf32>
      %343 = vector.shape_cast %339 : vector<8x128xf32> to vector<1x8x128xf32>
      tpu.vector_store %arg8[%340, %c0_133, %c0_134], %343 {strides = array<i32>} : memref<8x8x128xf32, #tpu.memory_space<vmem>>, vector<1x8x128xf32>,
      %c8_i32 = arith.constant 8 : i32
      %c0_135 = arith.constant 0 : index
      %c0_136 = arith.constant 0 : index
      %344 = vector.load %arg12[%c0_135, %c0_136] : memref<8x128xf32, #tpu.memory_space<vmem>>, vector<8x128xf32>
      tpu.vector_store %arg12[%c0_135, %c0_136], %339 {strides = array<i32>} : memref<8x128xf32, #tpu.memory_space<vmem>>, vector<8x128xf32>,
      %c0_137 = arith.constant 0 : index
      %c0_138 = arith.constant 0 : index
      %345 = vector.load %arg13[%c0_137, %c0_138] : memref<8x128xf32, #tpu.memory_space<vmem>>, vector<8x128xf32>
      tpu.vector_store %arg13[%c0_137, %c0_138], %337 {strides = array<i32>} : memref<8x128xf32, #tpu.memory_space<vmem>>, vector<8x128xf32>,
    } else {
    }
    %17 = arith.extui %13 : i1 to i32
    %c0_i32_14 = arith.constant 0 : i32
    %18 = arith.cmpi ne, %17, %c0_i32_14 : i32
    scf.if %18 {
      %c0_17 = arith.constant 0 : index
      %c0_18 = arith.constant 0 : index
      %22 = vector.load %arg12[%c0_17, %c0_18] : memref<8x128xf32, #tpu.memory_space<vmem>>, vector<8x128xf32>
      %c0_19 = arith.constant 0 : index
      %c0_20 = arith.constant 0 : index
      %23 = vector.load %arg13[%c0_19, %c0_20] : memref<8x128xf32, #tpu.memory_space<vmem>>, vector<8x128xf32>
      %c0_i32_21 = arith.constant 0 : i32
      %24 = arith.index_cast %c0_i32_21 : i32 to index
      %c0_22 = arith.constant 0 : index
      %c0_23 = arith.constant 0 : index
      %25 = vector.load %arg11[%24, %c0_22, %c0_23] : memref<8x8x512xf32, #tpu.memory_space<vmem>>, vector<1x8x512xf32>
      %26 = vector.shape_cast %25 : vector<1x8x512xf32> to vector<8x512xf32>
      %cst_24 = arith.constant dense<0.000000e+00> : vector<8x512xf32>
      %27 = tpu.matmul %22, %12, %cst_24 {dimension_numbers = #tpu.dot_dimension_numbers<[1], [0], [0], [1], [0, 0, 1, 1], [], []>} : vector<8x128xf32>, vector<128x512xf32>, vector<8x512xf32> -> vector<8x512xf32>
      %28 = arith.addf %26, %27 : vector<8x512xf32>
      %29 = vector.extract_strided_slice %28 {offsets = [0, 0], sizes = [8, 128], strides = [1, 1]} : vector<8x512xf32> to vector<8x128xf32>
      %cst_25 = arith.constant 5.000000e-01 : f32
      %30 = vector.broadcast %cst_25 : f32 to vector<8x128xf32>
      %31 = arith.mulf %30, %29 : vector<8x128xf32>
      %32 = math.tanh %31 : vector<8x128xf32>
      %cst_26 = arith.constant 1.000000e+00 : f32
      %33 = vector.broadcast %cst_26 : f32 to vector<8x128xf32>
      %34 = arith.addf %32, %33 : vector<8x128xf32>
      %cst_27 = arith.constant 5.000000e-01 : f32
      %35 = vector.broadcast %cst_27 : f32 to vector<8x128xf32>
      %36 = arith.mulf %35, %34 : vector<8x128xf32>
      %37 = vector.extract_strided_slice %28 {offsets = [0, 128], sizes = [8, 128], strides = [1, 1]} : vector<8x512xf32> to vector<8x128xf32>
      %cst_28 = arith.constant 5.000000e-01 : f32
      %38 = vector.broadcast %cst_28 : f32 to vector<8x128xf32>
      %39 = arith.mulf %38, %37 : vector<8x128xf32>
      %40 = math.tanh %39 : vector<8x128xf32>
      %cst_29 = arith.constant 1.000000e+00 : f32
      %41 = vector.broadcast %cst_29 : f32 to vector<8x128xf32>
      %42 = arith.addf %40, %41 : vector<8x128xf32>
      %cst_30 = arith.constant 5.000000e-01 : f32
      %43 = vector.broadcast %cst_30 : f32 to vector<8x128xf32>
      %44 = arith.mulf %43, %42 : vector<8x128xf32>
      %45 = vector.extract_strided_slice %28 {offsets = [0, 256], sizes = [8, 128], strides = [1, 1]} : vector<8x512xf32> to vector<8x128xf32>
      %46 = math.tanh %45 : vector<8x128xf32>
      %47 = vector.extract_strided_slice %28 {offsets = [0, 384], sizes = [8, 128], strides = [1, 1]} : vector<8x512xf32> to vector<8x128xf32>
      %cst_31 = arith.constant 5.000000e-01 : f32
      %48 = vector.broadcast %cst_31 : f32 to vector<8x128xf32>
      %49 = arith.mulf %48, %47 : vector<8x128xf32>
      %50 = math.tanh %49 : vector<8x128xf32>
      %cst_32 = arith.constant 1.000000e+00 : f32
      %51 = vector.broadcast %cst_32 : f32 to vector<8x128xf32>
      %52 = arith.addf %50, %51 : vector<8x128xf32>
      %cst_33 = arith.constant 5.000000e-01 : f32
      %53 = vector.broadcast %cst_33 : f32 to vector<8x128xf32>
      %54 = arith.mulf %53, %52 : vector<8x128xf32>
      %55 = arith.mulf %44, %23 : vector<8x128xf32>
      %56 = arith.mulf %36, %46 : vector<8x128xf32>
      %57 = arith.addf %55, %56 : vector<8x128xf32>
      %58 = math.tanh %57 : vector<8x128xf32>
      %59 = arith.mulf %54, %58 : vector<8x128xf32>
      %60 = arith.index_cast %c0_i32_21 : i32 to index
      %c0_34 = arith.constant 0 : index
      %c0_35 = arith.constant 0 : index
      %61 = vector.load %arg8[%60, %c0_34, %c0_35] : memref<8x8x128xf32, #tpu.memory_space<vmem>>, vector<1x8x128xf32>
      %62 = vector.shape_cast %61 : vector<1x8x128xf32> to vector<8x128xf32>
      %63 = vector.shape_cast %59 : vector<8x128xf32> to vector<1x8x128xf32>
      tpu.vector_store %arg8[%60, %c0_34, %c0_35], %63 {strides = array<i32>} : memref<8x8x128xf32, #tpu.memory_space<vmem>>, vector<1x8x128xf32>,
      %c1_i32_36 = arith.constant 1 : i32
      %64 = arith.index_cast %c1_i32_36 : i32 to index
      %c0_37 = arith.constant 0 : index
      %c0_38 = arith.constant 0 : index
      %65 = vector.load %arg11[%64, %c0_37, %c0_38] : memref<8x8x512xf32, #tpu.memory_space<vmem>>, vector<1x8x512xf32>
      %66 = vector.shape_cast %65 : vector<1x8x512xf32> to vector<8x512xf32>
      %cst_39 = arith.constant dense<0.000000e+00> : vector<8x512xf32>
      %67 = tpu.matmul %59, %12, %cst_39 {dimension_numbers = #tpu.dot_dimension_numbers<[1], [0], [0], [1], [0, 0, 1, 1], [], []>} : vector<8x128xf32>, vector<128x512xf32>, vector<8x512xf32> -> vector<8x512xf32>
      %68 = arith.addf %66, %67 : vector<8x512xf32>
      %69 = vector.extract_strided_slice %68 {offsets = [0, 0], sizes = [8, 128], strides = [1, 1]} : vector<8x512xf32> to vector<8x128xf32>
      %cst_40 = arith.constant 5.000000e-01 : f32
      %70 = vector.broadcast %cst_40 : f32 to vector<8x128xf32>
      %71 = arith.mulf %70, %69 : vector<8x128xf32>
      %72 = math.tanh %71 : vector<8x128xf32>
      %cst_41 = arith.constant 1.000000e+00 : f32
      %73 = vector.broadcast %cst_41 : f32 to vector<8x128xf32>
      %74 = arith.addf %72, %73 : vector<8x128xf32>
      %cst_42 = arith.constant 5.000000e-01 : f32
      %75 = vector.broadcast %cst_42 : f32 to vector<8x128xf32>
      %76 = arith.mulf %75, %74 : vector<8x128xf32>
      %77 = vector.extract_strided_slice %68 {offsets = [0, 128], sizes = [8, 128], strides = [1, 1]} : vector<8x512xf32> to vector<8x128xf32>
      %cst_43 = arith.constant 5.000000e-01 : f32
      %78 = vector.broadcast %cst_43 : f32 to vector<8x128xf32>
      %79 = arith.mulf %78, %77 : vector<8x128xf32>
      %80 = math.tanh %79 : vector<8x128xf32>
      %cst_44 = arith.constant 1.000000e+00 : f32
      %81 = vector.broadcast %cst_44 : f32 to vector<8x128xf32>
      %82 = arith.addf %80, %81 : vector<8x128xf32>
      %cst_45 = arith.constant 5.000000e-01 : f32
      %83 = vector.broadcast %cst_45 : f32 to vector<8x128xf32>
      %84 = arith.mulf %83, %82 : vector<8x128xf32>
      %85 = vector.extract_strided_slice %68 {offsets = [0, 256], sizes = [8, 128], strides = [1, 1]} : vector<8x512xf32> to vector<8x128xf32>
      %86 = math.tanh %85 : vector<8x128xf32>
      %87 = vector.extract_strided_slice %68 {offsets = [0, 384], sizes = [8, 128], strides = [1, 1]} : vector<8x512xf32> to vector<8x128xf32>
      %cst_46 = arith.constant 5.000000e-01 : f32
      %88 = vector.broadcast %cst_46 : f32 to vector<8x128xf32>
      %89 = arith.mulf %88, %87 : vector<8x128xf32>
      %90 = math.tanh %89 : vector<8x128xf32>
      %cst_47 = arith.constant 1.000000e+00 : f32
      %91 = vector.broadcast %cst_47 : f32 to vector<8x128xf32>
      %92 = arith.addf %90, %91 : vector<8x128xf32>
      %cst_48 = arith.constant 5.000000e-01 : f32
      %93 = vector.broadcast %cst_48 : f32 to vector<8x128xf32>
      %94 = arith.mulf %93, %92 : vector<8x128xf32>
      %95 = arith.mulf %84, %57 : vector<8x128xf32>
      %96 = arith.mulf %76, %86 : vector<8x128xf32>
      %97 = arith.addf %95, %96 : vector<8x128xf32>
      %98 = math.tanh %97 : vector<8x128xf32>
      %99 = arith.mulf %94, %98 : vector<8x128xf32>
      %100 = arith.index_cast %c1_i32_36 : i32 to index
      %c0_49 = arith.constant 0 : index
      %c0_50 = arith.constant 0 : index
      %101 = vector.load %arg8[%100, %c0_49, %c0_50] : memref<8x8x128xf32, #tpu.memory_space<vmem>>, vector<1x8x128xf32>
      %102 = vector.shape_cast %101 : vector<1x8x128xf32> to vector<8x128xf32>
      %103 = vector.shape_cast %99 : vector<8x128xf32> to vector<1x8x128xf32>
      tpu.vector_store %arg8[%100, %c0_49, %c0_50], %103 {strides = array<i32>} : memref<8x8x128xf32, #tpu.memory_space<vmem>>, vector<1x8x128xf32>,
      %c2_i32 = arith.constant 2 : i32
      %104 = arith.index_cast %c2_i32 : i32 to index
      %c0_51 = arith.constant 0 : index
      %c0_52 = arith.constant 0 : index
      %105 = vector.load %arg11[%104, %c0_51, %c0_52] : memref<8x8x512xf32, #tpu.memory_space<vmem>>, vector<1x8x512xf32>
      %106 = vector.shape_cast %105 : vector<1x8x512xf32> to vector<8x512xf32>
      %cst_53 = arith.constant dense<0.000000e+00> : vector<8x512xf32>
      %107 = tpu.matmul %99, %12, %cst_53 {dimension_numbers = #tpu.dot_dimension_numbers<[1], [0], [0], [1], [0, 0, 1, 1], [], []>} : vector<8x128xf32>, vector<128x512xf32>, vector<8x512xf32> -> vector<8x512xf32>
      %108 = arith.addf %106, %107 : vector<8x512xf32>
      %109 = vector.extract_strided_slice %108 {offsets = [0, 0], sizes = [8, 128], strides = [1, 1]} : vector<8x512xf32> to vector<8x128xf32>
      %cst_54 = arith.constant 5.000000e-01 : f32
      %110 = vector.broadcast %cst_54 : f32 to vector<8x128xf32>
      %111 = arith.mulf %110, %109 : vector<8x128xf32>
      %112 = math.tanh %111 : vector<8x128xf32>
      %cst_55 = arith.constant 1.000000e+00 : f32
      %113 = vector.broadcast %cst_55 : f32 to vector<8x128xf32>
      %114 = arith.addf %112, %113 : vector<8x128xf32>
      %cst_56 = arith.constant 5.000000e-01 : f32
      %115 = vector.broadcast %cst_56 : f32 to vector<8x128xf32>
      %116 = arith.mulf %115, %114 : vector<8x128xf32>
      %117 = vector.extract_strided_slice %108 {offsets = [0, 128], sizes = [8, 128], strides = [1, 1]} : vector<8x512xf32> to vector<8x128xf32>
      %cst_57 = arith.constant 5.000000e-01 : f32
      %118 = vector.broadcast %cst_57 : f32 to vector<8x128xf32>
      %119 = arith.mulf %118, %117 : vector<8x128xf32>
      %120 = math.tanh %119 : vector<8x128xf32>
      %cst_58 = arith.constant 1.000000e+00 : f32
      %121 = vector.broadcast %cst_58 : f32 to vector<8x128xf32>
      %122 = arith.addf %120, %121 : vector<8x128xf32>
      %cst_59 = arith.constant 5.000000e-01 : f32
      %123 = vector.broadcast %cst_59 : f32 to vector<8x128xf32>
      %124 = arith.mulf %123, %122 : vector<8x128xf32>
      %125 = vector.extract_strided_slice %108 {offsets = [0, 256], sizes = [8, 128], strides = [1, 1]} : vector<8x512xf32> to vector<8x128xf32>
      %126 = math.tanh %125 : vector<8x128xf32>
      %127 = vector.extract_strided_slice %108 {offsets = [0, 384], sizes = [8, 128], strides = [1, 1]} : vector<8x512xf32> to vector<8x128xf32>
      %cst_60 = arith.constant 5.000000e-01 : f32
      %128 = vector.broadcast %cst_60 : f32 to vector<8x128xf32>
      %129 = arith.mulf %128, %127 : vector<8x128xf32>
      %130 = math.tanh %129 : vector<8x128xf32>
      %cst_61 = arith.constant 1.000000e+00 : f32
      %131 = vector.broadcast %cst_61 : f32 to vector<8x128xf32>
      %132 = arith.addf %130, %131 : vector<8x128xf32>
      %cst_62 = arith.constant 5.000000e-01 : f32
      %133 = vector.broadcast %cst_62 : f32 to vector<8x128xf32>
      %134 = arith.mulf %133, %132 : vector<8x128xf32>
      %135 = arith.mulf %124, %97 : vector<8x128xf32>
      %136 = arith.mulf %116, %126 : vector<8x128xf32>
      %137 = arith.addf %135, %136 : vector<8x128xf32>
      %138 = math.tanh %137 : vector<8x128xf32>
      %139 = arith.mulf %134, %138 : vector<8x128xf32>
      %140 = arith.index_cast %c2_i32 : i32 to index
      %c0_63 = arith.constant 0 : index
      %c0_64 = arith.constant 0 : index
      %141 = vector.load %arg8[%140, %c0_63, %c0_64] : memref<8x8x128xf32, #tpu.memory_space<vmem>>, vector<1x8x128xf32>
      %142 = vector.shape_cast %141 : vector<1x8x128xf32> to vector<8x128xf32>
      %143 = vector.shape_cast %139 : vector<8x128xf32> to vector<1x8x128xf32>
      tpu.vector_store %arg8[%140, %c0_63, %c0_64], %143 {strides = array<i32>} : memref<8x8x128xf32, #tpu.memory_space<vmem>>, vector<1x8x128xf32>,
      %c3_i32 = arith.constant 3 : i32
      %144 = arith.index_cast %c3_i32 : i32 to index
      %c0_65 = arith.constant 0 : index
      %c0_66 = arith.constant 0 : index
      %145 = vector.load %arg11[%144, %c0_65, %c0_66] : memref<8x8x512xf32, #tpu.memory_space<vmem>>, vector<1x8x512xf32>
      %146 = vector.shape_cast %145 : vector<1x8x512xf32> to vector<8x512xf32>
      %cst_67 = arith.constant dense<0.000000e+00> : vector<8x512xf32>
      %147 = tpu.matmul %139, %12, %cst_67 {dimension_numbers = #tpu.dot_dimension_numbers<[1], [0], [0], [1], [0, 0, 1, 1], [], []>} : vector<8x128xf32>, vector<128x512xf32>, vector<8x512xf32> -> vector<8x512xf32>
      %148 = arith.addf %146, %147 : vector<8x512xf32>
      %149 = vector.extract_strided_slice %148 {offsets = [0, 0], sizes = [8, 128], strides = [1, 1]} : vector<8x512xf32> to vector<8x128xf32>
      %cst_68 = arith.constant 5.000000e-01 : f32
      %150 = vector.broadcast %cst_68 : f32 to vector<8x128xf32>
      %151 = arith.mulf %150, %149 : vector<8x128xf32>
      %152 = math.tanh %151 : vector<8x128xf32>
      %cst_69 = arith.constant 1.000000e+00 : f32
      %153 = vector.broadcast %cst_69 : f32 to vector<8x128xf32>
      %154 = arith.addf %152, %153 : vector<8x128xf32>
      %cst_70 = arith.constant 5.000000e-01 : f32
      %155 = vector.broadcast %cst_70 : f32 to vector<8x128xf32>
      %156 = arith.mulf %155, %154 : vector<8x128xf32>
      %157 = vector.extract_strided_slice %148 {offsets = [0, 128], sizes = [8, 128], strides = [1, 1]} : vector<8x512xf32> to vector<8x128xf32>
      %cst_71 = arith.constant 5.000000e-01 : f32
      %158 = vector.broadcast %cst_71 : f32 to vector<8x128xf32>
      %159 = arith.mulf %158, %157 : vector<8x128xf32>
      %160 = math.tanh %159 : vector<8x128xf32>
      %cst_72 = arith.constant 1.000000e+00 : f32
      %161 = vector.broadcast %cst_72 : f32 to vector<8x128xf32>
      %162 = arith.addf %160, %161 : vector<8x128xf32>
      %cst_73 = arith.constant 5.000000e-01 : f32
      %163 = vector.broadcast %cst_73 : f32 to vector<8x128xf32>
      %164 = arith.mulf %163, %162 : vector<8x128xf32>
      %165 = vector.extract_strided_slice %148 {offsets = [0, 256], sizes = [8, 128], strides = [1, 1]} : vector<8x512xf32> to vector<8x128xf32>
      %166 = math.tanh %165 : vector<8x128xf32>
      %167 = vector.extract_strided_slice %148 {offsets = [0, 384], sizes = [8, 128], strides = [1, 1]} : vector<8x512xf32> to vector<8x128xf32>
      %cst_74 = arith.constant 5.000000e-01 : f32
      %168 = vector.broadcast %cst_74 : f32 to vector<8x128xf32>
      %169 = arith.mulf %168, %167 : vector<8x128xf32>
      %170 = math.tanh %169 : vector<8x128xf32>
      %cst_75 = arith.constant 1.000000e+00 : f32
      %171 = vector.broadcast %cst_75 : f32 to vector<8x128xf32>
      %172 = arith.addf %170, %171 : vector<8x128xf32>
      %cst_76 = arith.constant 5.000000e-01 : f32
      %173 = vector.broadcast %cst_76 : f32 to vector<8x128xf32>
      %174 = arith.mulf %173, %172 : vector<8x128xf32>
      %175 = arith.mulf %164, %137 : vector<8x128xf32>
      %176 = arith.mulf %156, %166 : vector<8x128xf32>
      %177 = arith.addf %175, %176 : vector<8x128xf32>
      %178 = math.tanh %177 : vector<8x128xf32>
      %179 = arith.mulf %174, %178 : vector<8x128xf32>
      %180 = arith.index_cast %c3_i32 : i32 to index
      %c0_77 = arith.constant 0 : index
      %c0_78 = arith.constant 0 : index
      %181 = vector.load %arg8[%180, %c0_77, %c0_78] : memref<8x8x128xf32, #tpu.memory_space<vmem>>, vector<1x8x128xf32>
      %182 = vector.shape_cast %181 : vector<1x8x128xf32> to vector<8x128xf32>
      %183 = vector.shape_cast %179 : vector<8x128xf32> to vector<1x8x128xf32>
      tpu.vector_store %arg8[%180, %c0_77, %c0_78], %183 {strides = array<i32>} : memref<8x8x128xf32, #tpu.memory_space<vmem>>, vector<1x8x128xf32>,
      %c4_i32 = arith.constant 4 : i32
      %c0_79 = arith.constant 0 : index
      %c0_80 = arith.constant 0 : index
      %184 = vector.load %arg12[%c0_79, %c0_80] : memref<8x128xf32, #tpu.memory_space<vmem>>, vector<8x128xf32>
      tpu.vector_store %arg12[%c0_79, %c0_80], %179 {strides = array<i32>} : memref<8x128xf32, #tpu.memory_space<vmem>>, vector<8x128xf32>,
      %c0_81 = arith.constant 0 : index
      %c0_82 = arith.constant 0 : index
      %185 = vector.load %arg13[%c0_81, %c0_82] : memref<8x128xf32, #tpu.memory_space<vmem>>, vector<8x128xf32>
      tpu.vector_store %arg13[%c0_81, %c0_82], %177 {strides = array<i32>} : memref<8x128xf32, #tpu.memory_space<vmem>>, vector<8x128xf32>,
    } else {
    }
    %c1_i32_15 = arith.constant 1 : i32
    %19 = arith.cmpi eq, %arg1, %c1_i32_15 : i32
    %20 = arith.extui %19 : i1 to i32
    %c0_i32_16 = arith.constant 0 : i32
    %21 = arith.cmpi ne, %20, %c0_i32_16 : i32
    scf.if %21 {
      %c0_17 = arith.constant 0 : index
      %c0_18 = arith.constant 0 : index
      %22 = vector.load %arg12[%c0_17, %c0_18] : memref<8x128xf32, #tpu.memory_space<vmem>>, vector<8x128xf32>
      %c0_19 = arith.constant 0 : index
      %c0_20 = arith.constant 0 : index
      %23 = vector.load %arg9[%c0_19, %c0_20] : memref<8x128xf32, #tpu.memory_space<vmem>>, vector<8x128xf32>
      tpu.vector_store %arg9[%c0_19, %c0_20], %22 {strides = array<i32>} : memref<8x128xf32, #tpu.memory_space<vmem>>, vector<8x128xf32>,
      %c0_21 = arith.constant 0 : index
      %c0_22 = arith.constant 0 : index
      %24 = vector.load %arg13[%c0_21, %c0_22] : memref<8x128xf32, #tpu.memory_space<vmem>>, vector<8x128xf32>
      %c0_23 = arith.constant 0 : index
      %c0_24 = arith.constant 0 : index
      %25 = vector.load %arg10[%c0_23, %c0_24] : memref<8x128xf32, #tpu.memory_space<vmem>>, vector<8x128xf32>
      tpu.vector_store %arg10[%c0_23, %c0_24], %24 {strides = array<i32>} : memref<8x128xf32, #tpu.memory_space<vmem>>, vector<8x128xf32>,
    } else {
    }
    return
  }
  func.func @transform_0(%arg0: i32, %arg1: i32) -> (i32, i32, i32) {
    %c0_i32 = arith.constant 0 : i32
    %c0_i32_0 = arith.constant 0 : i32
    return %arg1, %arg0, %c0_i32 : i32, i32, i32
  }
  func.func @transform_1(%arg0: i32, %arg1: i32) -> (i32, i32) {
    %c0_i32 = arith.constant 0 : i32
    %c0_i32_0 = arith.constant 0 : i32
    %c0_i32_1 = arith.constant 0 : i32
    return %c0_i32, %c0_i32_0 : i32, i32
  }
  func.func @transform_2(%arg0: i32, %arg1: i32) -> (i32, i32) {
    %c0_i32 = arith.constant 0 : i32
    %c0_i32_0 = arith.constant 0 : i32
    %c0_i32_1 = arith.constant 0 : i32
    return %c0_i32, %c0_i32_0 : i32, i32
  }
  func.func @transform_3(%arg0: i32, %arg1: i32) -> (i32, i32) {
    %c0_i32 = arith.constant 0 : i32
    %c0_i32_0 = arith.constant 0 : i32
    %c0_i32_1 = arith.constant 0 : i32
    return %c0_i32, %c0_i32_0 : i32, i32
  }
  func.func @transform_4(%arg0: i32, %arg1: i32) -> (i32, i32) {
    %c0_i32 = arith.constant 0 : i32
    %c0_i32_0 = arith.constant 0 : i32
    return %arg0, %c0_i32 : i32, i32
  }
  func.func @transform_5(%arg0: i32, %arg1: i32) -> (i32, i32) {
    %c0_i32 = arith.constant 0 : i32
    %c0_i32_0 = arith.constant 0 : i32
    return %arg0, %c0_i32 : i32, i32
  }
  func.func @transform_6(%arg0: i32, %arg1: i32) -> (i32, i32, i32) {
    %c0_i32 = arith.constant 0 : i32
    %c0_i32_0 = arith.constant 0 : i32
    return %arg1, %arg0, %c0_i32 : i32, i32, i32
  }
  func.func @transform_7(%arg0: i32, %arg1: i32) -> (i32, i32) {
    %c0_i32 = arith.constant 0 : i32
    %c0_i32_0 = arith.constant 0 : i32
    return %arg0, %c0_i32 : i32, i32
  }
  func.func @transform_8(%arg0: i32, %arg1: i32) -> (i32, i32) {
    %c0_i32 = arith.constant 0 : i32
    %c0_i32_0 = arith.constant 0 : i32
    return %arg0, %c0_i32 : i32, i32
  }
}

</mosaic_0001>

<bundles_post_ra>
// kernel: tpu_custom_call.1
= control target key start
LH: loop header
LB: loop body
LE: loop exit
PB: predicated region body
PF: predicated region fallthrough
CT: control target
= control target key end

     0   :  { %s5755_s0 = inlined_call_operand.hbm [shape: f32[16,8,32], index: 0, kind: input, shape index: {}]   ;;  %s5756_s1 = inlined_call_operand.hbm [shape: f32[32,512], index: 1, kind: input, shape index: {}]   ;;  %s5757_s2 = inlined_call_operand.hbm [shape: f32[128,512], index: 2, kind: input, shape index: {}]   ;;  %s5758_s3 = inlined_call_operand.hbm [shape: f32[1,512], index: 3, kind: input, shape index: {}]   ;;  %s5759_s4 = inlined_call_operand.vmem [shape: f32[8,128], index: 4, kind: input, shape index: {}]   ;;  %s5760_s5 = inlined_call_operand.vmem [shape: f32[8,128], index: 5, kind: input, shape index: {}]   ;;  %s5761_s6 = inlined_call_operand.hbm [shape: f32[16,8,128], index: 6, kind: output, shape index: {0}]   ;;  %s5762_s7 = inlined_call_operand.hbm [shape: f32[8,128], index: 7, kind: output, shape index: {1}]   ;;  %s5763_s8 = inlined_call_operand.hbm [shape: f32[8,128], index: 8, kind: output, shape index: {2}]  }
   0x1   :  { %5813 = sst [smem:[#allocation79_spill]] %s5761_s6 }
   0x2   :  { %5814 = sst [smem:[#allocation80_spill]] %s5762_s7 }
   0x3   :  { %5815 = sst [smem:[#allocation81_spill]] %s5763_s8 }
   0x4   :  { %14 = vsyncpa [#allocation6], 0 }
   0x5   :  { %16 = vsyncpa [#allocation6 + $0x1], 0 }
   0x6   :  { %17 = vsyncpa [#allocation9], 0 }
   0x7   :  { %18 = vsyncpa [#allocation12], 0 }
   0x8   :  { %19 = vsyncpa [#allocation7], 0 }
   0x9   :  { %21 = vsyncpa [#allocation7 + $0x1], 0 }
   0xa   :  { %22 = vsyncpa [#allocation15], 0  ;;  %s4505_s27 = smov 0   ;;  %s4507_s28 = smov 0  }
   0xb   :  { %s4509_s29 = smov 0   ;;  %s4511_s30 = smov 0  }
   0xc   :  { %s4513_s9 = smov 0   ;;  %s4515_s10 = smov 0  }
   0xd LB: > { %5816 = sst [smem:[#allocation22_spill]] %s4422_s27  ;;  %s3104_s11 = sadd.s32 4294967295, %s4442_s10   ;;  %s4442_s10 = sphi %s4515_s10, %s28_s10   ;;  %s4438_s9 = sphi %s4513_s9, %s5973_s9   ;;  %s4434_s30 = sphi %s4511_s30, %s5972_s30   ;;  %s4430_s29 = sphi %s4509_s29, %s5971_s29   ;;  %s4426_s28 = sphi %s4507_s28, %s5970_s28   ;;  %s4422_s27 = sphi %s4505_s27, %s5969_s27  }
   0xe   : > { %s3105_s12 = sadd.s32 4294967294, %s4442_s10   ;;  %p62_p0 = scmp.ne.s32.totalorder %s4426_s28, %s4422_s27 }
   0xf   : > { %p4539_p1 = scmp.eq.s32.totalorder %s3104_s11, 0  ;;  %p4543_p2 = scmp.eq.s32.totalorder %s3104_s11, 1 }
  0x10   : > { %p209_p3 = scmp.eq.s32.totalorder %s3105_s12, 1  ;;  %p3106_p5 = scmp.ge.s32.totalorder %s4442_s10, 1 }
  0x11   : > { %s5817_s13 = scalar_select %p4539_p1, 1, 0 }
  0x12   : > { %s5818_s14 = scalar_select %p4543_p2, 1, 0 }
  0x13   : > { %p4549_p4 = por %p4539_p1, %p62_p0  ;;  %p4554_p6 = por %p209_p3, %p62_p0 }
  0x14   : > { %p268_p7 = scmp.lt.s32.totalorder %s4442_s10, 3  ;;  %s4444_s18 = smov [#allocation8]  }
  0x15   : > { %s5819_s15 = scalar_select %p4549_p4, 1, 0 }
  0x16   : > { %s5820_s16 = scalar_select %p4554_p6, 1, 0 }
  0x17   : > { %p4559_p8 = pnand %p3106_p5, %p268_p7  ;;  %s280_s19 = sshll.u32 %s4444_s18, 4  ;;  %s4563_s19 = int_to_ptr.vmem [resolvable:$true] %s280_s19 }
  0x18   : > { %5821 = sst [smem:[#allocation23_spill]] %s5820_s16  ;;  %s4445_s21 = smov [#allocation10]  }
  0x19   : > { %s5822_s17 = scalar_select %p4559_p8, 1, 0 }
  0x1a   : > { %p3970_p9 = pneg %p4559_p8  ;;  %s293_s22 = sshll.u32 %s4445_s21, 4  ;;  %s4574_s22 = int_to_ptr.vmem [resolvable:$true] %s293_s22 }
  0x1b   : > { %s4446_s23 = smov [#allocation11]   ;;  %s4182_s11 = scalar_lea.hbm %s5756_s1, 2048 }
  0x1c   : > { %p4570_p11 = pnand %p3970_p9, %p4539_p1  ;;  %s4576_s24 = sshll.u32 %s4446_s23, 4  ;;  %s308_s24 = int_to_ptr.vmem [resolvable:$true] %s4576_s24 }
  0x1d   : > { %p4183_p12 = scmp.ne.s32.totalorder %s5756_s1, %s4182_s11  ;;  %p4189_p5 = scmp.lt.u32.totalorder %s4182_s11, %s5756_s1 }
  0x1e   : > { %p4586_p13 = pneg %p4570_p11 }
  0x20   : > { %p4185_p0 = pnand %p4586_p13, %p4183_p12 }
  0x22   : > { %p4186_p3 = pneg %p4185_p0 }
  0x24   : > { %p4191_p7 = pnand %p4189_p5, %p4186_p3 }
  0x26   : > { %4194 = shalt.err (!%p4191_p7)
}
  0x27   : > { %s4195_s25 = scalar_lea.vmem %s4563_s19, 2048  ;;  %p4203_p1 = scmp.lt.s32.totalorder %s4563_s19, %s4563_s19 }
  0x28   : > { %p4196_p9 = scmp.ne.s32.totalorder %s4563_s19, %s4195_s25  ;;  %p4204_p4 = scmp.lt.s32.totalorder %s4195_s25, %s4195_s25 }
  0x2a   : > { %p4198_p10 = pnand %p4196_p9, %p4586_p13  ;;  %p4205_p12 = por %p4204_p4, %p4203_p1 }
  0x2c   : > { %p4199_p6 = pneg %p4198_p10 }
  0x2e   : > { %p4206_p0 = pnand %p4205_p12, %p4199_p6 }
  0x30   : > { %4209 = shalt.err (!%p4206_p0)
}
  0x31   : > { %s4447_s26 = smov 512   ;;  %s4448_s11 = smov 32  }
  0x32   : > { %3973 = dma.hbm_to_vmem [thread:$0]  (!%p4570_p11), %s5756_s1, 2048, %s4563_s19, [#allocation9], %s4447_s26, %s4447_s26, %s4448_s11  }
  0x33   : > { %s4210_s27 = scalar_lea.hbm %s5757_s2, 8192 }
  0x34   : > { %p4211_p1 = scmp.ne.s32.totalorder %s5757_s2, %s4210_s27  ;;  %p4217_p10 = scmp.lt.u32.totalorder %s4210_s27, %s5757_s2 }
  0x36   : > { %p4213_p4 = pnand %p4211_p1, %p4586_p13 }
  0x38   : > { %p4214_p6 = pneg %p4213_p4 }
  0x3a   : > { %p4219_p3 = pnand %p4217_p10, %p4214_p6 }
  0x3c   : > { %4222 = shalt.err (!%p4219_p3)
}
  0x3d   : > { %s4223_s19 = scalar_lea.vmem %s4574_s22, 8192  ;;  %p4231_p12 = scmp.lt.s32.totalorder %s4574_s22, %s4574_s22 }
  0x3e   : > { %p4224_p5 = scmp.ne.s32.totalorder %s4574_s22, %s4223_s19  ;;  %p4232_p0 = scmp.lt.s32.totalorder %s4223_s19, %s4223_s19 }
  0x40   : > { %p4226_p7 = pnand %p4224_p5, %p4586_p13  ;;  %p4233_p1 = por %p4232_p0, %p4231_p12 }
  0x42   : > { %p4227_p9 = pneg %p4226_p7 }
  0x44   : > { %p4234_p4 = pnand %p4233_p1, %p4227_p9 }
  0x46   : > { %4237 = shalt.err (!%p4234_p4)
}
  0x47   : > { %3976 = dma.hbm_to_vmem [thread:$0]  (!%p4570_p11), %s5757_s2, 8192, %s4574_s22, [#allocation9], %s4447_s26, %s4447_s26, %s4448_s11  }
  0x48   : > { %s4238_s12 = scalar_lea.hbm %s5758_s3, 64 }
  0x49   : > { %p4239_p6 = scmp.ne.s32.totalorder %s5758_s3, %s4238_s12  ;;  %p4245_p5 = scmp.lt.u32.totalorder %s4238_s12, %s5758_s3 }
  0x4b   : > { %p4241_p10 = pnand %p4239_p6, %p4586_p13 }
  0x4d   : > { %p4242_p3 = pneg %p4241_p10 }
  0x4f   : > { %p4247_p7 = pnand %p4245_p5, %p4242_p3 }
  0x51   : > { %4250 = shalt.err (!%p4247_p7)
}
  0x52   : > { %s4251_s19 = scalar_lea.vmem %s308_s24, 64  ;;  %p4259_p1 = scmp.lt.s32.totalorder %s308_s24, %s308_s24 }
  0x53   : > { %p4252_p9 = scmp.ne.s32.totalorder %s308_s24, %s4251_s19  ;;  %p4260_p4 = scmp.lt.s32.totalorder %s4251_s19, %s4251_s19 }
  0x55   : > { %p4254_p12 = pnand %p4252_p9, %p4586_p13  ;;  %p4261_p8 = por %p4260_p4, %p4259_p1 }
  0x57   : > { %p4255_p0 = pneg %p4254_p12 }
  0x59   : > { %p4262_p2 = pnand %p4261_p8, %p4255_p0 }
  0x5b   : > { %4265 = shalt.err (!%p4262_p2)
}
  0x5c   : > { %3979 = dma.hbm_to_vmem [thread:$0]  (!%p4570_p11), %s5758_s3, 64, %s308_s24, [#allocation12]  }
  0x5d   : > { %s49_s16 = sadd.s32 1, %s4430_s29  ;;  %s37_s11 = sadd.s32 1, %s4438_s9 }
  0x5e   : > { %p56_p2 = scmp.ne.s32.totalorder %s4430_s29, %s4426_s28  ;;  %p38_p8 = scmp.ge.s32.totalorder %s37_s11, 2 }
  0x5f   : > { %p57_p13 = scmp.eq.s32.totalorder %s4442_s10, 0  ;;  %p5825_p6 = scmp.ne.s32.totalorder %s5818_s14, 0 }
  0x60   : > { %p3991_p3 = scmp.lt.s32.totalorder %s4442_s10, 2  ;;  %s5975_s11 = smov (%p38_p8, %s37_s11), 0 }
  0x61   : > { %p4656_p10 = por %p5825_p6, %p56_p2  ;;  %p58_p5 = por %p57_p13, %p56_p2 }
  0x62   : > { %s332_s6 = sand.u32 1, %s4430_s29   ;;  %s44_s7 = ssub.s32 %s4438_s9, %s5975_s11 }
  0x63   : > { %p47_p7 = scmp.eq.s32.totalorder %s44_s7, 0  ;;  %s3113_s24 = sshll.u32 %s332_s6, 6 }
  0x64   : > { %s3160_s8 = sshll.u32 %s4438_s9, 10  ;;  %s336_s23 = scalar_lea.vmem [#allocation5], %s3113_s24 }
  0x65   : > { %s4668_s27 = scalar_select %p47_p7, %s4430_s29, %s49_s16  }
  0x66   : > { %s4673_s21 = scalar_lea.hbm %s5755_s0, %s3160_s8  ;;  %s344_s25 = sshll.u32 %s336_s23, 4  ;;  %s4675_s25 = int_to_ptr.vmem [resolvable:$true] %s344_s25 }
  0x67   : > { %p4679_p11 = pnand %p3991_p3, %p58_p5  ;;  %s4683_s22 = scalar_lea.sflag [#allocation6], %s332_s6 }
  0x68   : > { %s4266_s26 = scalar_lea.hbm %s4673_s21, 1024  ;;  %s4271_s24 = scalar_lea.hbm %s5755_s0, 2048 }
  0x69   : > { %p4267_p9 = scmp.ne.s32.totalorder %s4673_s21, %s4266_s26  ;;  %p4268_p12 = pneg %p4679_p11 }
  0x6a   : > { %p4272_p4 = scmp.lt.u32.totalorder %s4673_s21, %s5755_s0  ;;  %p4273_p2 = scmp.lt.u32.totalorder %s4271_s24, %s4266_s26 }
  0x6b   : > { %p4269_p0 = pnand %p4268_p12, %p4267_p9  ;;  %p4275_p13 = scmp.lt.u32.totalorder %s4266_s26, %s4673_s21 }
  0x6c   : > { %p4274_p8 = por %p4273_p2, %p4272_p4 }
  0x6d   : > { %p4270_p1 = pneg %p4269_p0 }
  0x6e   : > { %p4276_p6 = por %p4275_p13, %p4274_p8 }
  0x70   : > { %p4277_p3 = pnand %p4276_p6, %p4270_p1 }
  0x72   : > { %4280 = shalt.err (!%p4277_p3)
}
  0x73   : > { %s4281_s6 = scalar_lea.vmem %s4675_s25, 1024  ;;  %s4449_s18 = smov [#allocation5]  }
  0x74   : > { %p4282_p5 = scmp.ne.s32.totalorder %s4675_s25, %s4281_s6  ;;  %s4286_s23 = sshll.u32 %s4449_s18, 4  ;;  %s4287_s23 = int_to_ptr.vmem [resolvable:$false] %s4286_s23 }
  0x75   : > { %s4288_s16 = scalar_lea.vmem %s4287_s23, 2048  ;;  %p4289_p0 = scmp.lt.s32.totalorder %s4675_s25, %s4287_s23 }
  0x76   : > { %p4284_p7 = pnand %p4282_p5, %p4268_p12  ;;  %p4290_p4 = scmp.lt.s32.totalorder %s4288_s16, %s4281_s6 }
  0x78   : > { %p4285_p9 = pneg %p4284_p7  ;;  %p4291_p2 = por %p4290_p4, %p4289_p0 }
  0x7a   : > { %p4292_p8 = pnand %p4291_p2, %p4285_p9 }
  0x7c   : > { %4295 = shalt.err (!%p4292_p8)
}
  0x7d   : > { %s4450_s26 = smov 128   ;;  %s4451_s7 = smov 8  }
  0x7e   : > { %3983 = dma.hbm_to_vmem [thread:$0]  (!%p4679_p11), %s4673_s21, 1024, %s4675_s25, %s4683_s22, %s4450_s26, %s4450_s26, %s4451_s7  }
  0x7f   : > { %p5828_p12 = scmp.ne.s32.totalorder %s5822_s17, 0 }
  0x81   : > { %356 = sbr.rel (%p5828_p12) target bundleno = 3550 (0xdde), region = 44 }
  0x88   : > { %s4714_s24 = sand.u32 1, %s4426_s28   ;;  %p5829_p1 = scmp.ne.s32.totalorder %s5819_s15, 0 }
  0x89   : > { %s3117_s8 = sshll.u32 %s4714_s24, 6  ;;  %s359_s12 = scalar_lea.sflag [#allocation6], %s4714_s24 }
  0x8a   : > { %s4718_s6 = scalar_lea.vmem [#allocation5], %s3117_s8 }
  0x8b   : > { %4401 = dma.done.wait (%p5829_p1), %s359_s12, 1024  }
  0x8c   : > { %4403 = vsyncadd (%p5829_p1), %s359_s12, 4294966272  ;;  %p5830_p11 = scmp.ne.s32.totalorder %s5817_s13, 0 }
  0x8e   : > { %4405 = dma.done.wait (%p5830_p11), [#allocation9], 10240  }
  0x8f   : > { %4407 = vsyncadd (%p5830_p11), [#allocation9], 4294957056 }
  0x90   : > { %4409 = dma.done.wait (%p5830_p11), [#allocation12], 64  }
  0x91   : > { %4411 = vsyncadd (%p5830_p11), [#allocation12], 4294967232  ;;  %s4732_s17 = scalar_lea.vmem [#allocation13], %s3117_s8  ;;  %p3122_p13 = scmp.ne.s32.totalorder %s4434_s30, 0 }
  0x92   : > { %v429_v0 = vld [vmem:[%s5759_s4] sm:$0xff] (!%p3122_p13) }
  0x93   : > { %428 = sbr.rel (%p3122_p13) target bundleno = 154 (0x9a), region = 64  ;;  %v431_v1 = vld [vmem:[%s5760_s5] sm:$0xff] (!%p3122_p13)  ;;  %430 = vst [vmem:[#allocation3] sm:$0xff] (!%p3122_p13), %v429_v0 }
  0x94   : > { %432 = vst [vmem:[#allocation4] sm:$0xff] (!%p3122_p13), %v431_v1 }
  0x9a PF: > { %v434_v2 = vld [vmem:[#allocation8 + $0x8] sm:$0xff]  ;;  %v436_v4 = vld [vmem:[#allocation8 + $0x18] sm:$0xff]  ;;  %v433_v7 = vld [vmem:[#allocation8] sm:$0xff]  ;;  %v4452_v9 = vmov 0.0   ;;  %vm479_vm0 = vcmask 261120   ;;  %p3139_p6 = scmp.ge.s32.totalorder %s4434_s30, 1 }
  0x9b   : > { %v438_v3 = vld [vmem:[#allocation8 + $0x28] sm:$0xff]  ;;  %v440_v6 = vld [vmem:[#allocation8 + $0x38] sm:$0xff]  ;;  %v437_v8 = vld [vmem:[#allocation8 + $0x20] sm:$0xff]  ;;  %568 = vmatprep.mubr.f32.mxu0 %v4452_v9  ;;  %681 = vmatprep.mubr.f32.mxu1 %v4452_v9 }
  0x9c   : > { %v3162_v5 = vpack.c.bf16 %v438_v3, %v434_v2  ;;  %v3170_v10 = vpack.c.bf16 %v440_v6, %v436_v4  ;;  %v3164_v11 = vpack.c.bf16 %v437_v8, %v433_v7  ;;  %v435_v12 = vld [vmem:[#allocation8 + $0x10] sm:$0xff]  ;;  %v442_v14 = vld [vmem:[#allocation8 + $0x48] sm:$0xff]  ;;  %v444_v17 = vld [vmem:[#allocation8 + $0x58] sm:$0xff] }
  0x9d   : > { %v439_v13 = vld [vmem:[#allocation8 + $0x30] sm:$0xff]  ;;  %v446_v16 = vld [vmem:[#allocation8 + $0x68] sm:$0xff]  ;;  %v448_v18 = vld [vmem:[#allocation8 + $0x78] sm:$0xff] }
  0x9e   : > { %3163 = vmatprep.subr.bf16.mxu0 %v3162_v5  ;;  %v3172_v15 = vpack.c.bf16 %v439_v13, %v435_v12  ;;  %3171 = vmatprep.subr.bf16.mxu1 %v3170_v10  ;;  %v3166_v19 = vpack.c.bf16 %v446_v16, %v442_v14  ;;  %v3174_v20 = vpack.c.bf16 %v448_v18, %v444_v17  ;;  %v441_v21 = vld [vmem:[#allocation8 + $0x40] sm:$0xff]  ;;  %v443_v23 = vld [vmem:[#allocation8 + $0x50] sm:$0xff]  ;;  %v450_v28 = vld [vmem:[%s4718_s6 + $0x8] sm:$0xff] }
  0x9f   : > { %3165 = vmatpush1.bf16.msra.mxu0 %v3164_v11  ;;  %v445_v22 = vld [vmem:[#allocation8 + $0x60] sm:$0xff]  ;;  %v447_v25 = vld [vmem:[#allocation8 + $0x70] sm:$0xff]  ;;  %v452_v30 = vld [vmem:[%s4718_s6 + $0x18] sm:$0xff] }
  0xa0   : > { %3173 = vmatpush1.bf16.msra.mxu1 %v3172_v15  ;;  %v3168_v24 = vpack.c.bf16 %v445_v22, %v441_v21  ;;  %3167 = vmatprep.subr.bf16.mxu0 %v3166_v19  ;;  %v3176_v26 = vpack.c.bf16 %v447_v25, %v443_v23  ;;  %v449_v27 = vld [vmem:[%s4718_s6] sm:$0xff]  ;;  %v451_v29 = vld [vmem:[%s4718_s6 + $0x10] sm:$0xff]  ;;  %v454_v32 = vld [vmem:[%s4718_s6 + $0x28] sm:$0xff] }
  0xa1   : > { %3175 = vmatprep.subr.bf16.mxu1 %v3174_v20  ;;  %v453_v31 = vld [vmem:[%s4718_s6 + $0x20] sm:$0xff]  ;;  %v455_v33 = vld [vmem:[%s4718_s6 + $0x30] sm:$0xff]  ;;  %v456_v34 = vld [vmem:[%s4718_s6 + $0x38] sm:$0xff] }
  0xa2   : > { %v4781_v35 = vld [vmem:[#allocation10] sm:$0xff]  ;;  %v4783_v36 = vld [vmem:[#allocation10 + $0x8] sm:$0xff]  ;;  %v4785_v37 = vld [vmem:[#allocation10 + $0x10] sm:$0xff] }
  0xa3   : > { %3169 = vmatpush1.bf16.msra.mxu0 %v3168_v24  ;;  %v4787_v38 = vld [vmem:[#allocation10 + $0x18] sm:$0xff]  ;;  %v4789_v39 = vld [vmem:[#allocation10 + $0x20] sm:$0xff]  ;;  %v4791_v40 = vld [vmem:[#allocation10 + $0x28] sm:$0xff] }
  0xa4   : > { %3177 = vmatpush1.bf16.msra.mxu1 %v3176_v26  ;;  %v4793_v41 = vld [vmem:[#allocation10 + $0x30] sm:$0xff]  ;;  %v4795_v42 = vld [vmem:[#allocation10 + $0x38] sm:$0xff]  ;;  %v4797_v43 = vld [vmem:[#allocation10 + $0x40] sm:$0xff] }
  0xa5   : > { %5831 = vst [vmem:[#allocation24_spill] sm:$0xff] %v4793_v41  ;;  %5832 = vst [vmem:[#allocation25_spill] sm:$0xff] %v4797_v43  ;;  %v4799_v44 = vld [vmem:[#allocation10 + $0x48] sm:$0xff]  ;;  %v4801_v45 = vld [vmem:[#allocation10 + $0x50] sm:$0xff] }
  0xa6   : > { %3123 = vmatmul.mubr.msk.f32.vlgmr.msra.gmra.mrb[0].mxu0 %vm479_vm0, %v449_v27  ;;  %5833 = vst [vmem:[#allocation26_spill] sm:$0xff] %v4801_v45  ;;  %v4803_v46 = vld [vmem:[#allocation10 + $0x58] sm:$0xff]  ;;  %v4805_v47 = vld [vmem:[#allocation10 + $0x60] sm:$0xff]  ;;  %v4807_v48 = vld [vmem:[#allocation10 + $0x68] sm:$0xff] }
  0xa7   : > { %3131 = vmatmul.mubr.msk.f32.vlgmr.msra.gmra.mrb[0].mxu1 %vm479_vm0, %v449_v27  ;;  %574 = vmatprep.mubr.f32.mxu0 %v4452_v9  ;;  %5834 = vst [vmem:[#allocation27_spill] sm:$0xff] %v4803_v46  ;;  %5835 = vst [vmem:[#allocation28_spill] sm:$0xff] %v4805_v47  ;;  %v4809_v49 = vld [vmem:[#allocation10 + $0x70] sm:$0xff]  ;;  %v4811_v50 = vld [vmem:[#allocation10 + $0x78] sm:$0xff] }
  0xa8   : > { %687 = vmatprep.mubr.f32.mxu1 %v4452_v9  ;;  %5836 = vst [vmem:[#allocation29_spill] sm:$0xff] %v4809_v49  ;;  %5837 = vst [vmem:[#allocation30_spill] sm:$0xff] %v4811_v50  ;;  %v4813_v51 = vld [vmem:[#allocation10 + $0x80] sm:$0xff]  ;;  %v4815_v52 = vld [vmem:[#allocation10 + $0x88] sm:$0xff] }
  0xa9   : > { %5838 = vst [vmem:[#allocation31_spill] sm:$0xff] %v4813_v51  ;;  %5839 = vst [vmem:[#allocation32_spill] sm:$0xff] %v4815_v52  ;;  %v4817_v53 = vld [vmem:[#allocation10 + $0x90] sm:$0xff]  ;;  %v4819_v54 = vld [vmem:[#allocation10 + $0x98] sm:$0xff] }
  0xaa   : > { %3124 = vmatmul.mubr.msk.f32.gmra.mrb[2].mxu0 %vm479_vm0, %v450_v28  ;;  %5840 = vst [vmem:[#allocation33_spill] sm:$0xff] %v4817_v53  ;;  %5841 = vst [vmem:[#allocation34_spill] sm:$0xff] %v4819_v54  ;;  %v4821_v55 = vld [vmem:[#allocation10 + $0xa0] sm:$0xff]  ;;  %v4823_v56 = vld [vmem:[#allocation10 + $0xa8] sm:$0xff] }
  0xab   : > { %3132 = vmatmul.mubr.msk.f32.gmra.mrb[2].mxu1 %vm479_vm0, %v450_v28  ;;  %580 = vmatprep.mubr.f32.mxu0 %v4452_v9  ;;  %5842 = vst [vmem:[#allocation35_spill] sm:$0xff] %v4821_v55  ;;  %5843 = vst [vmem:[#allocation36_spill] sm:$0xff] %v4823_v56  ;;  %v4825_v57 = vld [vmem:[#allocation10 + $0xb0] sm:$0xff]  ;;  %v4827_v58 = vld [vmem:[#allocation10 + $0xb8] sm:$0xff] }
  0xac   : > { %693 = vmatprep.mubr.f32.mxu1 %v4452_v9  ;;  %5844 = vst [vmem:[#allocation37_spill] sm:$0xff] %v4825_v57  ;;  %5845 = vst [vmem:[#allocation38_spill] sm:$0xff] %v4827_v58  ;;  %v4829_v59 = vld [vmem:[#allocation10 + $0xc0] sm:$0xff]  ;;  %v4831_v60 = vld [vmem:[#allocation10 + $0xc8] sm:$0xff] }
  0xad   : > { %5846 = vst [vmem:[#allocation39_spill] sm:$0xff] %v4829_v59  ;;  %5847 = vst [vmem:[#allocation40_spill] sm:$0xff] %v4831_v60  ;;  %v4833_v61 = vld [vmem:[#allocation10 + $0xd0] sm:$0xff]  ;;  %v4835_v62 = vld [vmem:[#allocation10 + $0xd8] sm:$0xff] }
  0xae   : > { %3125 = vmatmul.mubr.msk.f32.gmra.mrb[4].mxu0 %vm479_vm0, %v451_v29  ;;  %5848 = vst [vmem:[#allocation41_spill] sm:$0xff] %v4833_v61  ;;  %5849 = vst [vmem:[#allocation42_spill] sm:$0xff] %v4835_v62  ;;  %v4837_v63 = vld [vmem:[#allocation10 + $0xe0] sm:$0xff]  ;;  %v4839_v0 = vld [vmem:[#allocation10 + $0xe8] sm:$0xff] }
  0xaf   : > { %3133 = vmatmul.mubr.msk.f32.gmra.mrb[4].mxu1 %vm479_vm0, %v451_v29  ;;  %586 = vmatprep.mubr.f32.mxu0 %v4452_v9  ;;  %5850 = vst [vmem:[#allocation43_spill] sm:$0xff] %v4837_v63  ;;  %5851 = vst [vmem:[#allocation44_spill] sm:$0xff] %v4839_v0  ;;  %v4841_v1 = vld [vmem:[#allocation10 + $0xf0] sm:$0xff]  ;;  %v4843_v2 = vld [vmem:[#allocation10 + $0xf8] sm:$0xff] }
  0xb0   : > { %699 = vmatprep.mubr.f32.mxu1 %v4452_v9  ;;  %5852 = vst [vmem:[#allocation45_spill] sm:$0xff] %v4841_v1  ;;  %5853 = vst [vmem:[#allocation46_spill] sm:$0xff] %v4843_v2  ;;  %v4845_v3 = vld [vmem:[#allocation10 + $0x100] sm:$0xff]  ;;  %v4847_v4 = vld [vmem:[#allocation10 + $0x108] sm:$0xff] }
  0xb1   : > { %5854 = vst [vmem:[#allocation47_spill] sm:$0xff] %v4845_v3  ;;  %5855 = vst [vmem:[#allocation48_spill] sm:$0xff] %v4847_v4  ;;  %v4849_v5 = vld [vmem:[#allocation10 + $0x110] sm:$0xff]  ;;  %v4851_v6 = vld [vmem:[#allocation10 + $0x118] sm:$0xff] }
  0xb2   : > { %3126 = vmatmul.mubr.msk.f32.gmra.mrb[6].mxu0 %vm479_vm0, %v452_v30  ;;  %5856 = vst [vmem:[#allocation49_spill] sm:$0xff] %v4849_v5  ;;  %5857 = vst [vmem:[#allocation50_spill] sm:$0xff] %v4851_v6  ;;  %v4853_v7 = vld [vmem:[#allocation10 + $0x120] sm:$0xff]  ;;  %v4855_v8 = vld [vmem:[#allocation10 + $0x128] sm:$0xff] }
  0xb3   : > { %3134 = vmatmul.mubr.msk.f32.gmra.mrb[6].mxu1 %vm479_vm0, %v452_v30  ;;  %592 = vmatprep.mubr.f32.mxu0 %v4452_v9  ;;  %5858 = vst [vmem:[#allocation51_spill] sm:$0xff] %v4853_v7  ;;  %5859 = vst [vmem:[#allocation52_spill] sm:$0xff] %v4855_v8  ;;  %v4859_v10 = vld [vmem:[#allocation10 + $0x138] sm:$0xff]  ;;  %v4861_v11 = vld [vmem:[#allocation10 + $0x140] sm:$0xff] }
  0xb4   : > { %705 = vmatprep.mubr.f32.mxu1 %v4452_v9  ;;  %5861 = vst [vmem:[#allocation54_spill] sm:$0xff] %v4859_v10  ;;  %5862 = vst [vmem:[#allocation55_spill] sm:$0xff] %v4861_v11  ;;  %v4863_v12 = vld [vmem:[#allocation10 + $0x148] sm:$0xff]  ;;  %v4865_v13 = vld [vmem:[#allocation10 + $0x150] sm:$0xff] }
  0xb5   : > { %5863 = vst [vmem:[#allocation56_spill] sm:$0xff] %v4863_v12  ;;  %5864 = vst [vmem:[#allocation57_spill] sm:$0xff] %v4865_v13  ;;  %v4867_v14 = vld [vmem:[#allocation10 + $0x158] sm:$0xff]  ;;  %v4869_v15 = vld [vmem:[#allocation10 + $0x160] sm:$0xff] }
  0xb6   : > { %3127 = vmatmul.mubr.msk.f32.gmra.mrb[8].mxu0 %vm479_vm0, %v453_v31  ;;  %5865 = vst [vmem:[#allocation58_spill] sm:$0xff] %v4867_v14  ;;  %5866 = vst [vmem:[#allocation59_spill] sm:$0xff] %v4869_v15  ;;  %v4871_v16 = vld [vmem:[#allocation10 + $0x168] sm:$0xff]  ;;  %v4873_v17 = vld [vmem:[#allocation10 + $0x170] sm:$0xff] }
  0xb7   : > { %3135 = vmatmul.mubr.msk.f32.gmra.mrb[8].mxu1 %vm479_vm0, %v453_v31  ;;  %598 = vmatprep.mubr.f32.mxu0 %v4452_v9  ;;  %5867 = vst [vmem:[#allocation60_spill] sm:$0xff] %v4871_v16  ;;  %5868 = vst [vmem:[#allocation61_spill] sm:$0xff] %v4873_v17  ;;  %v4875_v18 = vld [vmem:[#allocation10 + $0x178] sm:$0xff]  ;;  %v4877_v19 = vld [vmem:[#allocation10 + $0x180] sm:$0xff] }
  0xb8   : > { %711 = vmatprep.mubr.f32.mxu1 %v4452_v9  ;;  %5869 = vst [vmem:[#allocation62_spill] sm:$0xff] %v4875_v18  ;;  %5870 = vst [vmem:[#allocation63_spill] sm:$0xff] %v4877_v19  ;;  %v4879_v20 = vld [vmem:[#allocation10 + $0x188] sm:$0xff]  ;;  %v4881_v21 = vld [vmem:[#allocation10 + $0x190] sm:$0xff] }
  0xb9   : > { %5871 = vst [vmem:[#allocation64_spill] sm:$0xff] %v4879_v20  ;;  %5872 = vst [vmem:[#allocation65_spill] sm:$0xff] %v4881_v21  ;;  %v4883_v22 = vld [vmem:[#allocation10 + $0x198] sm:$0xff]  ;;  %v4885_v23 = vld [vmem:[#allocation10 + $0x1a0] sm:$0xff]  ;;  %v459_v21 = vlaneseq }
  0xba   : > { %3128 = vmatmul.mubr.msk.f32.gmra.mrb[10].mxu0 %vm479_vm0, %v454_v32  ;;  %5873 = vst [vmem:[#allocation66_spill] sm:$0xff] %v4883_v22  ;;  %5874 = vst [vmem:[#allocation67_spill] sm:$0xff] %v4885_v23  ;;  %v4887_v24 = vld [vmem:[#allocation10 + $0x1a8] sm:$0xff]  ;;  %v4889_v25 = vld [vmem:[#allocation10 + $0x1b0] sm:$0xff] }
  0xbb   : > { %3136 = vmatmul.mubr.msk.f32.gmra.mrb[10].mxu1 %vm479_vm0, %v454_v32  ;;  %604 = vmatprep.mubr.f32.mxu0 %v4452_v9  ;;  %5875 = vst [vmem:[#allocation68_spill] sm:$0xff] %v4887_v24  ;;  %5876 = vst [vmem:[#allocation69_spill] sm:$0xff] %v4889_v25  ;;  %v4891_v26 = vld [vmem:[#allocation10 + $0x1b8] sm:$0xff]  ;;  %v4893_v27 = vld [vmem:[#allocation10 + $0x1c0] sm:$0xff]  ;;  %v460_v25 = vshrl.u32 %v459_v21, 7 }
  0xbc   : > { %717 = vmatprep.mubr.f32.mxu1 %v4452_v9  ;;  %5877 = vst [vmem:[#allocation70_spill] sm:$0xff] %v4891_v26  ;;  %5878 = vst [vmem:[#allocation71_spill] sm:$0xff] %v4893_v27  ;;  %v4895_v28 = vld [vmem:[#allocation10 + $0x1c8] sm:$0xff]  ;;  %v4897_v29 = vld [vmem:[#allocation10 + $0x1d0] sm:$0xff] }
  0xbd   : > { %5879 = vst [vmem:[#allocation72_spill] sm:$0xff] %v4895_v28  ;;  %5880 = vst [vmem:[#allocation73_spill] sm:$0xff] %v4897_v29  ;;  %v4899_v30 = vld [vmem:[#allocation10 + $0x1d8] sm:$0xff]  ;;  %v4901_v31 = vld [vmem:[#allocation10 + $0x1e0] sm:$0xff]  ;;  %v461_v23 = vsub.s32 0, %v460_v25  ;;  %v469_v26 = vsub.s32 2, %v460_v25 }
  0xbe   : > { %3129 = vmatmul.mubr.msk.f32.gmra.mrb[12].mxu0 %vm479_vm0, %v455_v33  ;;  %5881 = vst [vmem:[#allocation74_spill] sm:$0xff] %v4899_v30  ;;  %5882 = vst [vmem:[#allocation75_spill] sm:$0xff] %v4901_v31  ;;  %v4903_v32 = vld [vmem:[#allocation10 + $0x1e8] sm:$0xff]  ;;  %v457_v19 = vld [vmem:[#allocation11] sm:$0xf]  ;;  %v465_v27 = vsub.s32 1, %v460_v25 }
  0xbf   : > { %3137 = vmatmul.mubr.msk.f32.gmra.mrb[12].mxu1 %vm479_vm0, %v455_v33  ;;  %610 = vmatprep.mubr.f32.mxu0 %v4452_v9  ;;  %5883 = vst [vmem:[#allocation76_spill] sm:$0xff] %v4903_v32  ;;  %v4905_v33 = vld [vmem:[#allocation10 + $0x1f0] sm:$0xff]  ;;  %v473_v22 = vsub.s32 3, %v460_v25  ;;  %v4909_v28 = vrot.slane %v457_v19, %v461_v23  ;;  %v4911_v29 = vrot.slane %v457_v19, %v469_v26 }
  0xc0   : > { %723 = vmatprep.mubr.f32.mxu1 %v4452_v9  ;;  %v4857_v9 = vld [vmem:[#allocation10 + $0x130] sm:$0xff]  ;;  %5884 = vst [vmem:[#allocation77_spill] sm:$0xff] %v4905_v33  ;;  %v4913_v30 = vrot.slane %v457_v19, %v465_v27 }
  0xc1   : > { %5860 = vst [vmem:[#allocation53_spill] sm:$0xff] %v4857_v9  ;;  %v4915_v31 = vrot.slane %v457_v19, %v473_v22 }
  0xc2   : > { %3130 = vmatmul.mubr.msk.f32.gmra.mrb[14].mxu0 %vm479_vm0, %v456_v34 }
  0xc3   : > { %3138 = vmatmul.mubr.msk.f32.gmra.mrb[14].mxu1 %vm479_vm0, %v456_v34  ;;  %v4907_v34 = vld [vmem:[#allocation10 + $0x1f8] sm:$0xff] }
  0xc4   : > { %5885 = vst [vmem:[#allocation78_spill] sm:$0xff] %v4907_v34 }
 0x179   : > { %v570_v32 = vpop.f32.mrb[0].mxu0 }
 0x17a   : > { %v571_v33 = vadd.f32 %v570_v32, %v4909_v28  ;;  %v683_v17 = vpop.f32.mrb[0].mxu1  ;;  %v572_v34 = vpop.f32.mrb[1].mxu0 }
 0x17b   : > { %v684_v21 = vadd.f32 %v683_v17, %v4911_v29  ;;  %v573_v13 = vadd.f32 %v572_v34, %v4913_v30  ;;  %v685_v24 = vpop.f32.mrb[1].mxu1 }
 0x17c   : > { %730 = vst [vmem:[#allocation2] sm:$0xff] %v571_v33  ;;  %v686_v23 = vadd.f32 %v685_v24, %v4915_v31 }
 0x17d   : > { %732 = vst [vmem:[#allocation2 + $0x10] sm:$0xff] %v684_v21  ;;  %731 = vst [vmem:[#allocation2 + $0x8] sm:$0xff] %v573_v13  ;;  %v576_v25 = vpop.f32.mrb[2].mxu0 }
 0x17e   : > { %733 = vst [vmem:[#allocation2 + $0x18] sm:$0xff] %v686_v23  ;;  %v577_v19 = vadd.f32 %v576_v25, %v4909_v28  ;;  %v689_v22 = vpop.f32.mrb[2].mxu1  ;;  %v578_v26 = vpop.f32.mrb[3].mxu0 }
 0x17f   : > { %v690_v27 = vadd.f32 %v689_v22, %v4911_v29  ;;  %v579_v32 = vadd.f32 %v578_v26, %v4913_v30  ;;  %v691_v20 = vpop.f32.mrb[3].mxu1 }
 0x180   : > { %734 = vst [vmem:[#allocation2 + $0x20] sm:$0xff] %v577_v19  ;;  %v692_v17 = vadd.f32 %v691_v20, %v4915_v31 }
 0x181   : > { %736 = vst [vmem:[#allocation2 + $0x30] sm:$0xff] %v690_v27  ;;  %735 = vst [vmem:[#allocation2 + $0x28] sm:$0xff] %v579_v32  ;;  %v582_v33 = vpop.f32.mrb[4].mxu0 }
 0x182   : > { %737 = vst [vmem:[#allocation2 + $0x38] sm:$0xff] %v692_v17  ;;  %v583_v13 = vadd.f32 %v582_v33, %v4909_v28  ;;  %v695_v24 = vpop.f32.mrb[4].mxu1  ;;  %v584_v34 = vpop.f32.mrb[5].mxu0 }
 0x183   : > { %v696_v21 = vadd.f32 %v695_v24, %v4911_v29  ;;  %v585_v23 = vadd.f32 %v584_v34, %v4913_v30  ;;  %v697_v25 = vpop.f32.mrb[5].mxu1 }
 0x184   : > { %738 = vst [vmem:[#allocation2 + $0x40] sm:$0xff] %v583_v13  ;;  %v698_v22 = vadd.f32 %v697_v25, %v4915_v31 }
 0x185   : > { %740 = vst [vmem:[#allocation2 + $0x50] sm:$0xff] %v696_v21  ;;  %739 = vst [vmem:[#allocation2 + $0x48] sm:$0xff] %v585_v23  ;;  %v588_v19 = vpop.f32.mrb[6].mxu0 }
 0x186   : > { %741 = vst [vmem:[#allocation2 + $0x58] sm:$0xff] %v698_v22  ;;  %v589_v20 = vadd.f32 %v588_v19, %v4909_v28  ;;  %v701_v26 = vpop.f32.mrb[6].mxu1  ;;  %v590_v27 = vpop.f32.mrb[7].mxu0 }
 0x187   : > { %v702_v32 = vadd.f32 %v701_v26, %v4911_v29  ;;  %v591_v17 = vadd.f32 %v590_v27, %v4913_v30  ;;  %v703_v33 = vpop.f32.mrb[7].mxu1 }
 0x188   : > { %742 = vst [vmem:[#allocation2 + $0x60] sm:$0xff] %v589_v20  ;;  %v704_v24 = vadd.f32 %v703_v33, %v4915_v31 }
 0x189   : > { %744 = vst [vmem:[#allocation2 + $0x70] sm:$0xff] %v702_v32  ;;  %743 = vst [vmem:[#allocation2 + $0x68] sm:$0xff] %v591_v17  ;;  %v594_v13 = vpop.f32.mrb[8].mxu0 }
 0x18a   : > { %745 = vst [vmem:[#allocation2 + $0x78] sm:$0xff] %v704_v24  ;;  %v595_v34 = vadd.f32 %v594_v13, %v4909_v28  ;;  %v707_v21 = vpop.f32.mrb[8].mxu1  ;;  %v596_v23 = vpop.f32.mrb[9].mxu0 }
 0x18b   : > { %v708_v25 = vadd.f32 %v707_v21, %v4911_v29  ;;  %v597_v22 = vadd.f32 %v596_v23, %v4913_v30  ;;  %v709_v19 = vpop.f32.mrb[9].mxu1 }
 0x18c   : > { %746 = vst [vmem:[#allocation2 + $0x80] sm:$0xff] %v595_v34  ;;  %v710_v26 = vadd.f32 %v709_v19, %v4915_v31 }
 0x18d   : > { %748 = vst [vmem:[#allocation2 + $0x90] sm:$0xff] %v708_v25  ;;  %747 = vst [vmem:[#allocation2 + $0x88] sm:$0xff] %v597_v22  ;;  %v600_v20 = vpop.f32.mrb[10].mxu0 }
 0x18e   : > { %749 = vst [vmem:[#allocation2 + $0x98] sm:$0xff] %v710_v26  ;;  %v601_v27 = vadd.f32 %v600_v20, %v4909_v28  ;;  %v713_v32 = vpop.f32.mrb[10].mxu1  ;;  %v602_v17 = vpop.f32.mrb[11].mxu0 }
 0x18f   : > { %v714_v33 = vadd.f32 %v713_v32, %v4911_v29  ;;  %v603_v24 = vadd.f32 %v602_v17, %v4913_v30  ;;  %v715_v13 = vpop.f32.mrb[11].mxu1 }
 0x190   : > { %750 = vst [vmem:[#allocation2 + $0xa0] sm:$0xff] %v601_v27  ;;  %v716_v21 = vadd.f32 %v715_v13, %v4915_v31 }
 0x191   : > { %752 = vst [vmem:[#allocation2 + $0xb0] sm:$0xff] %v714_v33  ;;  %751 = vst [vmem:[#allocation2 + $0xa8] sm:$0xff] %v603_v24  ;;  %v606_v34 = vpop.f32.mrb[12].mxu0 }
 0x192   : > { %753 = vst [vmem:[#allocation2 + $0xb8] sm:$0xff] %v716_v21  ;;  %v607_v23 = vadd.f32 %v606_v34, %v4909_v28  ;;  %v719_v25 = vpop.f32.mrb[12].mxu1  ;;  %v608_v22 = vpop.f32.mrb[13].mxu0 }
 0x193   : > { %v720_v19 = vadd.f32 %v719_v25, %v4911_v29  ;;  %v609_v26 = vadd.f32 %v608_v22, %v4913_v30  ;;  %v721_v20 = vpop.f32.mrb[13].mxu1  ;;  %v4973_v22 = vpack.c.bf16 (!%p3139_p6), %v4811_v50, %v4803_v46 }
 0x194   : > { %754 = vst [vmem:[#allocation2 + $0xc0] sm:$0xff] %v607_v23  ;;  %v722_v32 = vadd.f32 %v721_v20, %v4915_v31  ;;  %830 = sbr.rel (%p3139_p6) target bundleno = 2432 (0x980), region = 68  ;;  %v4952_v23 = vpack.c.bf16 (!%p3139_p6), %v4791_v40, %v4783_v36  ;;  %v4989_v20 = vpack.c.bf16 (!%p3139_p6), %v4809_v49, %v4801_v45 }
 0x195   : > { %756 = vst [vmem:[#allocation2 + $0xd0] sm:$0xff] %v720_v19  ;;  %755 = vst [vmem:[#allocation2 + $0xc8] sm:$0xff] %v609_v26  ;;  %v612_v27 = vpop.f32.mrb[14].mxu0  ;;  %v4978_v19 = vpack.c.bf16 (!%p3139_p6), %v4805_v47, %v4797_v43  ;;  %v4985_v26 = vpack.c.bf16 (!%p3139_p6), %v4823_v56, %v4815_v52 }
 0x196   : > { %757 = vst [vmem:[#allocation2 + $0xd8] sm:$0xff] %v722_v32  ;;  %v613_v17 = vadd.f32 %v612_v27, %v4909_v28  ;;  %v725_v33 = vpop.f32.mrb[14].mxu1  ;;  %v614_v24 = vpop.f32.mrb[15].mxu0  ;;  %v4956_v28 = vpack.c.bf16 (!%p3139_p6), %v4789_v39, %v4781_v35  ;;  %3179 = vmatprep.subr.bf16.mxu0 (!%p3139_p6), %v4952_v23  ;;  %v4994_v32 = vpack.c.bf16 (!%p3139_p6), %v4827_v58, %v4819_v54  ;;  %v5774_v27 = vmov (!%p3139_p6), 0.0   ;;  %v836_v54 = vld [vmem:[#allocation2 + $0x18] sm:$0xff] (!%p3139_p6) }
 0x197   : > { %v726_v13 = vadd.f32 %v725_v33, %v4911_v29  ;;  %v615_v21 = vadd.f32 %v614_v24, %v4913_v30  ;;  %v727_v34 = vpop.f32.mrb[15].mxu1  ;;  %v4960_v29 = vpack.c.bf16 (!%p3139_p6), %v4807_v48, %v4799_v44  ;;  %v4964_v30 = vpack.c.bf16 (!%p3139_p6), %v4795_v42, %v4787_v38  ;;  %901 = vmatprep.mubr.f32.mxu0 (!%p3139_p6), %v5774_v27 }
 0x198   : > { %758 = vst [vmem:[#allocation2 + $0xe0] sm:$0xff] %v613_v17  ;;  %v728_v25 = vadd.f32 %v727_v34, %v4915_v31  ;;  %v4968_v31 = vpack.c.bf16 (!%p3139_p6), %v4793_v41, %v4785_v37  ;;  %3181 = vmatpush1.bf16.msra.mxu0 (!%p3139_p6), %v4956_v28  ;;  %v5000_v17 = vpack.c.bf16 (!%p3139_p6), %v4821_v55, %v4813_v51 }
 0x199   : > { %760 = vst [vmem:[#allocation2 + $0xf0] sm:$0xff] %v726_v13  ;;  %759 = vst [vmem:[#allocation2 + $0xe8] sm:$0xff] %v615_v21  ;;  %3211 = vmatprep.subr.bf16.mxu1 (!%p3139_p6), %v4964_v30  ;;  %3183 = vmatprep.subr.bf16.mxu0 (!%p3139_p6), %v4960_v29  ;;  %v5006_v33 = vpack.c.bf16 (!%p3139_p6), %v4839_v0, %v4831_v60  ;;  %v5010_v24 = vpack.c.bf16 (!%p3139_p6), %v4825_v57, %v4817_v53 }
 0x19a   : > { %761 = vst [vmem:[#allocation2 + $0xf8] sm:$0xff] %v728_v25  ;;  %3213 = vmatpush1.bf16.msra.mxu1 (!%p3139_p6), %v4968_v31  ;;  %v5015_v13 = vpack.c.bf16 (!%p3139_p6), %v4843_v2, %v4835_v62  ;;  %972 = vmatprep.mubr.f32.mxu1 (!%p3139_p6), %v5774_v27  ;;  %v5021_v21 = vpack.c.bf16 (!%p3139_p6), %v4837_v63, %v4829_v59  ;;  %v5897_v59 = vld [vmem:[#allocation69_spill] sm:$0xff] (!%p3139_p6) }
 0x19b   : > { %3215 = vmatprep.subr.bf16.mxu1 %v4973_v22  ;;  %v5027_v34 = vpack.c.bf16 %v4855_v8, %v4847_v4  ;;  %v5031_v25 = vpack.c.bf16 %v4841_v1, %v4833_v61  ;;  %v5036_v27 = vpack.c.bf16 %v4859_v10, %v4851_v6  ;;  %v5041_v63 = vpack.c.bf16 %v4853_v7, %v4845_v3  ;;  %v5889_v3 = vld [vmem:[#allocation61_spill] sm:$0xff] }
 0x19c   : > { %3185 = vmatpush1.bf16.msra.mxu0 %v4978_v19  ;;  %v5047_v1 = vpack.c.bf16 %v4871_v16, %v4863_v12  ;;  %v5051_v61 = vpack.c.bf16 %v4857_v9, %v4849_v5  ;;  %v5056_v10 = vpack.c.bf16 %v4875_v18, %v4867_v14  ;;  %v5061_v7 = vpack.c.bf16 %v4869_v15, %v4861_v11  ;;  %v5886_v16 = vld [vmem:[#allocation64_spill] sm:$0xff]  ;;  %v5888_v5 = vld [vmem:[#allocation57_spill] sm:$0xff]  ;;  %v5890_v18 = vld [vmem:[#allocation66_spill] sm:$0xff] }
 0x19d   : > { %3187 = vmatprep.subr.bf16.mxu0 %v4985_v26  ;;  %v5887_v12 = vld [vmem:[#allocation68_spill] sm:$0xff]  ;;  %v5071_v6 = vpack.c.bf16 %v5889_v3, %v5888_v5  ;;  %v5891_v14 = vld [vmem:[#allocation70_spill] sm:$0xff]  ;;  %v5892_v15 = vld [vmem:[#allocation63_spill] sm:$0xff] }
 0x19e   : > { %3217 = vmatpush1.bf16.msra.mxu1 %v4989_v20  ;;  %v5067_v9 = vpack.c.bf16 %v5887_v12, %v5886_v16  ;;  %v5076_v8 = vpack.c.bf16 %v5891_v14, %v5890_v18  ;;  %v5893_v11 = vld [vmem:[#allocation67_spill] sm:$0xff]  ;;  %v5894_v12 = vld [vmem:[#allocation72_spill] sm:$0xff]  ;;  %v5896_v5 = vld [vmem:[#allocation65_spill] sm:$0xff] }
 0x19f   : > { %3219 = vmatprep.subr.bf16.mxu1 %v4994_v32  ;;  %v5081_v4 = vpack.c.bf16 %v5893_v11, %v5892_v15  ;;  %v5895_v16 = vld [vmem:[#allocation76_spill] sm:$0xff]  ;;  %v5091_v2 = vpack.c.bf16 %v5897_v59, %v5896_v5  ;;  %v5898_v14 = vld [vmem:[#allocation74_spill] sm:$0xff]  ;;  %v5900_v11 = vld [vmem:[#allocation71_spill] sm:$0xff] }
 0x1a0   : > { %3189 = vmatpush1.bf16.msra.mxu0 %v5000_v17  ;;  %v5087_v3 = vpack.c.bf16 %v5895_v16, %v5894_v12  ;;  %v5899_v18 = vld [vmem:[#allocation78_spill] sm:$0xff]  ;;  %v5901_v15 = vld [vmem:[#allocation75_spill] sm:$0xff]  ;;  %v5902_v12 = vld [vmem:[#allocation73_spill] sm:$0xff] }
 0x1a1   : > { %3191 = vmatprep.subr.bf16.mxu0 %v5006_v33  ;;  %v5096_v62 = vpack.c.bf16 %v5899_v18, %v5898_v14  ;;  %v5101_v57 = vpack.c.bf16 %v5901_v15, %v5900_v11  ;;  %v5903_v16 = vld [vmem:[#allocation77_spill] sm:$0xff]  ;;  %v831_v5 = vld [vmem:[#allocation3] sm:$0xff]  ;;  %v5904_v14 = vmov 0.0  }
 0x1a2   : > { %3221 = vmatpush1.bf16.msra.mxu1 %v5010_v24  ;;  %v5107_v59 = vpack.c.bf16 %v5903_v16, %v5902_v12  ;;  %v833_v18 = vld [vmem:[#allocation2] sm:$0xff]  ;;  %v834_v11 = vld [vmem:[#allocation2 + $0x8] sm:$0xff]  ;;  %v835_v12 = vld [vmem:[#allocation2 + $0x10] sm:$0xff] }
 0x1a3   : > { %3223 = vmatprep.subr.bf16.mxu1 %v5015_v13 }
 0x1a4   : > { %3193 = vmatpush1.bf16.msra.mxu0 %v5021_v21 }
 0x1a5   : > { %3195 = vmatprep.subr.bf16.mxu0 %v5027_v34 }
 0x1a6   : > { %3225 = vmatpush1.bf16.msra.mxu1 %v5031_v25 }
 0x1a7   : > { %3227 = vmatprep.subr.bf16.mxu1 %v5036_v27 }
 0x1a8   : > { %3197 = vmatpush1.bf16.msra.mxu0 %v5041_v63 }
 0x1a9   : > { %3199 = vmatprep.subr.bf16.mxu0 %v5047_v1 }
 0x1aa   : > { %3229 = vmatpush1.bf16.msra.mxu1 %v5051_v61 }
 0x1ab   : > { %3231 = vmatprep.subr.bf16.mxu1 %v5056_v10 }
 0x1ac   : > { %3201 = vmatpush1.bf16.msra.mxu0 %v5061_v7 }
 0x1ad   : > { %3203 = vmatprep.subr.bf16.mxu0 %v5067_v9 }
 0x1ae   : > { %3233 = vmatpush1.bf16.msra.mxu1 %v5071_v6 }
 0x1af   : > { %3235 = vmatprep.subr.bf16.mxu1 %v5076_v8 }
 0x1b0   : > { %3205 = vmatpush1.bf16.msra.mxu0 %v5081_v4 }
 0x1b1   : > { %3207 = vmatprep.subr.bf16.mxu0 %v5087_v3 }
 0x1b2   : > { %3237 = vmatpush1.bf16.msra.mxu1 %v5091_v2 }
 0x1b3   : > { %3239 = vmatprep.subr.bf16.mxu1 %v5096_v62 }
 0x1b4   : > { %3209 = vmatpush1.bf16.msra.mxu0 %v5101_v57 }
 0x1b5   : > { %3243 = vmatprep.subr.bf16.mxu0 %v4952_v23 }
 0x1b6   : > { %3241 = vmatpush1.bf16.msra.mxu1 %v5107_v59 }
 0x1b7   : > { %3275 = vmatprep.subr.bf16.mxu1 %v4964_v30  ;;  %902 = vmatmul.mubr.f32.vlgmr.msra.gmra.mrb[0].mxu0 %v831_v5 }
 0x1b8   : > { %3245 = vmatpush1.bf16.msra.mxu0 %v4956_v28  ;;  %1071 = vmatprep.mubr.f32.mxu0 %v5904_v14 }
 0x1b9   : > { %973 = vmatmul.mubr.f32.vlgmr.msra.gmra.mrb[0].mxu1 %v831_v5  ;;  %3247 = vmatprep.subr.bf16.mxu0 %v4960_v29 }
 0x1ba   : > { %3277 = vmatpush1.bf16.msra.mxu1 %v4968_v31  ;;  %1142 = vmatprep.mubr.f32.mxu1 %v5904_v14 }
 0x1bb   : > { %3279 = vmatprep.subr.bf16.mxu1 %v4973_v22 }
 0x1bc   : > { %3249 = vmatpush1.bf16.msra.mxu0 %v4978_v19 }
 0x1bd   : > { %3251 = vmatprep.subr.bf16.mxu0 %v4985_v26 }
 0x1be   : > { %3281 = vmatpush1.bf16.msra.mxu1 %v4989_v20 }
 0x1bf   : > { %3283 = vmatprep.subr.bf16.mxu1 %v4994_v32 }
 0x1c0   : > { %3253 = vmatpush1.bf16.msra.mxu0 %v5000_v17 }
 0x1c1   : > { %3255 = vmatprep.subr.bf16.mxu0 %v5006_v33 }
 0x1c2   : > { %3285 = vmatpush1.bf16.msra.mxu1 %v5010_v24 }
 0x1c3   : > { %3287 = vmatprep.subr.bf16.mxu1 %v5015_v13 }
 0x1c4   : > { %3257 = vmatpush1.bf16.msra.mxu0 %v5021_v21 }
 0x1c5   : > { %3259 = vmatprep.subr.bf16.mxu0 %v5027_v34 }
 0x1c6   : > { %3289 = vmatpush1.bf16.msra.mxu1 %v5031_v25 }
 0x1c7   : > { %3291 = vmatprep.subr.bf16.mxu1 %v5036_v27 }
 0x1c8   : > { %3261 = vmatpush1.bf16.msra.mxu0 %v5041_v63 }
 0x1c9   : > { %3263 = vmatprep.subr.bf16.mxu0 %v5047_v1 }
 0x1ca   : > { %3293 = vmatpush1.bf16.msra.mxu1 %v5051_v61 }
 0x1cb   : > { %3295 = vmatprep.subr.bf16.mxu1 %v5056_v10 }
 0x1cc   : > { %3265 = vmatpush1.bf16.msra.mxu0 %v5061_v7 }
 0x1cd   : > { %3267 = vmatprep.subr.bf16.mxu0 %v5067_v9 }
 0x1ce   : > { %3297 = vmatpush1.bf16.msra.mxu1 %v5071_v6 }
 0x1cf   : > { %3299 = vmatprep.subr.bf16.mxu1 %v5076_v8 }
 0x1d0   : > { %3269 = vmatpush1.bf16.msra.mxu0 %v5081_v4 }
 0x1d1   : > { %3271 = vmatprep.subr.bf16.mxu0 %v5087_v3 }
 0x1d2   : > { %3301 = vmatpush1.bf16.msra.mxu1 %v5091_v2 }
 0x1d3   : > { %3303 = vmatprep.subr.bf16.mxu1 %v5096_v62 }
 0x1d4   : > { %3273 = vmatpush1.bf16.msra.mxu0 %v5101_v57 }
 0x1d5   : > { %3307 = vmatprep.subr.bf16.mxu0 %v4952_v23 }
 0x1d6   : > { %3305 = vmatpush1.bf16.msra.mxu1 %v5107_v59 }
 0x1d7   : > { %3339 = vmatprep.subr.bf16.mxu1 %v4964_v30 }
 0x28a   : > { %v903_v15 = vpop.f32.mrb[0].mxu0 }
 0x28b   : > { %v979_v16 = vadd.f32 %v903_v15, %v833_v18  ;;  %v905_v5 = vpop.f32.mrb[1].mxu0  ;;  %v832_v15 = vld [vmem:[#allocation4] sm:$0xff] }
 0x28c   : > { %v974_v53 = vpop.f32.mrb[0].mxu1  ;;  %v980_v0 = vadd.f32 %v905_v5, %v834_v11 }
 0x28d   : > { %v976_v60 = vpop.f32.mrb[1].mxu1  ;;  %v983_v55 = vmul.f32 0.5, %v979_v16  ;;  %v981_v51 = vadd.f32 %v974_v53, %v835_v12 }
 0x28e   : > { %v987_v58 = vmul.f32 0.5, %v980_v0  ;;  %v982_v49 = vadd.f32 %v976_v60, %v836_v54  ;;  %v1005_v0 = vld [vmem:[#allocation2 + $0x30] sm:$0xff] }
 0x28f   : > { %4062 = vtanh.f32 %v983_v55 }
 0x290   : > { %4064 = vtanh.f32 %v987_v58  ;;  %v992_v45 = vmul.f32 0.5, %v982_v49 }
 0x291   : > { %4066 = vtanh.f32 %v981_v51 }
 0x292   : > { %4068 = vtanh.f32 %v992_v45  ;;  %v1004_v45 = vld [vmem:[#allocation2 + $0x28] sm:$0xff] }
 0x299   : > { %v4063_v56 = vpop.eup %4062 }
 0x29a   : > { %v4065_v52 = vpop.eup %4064  ;;  %v985_v47 = vadd.f32 1.0, %v4063_v56 }
 0x29b   : > { %v4067_v43 = vpop.eup %4066  ;;  %v989_v50 = vadd.f32 1.0, %v4065_v52 }
 0x29c   : > { %v986_v18 = vmul.f32 0.5, %v985_v47  ;;  %v4069_v55 = vpop.eup %4068 }
 0x29d   : > { %v990_v11 = vmul.f32 0.5, %v989_v50  ;;  %v994_v51 = vadd.f32 1.0, %v4069_v55 }
 0x29e   : > { %v997_v5 = vmul.f32 %v4067_v43, %v986_v18  ;;  %v1003_v43 = vld [vmem:[#allocation2 + $0x20] sm:$0xff] }
 0x29f   : > { %v996_v16 = vmul.f32 %v990_v11, %v832_v15  ;;  %v995_v54 = vmul.f32 0.5, %v994_v51 }
 0x2a1   : > { %v5148_v53 = vadd.f32 %v997_v5, %v996_v16  ;;  %v1006_v5 = vld [vmem:[#allocation2 + $0x38] sm:$0xff] }
 0x2a3   : > { %4070 = vtanh.f32 %v5148_v53 }
 0x2ad   : > { %v4071_v49 = vpop.eup %4070 }
 0x2ae   : > { %v1000_v58 = vmul.f32 %v4071_v49, %v995_v54 }
 0x2b0   : > { %1001 = vst [vmem:[%s4732_s17] sm:$0xff] %v1000_v58  ;;  %1072 = vmatmul.mubr.f32.vlgmr.msra.gmra.mrb[2].mxu0 %v1000_v58  ;;  %1143 = vmatmul.mubr.f32.vlgmr.msra.gmra.mrb[2].mxu1 %v1000_v58 }
 0x2b1   : > { %3309 = vmatpush1.bf16.msra.mxu0 %v4956_v28  ;;  %3341 = vmatpush1.bf16.msra.mxu1 %v4968_v31 }
 0x2b2   : > { %3311 = vmatprep.subr.bf16.mxu0 %v4960_v29  ;;  %3343 = vmatprep.subr.bf16.mxu1 %v4973_v22 }
 0x2b3   : > { %1242 = vmatprep.mubr.f32.mxu0 %v5904_v14  ;;  %1313 = vmatprep.mubr.f32.mxu1 %v5904_v14 }
 0x2b5   : > { %3313 = vmatpush1.bf16.msra.mxu0 %v4978_v19  ;;  %3345 = vmatpush1.bf16.msra.mxu1 %v4989_v20 }
 0x2b6   : > { %3315 = vmatprep.subr.bf16.mxu0 %v4985_v26  ;;  %3347 = vmatprep.subr.bf16.mxu1 %v4994_v32 }
 0x2b9   : > { %3317 = vmatpush1.bf16.msra.mxu0 %v5000_v17  ;;  %3349 = vmatpush1.bf16.msra.mxu1 %v5010_v24 }
 0x2ba   : > { %3319 = vmatprep.subr.bf16.mxu0 %v5006_v33  ;;  %3351 = vmatprep.subr.bf16.mxu1 %v5015_v13 }
 0x2bd   : > { %3321 = vmatpush1.bf16.msra.mxu0 %v5021_v21  ;;  %3353 = vmatpush1.bf16.msra.mxu1 %v5031_v25 }
 0x2be   : > { %3323 = vmatprep.subr.bf16.mxu0 %v5027_v34  ;;  %3355 = vmatprep.subr.bf16.mxu1 %v5036_v27 }
 0x2c1   : > { %3325 = vmatpush1.bf16.msra.mxu0 %v5041_v63  ;;  %3357 = vmatpush1.bf16.msra.mxu1 %v5051_v61 }
 0x2c2   : > { %3327 = vmatprep.subr.bf16.mxu0 %v5047_v1  ;;  %3359 = vmatprep.subr.bf16.mxu1 %v5056_v10 }
 0x2c5   : > { %3329 = vmatpush1.bf16.msra.mxu0 %v5061_v7  ;;  %3361 = vmatpush1.bf16.msra.mxu1 %v5071_v6 }
 0x2c6   : > { %3331 = vmatprep.subr.bf16.mxu0 %v5067_v9  ;;  %3363 = vmatprep.subr.bf16.mxu1 %v5076_v8 }
 0x2c9   : > { %3333 = vmatpush1.bf16.msra.mxu0 %v5081_v4  ;;  %3365 = vmatpush1.bf16.msra.mxu1 %v5091_v2 }
 0x2ca   : > { %3335 = vmatprep.subr.bf16.mxu0 %v5087_v3  ;;  %3367 = vmatprep.subr.bf16.mxu1 %v5096_v62 }
 0x2cd   : > { %3337 = vmatpush1.bf16.msra.mxu0 %v5101_v57  ;;  %3369 = vmatpush1.bf16.msra.mxu1 %v5107_v59 }
 0x2ce   : > { %3371 = vmatprep.subr.bf16.mxu0 %v4952_v23  ;;  %3403 = vmatprep.subr.bf16.mxu1 %v4964_v30 }
 0x383   : > { %v1073_v47 = vpop.f32.mrb[2].mxu0  ;;  %v1144_v50 = vpop.f32.mrb[2].mxu1 }
 0x384   : > { %v1149_v52 = vadd.f32 %v1073_v47, %v1003_v43  ;;  %v1075_v56 = vpop.f32.mrb[3].mxu0  ;;  %v1146_v60 = vpop.f32.mrb[3].mxu1  ;;  %v1151_v11 = vadd.f32 %v1144_v50, %v1005_v0 }
 0x385   : > { %v1150_v12 = vadd.f32 %v1075_v56, %v1004_v45  ;;  %v1152_v16 = vadd.f32 %v1146_v60, %v1006_v5 }
 0x386   : > { %v1153_v18 = vmul.f32 0.5, %v1149_v52 }
 0x387   : > { %v1157_v15 = vmul.f32 0.5, %v1150_v12  ;;  %v1162_v55 = vmul.f32 0.5, %v1152_v16  ;;  %v1176_v16 = vld [vmem:[#allocation2 + $0x50] sm:$0xff] }
 0x388   : > { %4072 = vtanh.f32 %v1153_v18 }
 0x389   : > { %4074 = vtanh.f32 %v1157_v15 }
 0x38a   : > { %4076 = vtanh.f32 %v1151_v11 }
 0x38b   : > { %4078 = vtanh.f32 %v1162_v55 }
 0x392   : > { %v4073_v51 = vpop.eup %4072 }
 0x393   : > { %v4075_v54 = vpop.eup %4074  ;;  %v1155_v49 = vadd.f32 1.0, %v4073_v51 }
 0x394   : > { %v1159_v58 = vadd.f32 1.0, %v4075_v54  ;;  %v4077_v47 = vpop.eup %4076 }
 0x395   : > { %v1156_v43 = vmul.f32 0.5, %v1155_v49  ;;  %v4079_v50 = vpop.eup %4078 }
 0x396   : > { %v1160_v46 = vmul.f32 0.5, %v1159_v58  ;;  %v1164_v56 = vadd.f32 1.0, %v4079_v50  ;;  %v1177_v58 = vld [vmem:[#allocation2 + $0x58] sm:$0xff] }
 0x397   : > { %v1167_v41 = vmul.f32 %v4077_v47, %v1156_v43 }
 0x398   : > { %v1166_v45 = vmul.f32 %v1160_v46, %v5148_v53  ;;  %v1165_v60 = vmul.f32 0.5, %v1164_v56  ;;  %v1175_v46 = vld [vmem:[#allocation2 + $0x48] sm:$0xff] }
 0x39a   : > { %v5187_v52 = vadd.f32 %v1167_v41, %v1166_v45  ;;  %v1174_v41 = vld [vmem:[#allocation2 + $0x40] sm:$0xff] }
 0x39c   : > { %4080 = vtanh.f32 %v5187_v52 }
 0x3a6   : > { %v4081_v0 = vpop.eup %4080 }
 0x3a7   : > { %v1170_v12 = vmul.f32 %v4081_v0, %v1165_v60 }
 0x3a9   : > { %3140 = vst [vmem:[%s4732_s17 + $0x8] sm:$0xff] %v1170_v12  ;;  %1243 = vmatmul.mubr.f32.vlgmr.msra.gmra.mrb[4].mxu0 %v1170_v12  ;;  %1314 = vmatmul.mubr.f32.vlgmr.msra.gmra.mrb[4].mxu1 %v1170_v12 }
 0x3aa   : > { %3373 = vmatpush1.bf16.msra.mxu0 %v4956_v28  ;;  %3405 = vmatpush1.bf16.msra.mxu1 %v4968_v31 }
 0x3ab   : > { %3375 = vmatprep.subr.bf16.mxu0 %v4960_v29  ;;  %3407 = vmatprep.subr.bf16.mxu1 %v4973_v22 }
 0x3ac   : > { %1413 = vmatprep.mubr.f32.mxu0 %v5904_v14  ;;  %1484 = vmatprep.mubr.f32.mxu1 %v5904_v14 }
 0x3ae   : > { %3377 = vmatpush1.bf16.msra.mxu0 %v4978_v19  ;;  %3409 = vmatpush1.bf16.msra.mxu1 %v4989_v20 }
 0x3af   : > { %3379 = vmatprep.subr.bf16.mxu0 %v4985_v26  ;;  %3411 = vmatprep.subr.bf16.mxu1 %v4994_v32 }
 0x3b2   : > { %3381 = vmatpush1.bf16.msra.mxu0 %v5000_v17  ;;  %3413 = vmatpush1.bf16.msra.mxu1 %v5010_v24 }
 0x3b3   : > { %3383 = vmatprep.subr.bf16.mxu0 %v5006_v33  ;;  %3415 = vmatprep.subr.bf16.mxu1 %v5015_v13 }
 0x3b6   : > { %3385 = vmatpush1.bf16.msra.mxu0 %v5021_v21  ;;  %3417 = vmatpush1.bf16.msra.mxu1 %v5031_v25 }
 0x3b7   : > { %3387 = vmatprep.subr.bf16.mxu0 %v5027_v34  ;;  %3419 = vmatprep.subr.bf16.mxu1 %v5036_v27 }
 0x3ba   : > { %3389 = vmatpush1.bf16.msra.mxu0 %v5041_v63  ;;  %3421 = vmatpush1.bf16.msra.mxu1 %v5051_v61 }
 0x3bb   : > { %3391 = vmatprep.subr.bf16.mxu0 %v5047_v1  ;;  %3423 = vmatprep.subr.bf16.mxu1 %v5056_v10 }
 0x3be   : > { %3393 = vmatpush1.bf16.msra.mxu0 %v5061_v7  ;;  %3425 = vmatpush1.bf16.msra.mxu1 %v5071_v6 }
 0x3bf   : > { %3395 = vmatprep.subr.bf16.mxu0 %v5067_v9  ;;  %3427 = vmatprep.subr.bf16.mxu1 %v5076_v8 }
 0x3c2   : > { %3397 = vmatpush1.bf16.msra.mxu0 %v5081_v4  ;;  %3429 = vmatpush1.bf16.msra.mxu1 %v5091_v2 }
 0x3c3   : > { %3399 = vmatprep.subr.bf16.mxu0 %v5087_v3  ;;  %3431 = vmatprep.subr.bf16.mxu1 %v5096_v62 }
 0x3c6   : > { %3401 = vmatpush1.bf16.msra.mxu0 %v5101_v57  ;;  %3433 = vmatpush1.bf16.msra.mxu1 %v5107_v59 }
 0x3c7   : > { %3435 = vmatprep.subr.bf16.mxu0 %v4952_v23  ;;  %3467 = vmatprep.subr.bf16.mxu1 %v4964_v30 }
 0x47c   : > { %v1244_v53 = vpop.f32.mrb[4].mxu0  ;;  %v1315_v18 = vpop.f32.mrb[4].mxu1 }
 0x47d   : > { %v1320_v15 = vadd.f32 %v1244_v53, %v1174_v41  ;;  %v1246_v11 = vpop.f32.mrb[5].mxu0  ;;  %v1317_v5 = vpop.f32.mrb[5].mxu1  ;;  %v1322_v49 = vadd.f32 %v1315_v18, %v1176_v16 }
 0x47e   : > { %v1321_v55 = vadd.f32 %v1246_v11, %v1175_v46  ;;  %v1323_v43 = vadd.f32 %v1317_v5, %v1177_v58 }
 0x47f   : > { %v1324_v51 = vmul.f32 0.5, %v1320_v15 }
 0x480   : > { %v1328_v54 = vmul.f32 0.5, %v1321_v55  ;;  %v1333_v47 = vmul.f32 0.5, %v1323_v43 }
 0x481   : > { %4082 = vtanh.f32 %v1324_v51  ;;  %v1346_v51 = vld [vmem:[#allocation2 + $0x68] sm:$0xff] }
 0x482   : > { %4084 = vtanh.f32 %v1328_v54 }
 0x483   : > { %4086 = vtanh.f32 %v1322_v49 }
 0x484   : > { %4088 = vtanh.f32 %v1333_v47 }
 0x48b   : > { %v4083_v45 = vpop.eup %4082 }
 0x48c   : > { %v4085_v50 = vpop.eup %4084  ;;  %v1326_v56 = vadd.f32 1.0, %v4083_v45  ;;  %v1347_v45 = vld [vmem:[#allocation2 + $0x70] sm:$0xff] }
 0x48d   : > { %v1330_v60 = vadd.f32 1.0, %v4085_v50  ;;  %v4087_v12 = vpop.eup %4086 }
 0x48e   : > { %v1327_v0 = vmul.f32 0.5, %v1326_v56  ;;  %v4089_v18 = vpop.eup %4088 }
 0x48f   : > { %v1331_v41 = vmul.f32 0.5, %v1330_v60  ;;  %v1335_v11 = vadd.f32 1.0, %v4089_v18 }
 0x490   : > { %v1338_v53 = vmul.f32 %v4087_v12, %v1327_v0  ;;  %v1348_v12 = vld [vmem:[#allocation2 + $0x78] sm:$0xff] }
 0x491   : > { %v1337_v46 = vmul.f32 %v1331_v41, %v5187_v52  ;;  %v1336_v5 = vmul.f32 0.5, %v1335_v11  ;;  %v1345_v52 = vld [vmem:[#allocation2 + $0x60] sm:$0xff] }
 0x493   : > { %v5226_v15 = vadd.f32 %v1338_v53, %v1337_v46 }
 0x495   : > { %4090 = vtanh.f32 %v5226_v15 }
 0x49f   : > { %v4091_v16 = vpop.eup %4090 }
 0x4a0   : > { %v1341_v55 = vmul.f32 %v4091_v16, %v1336_v5 }
 0x4a2   : > { %3141 = vst [vmem:[%s4732_s17 + $0x10] sm:$0xff] %v1341_v55  ;;  %1414 = vmatmul.mubr.f32.vlgmr.msra.gmra.mrb[6].mxu0 %v1341_v55  ;;  %1485 = vmatmul.mubr.f32.vlgmr.msra.gmra.mrb[6].mxu1 %v1341_v55 }
 0x4a3   : > { %3437 = vmatpush1.bf16.msra.mxu0 %v4956_v28  ;;  %3469 = vmatpush1.bf16.msra.mxu1 %v4968_v31 }
 0x4a4   : > { %3439 = vmatprep.subr.bf16.mxu0 %v4960_v29  ;;  %3471 = vmatprep.subr.bf16.mxu1 %v4973_v22 }
 0x4a5   : > { %1584 = vmatprep.mubr.f32.mxu0 %v5904_v14  ;;  %1655 = vmatprep.mubr.f32.mxu1 %v5904_v14 }
 0x4a7   : > { %3441 = vmatpush1.bf16.msra.mxu0 %v4978_v19  ;;  %3473 = vmatpush1.bf16.msra.mxu1 %v4989_v20 }
 0x4a8   : > { %3443 = vmatprep.subr.bf16.mxu0 %v4985_v26  ;;  %3475 = vmatprep.subr.bf16.mxu1 %v4994_v32 }
 0x4ab   : > { %3445 = vmatpush1.bf16.msra.mxu0 %v5000_v17  ;;  %3477 = vmatpush1.bf16.msra.mxu1 %v5010_v24 }
 0x4ac   : > { %3447 = vmatprep.subr.bf16.mxu0 %v5006_v33  ;;  %3479 = vmatprep.subr.bf16.mxu1 %v5015_v13 }
 0x4af   : > { %3449 = vmatpush1.bf16.msra.mxu0 %v5021_v21  ;;  %3481 = vmatpush1.bf16.msra.mxu1 %v5031_v25 }
 0x4b0   : > { %3451 = vmatprep.subr.bf16.mxu0 %v5027_v34  ;;  %3483 = vmatprep.subr.bf16.mxu1 %v5036_v27 }
 0x4b3   : > { %3453 = vmatpush1.bf16.msra.mxu0 %v5041_v63  ;;  %3485 = vmatpush1.bf16.msra.mxu1 %v5051_v61 }
 0x4b4   : > { %3455 = vmatprep.subr.bf16.mxu0 %v5047_v1  ;;  %3487 = vmatprep.subr.bf16.mxu1 %v5056_v10 }
 0x4b7   : > { %3457 = vmatpush1.bf16.msra.mxu0 %v5061_v7  ;;  %3489 = vmatpush1.bf16.msra.mxu1 %v5071_v6 }
 0x4b8   : > { %3459 = vmatprep.subr.bf16.mxu0 %v5067_v9  ;;  %3491 = vmatprep.subr.bf16.mxu1 %v5076_v8 }
 0x4bb   : > { %3461 = vmatpush1.bf16.msra.mxu0 %v5081_v4  ;;  %3493 = vmatpush1.bf16.msra.mxu1 %v5091_v2 }
 0x4bc   : > { %3463 = vmatprep.subr.bf16.mxu0 %v5087_v3  ;;  %3495 = vmatprep.subr.bf16.mxu1 %v5096_v62 }
 0x4bf   : > { %3465 = vmatpush1.bf16.msra.mxu0 %v5101_v57  ;;  %3497 = vmatpush1.bf16.msra.mxu1 %v5107_v59 }
 0x4c0   : > { %3499 = vmatprep.subr.bf16.mxu0 %v4952_v23  ;;  %3531 = vmatprep.subr.bf16.mxu1 %v4964_v30 }
 0x575   : > { %v1415_v54 = vpop.f32.mrb[6].mxu0  ;;  %v1486_v49 = vpop.f32.mrb[6].mxu1 }
 0x576   : > { %v1491_v58 = vadd.f32 %v1415_v54, %v1345_v52  ;;  %v1417_v43 = vpop.f32.mrb[7].mxu0  ;;  %v1488_v47 = vpop.f32.mrb[7].mxu1  ;;  %v1493_v0 = vadd.f32 %v1486_v49, %v1347_v45 }
 0x577   : > { %v1492_v50 = vadd.f32 %v1417_v43, %v1346_v51  ;;  %v1494_v41 = vadd.f32 %v1488_v47, %v1348_v12 }
 0x578   : > { %v1495_v56 = vmul.f32 0.5, %v1491_v58 }
 0x579   : > { %v1499_v60 = vmul.f32 0.5, %v1492_v50  ;;  %v1504_v53 = vmul.f32 0.5, %v1494_v41 }
 0x57a   : > { %4092 = vtanh.f32 %v1495_v56  ;;  %v1517_v56 = vld [vmem:[#allocation2 + $0x88] sm:$0xff] }
 0x57b   : > { %4094 = vtanh.f32 %v1499_v60 }
 0x57c   : > { %4096 = vtanh.f32 %v1493_v0 }
 0x57d   : > { %4098 = vtanh.f32 %v1504_v53 }
 0x584   : > { %v4093_v46 = vpop.eup %4092 }
 0x585   : > { %v4095_v18 = vpop.eup %4094  ;;  %v1497_v11 = vadd.f32 1.0, %v4093_v46  ;;  %v1518_v46 = vld [vmem:[#allocation2 + $0x90] sm:$0xff] }
 0x586   : > { %v1501_v5 = vadd.f32 1.0, %v4095_v18  ;;  %v4097_v55 = vpop.eup %4096 }
 0x587   : > { %v1498_v16 = vmul.f32 0.5, %v1497_v11  ;;  %v4099_v49 = vpop.eup %4098 }
 0x588   : > { %v1502_v52 = vmul.f32 0.5, %v1501_v5  ;;  %v1506_v43 = vadd.f32 1.0, %v4099_v49 }
 0x589   : > { %v1509_v54 = vmul.f32 %v4097_v55, %v1498_v16  ;;  %v1519_v55 = vld [vmem:[#allocation2 + $0x98] sm:$0xff] }
 0x58a   : > { %v1508_v51 = vmul.f32 %v1502_v52, %v5226_v15  ;;  %v1507_v47 = vmul.f32 0.5, %v1506_v43  ;;  %v1516_v15 = vld [vmem:[#allocation2 + $0x80] sm:$0xff] }
 0x58c   : > { %v5265_v58 = vadd.f32 %v1509_v54, %v1508_v51 }
 0x58e   : > { %4100 = vtanh.f32 %v5265_v58 }
 0x598   : > { %v4101_v45 = vpop.eup %4100 }
 0x599   : > { %v1512_v50 = vmul.f32 %v4101_v45, %v1507_v47 }
 0x59b   : > { %3142 = vst [vmem:[%s4732_s17 + $0x18] sm:$0xff] %v1512_v50  ;;  %1585 = vmatmul.mubr.f32.vlgmr.msra.gmra.mrb[8].mxu0 %v1512_v50  ;;  %1656 = vmatmul.mubr.f32.vlgmr.msra.gmra.mrb[8].mxu1 %v1512_v50 }
 0x59c   : > { %3501 = vmatpush1.bf16.msra.mxu0 %v4956_v28  ;;  %3533 = vmatpush1.bf16.msra.mxu1 %v4968_v31 }
 0x59d   : > { %3503 = vmatprep.subr.bf16.mxu0 %v4960_v29  ;;  %3535 = vmatprep.subr.bf16.mxu1 %v4973_v22 }
 0x59e   : > { %1755 = vmatprep.mubr.f32.mxu0 %v5904_v14  ;;  %1826 = vmatprep.mubr.f32.mxu1 %v5904_v14 }
 0x5a0   : > { %3505 = vmatpush1.bf16.msra.mxu0 %v4978_v19  ;;  %3537 = vmatpush1.bf16.msra.mxu1 %v4989_v20 }
 0x5a1   : > { %3507 = vmatprep.subr.bf16.mxu0 %v4985_v26  ;;  %3539 = vmatprep.subr.bf16.mxu1 %v4994_v32 }
 0x5a4   : > { %3509 = vmatpush1.bf16.msra.mxu0 %v5000_v17  ;;  %3541 = vmatpush1.bf16.msra.mxu1 %v5010_v24 }
 0x5a5   : > { %3511 = vmatprep.subr.bf16.mxu0 %v5006_v33  ;;  %3543 = vmatprep.subr.bf16.mxu1 %v5015_v13 }
 0x5a8   : > { %3513 = vmatpush1.bf16.msra.mxu0 %v5021_v21  ;;  %3545 = vmatpush1.bf16.msra.mxu1 %v5031_v25 }
 0x5a9   : > { %3515 = vmatprep.subr.bf16.mxu0 %v5027_v34  ;;  %3547 = vmatprep.subr.bf16.mxu1 %v5036_v27 }
 0x5ac   : > { %3517 = vmatpush1.bf16.msra.mxu0 %v5041_v63  ;;  %3549 = vmatpush1.bf16.msra.mxu1 %v5051_v61 }
 0x5ad   : > { %3519 = vmatprep.subr.bf16.mxu0 %v5047_v1  ;;  %3551 = vmatprep.subr.bf16.mxu1 %v5056_v10 }
 0x5b0   : > { %3521 = vmatpush1.bf16.msra.mxu0 %v5061_v7  ;;  %3553 = vmatpush1.bf16.msra.mxu1 %v5071_v6 }
 0x5b1   : > { %3523 = vmatprep.subr.bf16.mxu0 %v5067_v9  ;;  %3555 = vmatprep.subr.bf16.mxu1 %v5076_v8 }
 0x5b4   : > { %3525 = vmatpush1.bf16.msra.mxu0 %v5081_v4  ;;  %3557 = vmatpush1.bf16.msra.mxu1 %v5091_v2 }
 0x5b5   : > { %3527 = vmatprep.subr.bf16.mxu0 %v5087_v3  ;;  %3559 = vmatprep.subr.bf16.mxu1 %v5096_v62 }
 0x5b8   : > { %3529 = vmatpush1.bf16.msra.mxu0 %v5101_v57  ;;  %3561 = vmatpush1.bf16.msra.mxu1 %v5107_v59 }
 0x5b9   : > { %3563 = vmatprep.subr.bf16.mxu0 %v4952_v23  ;;  %3595 = vmatprep.subr.bf16.mxu1 %v4964_v30 }
 0x66e   : > { %v1586_v60 = vpop.f32.mrb[8].mxu0  ;;  %v1657_v0 = vpop.f32.mrb[8].mxu1 }
 0x66f   : > { %v1662_v12 = vadd.f32 %v1586_v60, %v1516_v15  ;;  %v1588_v41 = vpop.f32.mrb[9].mxu0  ;;  %v1659_v53 = vpop.f32.mrb[9].mxu1  ;;  %v1664_v16 = vadd.f32 %v1657_v0, %v1518_v46 }
 0x670   : > { %v1663_v18 = vadd.f32 %v1588_v41, %v1517_v56  ;;  %v1665_v52 = vadd.f32 %v1659_v53, %v1519_v55 }
 0x671   : > { %v1666_v11 = vmul.f32 0.5, %v1662_v12 }
 0x672   : > { %v1670_v5 = vmul.f32 0.5, %v1663_v18  ;;  %v1675_v54 = vmul.f32 0.5, %v1665_v52 }
 0x673   : > { %4102 = vtanh.f32 %v1666_v11  ;;  %v1688_v11 = vld [vmem:[#allocation2 + $0xa8] sm:$0xff] }
 0x674   : > { %4104 = vtanh.f32 %v1670_v5 }
 0x675   : > { %4106 = vtanh.f32 %v1664_v16 }
 0x676   : > { %4108 = vtanh.f32 %v1675_v54 }
 0x67d   : > { %v4103_v51 = vpop.eup %4102 }
 0x67e   : > { %v4105_v49 = vpop.eup %4104  ;;  %v1668_v43 = vadd.f32 1.0, %v4103_v51  ;;  %v1689_v51 = vld [vmem:[#allocation2 + $0xb0] sm:$0xff] }
 0x67f   : > { %v1672_v47 = vadd.f32 1.0, %v4105_v49  ;;  %v4107_v50 = vpop.eup %4106 }
 0x680   : > { %v1669_v45 = vmul.f32 0.5, %v1668_v43  ;;  %v4109_v0 = vpop.eup %4108 }
 0x681   : > { %v1673_v15 = vmul.f32 0.5, %v1672_v47  ;;  %v1677_v41 = vadd.f32 1.0, %v4109_v0 }
 0x682   : > { %v1680_v60 = vmul.f32 %v4107_v50, %v1669_v45  ;;  %v1690_v50 = vld [vmem:[#allocation2 + $0xb8] sm:$0xff] }
 0x683   : > { %v1679_v56 = vmul.f32 %v1673_v15, %v5265_v58  ;;  %v1678_v53 = vmul.f32 0.5, %v1677_v41  ;;  %v1687_v58 = vld [vmem:[#allocation2 + $0xa0] sm:$0xff] }
 0x685   : > { %v5304_v12 = vadd.f32 %v1680_v60, %v1679_v56 }
 0x687   : > { %4110 = vtanh.f32 %v5304_v12 }
 0x691   : > { %v4111_v46 = vpop.eup %4110 }
 0x692   : > { %v1683_v18 = vmul.f32 %v4111_v46, %v1678_v53 }
 0x694   : > { %3143 = vst [vmem:[%s4732_s17 + $0x20] sm:$0xff] %v1683_v18  ;;  %1756 = vmatmul.mubr.f32.vlgmr.msra.gmra.mrb[10].mxu0 %v1683_v18  ;;  %1827 = vmatmul.mubr.f32.vlgmr.msra.gmra.mrb[10].mxu1 %v1683_v18 }
 0x695   : > { %3565 = vmatpush1.bf16.msra.mxu0 %v4956_v28  ;;  %3597 = vmatpush1.bf16.msra.mxu1 %v4968_v31 }
 0x696   : > { %3567 = vmatprep.subr.bf16.mxu0 %v4960_v29  ;;  %3599 = vmatprep.subr.bf16.mxu1 %v4973_v22 }
 0x697   : > { %1926 = vmatprep.mubr.f32.mxu0 %v5904_v14  ;;  %1997 = vmatprep.mubr.f32.mxu1 %v5904_v14 }
 0x699   : > { %3569 = vmatpush1.bf16.msra.mxu0 %v4978_v19  ;;  %3601 = vmatpush1.bf16.msra.mxu1 %v4989_v20 }
 0x69a   : > { %3571 = vmatprep.subr.bf16.mxu0 %v4985_v26  ;;  %3603 = vmatprep.subr.bf16.mxu1 %v4994_v32 }
 0x69d   : > { %3573 = vmatpush1.bf16.msra.mxu0 %v5000_v17  ;;  %3605 = vmatpush1.bf16.msra.mxu1 %v5010_v24 }
 0x69e   : > { %3575 = vmatprep.subr.bf16.mxu0 %v5006_v33  ;;  %3607 = vmatprep.subr.bf16.mxu1 %v5015_v13 }
 0x6a1   : > { %3577 = vmatpush1.bf16.msra.mxu0 %v5021_v21  ;;  %3609 = vmatpush1.bf16.msra.mxu1 %v5031_v25 }
 0x6a2   : > { %3579 = vmatprep.subr.bf16.mxu0 %v5027_v34  ;;  %3611 = vmatprep.subr.bf16.mxu1 %v5036_v27 }
 0x6a5   : > { %3581 = vmatpush1.bf16.msra.mxu0 %v5041_v63  ;;  %3613 = vmatpush1.bf16.msra.mxu1 %v5051_v61 }
 0x6a6   : > { %3583 = vmatprep.subr.bf16.mxu0 %v5047_v1  ;;  %3615 = vmatprep.subr.bf16.mxu1 %v5056_v10 }
 0x6a9   : > { %3585 = vmatpush1.bf16.msra.mxu0 %v5061_v7  ;;  %3617 = vmatpush1.bf16.msra.mxu1 %v5071_v6 }
 0x6aa   : > { %3587 = vmatprep.subr.bf16.mxu0 %v5067_v9  ;;  %3619 = vmatprep.subr.bf16.mxu1 %v5076_v8 }
 0x6ad   : > { %3589 = vmatpush1.bf16.msra.mxu0 %v5081_v4  ;;  %3621 = vmatpush1.bf16.msra.mxu1 %v5091_v2 }
 0x6ae   : > { %3591 = vmatprep.subr.bf16.mxu0 %v5087_v3  ;;  %3623 = vmatprep.subr.bf16.mxu1 %v5096_v62 }
 0x6b1   : > { %3593 = vmatpush1.bf16.msra.mxu0 %v5101_v57  ;;  %3625 = vmatpush1.bf16.msra.mxu1 %v5107_v59 }
 0x6b2   : > { %3627 = vmatprep.subr.bf16.mxu0 %v4952_v23  ;;  %3659 = vmatprep.subr.bf16.mxu1 %v4964_v30 }
 0x767   : > { %v1757_v5 = vpop.f32.mrb[10].mxu0  ;;  %v1828_v16 = vpop.f32.mrb[10].mxu1 }
 0x768   : > { %v1833_v55 = vadd.f32 %v1757_v5, %v1687_v58  ;;  %v1759_v52 = vpop.f32.mrb[11].mxu0  ;;  %v1830_v54 = vpop.f32.mrb[11].mxu1  ;;  %v1835_v45 = vadd.f32 %v1828_v16, %v1689_v51 }
 0x769   : > { %v1834_v49 = vadd.f32 %v1759_v52, %v1688_v11  ;;  %v1836_v15 = vadd.f32 %v1830_v54, %v1690_v50  ;;  %v2031_v50 = vld [vmem:[#allocation2 + $0xf0] sm:$0xff] }
 0x76a   : > { %v1837_v43 = vmul.f32 0.5, %v1833_v55 }
 0x76b   : > { %v1841_v47 = vmul.f32 0.5, %v1834_v49  ;;  %v1846_v23 = vmul.f32 0.5, %v1836_v15 }
 0x76c   : > { %4112 = vtanh.f32 %v1837_v43 }
 0x76d   : > { %4114 = vtanh.f32 %v1841_v47 }
 0x76e   : > { %4116 = vtanh.f32 %v1835_v45 }
 0x76f   : > { %4118 = vtanh.f32 %v1846_v23 }
 0x776   : > { %v4113_v60 = vpop.eup %4112 }
 0x777   : > { %v4115_v30 = vpop.eup %4114  ;;  %v1839_v56 = vadd.f32 1.0, %v4113_v60 }
 0x778   : > { %v1843_v0 = vadd.f32 1.0, %v4115_v30  ;;  %v4117_v53 = vpop.eup %4116 }
 0x779   : > { %v1840_v41 = vmul.f32 0.5, %v1839_v56  ;;  %v4119_v5 = vpop.eup %4118  ;;  %v2032_v56 = vld [vmem:[#allocation2 + $0xf8] sm:$0xff] }
 0x77a   : > { %v1844_v46 = vmul.f32 0.5, %v1843_v0  ;;  %v1848_v16 = vadd.f32 1.0, %v4119_v5 }
 0x77b   : > { %v1851_v18 = vmul.f32 %v4117_v53, %v1840_v41 }
 0x77c   : > { %v1850_v58 = vmul.f32 %v1844_v46, %v5304_v12  ;;  %v1849_v55 = vmul.f32 0.5, %v1848_v16  ;;  %v2030_v12 = vld [vmem:[#allocation2 + $0xe8] sm:$0xff] }
 0x77e   : > { %v5343_v11 = vadd.f32 %v1851_v18, %v1850_v58 }
 0x780   : > { %4120 = vtanh.f32 %v5343_v11 }
 0x78a   : > { %v4121_v52 = vpop.eup %4120 }
 0x78b   : > { %v1854_v54 = vmul.f32 %v4121_v52, %v1849_v55 }
 0x78d   : > { %3144 = vst [vmem:[%s4732_s17 + $0x28] sm:$0xff] %v1854_v54  ;;  %1927 = vmatmul.mubr.f32.vlgmr.msra.gmra.mrb[12].mxu0 %v1854_v54  ;;  %1998 = vmatmul.mubr.f32.vlgmr.msra.gmra.mrb[12].mxu1 %v1854_v54 }
 0x78e   : > { %3629 = vmatpush1.bf16.msra.mxu0 %v4956_v28  ;;  %3661 = vmatpush1.bf16.msra.mxu1 %v4968_v31  ;;  %v1861_v31 = vld [vmem:[#allocation2 + $0xd8] sm:$0xff] }
 0x78f   : > { %3631 = vmatprep.subr.bf16.mxu0 %v4960_v29  ;;  %3663 = vmatprep.subr.bf16.mxu1 %v4973_v22 }
 0x790   : > { %2097 = vmatprep.mubr.f32.mxu0 %v5904_v14  ;;  %2168 = vmatprep.mubr.f32.mxu1 %v5904_v14  ;;  %v2029_v14 = vld [vmem:[#allocation2 + $0xe0] sm:$0xff] }
 0x792   : > { %3633 = vmatpush1.bf16.msra.mxu0 %v4978_v19  ;;  %3665 = vmatpush1.bf16.msra.mxu1 %v4989_v20 }
 0x793   : > { %3635 = vmatprep.subr.bf16.mxu0 %v4985_v26  ;;  %3667 = vmatprep.subr.bf16.mxu1 %v4994_v32 }
 0x796   : > { %3637 = vmatpush1.bf16.msra.mxu0 %v5000_v17  ;;  %3669 = vmatpush1.bf16.msra.mxu1 %v5010_v24 }
 0x797   : > { %3639 = vmatprep.subr.bf16.mxu0 %v5006_v33  ;;  %3671 = vmatprep.subr.bf16.mxu1 %v5015_v13 }
 0x79a   : > { %3641 = vmatpush1.bf16.msra.mxu0 %v5021_v21  ;;  %3673 = vmatpush1.bf16.msra.mxu1 %v5031_v25 }
 0x79b   : > { %3643 = vmatprep.subr.bf16.mxu0 %v5027_v34  ;;  %3675 = vmatprep.subr.bf16.mxu1 %v5036_v27 }
 0x79e   : > { %3645 = vmatpush1.bf16.msra.mxu0 %v5041_v63  ;;  %3677 = vmatpush1.bf16.msra.mxu1 %v5051_v61  ;;  %v1858_v61 = vld [vmem:[#allocation2 + $0xc0] sm:$0xff]  ;;  %v1859_v63 = vld [vmem:[#allocation2 + $0xc8] sm:$0xff] }
 0x79f   : > { %3647 = vmatprep.subr.bf16.mxu0 %v5047_v1  ;;  %3679 = vmatprep.subr.bf16.mxu1 %v5056_v10 }
 0x7a2   : > { %3649 = vmatpush1.bf16.msra.mxu0 %v5061_v7  ;;  %3681 = vmatpush1.bf16.msra.mxu1 %v5071_v6 }
 0x7a3   : > { %3651 = vmatprep.subr.bf16.mxu0 %v5067_v9  ;;  %3683 = vmatprep.subr.bf16.mxu1 %v5076_v8  ;;  %v1860_v8 = vld [vmem:[#allocation2 + $0xd0] sm:$0xff] }
 0x7a6   : > { %3653 = vmatpush1.bf16.msra.mxu0 %v5081_v4  ;;  %3685 = vmatpush1.bf16.msra.mxu1 %v5091_v2 }
 0x7a7   : > { %3655 = vmatprep.subr.bf16.mxu0 %v5087_v3  ;;  %3687 = vmatprep.subr.bf16.mxu1 %v5096_v62 }
 0x7aa   : > { %3657 = vmatpush1.bf16.msra.mxu0 %v5101_v57  ;;  %3689 = vmatpush1.bf16.msra.mxu1 %v5107_v59 }
 0x860   : > { %v1928_v1 = vpop.f32.mrb[12].mxu0  ;;  %v1999_v6 = vpop.f32.mrb[12].mxu1 }
 0x861   : > { %v2004_v7 = vadd.f32 %v1928_v1, %v1858_v61  ;;  %v1930_v9 = vpop.f32.mrb[13].mxu0  ;;  %v2001_v10 = vpop.f32.mrb[13].mxu1  ;;  %v2006_v2 = vadd.f32 %v1999_v6, %v1860_v8 }
 0x862   : > { %v2005_v28 = vadd.f32 %v1930_v9, %v1859_v63  ;;  %v2007_v62 = vadd.f32 %v2001_v10, %v1861_v31 }
 0x863   : > { %v2008_v4 = vmul.f32 0.5, %v2004_v7 }
 0x864   : > { %v2012_v29 = vmul.f32 0.5, %v2005_v28  ;;  %v2017_v57 = vmul.f32 0.5, %v2007_v62 }
 0x865   : > { %4122 = vtanh.f32 %v2008_v4 }
 0x866   : > { %4124 = vtanh.f32 %v2012_v29 }
 0x867   : > { %4126 = vtanh.f32 %v2006_v2 }
 0x868   : > { %4128 = vtanh.f32 %v2017_v57 }
 0x86f   : > { %v4123_v22 = vpop.eup %4122 }
 0x870   : > { %v4125_v19 = vpop.eup %4124  ;;  %v2010_v26 = vadd.f32 1.0, %v4123_v22 }
 0x871   : > { %v2014_v20 = vadd.f32 1.0, %v4125_v19  ;;  %v4127_v27 = vpop.eup %4126 }
 0x872   : > { %v2011_v32 = vmul.f32 0.5, %v2010_v26  ;;  %v4129_v21 = vpop.eup %4128 }
 0x873   : > { %v2015_v17 = vmul.f32 0.5, %v2014_v20  ;;  %v2019_v34 = vadd.f32 1.0, %v4129_v21 }
 0x874   : > { %v2022_v33 = vmul.f32 %v4127_v27, %v2011_v32 }
 0x875   : > { %v2021_v24 = vmul.f32 %v2015_v17, %v5343_v11  ;;  %v2020_v25 = vmul.f32 0.5, %v2019_v34 }
 0x877   : > { %v2023_v13 = vadd.f32 %v2022_v33, %v2021_v24 }
 0x879   : > { %4130 = vtanh.f32 %v2023_v13 }
 0x883   : > { %v4131_v3 = vpop.eup %4130 }
 0x884   : > { %v2025_v59 = vmul.f32 %v4131_v3, %v2020_v25 }
 0x886   : > { %3145 = vst [vmem:[%s4732_s17 + $0x30] sm:$0xff] %v2025_v59  ;;  %2098 = vmatmul.mubr.f32.vlgmr.msra.gmra.mrb[14].mxu0 %v2025_v59  ;;  %2169 = vmatmul.mubr.f32.vlgmr.msra.gmra.mrb[14].mxu1 %v2025_v59 }
 0x959   : > { %v2099_v51 = vpop.f32.mrb[14].mxu0  ;;  %v2170_v49 = vpop.f32.mrb[14].mxu1 }
 0x95a   : > { %v2175_v43 = vadd.f32 %v2099_v51, %v2029_v14  ;;  %v2101_v47 = vpop.f32.mrb[15].mxu0  ;;  %v2172_v45 = vpop.f32.mrb[15].mxu1  ;;  %v2177_v30 = vadd.f32 %v2170_v49, %v2031_v50 }
 0x95b   : > { %v2176_v15 = vadd.f32 %v2101_v47, %v2030_v12  ;;  %v2178_v0 = vadd.f32 %v2172_v45, %v2032_v56 }
 0x95c   : > { %v2179_v23 = vmul.f32 0.5, %v2175_v43 }
 0x95d   : > { %v2183_v60 = vmul.f32 0.5, %v2176_v15  ;;  %v2188_v41 = vmul.f32 0.5, %v2178_v0 }
 0x95e   : > { %4132 = vtanh.f32 %v2179_v23 }
 0x95f   : > { %4134 = vtanh.f32 %v2183_v60 }
 0x960   : > { %4136 = vtanh.f32 %v2177_v30 }
 0x961   : > { %4138 = vtanh.f32 %v2188_v41 }
 0x968   : > { %v4133_v53 = vpop.eup %4132 }
 0x969   : > { %v4135_v46 = vpop.eup %4134  ;;  %v2181_v18 = vadd.f32 1.0, %v4133_v53 }
 0x96a   : > { %v2185_v58 = vadd.f32 1.0, %v4135_v46  ;;  %v4137_v5 = vpop.eup %4136 }
 0x96b   : > { %v2182_v11 = vmul.f32 0.5, %v2181_v18  ;;  %v4139_v61 = vpop.eup %4138 }
 0x96c   : > { %v2186_v16 = vmul.f32 0.5, %v2185_v58  ;;  %v2190_v63 = vadd.f32 1.0, %v4139_v61 }
 0x96d   : > { %v2193_v55 = vmul.f32 %v4137_v5, %v2182_v11 }
 0x96e   : > { %v2192_v52 = vmul.f32 %v2186_v16, %v2023_v13  ;;  %v2191_v1 = vmul.f32 0.5, %v2190_v63 }
 0x970   : > { %v2194_v54 = vadd.f32 %v2193_v55, %v2192_v52 }
 0x972   : > { %4140 = vtanh.f32 %v2194_v54  ;;  %2200 = vst [vmem:[#allocation4] sm:$0xff] %v2194_v54 }
 0x97c   : > { %v4141_v6 = vpop.eup %4140 }
 0x97d   : > { %v2196_v7 = vmul.f32 %v4141_v6, %v2191_v1 }
 0x97f   : > { %3146 = vst [vmem:[%s4732_s17 + $0x38] sm:$0xff] %v2196_v7  ;;  %2199 = vst [vmem:[#allocation3] sm:$0xff] %v2196_v7 }
 0x980 PF: > { %p3147_p3 = scmp.ne.s32.totalorder %s4434_s30, 1 }
 0x981   : > { %v5385_v9 = vpack.c.bf16 (!%p3147_p3), %v4791_v40, %v4783_v36  ;;  %v5389_v10 = vpack.c.bf16 (!%p3147_p3), %v4789_v39, %v4781_v35  ;;  %v5393_v8 = vpack.c.bf16 (!%p3147_p3), %v4807_v48, %v4799_v44  ;;  %v5397_v28 = vpack.c.bf16 (!%p3147_p3), %v4795_v42, %v4787_v38  ;;  %v5905_v4 = vld [vmem:[#allocation24_spill] sm:$0xff] (!%p3147_p3)  ;;  %v5906_v36 = vld [vmem:[#allocation27_spill] sm:$0xff] (!%p3147_p3)  ;;  %v5907_v40 = vld [vmem:[#allocation30_spill] sm:$0xff] (!%p3147_p3) }
 0x982   : > { %2203 = sbr.rel (%p3147_p3) target bundleno = 3465 (0xd89), region = 72  ;;  %v5401_v29 = vpack.c.bf16 (!%p3147_p3), %v5905_v4, %v4785_v37  ;;  %v5406_v2 = vpack.c.bf16 (!%p3147_p3), %v5907_v40, %v5906_v36  ;;  %v5908_v35 = vld [vmem:[#allocation25_spill] sm:$0xff] (!%p3147_p3)  ;;  %v5909_v39 = vld [vmem:[#allocation28_spill] sm:$0xff] (!%p3147_p3)  ;;  %v5912_v48 = vld [vmem:[#allocation26_spill] sm:$0xff] (!%p3147_p3)  ;;  %v4454_v26 = vmov (!%p3147_p3), 0.0  }
 0x983   : > { %3691 = vmatprep.subr.bf16.mxu0 (!%p3147_p3), %v5385_v9  ;;  %v5411_v44 = vpack.c.bf16 (!%p3147_p3), %v5909_v39, %v5908_v35  ;;  %3723 = vmatprep.subr.bf16.mxu1 (!%p3147_p3), %v5397_v28  ;;  %v5910_v37 = vld [vmem:[#allocation32_spill] sm:$0xff] (!%p3147_p3)  ;;  %v5913_v31 = vld [vmem:[#allocation29_spill] sm:$0xff] (!%p3147_p3)  ;;  %v5914_v57 = vld [vmem:[#allocation34_spill] sm:$0xff] (!%p3147_p3) }
 0x984   : > { %3693 = vmatpush1.bf16.msra.mxu0 (!%p3147_p3), %v5389_v10  ;;  %3725 = vmatpush1.bf16.msra.mxu1 (!%p3147_p3), %v5401_v29  ;;  %v5911_v38 = vld [vmem:[#allocation36_spill] sm:$0xff] (!%p3147_p3)  ;;  %v5422_v62 = vpack.c.bf16 (!%p3147_p3), %v5913_v31, %v5912_v48  ;;  %v5915_v22 = vld [vmem:[#allocation38_spill] sm:$0xff] (!%p3147_p3)  ;;  %v5916_v20 = vld [vmem:[#allocation31_spill] sm:$0xff] (!%p3147_p3) }
 0x985   : > { %3695 = vmatprep.subr.bf16.mxu0 (!%p3147_p3), %v5393_v8  ;;  %v5418_v42 = vpack.c.bf16 (!%p3147_p3), %v5911_v38, %v5910_v37  ;;  %3727 = vmatprep.subr.bf16.mxu1 (!%p3147_p3), %v5406_v2  ;;  %v5427_v19 = vpack.c.bf16 (!%p3147_p3), %v5915_v22, %v5914_v57  ;;  %v5917_v32 = vld [vmem:[#allocation35_spill] sm:$0xff] (!%p3147_p3)  ;;  %v5918_v17 = vld [vmem:[#allocation40_spill] sm:$0xff] (!%p3147_p3)  ;;  %v5920_v13 = vld [vmem:[#allocation33_spill] sm:$0xff] (!%p3147_p3) }
 0x986   : > { %2274 = vmatprep.mubr.f32.mxu0 (!%p3147_p3), %v4454_v26  ;;  %v5433_v27 = vpack.c.bf16 (!%p3147_p3), %v5917_v32, %v5916_v20  ;;  %v5919_v33 = vld [vmem:[#allocation44_spill] sm:$0xff] (!%p3147_p3)  ;;  %v5921_v21 = vld [vmem:[#allocation37_spill] sm:$0xff] (!%p3147_p3)  ;;  %v5922_v25 = vld [vmem:[#allocation42_spill] sm:$0xff] (!%p3147_p3)  ;;  %2345 = vmatprep.mubr.f32.mxu1 (!%p3147_p3), %v4454_v26 }
 0x987   : > { %v5439_v24 = vpack.c.bf16 (!%p3147_p3), %v5919_v33, %v5918_v17  ;;  %v5443_v34 = vpack.c.bf16 (!%p3147_p3), %v5921_v21, %v5920_v13  ;;  %v5923_v3 = vld [vmem:[#allocation46_spill] sm:$0xff] (!%p3147_p3)  ;;  %v5924_v14 = vld [vmem:[#allocation39_spill] sm:$0xff] (!%p3147_p3)  ;;  %v5926_v49 = vld [vmem:[#allocation48_spill] sm:$0xff] (!%p3147_p3) }
 0x988   : > { %3697 = vmatpush1.bf16.msra.mxu0 (!%p3147_p3), %v5411_v44  ;;  %3729 = vmatpush1.bf16.msra.mxu1 (!%p3147_p3), %v5422_v62  ;;  %v5448_v59 = vpack.c.bf16 (!%p3147_p3), %v5923_v3, %v5922_v25  ;;  %v5925_v12 = vld [vmem:[#allocation43_spill] sm:$0xff] (!%p3147_p3)  ;;  %v5927_v43 = vld [vmem:[#allocation52_spill] sm:$0xff] (!%p3147_p3)  ;;  %v5928_v45 = vld [vmem:[#allocation41_spill] sm:$0xff] (!%p3147_p3) }
 0x989   : > { %3699 = vmatprep.subr.bf16.mxu0 %v5418_v42  ;;  %3731 = vmatprep.subr.bf16.mxu1 %v5427_v19  ;;  %v5454_v51 = vpack.c.bf16 %v5925_v12, %v5924_v14  ;;  %v5460_v47 = vpack.c.bf16 %v5927_v43, %v5926_v49  ;;  %v5929_v50 = vld [vmem:[#allocation45_spill] sm:$0xff]  ;;  %v5930_v23 = vld [vmem:[#allocation50_spill] sm:$0xff]  ;;  %v5932_v56 = vld [vmem:[#allocation47_spill] sm:$0xff] }
 0x98a   : > { %v5464_v15 = vpack.c.bf16 %v5929_v50, %v5928_v45  ;;  %v5931_v60 = vld [vmem:[#allocation54_spill] sm:$0xff]  ;;  %v5933_v0 = vld [vmem:[#allocation51_spill] sm:$0xff]  ;;  %v5934_v53 = vld [vmem:[#allocation56_spill] sm:$0xff] }
 0x98b   : > { %v5469_v30 = vpack.c.bf16 %v5931_v60, %v5930_v23  ;;  %v5474_v41 = vpack.c.bf16 %v5933_v0, %v5932_v56  ;;  %v5935_v46 = vld [vmem:[#allocation60_spill] sm:$0xff]  ;;  %v5936_v58 = vld [vmem:[#allocation49_spill] sm:$0xff]  ;;  %v5938_v16 = vld [vmem:[#allocation58_spill] sm:$0xff] }
 0x98c   : > { %3701 = vmatpush1.bf16.msra.mxu0 %v5433_v27  ;;  %3733 = vmatpush1.bf16.msra.mxu1 %v5443_v34  ;;  %v5480_v18 = vpack.c.bf16 %v5935_v46, %v5934_v53  ;;  %v5937_v11 = vld [vmem:[#allocation53_spill] sm:$0xff]  ;;  %v5939_v55 = vld [vmem:[#allocation62_spill] sm:$0xff]  ;;  %v5940_v54 = vld [vmem:[#allocation55_spill] sm:$0xff] }
 0x98d   : > { %3703 = vmatprep.subr.bf16.mxu0 %v5439_v24  ;;  %3735 = vmatprep.subr.bf16.mxu1 %v5448_v59  ;;  %v5484_v5 = vpack.c.bf16 %v5937_v11, %v5936_v58  ;;  %v5489_v52 = vpack.c.bf16 %v5939_v55, %v5938_v16  ;;  %v5941_v61 = vld [vmem:[#allocation59_spill] sm:$0xff]  ;;  %v5942_v1 = vld [vmem:[#allocation64_spill] sm:$0xff]  ;;  %v5944_v4 = vld [vmem:[#allocation57_spill] sm:$0xff] }
 0x98e   : > { %v5494_v63 = vpack.c.bf16 %v5941_v61, %v5940_v54  ;;  %v5943_v6 = vld [vmem:[#allocation68_spill] sm:$0xff]  ;;  %v5945_v36 = vld [vmem:[#allocation61_spill] sm:$0xff]  ;;  %v5946_v35 = vld [vmem:[#allocation66_spill] sm:$0xff] }
 0x98f   : > { %v5500_v7 = vpack.c.bf16 %v5943_v6, %v5942_v1  ;;  %v5504_v40 = vpack.c.bf16 %v5945_v36, %v5944_v4  ;;  %v5947_v39 = vld [vmem:[#allocation70_spill] sm:$0xff]  ;;  %v5948_v38 = vld [vmem:[#allocation63_spill] sm:$0xff]  ;;  %v5950_v57 = vld [vmem:[#allocation72_spill] sm:$0xff] }
 0x990   : > { %3705 = vmatpush1.bf16.msra.mxu0 %v5454_v51  ;;  %3737 = vmatpush1.bf16.msra.mxu1 %v5464_v15  ;;  %v5509_v37 = vpack.c.bf16 %v5947_v39, %v5946_v35  ;;  %v5949_v48 = vld [vmem:[#allocation67_spill] sm:$0xff]  ;;  %v5951_v22 = vld [vmem:[#allocation76_spill] sm:$0xff]  ;;  %v5952_v32 = vld [vmem:[#allocation65_spill] sm:$0xff] }
 0x991   : > { %3707 = vmatprep.subr.bf16.mxu0 %v5460_v47  ;;  %3739 = vmatprep.subr.bf16.mxu1 %v5469_v30  ;;  %v5514_v31 = vpack.c.bf16 %v5949_v48, %v5948_v38  ;;  %v5520_v20 = vpack.c.bf16 %v5951_v22, %v5950_v57  ;;  %v5953_v17 = vld [vmem:[#allocation69_spill] sm:$0xff]  ;;  %v5954_v13 = vld [vmem:[#allocation74_spill] sm:$0xff]  ;;  %v5956_v3 = vld [vmem:[#allocation71_spill] sm:$0xff] }
 0x992   : > { %v5524_v33 = vpack.c.bf16 %v5953_v17, %v5952_v32  ;;  %v5955_v21 = vld [vmem:[#allocation78_spill] sm:$0xff]  ;;  %v5957_v14 = vld [vmem:[#allocation75_spill] sm:$0xff]  ;;  %v5958_v49 = vld [vmem:[#allocation73_spill] sm:$0xff] }
 0x993   : > { %v5529_v25 = vpack.c.bf16 %v5955_v21, %v5954_v13  ;;  %v5534_v12 = vpack.c.bf16 %v5957_v14, %v5956_v3  ;;  %v5959_v43 = vld [vmem:[#allocation77_spill] sm:$0xff]  ;;  %v2204_v50 = vld [vmem:[#allocation3] sm:$0xff]  ;;  %v2209_v1 = vld [vmem:[#allocation2 + $0x18] sm:$0xff] }
 0x994   : > { %3709 = vmatpush1.bf16.msra.mxu0 %v5474_v41  ;;  %3741 = vmatpush1.bf16.msra.mxu1 %v5484_v5  ;;  %v5540_v45 = vpack.c.bf16 %v5959_v43, %v5958_v49  ;;  %v2206_v23 = vld [vmem:[#allocation2] sm:$0xff]  ;;  %v2207_v60 = vld [vmem:[#allocation2 + $0x8] sm:$0xff]  ;;  %v2208_v0 = vld [vmem:[#allocation2 + $0x10] sm:$0xff] }
 0x995   : > { %3711 = vmatprep.subr.bf16.mxu0 %v5480_v18  ;;  %3743 = vmatprep.subr.bf16.mxu1 %v5489_v52  ;;  %v2205_v22 = vld [vmem:[#allocation4] sm:$0xff] }
 0x998   : > { %3713 = vmatpush1.bf16.msra.mxu0 %v5494_v63  ;;  %3745 = vmatpush1.bf16.msra.mxu1 %v5504_v40 }
 0x999   : > { %3715 = vmatprep.subr.bf16.mxu0 %v5500_v7  ;;  %3747 = vmatprep.subr.bf16.mxu1 %v5509_v37 }
 0x99c   : > { %3717 = vmatpush1.bf16.msra.mxu0 %v5514_v31  ;;  %3749 = vmatpush1.bf16.msra.mxu1 %v5524_v33 }
 0x99d   : > { %3719 = vmatprep.subr.bf16.mxu0 %v5520_v20  ;;  %3751 = vmatprep.subr.bf16.mxu1 %v5529_v25 }
 0x9a0   : > { %3721 = vmatpush1.bf16.msra.mxu0 %v5534_v12  ;;  %3753 = vmatpush1.bf16.msra.mxu1 %v5540_v45 }
 0x9a1   : > { %3755 = vmatprep.subr.bf16.mxu0 %v5385_v9  ;;  %3787 = vmatprep.subr.bf16.mxu1 %v5397_v28 }
 0x9a3   : > { %2275 = vmatmul.mubr.f32.vlgmr.msra.gmra.mrb[0].mxu0 %v2204_v50  ;;  %2346 = vmatmul.mubr.f32.vlgmr.msra.gmra.mrb[0].mxu1 %v2204_v50 }
 0x9a4   : > { %3757 = vmatpush1.bf16.msra.mxu0 %v5389_v10  ;;  %3789 = vmatpush1.bf16.msra.mxu1 %v5401_v29 }
 0x9a5   : > { %3759 = vmatprep.subr.bf16.mxu0 %v5393_v8  ;;  %3791 = vmatprep.subr.bf16.mxu1 %v5406_v2 }
 0x9a6   : > { %2444 = vmatprep.mubr.f32.mxu0 %v4454_v26  ;;  %2515 = vmatprep.mubr.f32.mxu1 %v4454_v26 }
 0x9a8   : > { %3761 = vmatpush1.bf16.msra.mxu0 %v5411_v44  ;;  %3793 = vmatpush1.bf16.msra.mxu1 %v5422_v62 }
 0x9a9   : > { %3763 = vmatprep.subr.bf16.mxu0 %v5418_v42  ;;  %3795 = vmatprep.subr.bf16.mxu1 %v5427_v19 }
 0x9ac   : > { %3765 = vmatpush1.bf16.msra.mxu0 %v5433_v27  ;;  %3797 = vmatpush1.bf16.msra.mxu1 %v5443_v34 }
 0x9ad   : > { %3767 = vmatprep.subr.bf16.mxu0 %v5439_v24  ;;  %3799 = vmatprep.subr.bf16.mxu1 %v5448_v59 }
 0x9b0   : > { %3769 = vmatpush1.bf16.msra.mxu0 %v5454_v51  ;;  %3801 = vmatpush1.bf16.msra.mxu1 %v5464_v15 }
 0x9b1   : > { %3771 = vmatprep.subr.bf16.mxu0 %v5460_v47  ;;  %3803 = vmatprep.subr.bf16.mxu1 %v5469_v30 }
 0x9b4   : > { %3773 = vmatpush1.bf16.msra.mxu0 %v5474_v41  ;;  %3805 = vmatpush1.bf16.msra.mxu1 %v5484_v5 }
 0x9b5   : > { %3775 = vmatprep.subr.bf16.mxu0 %v5480_v18  ;;  %3807 = vmatprep.subr.bf16.mxu1 %v5489_v52 }
 0x9b8   : > { %3777 = vmatpush1.bf16.msra.mxu0 %v5494_v63  ;;  %3809 = vmatpush1.bf16.msra.mxu1 %v5504_v40 }
 0x9b9   : > { %3779 = vmatprep.subr.bf16.mxu0 %v5500_v7  ;;  %3811 = vmatprep.subr.bf16.mxu1 %v5509_v37 }
 0x9bc   : > { %3781 = vmatpush1.bf16.msra.mxu0 %v5514_v31  ;;  %3813 = vmatpush1.bf16.msra.mxu1 %v5524_v33 }
 0x9bd   : > { %3783 = vmatprep.subr.bf16.mxu0 %v5520_v20  ;;  %3815 = vmatprep.subr.bf16.mxu1 %v5529_v25 }
 0x9c0   : > { %3785 = vmatpush1.bf16.msra.mxu0 %v5534_v12  ;;  %3817 = vmatpush1.bf16.msra.mxu1 %v5540_v45 }
 0x9c1   : > { %3819 = vmatprep.subr.bf16.mxu0 %v5385_v9  ;;  %3851 = vmatprep.subr.bf16.mxu1 %v5397_v28 }
 0xa76   : > { %v2276_v56 = vpop.f32.mrb[0].mxu0  ;;  %v2347_v58 = vpop.f32.mrb[0].mxu1 }
 0xa77   : > { %v2352_v53 = vadd.f32 %v2276_v56, %v2206_v23  ;;  %v2278_v46 = vpop.f32.mrb[1].mxu0  ;;  %v2349_v16 = vpop.f32.mrb[1].mxu1  ;;  %v2354_v54 = vadd.f32 %v2347_v58, %v2208_v0  ;;  %v2376_v23 = vld [vmem:[#allocation2 + $0x20] sm:$0xff] }
 0xa78   : > { %v2353_v11 = vadd.f32 %v2278_v46, %v2207_v60  ;;  %v2355_v6 = vadd.f32 %v2349_v16, %v2209_v1  ;;  %v2377_v60 = vld [vmem:[#allocation2 + $0x28] sm:$0xff]  ;;  %v2379_v1 = vld [vmem:[#allocation2 + $0x38] sm:$0xff] }
 0xa79   : > { %v2356_v55 = vmul.f32 0.5, %v2352_v53 }
 0xa7a   : > { %v2360_v61 = vmul.f32 0.5, %v2353_v11  ;;  %v2365_v4 = vmul.f32 0.5, %v2355_v6  ;;  %v2378_v11 = vld [vmem:[#allocation2 + $0x30] sm:$0xff] }
 0xa7b   : > { %4142 = vtanh.f32 %v2356_v55 }
 0xa7c   : > { %4144 = vtanh.f32 %v2360_v61 }
 0xa7d   : > { %4146 = vtanh.f32 %v2354_v54 }
 0xa7e   : > { %4148 = vtanh.f32 %v2365_v4 }
 0xa85   : > { %v4143_v36 = vpop.eup %4142 }
 0xa86   : > { %v4145_v35 = vpop.eup %4144  ;;  %v2358_v39 = vadd.f32 1.0, %v4143_v36 }
 0xa87   : > { %v4147_v38 = vpop.eup %4146  ;;  %v2362_v48 = vadd.f32 1.0, %v4145_v35 }
 0xa88   : > { %v2359_v57 = vmul.f32 0.5, %v2358_v39  ;;  %v4149_v3 = vpop.eup %4148 }
 0xa89   : > { %v2363_v32 = vmul.f32 0.5, %v2362_v48  ;;  %v2367_v14 = vadd.f32 1.0, %v4149_v3 }
 0xa8a   : > { %v2370_v17 = vmul.f32 %v4147_v38, %v2359_v57 }
 0xa8b   : > { %v2369_v13 = vmul.f32 %v2363_v32, %v2205_v22  ;;  %v2368_v49 = vmul.f32 0.5, %v2367_v14 }
 0xa8d   : > { %v5581_v21 = vadd.f32 %v2370_v17, %v2369_v13 }
 0xa8f   : > { %4150 = vtanh.f32 %v5581_v21 }
 0xa99   : > { %v4151_v43 = vpop.eup %4150 }
 0xa9a   : > { %v2373_v50 = vmul.f32 %v4151_v43, %v2368_v49 }
 0xa9c   : > { %2374 = vst [vmem:[%s4732_s17] sm:$0xff] %v2373_v50  ;;  %2445 = vmatmul.mubr.f32.vlgmr.msra.gmra.mrb[2].mxu0 %v2373_v50  ;;  %2516 = vmatmul.mubr.f32.vlgmr.msra.gmra.mrb[2].mxu1 %v2373_v50 }
 0xa9d   : > { %3821 = vmatpush1.bf16.msra.mxu0 %v5389_v10  ;;  %3853 = vmatpush1.bf16.msra.mxu1 %v5401_v29 }
 0xa9e   : > { %3823 = vmatprep.subr.bf16.mxu0 %v5393_v8  ;;  %3855 = vmatprep.subr.bf16.mxu1 %v5406_v2 }
 0xa9f   : > { %2615 = vmatprep.mubr.f32.mxu0 %v4454_v26  ;;  %2686 = vmatprep.mubr.f32.mxu1 %v4454_v26 }
 0xaa1   : > { %3825 = vmatpush1.bf16.msra.mxu0 %v5411_v44  ;;  %3857 = vmatpush1.bf16.msra.mxu1 %v5422_v62 }
 0xaa2   : > { %3827 = vmatprep.subr.bf16.mxu0 %v5418_v42  ;;  %3859 = vmatprep.subr.bf16.mxu1 %v5427_v19 }
 0xaa5   : > { %3829 = vmatpush1.bf16.msra.mxu0 %v5433_v27  ;;  %3861 = vmatpush1.bf16.msra.mxu1 %v5443_v34 }
 0xaa6   : > { %3831 = vmatprep.subr.bf16.mxu0 %v5439_v24  ;;  %3863 = vmatprep.subr.bf16.mxu1 %v5448_v59 }
 0xaa9   : > { %3833 = vmatpush1.bf16.msra.mxu0 %v5454_v51  ;;  %3865 = vmatpush1.bf16.msra.mxu1 %v5464_v15 }
 0xaaa   : > { %3835 = vmatprep.subr.bf16.mxu0 %v5460_v47  ;;  %3867 = vmatprep.subr.bf16.mxu1 %v5469_v30 }
 0xaad   : > { %3837 = vmatpush1.bf16.msra.mxu0 %v5474_v41  ;;  %3869 = vmatpush1.bf16.msra.mxu1 %v5484_v5 }
 0xaae   : > { %3839 = vmatprep.subr.bf16.mxu0 %v5480_v18  ;;  %3871 = vmatprep.subr.bf16.mxu1 %v5489_v52 }
 0xab1   : > { %3841 = vmatpush1.bf16.msra.mxu0 %v5494_v63  ;;  %3873 = vmatpush1.bf16.msra.mxu1 %v5504_v40 }
 0xab2   : > { %3843 = vmatprep.subr.bf16.mxu0 %v5500_v7  ;;  %3875 = vmatprep.subr.bf16.mxu1 %v5509_v37 }
 0xab5   : > { %3845 = vmatpush1.bf16.msra.mxu0 %v5514_v31  ;;  %3877 = vmatpush1.bf16.msra.mxu1 %v5524_v33 }
 0xab6   : > { %3847 = vmatprep.subr.bf16.mxu0 %v5520_v20  ;;  %3879 = vmatprep.subr.bf16.mxu1 %v5529_v25 }
 0xab9   : > { %3849 = vmatpush1.bf16.msra.mxu0 %v5534_v12  ;;  %3881 = vmatpush1.bf16.msra.mxu1 %v5540_v45 }
 0xaba   : > { %3883 = vmatprep.subr.bf16.mxu0 %v5385_v9  ;;  %3915 = vmatprep.subr.bf16.mxu1 %v5397_v28 }
 0xb6f   : > { %v2446_v56 = vpop.f32.mrb[2].mxu0  ;;  %v2517_v0 = vpop.f32.mrb[2].mxu1 }
 0xb70   : > { %v2522_v53 = vadd.f32 %v2446_v56, %v2376_v23  ;;  %v2448_v46 = vpop.f32.mrb[3].mxu0  ;;  %v2519_v58 = vpop.f32.mrb[3].mxu1  ;;  %v2524_v61 = vadd.f32 %v2517_v0, %v2378_v11  ;;  %v2720_v0 = vld [vmem:[#allocation2 + $0x70] sm:$0xff] }
 0xb71   : > { %v2523_v16 = vadd.f32 %v2448_v46, %v2377_v60  ;;  %v2525_v6 = vadd.f32 %v2519_v58, %v2379_v1 }
 0xb72   : > { %v2526_v55 = vmul.f32 0.5, %v2522_v53 }
 0xb73   : > { %v2530_v54 = vmul.f32 0.5, %v2523_v16  ;;  %v2535_v9 = vmul.f32 0.5, %v2525_v6  ;;  %v2721_v16 = vld [vmem:[#allocation2 + $0x78] sm:$0xff] }
 0xb74   : > { %4152 = vtanh.f32 %v2526_v55 }
 0xb75   : > { %4154 = vtanh.f32 %v2530_v54 }
 0xb76   : > { %4156 = vtanh.f32 %v2524_v61 }
 0xb77   : > { %4158 = vtanh.f32 %v2535_v9 }
 0xb7e   : > { %v4153_v4 = vpop.eup %4152 }
 0xb7f   : > { %v4155_v28 = vpop.eup %4154  ;;  %v2528_v36 = vadd.f32 1.0, %v4153_v4 }
 0xb80   : > { %v2532_v35 = vadd.f32 1.0, %v4155_v28  ;;  %v4157_v38 = vpop.eup %4156 }
 0xb81   : > { %v2529_v39 = vmul.f32 0.5, %v2528_v36  ;;  %v4159_v17 = vpop.eup %4158 }
 0xb82   : > { %v2533_v48 = vmul.f32 0.5, %v2532_v35  ;;  %v2537_v13 = vadd.f32 1.0, %v4159_v17 }
 0xb83   : > { %v2540_v57 = vmul.f32 %v4157_v38, %v2529_v39 }
 0xb84   : > { %v2539_v22 = vmul.f32 %v2533_v48, %v5581_v21  ;;  %v2538_v3 = vmul.f32 0.5, %v2537_v13  ;;  %v2719_v21 = vld [vmem:[#allocation2 + $0x68] sm:$0xff] }
 0xb86   : > { %v5620_v32 = vadd.f32 %v2540_v57, %v2539_v22 }
 0xb88   : > { %4160 = vtanh.f32 %v5620_v32 }
 0xb92   : > { %v4161_v14 = vpop.eup %4160 }
 0xb93   : > { %v2543_v49 = vmul.f32 %v4161_v14, %v2538_v3 }
 0xb95   : > { %3148 = vst [vmem:[%s4732_s17 + $0x8] sm:$0xff] %v2543_v49  ;;  %2616 = vmatmul.mubr.f32.vlgmr.msra.gmra.mrb[4].mxu0 %v2543_v49  ;;  %2687 = vmatmul.mubr.f32.vlgmr.msra.gmra.mrb[4].mxu1 %v2543_v49 }
 0xb96   : > { %3885 = vmatpush1.bf16.msra.mxu0 %v5389_v10  ;;  %3917 = vmatpush1.bf16.msra.mxu1 %v5401_v29  ;;  %v2547_v10 = vld [vmem:[#allocation2 + $0x40] sm:$0xff] }
 0xb97   : > { %3887 = vmatprep.subr.bf16.mxu0 %v5393_v8  ;;  %3919 = vmatprep.subr.bf16.mxu1 %v5406_v2  ;;  %v2548_v8 = vld [vmem:[#allocation2 + $0x48] sm:$0xff] }
 0xb98   : > { %2786 = vmatprep.mubr.f32.mxu0 %v4454_v26  ;;  %2857 = vmatprep.mubr.f32.mxu1 %v4454_v26 }
 0xb9a   : > { %3889 = vmatpush1.bf16.msra.mxu0 %v5411_v44  ;;  %3921 = vmatpush1.bf16.msra.mxu1 %v5422_v62 }
 0xb9b   : > { %3891 = vmatprep.subr.bf16.mxu0 %v5418_v42  ;;  %3923 = vmatprep.subr.bf16.mxu1 %v5427_v19  ;;  %v2549_v19 = vld [vmem:[#allocation2 + $0x50] sm:$0xff] }
 0xb9e   : > { %3893 = vmatpush1.bf16.msra.mxu0 %v5433_v27  ;;  %3925 = vmatpush1.bf16.msra.mxu1 %v5443_v34 }
 0xb9f   : > { %3895 = vmatprep.subr.bf16.mxu0 %v5439_v24  ;;  %3927 = vmatprep.subr.bf16.mxu1 %v5448_v59  ;;  %v2550_v59 = vld [vmem:[#allocation2 + $0x58] sm:$0xff] }
 0xba2   : > { %3897 = vmatpush1.bf16.msra.mxu0 %v5454_v51  ;;  %3929 = vmatpush1.bf16.msra.mxu1 %v5464_v15 }
 0xba3   : > { %3899 = vmatprep.subr.bf16.mxu0 %v5460_v47  ;;  %3931 = vmatprep.subr.bf16.mxu1 %v5469_v30 }
 0xba6   : > { %3901 = vmatpush1.bf16.msra.mxu0 %v5474_v41  ;;  %3933 = vmatpush1.bf16.msra.mxu1 %v5484_v5 }
 0xba7   : > { %3903 = vmatprep.subr.bf16.mxu0 %v5480_v18  ;;  %3935 = vmatprep.subr.bf16.mxu1 %v5489_v52 }
 0xbaa   : > { %3905 = vmatpush1.bf16.msra.mxu0 %v5494_v63  ;;  %3937 = vmatpush1.bf16.msra.mxu1 %v5504_v40 }
 0xbab   : > { %3907 = vmatprep.subr.bf16.mxu0 %v5500_v7  ;;  %3939 = vmatprep.subr.bf16.mxu1 %v5509_v37 }
 0xbae   : > { %3909 = vmatpush1.bf16.msra.mxu0 %v5514_v31  ;;  %3941 = vmatpush1.bf16.msra.mxu1 %v5524_v33 }
 0xbaf   : > { %3911 = vmatprep.subr.bf16.mxu0 %v5520_v20  ;;  %3943 = vmatprep.subr.bf16.mxu1 %v5529_v25 }
 0xbb2   : > { %3913 = vmatpush1.bf16.msra.mxu0 %v5534_v12  ;;  %3945 = vmatpush1.bf16.msra.mxu1 %v5540_v45  ;;  %v2718_v45 = vld [vmem:[#allocation2 + $0x60] sm:$0xff] }
 0xc68   : > { %v2617_v29 = vpop.f32.mrb[4].mxu0  ;;  %v2688_v2 = vpop.f32.mrb[4].mxu1 }
 0xc69   : > { %v2693_v44 = vadd.f32 %v2617_v29, %v2547_v10  ;;  %v2619_v42 = vpop.f32.mrb[5].mxu0  ;;  %v2690_v62 = vpop.f32.mrb[5].mxu1  ;;  %v2695_v34 = vadd.f32 %v2688_v2, %v2549_v19 }
 0xc6a   : > { %v2694_v26 = vadd.f32 %v2619_v42, %v2548_v8  ;;  %v2696_v51 = vadd.f32 %v2690_v62, %v2550_v59 }
 0xc6b   : > { %v2697_v27 = vmul.f32 0.5, %v2693_v44 }
 0xc6c   : > { %v2701_v24 = vmul.f32 0.5, %v2694_v26  ;;  %v2706_v47 = vmul.f32 0.5, %v2696_v51 }
 0xc6d   : > { %4162 = vtanh.f32 %v2697_v27 }
 0xc6e   : > { %4164 = vtanh.f32 %v2701_v24 }
 0xc6f   : > { %4166 = vtanh.f32 %v2695_v34 }
 0xc70   : > { %4168 = vtanh.f32 %v2706_v47 }
 0xc77   : > { %v4163_v15 = vpop.eup %4162 }
 0xc78   : > { %v4165_v30 = vpop.eup %4164  ;;  %v2699_v41 = vadd.f32 1.0, %v4163_v15 }
 0xc79   : > { %v2703_v18 = vadd.f32 1.0, %v4165_v30  ;;  %v4167_v52 = vpop.eup %4166 }
 0xc7a   : > { %v2700_v5 = vmul.f32 0.5, %v2699_v41  ;;  %v4169_v31 = vpop.eup %4168 }
 0xc7b   : > { %v2704_v63 = vmul.f32 0.5, %v2703_v18  ;;  %v2708_v20 = vadd.f32 1.0, %v4169_v31 }
 0xc7c   : > { %v2711_v7 = vmul.f32 %v4167_v52, %v2700_v5 }
 0xc7d   : > { %v2710_v40 = vmul.f32 %v2704_v63, %v5620_v32  ;;  %v2709_v33 = vmul.f32 0.5, %v2708_v20 }
 0xc7f   : > { %v2712_v37 = vadd.f32 %v2711_v7, %v2710_v40 }
 0xc81   : > { %4170 = vtanh.f32 %v2712_v37 }
 0xc8b   : > { %v4171_v25 = vpop.eup %4170 }
 0xc8c   : > { %v2714_v12 = vmul.f32 %v4171_v25, %v2709_v33 }
 0xc8e   : > { %3149 = vst [vmem:[%s4732_s17 + $0x10] sm:$0xff] %v2714_v12  ;;  %2787 = vmatmul.mubr.f32.vlgmr.msra.gmra.mrb[6].mxu0 %v2714_v12  ;;  %2858 = vmatmul.mubr.f32.vlgmr.msra.gmra.mrb[6].mxu1 %v2714_v12 }
 0xd61   : > { %v2788_v43 = vpop.f32.mrb[6].mxu0  ;;  %v2859_v50 = vpop.f32.mrb[6].mxu1 }
 0xd62   : > { %v2864_v23 = vadd.f32 %v2788_v43, %v2718_v45  ;;  %v2790_v60 = vpop.f32.mrb[7].mxu0  ;;  %v2861_v56 = vpop.f32.mrb[7].mxu1  ;;  %v2866_v11 = vadd.f32 %v2859_v50, %v2720_v0 }
 0xd63   : > { %v2865_v53 = vadd.f32 %v2790_v60, %v2719_v21  ;;  %v2867_v55 = vadd.f32 %v2861_v56, %v2721_v16 }
 0xd64   : > { %v2868_v46 = vmul.f32 0.5, %v2864_v23 }
 0xd65   : > { %v2872_v58 = vmul.f32 0.5, %v2865_v53  ;;  %v2877_v54 = vmul.f32 0.5, %v2867_v55 }
 0xd66   : > { %4172 = vtanh.f32 %v2868_v46 }
 0xd67   : > { %4174 = vtanh.f32 %v2872_v58 }
 0xd68   : > { %4176 = vtanh.f32 %v2866_v11 }
 0xd69   : > { %4178 = vtanh.f32 %v2877_v54 }
 0xd70   : > { %v4173_v61 = vpop.eup %4172 }
 0xd71   : > { %v4175_v1 = vpop.eup %4174  ;;  %v2870_v6 = vadd.f32 1.0, %v4173_v61 }
 0xd72   : > { %v2874_v9 = vadd.f32 1.0, %v4175_v1  ;;  %v4177_v28 = vpop.eup %4176 }
 0xd73   : > { %v2871_v4 = vmul.f32 0.5, %v2870_v6  ;;  %v4179_v48 = vpop.eup %4178 }
 0xd74   : > { %v2875_v36 = vmul.f32 0.5, %v2874_v9  ;;  %v2879_v57 = vadd.f32 1.0, %v4179_v48 }
 0xd75   : > { %v2882_v35 = vmul.f32 %v4177_v28, %v2871_v4 }
 0xd76   : > { %v2881_v39 = vmul.f32 %v2875_v36, %v2712_v37  ;;  %v2880_v22 = vmul.f32 0.5, %v2879_v57 }
 0xd78   : > { %v2883_v38 = vadd.f32 %v2882_v35, %v2881_v39 }
 0xd7a   : > { %4180 = vtanh.f32 %v2883_v38  ;;  %2889 = vst [vmem:[#allocation4] sm:$0xff] %v2883_v38  ;;  %2893 = vst [vmem:[#allocation16] sm:$0xff] %v2883_v38 }
 0xd84   : > { %v4181_v32 = vpop.eup %4180 }
 0xd85   : > { %v2885_v17 = vmul.f32 %v4181_v32, %v2880_v22 }
 0xd87   : > { %3150 = vst [vmem:[%s4732_s17 + $0x18] sm:$0xff] %v2885_v17  ;;  %2888 = vst [vmem:[#allocation3] sm:$0xff] %v2885_v17 }
 0xd88   : > { %2891 = vst [vmem:[#allocation14] sm:$0xff] %v2885_v17 }
 0xd89 PF: > { %s4455_s13 = smov [#allocation14]   ;;  %s3161_s18 = sshll.u32 %s4434_s30, 10 }
 0xd8a   : > { %s2925_s22 = sshll.u32 %s4455_s13, 4  ;;  %p5960_p7 = scmp.ne.s32.totalorder %s5818_s14, 0  ;;  %s2926_s22 = int_to_ptr.vmem [resolvable:$true] %s2925_s22 }
 0xd8b   : > { %s4296_s23 = scalar_lea.vmem %s2926_s22, 128  ;;  %p4303_p4 = scmp.lt.s32.totalorder %s2926_s22, %s2926_s22 }
 0xd8c   : > { %p4297_p5 = scmp.ne.s32.totalorder %s2926_s22, %s4296_s23  ;;  %p4304_p2 = scmp.lt.s32.totalorder %s4296_s23, %s4296_s23 }
 0xd8e   : > { %p4298_p9 = pnand %p4297_p5, %p5960_p7  ;;  %p4305_p8 = por %p4304_p2, %p4303_p4 }
 0xd90   : > { %p4299_p0 = pneg %p4298_p9 }
 0xd92   : > { %p4306_p12 = pnand %p4305_p8, %p4299_p0 }
 0xd94   : > { %4309 = shalt.err (!%p4306_p12)
}
 0xd95   : > { %s5961_s7 = sld [smem:[#allocation80_spill]] }
 0xd9b   : > { %s4310_s8 = scalar_lea.hbm %s5961_s7, 128 }
 0xd9c   : > { %p4311_p1 = scmp.ne.s32.totalorder %s5961_s7, %s4310_s8  ;;  %p4316_p6 = scmp.lt.u32.totalorder %s4310_s8, %s5961_s7 }
 0xd9e   : > { %p4312_p11 = pnand %p4311_p1, %p5960_p7 }
 0xda0   : > { %p4313_p13 = pneg %p4312_p11 }
 0xda2   : > { %p4318_p3 = pnand %p4316_p6, %p4313_p13 }
 0xda4   : > { %4321 = shalt.err (!%p4318_p3)
}
 0xda5   : > { %3962 = dma.vmem_to_hbm [thread:$0]  (%p5960_p7), %s2926_s22, 128, %s5961_s7, [#allocation15]  }
 0xda6   : > { %s5962_s23 = sld [smem:[#allocation79_spill]]  ;;  %s2909_s26 = sshll.u32 %s4732_s17, 4  ;;  %s5684_s26 = int_to_ptr.vmem [resolvable:$true] %s2909_s26 }
 0xda7   : > { %s2895_s8 = scalar_lea.sflag [#allocation7], %s4714_s24  ;;  %s4322_s12 = scalar_lea.vmem %s5684_s26, 1024 }
 0xda8   : > { %p4323_p5 = scmp.ne.s32.totalorder %s5684_s26, %s4322_s12  ;;  %s4456_s6 = smov [#allocation13]  }
 0xda9   : > { %s4326_s30 = sshll.u32 %s4456_s6, 4  ;;  %s4327_s30 = int_to_ptr.vmem [resolvable:$false] %s4326_s30 }
 0xdaa   : > { %p4324_p9 = pnand %p4323_p5, %p4656_p10  ;;  %s4328_s22 = scalar_lea.vmem %s4327_s30, 2048 }
 0xdab   : > { %p4329_p4 = scmp.lt.s32.totalorder %s5684_s26, %s4327_s30  ;;  %p4330_p2 = scmp.lt.s32.totalorder %s4328_s22, %s4322_s12 }
 0xdac   : > { %s5681_s16 = scalar_lea.hbm %s5962_s23, %s3161_s18  ;;  %p4325_p0 = pneg %p4324_p9 }
 0xdad   : > { %p4331_p8 = por %p4330_p2, %p4329_p4 }
 0xdaf   : > { %p4332_p12 = pnand %p4331_p8, %p4325_p0 }
 0xdb1   : > { %4335 = shalt.err (!%p4332_p12)
}
 0xdb2   : > { %s4336_s17 = scalar_lea.hbm %s5681_s16, 1024  ;;  %s4340_s15 = scalar_lea.hbm %s5962_s23, 2048 }
 0xdb3   : > { %p4337_p1 = scmp.ne.s32.totalorder %s5681_s16, %s4336_s17  ;;  %p4341_p6 = scmp.lt.u32.totalorder %s5681_s16, %s5962_s23 }
 0xdb4   : > { %p4342_p3 = scmp.lt.u32.totalorder %s4340_s15, %s4336_s17  ;;  %p4344_p9 = scmp.lt.u32.totalorder %s4336_s17, %s5681_s16 }
 0xdb5   : > { %p4338_p11 = pnand %p4337_p1, %p4656_p10 }
 0xdb6   : > { %p4343_p5 = por %p4342_p3, %p4341_p6 }
 0xdb7   : > { %p4339_p13 = pneg %p4338_p11 }
 0xdb8   : > { %p4345_p0 = por %p4344_p9, %p4343_p5 }
 0xdba   : > { %p4346_p4 = pnand %p4345_p0, %p4339_p13 }
 0xdbc   : > { %4349 = shalt.err (!%p4346_p4)
}
 0xdbd   : > { %s4457_s13 = smov 128   ;;  %s4458_s12 = smov 8  }
 0xdbe   : > { %3960 = dma.vmem_to_hbm [thread:$0]  (%p4656_p10), %s5684_s26, 1024, %s5681_s16, %s2895_s8, %s4457_s13, %s4457_s13, %s4458_s12  }
 0xdbf   : > { %s4459_s6 = smov [#allocation16]  }
 0xdc0   : > { %s2938_s30 = sshll.u32 %s4459_s6, 4  ;;  %s2939_s30 = int_to_ptr.vmem [resolvable:$true] %s2938_s30 }
 0xdc1   : > { %s4350_s22 = scalar_lea.vmem %s2939_s30, 128  ;;  %p4357_p1 = scmp.lt.s32.totalorder %s2939_s30, %s2939_s30 }
 0xdc2   : > { %p4351_p2 = scmp.ne.s32.totalorder %s2939_s30, %s4350_s22  ;;  %p4358_p11 = scmp.lt.s32.totalorder %s4350_s22, %s4350_s22 }
 0xdc4   : > { %p4352_p8 = pnand %p4351_p2, %p5960_p7  ;;  %p4359_p13 = por %p4358_p11, %p4357_p1 }
 0xdc6   : > { %p4353_p12 = pneg %p4352_p8 }
 0xdc8   : > { %p4360_p6 = pnand %p4359_p13, %p4353_p12 }
 0xdca   : > { %4363 = shalt.err (!%p4360_p6)
}
 0xdcb   : > { %s5963_s21 = sld [smem:[#allocation81_spill]] }
 0xdd1   : > { %s4364_s20 = scalar_lea.hbm %s5963_s21, 128 }
 0xdd2   : > { %p4365_p10 = scmp.ne.s32.totalorder %s5963_s21, %s4364_s20  ;;  %p4370_p9 = scmp.lt.u32.totalorder %s4364_s20, %s5963_s21 }
 0xdd4   : > { %p4366_p3 = pnand %p4365_p10, %p5960_p7 }
 0xdd6   : > { %p4367_p5 = pneg %p4366_p3 }
 0xdd8   : > { %p4372_p0 = pnand %p4370_p9, %p4367_p5 }
 0xdda   : > { %4375 = shalt.err (!%p4372_p0)
}
 0xddb   : > { %3964 = dma.vmem_to_hbm [thread:$0]  (%p5960_p7), %s2939_s30, 128, %s5963_s21, [#allocation15]  }
 0xddc   : > { %4413 = dma.done.wait (%p5960_p7), [#allocation15], 256  }
 0xddd   : > { %4415 = vsyncadd (%p5960_p7), [#allocation15], 4294967040 }
 0xdde PF: > { %s5964_s19 = sld [smem:[#allocation22_spill]]  ;;  %s5965_s13 = sld [smem:[#allocation23_spill]] }
 0xddf   : > { %p5967_p2 = scmp.ge.s32.totalorder %s4442_s10, 2 }
 0xde4   : > { %s2958_s12 = sand.u32 1, %s5964_s19   ;;  %p5966_p4 = scmp.ne.s32.totalorder %s5965_s13, 0 }
 0xde5   : > { %s2959_s6 = scalar_lea.sflag [#allocation7], %s2958_s12 }
 0xde6   : > { %p3985_p8 = pnand %p5967_p2, %p5966_p4 }
 0xde8   : > { %4417 = dma.done.wait (!%p3985_p8), %s2959_s6, 1024  }
 0xde9   : > { %4419 = vsyncadd (!%p3985_p8), %s2959_s6, 4294966272  ;;  %s28_s10 = sadd.s32 1, %s4442_s10   ;;  %s5968_s30 = smov %s4668_s27 }
 0xdea   : > { %p25_p12 = scmp.ge.s32.totalorder %s28_s10, 4   ;;  %s5969_s27 = smov %s4426_s28 }
 0xdeb   : > { %s5970_s28 = smov %s4430_s29  ;;  %s5971_s29 = smov %s5968_s30 }
 0xdec   : > { %s5972_s30 = smov %s4438_s9  ;;  %s5973_s9 = smov %s5975_s11 }
 0xded   :  { %27 = sbr.rel (!%p25_p12) target bundleno = 13 (0xd), region = 157 }
 0xdf4   :  { %2964 = vsyncpa [#allocation6], 1 }
 0xdf5   :  { %2966 = vsyncpa [#allocation6 + $0x1], 1 }
 0xdf6   :  { %2967 = vsyncpa [#allocation9], 1 }
 0xdf7   :  { %2968 = vsyncpa [#allocation12], 1 }
 0xdf8   :  { %2969 = vsyncpa [#allocation7], 1 }
 0xdf9   :  { %2971 = vsyncpa [#allocation7 + $0x1], 1 }
 0xdfa   :  { %2972 = vsyncpa [#allocation15], 1 }

// kernel: tpu_custom_call.1
= control target key start
LH: loop header
LB: loop body
LE: loop exit
PB: predicated region body
PF: predicated region fallthrough
CT: control target
= control target key end

     0   :  { %s5755_s0 = inlined_call_operand.hbm [shape: f32[16,8,32], index: 0, kind: input, shape index: {}]   ;;  %s5756_s1 = inlined_call_operand.hbm [shape: f32[32,512], index: 1, kind: input, shape index: {}]   ;;  %s5757_s2 = inlined_call_operand.hbm [shape: f32[128,512], index: 2, kind: input, shape index: {}]   ;;  %s5758_s3 = inlined_call_operand.hbm [shape: f32[1,512], index: 3, kind: input, shape index: {}]   ;;  %s5759_s4 = inlined_call_operand.vmem [shape: f32[8,128], index: 4, kind: input, shape index: {}]   ;;  %s5760_s5 = inlined_call_operand.vmem [shape: f32[8,128], index: 5, kind: input, shape index: {}]   ;;  %s5761_s6 = inlined_call_operand.hbm [shape: f32[16,8,128], index: 6, kind: output, shape index: {0}]   ;;  %s5762_s7 = inlined_call_operand.hbm [shape: f32[8,128], index: 7, kind: output, shape index: {1}]   ;;  %s5763_s8 = inlined_call_operand.hbm [shape: f32[8,128], index: 8, kind: output, shape index: {2}]  }
   0x1   :  { %5813 = sst [smem:[#allocation79_spill]] %s5761_s6 }
   0x2   :  { %5814 = sst [smem:[#allocation80_spill]] %s5762_s7 }
   0x3   :  { %5815 = sst [smem:[#allocation81_spill]] %s5763_s8 }
   0x4   :  { %14 = vsyncpa [#allocation6], 0 }
   0x5   :  { %16 = vsyncpa [#allocation6 + $0x1], 0 }
   0x6   :  { %17 = vsyncpa [#allocation9], 0 }
   0x7   :  { %18 = vsyncpa [#allocation12], 0 }
   0x8   :  { %19 = vsyncpa [#allocation7], 0 }
   0x9   :  { %21 = vsyncpa [#allocation7 + $0x1], 0 }
   0xa   :  { %22 = vsyncpa [#allocation15], 0  ;;  %s4505_s27 = smov 0   ;;  %s4507_s28 = smov 0  }
   0xb   :  { %s4509_s29 = smov 0   ;;  %s4511_s30 = smov 0  }
   0xc   :  { %s4513_s9 = smov 0   ;;  %s4515_s10 = smov 0  }
   0xd LB: > { %5816 = sst [smem:[#allocation22_spill]] %s4422_s27  ;;  %s3104_s11 = sadd.s32 4294967295, %s4442_s10   ;;  %s4442_s10 = sphi %s4515_s10, %s28_s10   ;;  %s4438_s9 = sphi %s4513_s9, %s5973_s9   ;;  %s4434_s30 = sphi %s4511_s30, %s5972_s30   ;;  %s4430_s29 = sphi %s4509_s29, %s5971_s29   ;;  %s4426_s28 = sphi %s4507_s28, %s5970_s28   ;;  %s4422_s27 = sphi %s4505_s27, %s5969_s27  }
   0xe   : > { %s3105_s12 = sadd.s32 4294967294, %s4442_s10   ;;  %p62_p0 = scmp.ne.s32.totalorder %s4426_s28, %s4422_s27 }
   0xf   : > { %p4539_p1 = scmp.eq.s32.totalorder %s3104_s11, 0  ;;  %p4543_p2 = scmp.eq.s32.totalorder %s3104_s11, 1 }
  0x10   : > { %p209_p3 = scmp.eq.s32.totalorder %s3105_s12, 1  ;;  %p3106_p5 = scmp.ge.s32.totalorder %s4442_s10, 1 }
  0x11   : > { %s5817_s13 = scalar_select %p4539_p1, 1, 0 }
  0x12   : > { %s5818_s14 = scalar_select %p4543_p2, 1, 0 }
  0x13   : > { %p4549_p4 = por %p4539_p1, %p62_p0  ;;  %p4554_p6 = por %p209_p3, %p62_p0 }
  0x14   : > { %p268_p7 = scmp.lt.s32.totalorder %s4442_s10, 3  ;;  %s4444_s18 = smov [#allocation8]  }
  0x15   : > { %s5819_s15 = scalar_select %p4549_p4, 1, 0 }
  0x16   : > { %s5820_s16 = scalar_select %p4554_p6, 1, 0 }
  0x17   : > { %p4559_p8 = pnand %p3106_p5, %p268_p7  ;;  %s280_s19 = sshll.u32 %s4444_s18, 4  ;;  %s4563_s19 = int_to_ptr.vmem [resolvable:$true] %s280_s19 }
  0x18   : > { %5821 = sst [smem:[#allocation23_spill]] %s5820_s16  ;;  %s4445_s21 = smov [#allocation10]  }
  0x19   : > { %s5822_s17 = scalar_select %p4559_p8, 1, 0 }
  0x1a   : > { %p3970_p9 = pneg %p4559_p8  ;;  %s293_s22 = sshll.u32 %s4445_s21, 4  ;;  %s4574_s22 = int_to_ptr.vmem [resolvable:$true] %s293_s22 }
  0x1b   : > { %s4446_s23 = smov [#allocation11]   ;;  %s4182_s11 = scalar_lea.hbm %s5756_s1, 2048 }
  0x1c   : > { %p4570_p11 = pnand %p3970_p9, %p4539_p1  ;;  %s4576_s24 = sshll.u32 %s4446_s23, 4  ;;  %s308_s24 = int_to_ptr.vmem [resolvable:$true] %s4576_s24 }
  0x1d   : > { %p4183_p12 = scmp.ne.s32.totalorder %s5756_s1, %s4182_s11  ;;  %p4189_p5 = scmp.lt.u32.totalorder %s4182_s11, %s5756_s1 }
  0x1e   : > { %p4586_p13 = pneg %p4570_p11 }
  0x20   : > { %p4185_p0 = pnand %p4586_p13, %p4183_p12 }
  0x22   : > { %p4186_p3 = pneg %p4185_p0 }
  0x24   : > { %p4191_p7 = pnand %p4189_p5, %p4186_p3 }
  0x26   : > { %4194 = shalt.err (!%p4191_p7)
}
  0x27   : > { %s4195_s25 = scalar_lea.vmem %s4563_s19, 2048  ;;  %p4203_p1 = scmp.lt.s32.totalorder %s4563_s19, %s4563_s19 }
  0x28   : > { %p4196_p9 = scmp.ne.s32.totalorder %s4563_s19, %s4195_s25  ;;  %p4204_p4 = scmp.lt.s32.totalorder %s4195_s25, %s4195_s25 }
  0x2a   : > { %p4198_p10 = pnand %p4196_p9, %p4586_p13  ;;  %p4205_p12 = por %p4204_p4, %p4203_p1 }
  0x2c   : > { %p4199_p6 = pneg %p4198_p10 }
  0x2e   : > { %p4206_p0 = pnand %p4205_p12, %p4199_p6 }
  0x30   : > { %4209 = shalt.err (!%p4206_p0)
}
  0x31   : > { %s4447_s26 = smov 512   ;;  %s4448_s11 = smov 32  }
  0x32   : > { %3973 = dma.hbm_to_vmem [thread:$0]  (!%p4570_p11), %s5756_s1, 2048, %s4563_s19, [#allocation9], %s4447_s26, %s4447_s26, %s4448_s11  }
  0x33   : > { %s4210_s27 = scalar_lea.hbm %s5757_s2, 8192 }
  0x34   : > { %p4211_p1 = scmp.ne.s32.totalorder %s5757_s2, %s4210_s27  ;;  %p4217_p10 = scmp.lt.u32.totalorder %s4210_s27, %s5757_s2 }
  0x36   : > { %p4213_p4 = pnand %p4211_p1, %p4586_p13 }
  0x38   : > { %p4214_p6 = pneg %p4213_p4 }
  0x3a   : > { %p4219_p3 = pnand %p4217_p10, %p4214_p6 }
  0x3c   : > { %4222 = shalt.err (!%p4219_p3)
}
  0x3d   : > { %s4223_s19 = scalar_lea.vmem %s4574_s22, 8192  ;;  %p4231_p12 = scmp.lt.s32.totalorder %s4574_s22, %s4574_s22 }
  0x3e   : > { %p4224_p5 = scmp.ne.s32.totalorder %s4574_s22, %s4223_s19  ;;  %p4232_p0 = scmp.lt.s32.totalorder %s4223_s19, %s4223_s19 }
  0x40   : > { %p4226_p7 = pnand %p4224_p5, %p4586_p13  ;;  %p4233_p1 = por %p4232_p0, %p4231_p12 }
  0x42   : > { %p4227_p9 = pneg %p4226_p7 }
  0x44   : > { %p4234_p4 = pnand %p4233_p1, %p4227_p9 }
  0x46   : > { %4237 = shalt.err (!%p4234_p4)
}
  0x47   : > { %3976 = dma.hbm_to_vmem [thread:$0]  (!%p4570_p11), %s5757_s2, 8192, %s4574_s22, [#allocation9], %s4447_s26, %s4447_s26, %s4448_s11  }
  0x48   : > { %s4238_s12 = scalar_lea.hbm %s5758_s3, 64 }
  0x49   : > { %p4239_p6 = scmp.ne.s32.totalorder %s5758_s3, %s4238_s12  ;;  %p4245_p5 = scmp.lt.u32.totalorder %s4238_s12, %s5758_s3 }
  0x4b   : > { %p4241_p10 = pnand %p4239_p6, %p4586_p13 }
  0x4d   : > { %p4242_p3 = pneg %p4241_p10 }
  0x4f   : > { %p4247_p7 = pnand %p4245_p5, %p4242_p3 }
  0x51   : > { %4250 = shalt.err (!%p4247_p7)
}
  0x52   : > { %s4251_s19 = scalar_lea.vmem %s308_s24, 64  ;;  %p4259_p1 = scmp.lt.s32.totalorder %s308_s24, %s308_s24 }
  0x53   : > { %p4252_p9 = scmp.ne.s32.totalorder %s308_s24, %s4251_s19  ;;  %p4260_p4 = scmp.lt.s32.totalorder %s4251_s19, %s4251_s19 }
  0x55   : > { %p4254_p12 = pnand %p4252_p9, %p4586_p13  ;;  %p4261_p8 = por %p4260_p4, %p4259_p1 }
  0x57   : > { %p4255_p0 = pneg %p4254_p12 }
  0x59   : > { %p4262_p2 = pnand %p4261_p8, %p4255_p0 }
  0x5b   : > { %4265 = shalt.err (!%p4262_p2)
}
  0x5c   : > { %3979 = dma.hbm_to_vmem [thread:$0]  (!%p4570_p11), %s5758_s3, 64, %s308_s24, [#allocation12]  }
  0x5d   : > { %s49_s16 = sadd.s32 1, %s4430_s29  ;;  %s37_s11 = sadd.s32 1, %s4438_s9 }
  0x5e   : > { %p56_p2 = scmp.ne.s32.totalorder %s4430_s29, %s4426_s28  ;;  %p38_p8 = scmp.ge.s32.totalorder %s37_s11, 2 }
  0x5f   : > { %p57_p13 = scmp.eq.s32.totalorder %s4442_s10, 0  ;;  %p5825_p6 = scmp.ne.s32.totalorder %s5818_s14, 0 }
  0x60   : > { %p3991_p3 = scmp.lt.s32.totalorder %s4442_s10, 2  ;;  %s5975_s11 = smov (%p38_p8, %s37_s11), 0 }
  0x61   : > { %p4656_p10 = por %p5825_p6, %p56_p2  ;;  %p58_p5 = por %p57_p13, %p56_p2 }
  0x62   : > { %s332_s6 = sand.u32 1, %s4430_s29   ;;  %s44_s7 = ssub.s32 %s4438_s9, %s5975_s11 }
  0x63   : > { %p47_p7 = scmp.eq.s32.totalorder %s44_s7, 0  ;;  %s3113_s24 = sshll.u32 %s332_s6, 6 }
  0x64   : > { %s3160_s8 = sshll.u32 %s4438_s9, 10  ;;  %s336_s23 = scalar_lea.vmem [#allocation5], %s3113_s24 }
  0x65   : > { %s4668_s27 = scalar_select %p47_p7, %s4430_s29, %s49_s16  }
  0x66   : > { %s4673_s21 = scalar_lea.hbm %s5755_s0, %s3160_s8  ;;  %s344_s25 = sshll.u32 %s336_s23, 4  ;;  %s4675_s25 = int_to_ptr.vmem [resolvable:$true] %s344_s25 }
  0x67   : > { %p4679_p11 = pnand %p3991_p3, %p58_p5  ;;  %s4683_s22 = scalar_lea.sflag [#allocation6], %s332_s6 }
  0x68   : > { %s4266_s26 = scalar_lea.hbm %s4673_s21, 1024  ;;  %s4271_s24 = scalar_lea.hbm %s5755_s0, 2048 }
  0x69   : > { %p4267_p9 = scmp.ne.s32.totalorder %s4673_s21, %s4266_s26  ;;  %p4268_p12 = pneg %p4679_p11 }
  0x6a   : > { %p4272_p4 = scmp.lt.u32.totalorder %s4673_s21, %s5755_s0  ;;  %p4273_p2 = scmp.lt.u32.totalorder %s4271_s24, %s4266_s26 }
  0x6b   : > { %p4269_p0 = pnand %p4268_p12, %p4267_p9  ;;  %p4275_p13 = scmp.lt.u32.totalorder %s4266_s26, %s4673_s21 }
  0x6c   : > { %p4274_p8 = por %p4273_p2, %p4272_p4 }
  0x6d   : > { %p4270_p1 = pneg %p4269_p0 }
  0x6e   : > { %p4276_p6 = por %p4275_p13, %p4274_p8 }
  0x70   : > { %p4277_p3 = pnand %p4276_p6, %p4270_p1 }
  0x72   : > { %4280 = shalt.err (!%p4277_p3)
}
  0x73   : > { %s4281_s6 = scalar_lea.vmem %s4675_s25, 1024  ;;  %s4449_s18 = smov [#allocation5]  }
  0x74   : > { %p4282_p5 = scmp.ne.s32.totalorder %s4675_s25, %s4281_s6  ;;  %s4286_s23 = sshll.u32 %s4449_s18, 4  ;;  %s4287_s23 = int_to_ptr.vmem [resolvable:$false] %s4286_s23 }
  0x75   : > { %s4288_s16 = scalar_lea.vmem %s4287_s23, 2048  ;;  %p4289_p0 = scmp.lt.s32.totalorder %s4675_s25, %s4287_s23 }
  0x76   : > { %p4284_p7 = pnand %p4282_p5, %p4268_p12  ;;  %p4290_p4 = scmp.lt.s32.totalorder %s4288_s16, %s4281_s6 }
  0x78   : > { %p4285_p9 = pneg %p4284_p7  ;;  %p4291_p2 = por %p4290_p4, %p4289_p0 }
  0x7a   : > { %p4292_p8 = pnand %p4291_p2, %p4285_p9 }
  0x7c   : > { %4295 = shalt.err (!%p4292_p8)
}
  0x7d   : > { %s4450_s26 = smov 128   ;;  %s4451_s7 = smov 8  }
  0x7e   : > { %3983 = dma.hbm_to_vmem [thread:$0]  (!%p4679_p11), %s4673_s21, 1024, %s4675_s25, %s4683_s22, %s4450_s26, %s4450_s26, %s4451_s7  }
  0x7f   : > { %p5828_p12 = scmp.ne.s32.totalorder %s5822_s17, 0 }
  0x81   : > { %356 = sbr.rel (%p5828_p12) target bundleno = 3550 (0xdde), region = 44 }
  0x88   : > { %s4714_s24 = sand.u32 1, %s4426_s28   ;;  %p5829_p1 = scmp.ne.s32.totalorder %s5819_s15, 0 }
  0x89   : > { %s3117_s8 = sshll.u32 %s4714_s24, 6  ;;  %s359_s12 = scalar_lea.sflag [#allocation6], %s4714_s24 }
  0x8a   : > { %s4718_s6 = scalar_lea.vmem [#allocation5], %s3117_s8 }
  0x8b   : > { %4401 = dma.done.wait (%p5829_p1), %s359_s12, 1024  }
  0x8c   : > { %4403 = vsyncadd (%p5829_p1), %s359_s12, 4294966272  ;;  %p5830_p11 = scmp.ne.s32.totalorder %s5817_s13, 0 }
  0x8e   : > { %4405 = dma.done.wait (%p5830_p11), [#allocation9], 10240  }
  0x8f   : > { %4407 = vsyncadd (%p5830_p11), [#allocation9], 4294957056 }
  0x90   : > { %4409 = dma.done.wait (%p5830_p11), [#allocation12], 64  }
  0x91   : > { %4411 = vsyncadd (%p5830_p11), [#allocation12], 4294967232  ;;  %s4732_s17 = scalar_lea.vmem [#allocation13], %s3117_s8  ;;  %p3122_p13 = scmp.ne.s32.totalorder %s4434_s30, 0 }
  0x92   : > { %v429_v0 = vld [vmem:[%s5759_s4] sm:$0xff] (!%p3122_p13) }
  0x93   : > { %428 = sbr.rel (%p3122_p13) target bundleno = 154 (0x9a), region = 64  ;;  %v431_v1 = vld [vmem:[%s5760_s5] sm:$0xff] (!%p3122_p13)  ;;  %430 = vst [vmem:[#allocation3] sm:$0xff] (!%p3122_p13), %v429_v0 }
  0x94   : > { %432 = vst [vmem:[#allocation4] sm:$0xff] (!%p3122_p13), %v431_v1 }
  0x9a PF: > { %v434_v2 = vld [vmem:[#allocation8 + $0x8] sm:$0xff]  ;;  %v436_v4 = vld [vmem:[#allocation8 + $0x18] sm:$0xff]  ;;  %v433_v7 = vld [vmem:[#allocation8] sm:$0xff]  ;;  %v4452_v9 = vmov 0.0   ;;  %vm479_vm0 = vcmask 261120   ;;  %p3139_p6 = scmp.ge.s32.totalorder %s4434_s30, 1 }
  0x9b   : > { %v438_v3 = vld [vmem:[#allocation8 + $0x28] sm:$0xff]  ;;  %v440_v6 = vld [vmem:[#allocation8 + $0x38] sm:$0xff]  ;;  %v437_v8 = vld [vmem:[#allocation8 + $0x20] sm:$0xff]  ;;  %568 = vmatprep.mubr.f32.mxu0 %v4452_v9  ;;  %681 = vmatprep.mubr.f32.mxu1 %v4452_v9 }
  0x9c   : > { %v3162_v5 = vpack.c.bf16 %v438_v3, %v434_v2  ;;  %v3170_v10 = vpack.c.bf16 %v440_v6, %v436_v4  ;;  %v3164_v11 = vpack.c.bf16 %v437_v8, %v433_v7  ;;  %v435_v12 = vld [vmem:[#allocation8 + $0x10] sm:$0xff]  ;;  %v442_v14 = vld [vmem:[#allocation8 + $0x48] sm:$0xff]  ;;  %v444_v17 = vld [vmem:[#allocation8 + $0x58] sm:$0xff] }
  0x9d   : > { %v439_v13 = vld [vmem:[#allocation8 + $0x30] sm:$0xff]  ;;  %v446_v16 = vld [vmem:[#allocation8 + $0x68] sm:$0xff]  ;;  %v448_v18 = vld [vmem:[#allocation8 + $0x78] sm:$0xff] }
  0x9e   : > { %3163 = vmatprep.subr.bf16.mxu0 %v3162_v5  ;;  %v3172_v15 = vpack.c.bf16 %v439_v13, %v435_v12  ;;  %3171 = vmatprep.subr.bf16.mxu1 %v3170_v10  ;;  %v3166_v19 = vpack.c.bf16 %v446_v16, %v442_v14  ;;  %v3174_v20 = vpack.c.bf16 %v448_v18, %v444_v17  ;;  %v441_v21 = vld [vmem:[#allocation8 + $0x40] sm:$0xff]  ;;  %v443_v23 = vld [vmem:[#allocation8 + $0x50] sm:$0xff]  ;;  %v450_v28 = vld [vmem:[%s4718_s6 + $0x8] sm:$0xff] }
  0x9f   : > { %3165 = vmatpush1.bf16.msra.mxu0 %v3164_v11  ;;  %v445_v22 = vld [vmem:[#allocation8 + $0x60] sm:$0xff]  ;;  %v447_v25 = vld [vmem:[#allocation8 + $0x70] sm:$0xff]  ;;  %v452_v30 = vld [vmem:[%s4718_s6 + $0x18] sm:$0xff] }
  0xa0   : > { %3173 = vmatpush1.bf16.msra.mxu1 %v3172_v15  ;;  %v3168_v24 = vpack.c.bf16 %v445_v22, %v441_v21  ;;  %3167 = vmatprep.subr.bf16.mxu0 %v3166_v19  ;;  %v3176_v26 = vpack.c.bf16 %v447_v25, %v443_v23  ;;  %v449_v27 = vld [vmem:[%s4718_s6] sm:$0xff]  ;;  %v451_v29 = vld [vmem:[%s4718_s6 + $0x10] sm:$0xff]  ;;  %v454_v32 = vld [vmem:[%s4718_s6 + $0x28] sm:$0xff] }
  0xa1   : > { %3175 = vmatprep.subr.bf16.mxu1 %v3174_v20  ;;  %v453_v31 = vld [vmem:[%s4718_s6 + $0x20] sm:$0xff]  ;;  %v455_v33 = vld [vmem:[%s4718_s6 + $0x30] sm:$0xff]  ;;  %v456_v34 = vld [vmem:[%s4718_s6 + $0x38] sm:$0xff] }
  0xa2   : > { %v4781_v35 = vld [vmem:[#allocation10] sm:$0xff]  ;;  %v4783_v36 = vld [vmem:[#allocation10 + $0x8] sm:$0xff]  ;;  %v4785_v37 = vld [vmem:[#allocation10 + $0x10] sm:$0xff] }
  0xa3   : > { %3169 = vmatpush1.bf16.msra.mxu0 %v3168_v24  ;;  %v4787_v38 = vld [vmem:[#allocation10 + $0x18] sm:$0xff]  ;;  %v4789_v39 = vld [vmem:[#allocation10 + $0x20] sm:$0xff]  ;;  %v4791_v40 = vld [vmem:[#allocation10 + $0x28] sm:$0xff] }
  0xa4   : > { %3177 = vmatpush1.bf16.msra.mxu1 %v3176_v26  ;;  %v4793_v41 = vld [vmem:[#allocation10 + $0x30] sm:$0xff]  ;;  %v4795_v42 = vld [vmem:[#allocation10 + $0x38] sm:$0xff]  ;;  %v4797_v43 = vld [vmem:[#allocation10 + $0x40] sm:$0xff] }
  0xa5   : > { %5831 = vst [vmem:[#allocation24_spill] sm:$0xff] %v4793_v41  ;;  %5832 = vst [vmem:[#allocation25_spill] sm:$0xff] %v4797_v43  ;;  %v4799_v44 = vld [vmem:[#allocation10 + $0x48] sm:$0xff]  ;;  %v4801_v45 = vld [vmem:[#allocation10 + $0x50] sm:$0xff] }
  0xa6   : > { %3123 = vmatmul.mubr.msk.f32.vlgmr.msra.gmra.mrb[0].mxu0 %vm479_vm0, %v449_v27  ;;  %5833 = vst [vmem:[#allocation26_spill] sm:$0xff] %v4801_v45  ;;  %v4803_v46 = vld [vmem:[#allocation10 + $0x58] sm:$0xff]  ;;  %v4805_v47 = vld [vmem:[#allocation10 + $0x60] sm:$0xff]  ;;  %v4807_v48 = vld [vmem:[#allocation10 + $0x68] sm:$0xff] }
  0xa7   : > { %3131 = vmatmul.mubr.msk.f32.vlgmr.msra.gmra.mrb[0].mxu1 %vm479_vm0, %v449_v27  ;;  %574 = vmatprep.mubr.f32.mxu0 %v4452_v9  ;;  %5834 = vst [vmem:[#allocation27_spill] sm:$0xff] %v4803_v46  ;;  %5835 = vst [vmem:[#allocation28_spill] sm:$0xff] %v4805_v47  ;;  %v4809_v49 = vld [vmem:[#allocation10 + $0x70] sm:$0xff]  ;;  %v4811_v50 = vld [vmem:[#allocation10 + $0x78] sm:$0xff] }
  0xa8   : > { %687 = vmatprep.mubr.f32.mxu1 %v4452_v9  ;;  %5836 = vst [vmem:[#allocation29_spill] sm:$0xff] %v4809_v49  ;;  %5837 = vst [vmem:[#allocation30_spill] sm:$0xff] %v4811_v50  ;;  %v4813_v51 = vld [vmem:[#allocation10 + $0x80] sm:$0xff]  ;;  %v4815_v52 = vld [vmem:[#allocation10 + $0x88] sm:$0xff] }
  0xa9   : > { %5838 = vst [vmem:[#allocation31_spill] sm:$0xff] %v4813_v51  ;;  %5839 = vst [vmem:[#allocation32_spill] sm:$0xff] %v4815_v52  ;;  %v4817_v53 = vld [vmem:[#allocation10 + $0x90] sm:$0xff]  ;;  %v4819_v54 = vld [vmem:[#allocation10 + $0x98] sm:$0xff] }
  0xaa   : > { %3124 = vmatmul.mubr.msk.f32.gmra.mrb[2].mxu0 %vm479_vm0, %v450_v28  ;;  %5840 = vst [vmem:[#allocation33_spill] sm:$0xff] %v4817_v53  ;;  %5841 = vst [vmem:[#allocation34_spill] sm:$0xff] %v4819_v54  ;;  %v4821_v55 = vld [vmem:[#allocation10 + $0xa0] sm:$0xff]  ;;  %v4823_v56 = vld [vmem:[#allocation10 + $0xa8] sm:$0xff] }
  0xab   : > { %3132 = vmatmul.mubr.msk.f32.gmra.mrb[2].mxu1 %vm479_vm0, %v450_v28  ;;  %580 = vmatprep.mubr.f32.mxu0 %v4452_v9  ;;  %5842 = vst [vmem:[#allocation35_spill] sm:$0xff] %v4821_v55  ;;  %5843 = vst [vmem:[#allocation36_spill] sm:$0xff] %v4823_v56  ;;  %v4825_v57 = vld [vmem:[#allocation10 + $0xb0] sm:$0xff]  ;;  %v4827_v58 = vld [vmem:[#allocation10 + $0xb8] sm:$0xff] }
  0xac   : > { %693 = vmatprep.mubr.f32.mxu1 %v4452_v9  ;;  %5844 = vst [vmem:[#allocation37_spill] sm:$0xff] %v4825_v57  ;;  %5845 = vst [vmem:[#allocation38_spill] sm:$0xff] %v4827_v58  ;;  %v4829_v59 = vld [vmem:[#allocation10 + $0xc0] sm:$0xff]  ;;  %v4831_v60 = vld [vmem:[#allocation10 + $0xc8] sm:$0xff] }
  0xad   : > { %5846 = vst [vmem:[#allocation39_spill] sm:$0xff] %v4829_v59  ;;  %5847 = vst [vmem:[#allocation40_spill] sm:$0xff] %v4831_v60  ;;  %v4833_v61 = vld [vmem:[#allocation10 + $0xd0] sm:$0xff]  ;;  %v4835_v62 = vld [vmem:[#allocation10 + $0xd8] sm:$0xff] }
  0xae   : > { %3125 = vmatmul.mubr.msk.f32.gmra.mrb[4].mxu0 %vm479_vm0, %v451_v29  ;;  %5848 = vst [vmem:[#allocation41_spill] sm:$0xff] %v4833_v61  ;;  %5849 = vst [vmem:[#allocation42_spill] sm:$0xff] %v4835_v62  ;;  %v4837_v63 = vld [vmem:[#allocation10 + $0xe0] sm:$0xff]  ;;  %v4839_v0 = vld [vmem:[#allocation10 + $0xe8] sm:$0xff] }
  0xaf   : > { %3133 = vmatmul.mubr.msk.f32.gmra.mrb[4].mxu1 %vm479_vm0, %v451_v29  ;;  %586 = vmatprep.mubr.f32.mxu0 %v4452_v9  ;;  %5850 = vst [vmem:[#allocation43_spill] sm:$0xff] %v4837_v63  ;;  %5851 = vst [vmem:[#allocation44_spill] sm:$0xff] %v4839_v0  ;;  %v4841_v1 = vld [vmem:[#allocation10 + $0xf0] sm:$0xff]  ;;  %v4843_v2 = vld [vmem:[#allocation10 + $0xf8] sm:$0xff] }
  0xb0   : > { %699 = vmatprep.mubr.f32.mxu1 %v4452_v9  ;;  %5852 = vst [vmem:[#allocation45_spill] sm:$0xff] %v4841_v1  ;;  %5853 = vst [vmem:[#allocation46_spill] sm:$0xff] %v4843_v2  ;;  %v4845_v3 = vld [vmem:[#allocation10 + $0x100] sm:$0xff]  ;;  %v4847_v4 = vld [vmem:[#allocation10 + $0x108] sm:$0xff] }
  0xb1   : > { %5854 = vst [vmem:[#allocation47_spill] sm:$0xff] %v4845_v3  ;;  %5855 = vst [vmem:[#allocation48_spill] sm:$0xff] %v4847_v4  ;;  %v4849_v5 = vld [vmem:[#allocation10 + $0x110] sm:$0xff]  ;;  %v4851_v6 = vld [vmem:[#allocation10 + $0x118] sm:$0xff] }
  0xb2   : > { %3126 = vmatmul.mubr.msk.f32.gmra.mrb[6].mxu0 %vm479_vm0, %v452_v30  ;;  %5856 = vst [vmem:[#allocation49_spill] sm:$0xff] %v4849_v5  ;;  %5857 = vst [vmem:[#allocation50_spill] sm:$0xff] %v4851_v6  ;;  %v4853_v7 = vld [vmem:[#allocation10 + $0x120] sm:$0xff]  ;;  %v4855_v8 = vld [vmem:[#allocation10 + $0x128] sm:$0xff] }
  0xb3   : > { %3134 = vmatmul.mubr.msk.f32.gmra.mrb[6].mxu1 %vm479_vm0, %v452_v30  ;;  %592 = vmatprep.mubr.f32.mxu0 %v4452_v9  ;;  %5858 = vst [vmem:[#allocation51_spill] sm:$0xff] %v4853_v7  ;;  %5859 = vst [vmem:[#allocation52_spill] sm:$0xff] %v4855_v8  ;;  %v4859_v10 = vld [vmem:[#allocation10 + $0x138] sm:$0xff]  ;;  %v4861_v11 = vld [vmem:[#allocation10 + $0x140] sm:$0xff] }
  0xb4   : > { %705 = vmatprep.mubr.f32.mxu1 %v4452_v9  ;;  %5861 = vst [vmem:[#allocation54_spill] sm:$0xff] %v4859_v10  ;;  %5862 = vst [vmem:[#allocation55_spill] sm:$0xff] %v4861_v11  ;;  %v4863_v12 = vld [vmem:[#allocation10 + $0x148] sm:$0xff]  ;;  %v4865_v13 = vld [vmem:[#allocation10 + $0x150] sm:$0xff] }
  0xb5   : > { %5863 = vst [vmem:[#allocation56_spill] sm:$0xff] %v4863_v12  ;;  %5864 = vst [vmem:[#allocation57_spill] sm:$0xff] %v4865_v13  ;;  %v4867_v14 = vld [vmem:[#allocation10 + $0x158] sm:$0xff]  ;;  %v4869_v15 = vld [vmem:[#allocation10 + $0x160] sm:$0xff] }
  0xb6   : > { %3127 = vmatmul.mubr.msk.f32.gmra.mrb[8].mxu0 %vm479_vm0, %v453_v31  ;;  %5865 = vst [vmem:[#allocation58_spill] sm:$0xff] %v4867_v14  ;;  %5866 = vst [vmem:[#allocation59_spill] sm:$0xff] %v4869_v15  ;;  %v4871_v16 = vld [vmem:[#allocation10 + $0x168] sm:$0xff]  ;;  %v4873_v17 = vld [vmem:[#allocation10 + $0x170] sm:$0xff] }
  0xb7   : > { %3135 = vmatmul.mubr.msk.f32.gmra.mrb[8].mxu1 %vm479_vm0, %v453_v31  ;;  %598 = vmatprep.mubr.f32.mxu0 %v4452_v9  ;;  %5867 = vst [vmem:[#allocation60_spill] sm:$0xff] %v4871_v16  ;;  %5868 = vst [vmem:[#allocation61_spill] sm:$0xff] %v4873_v17  ;;  %v4875_v18 = vld [vmem:[#allocation10 + $0x178] sm:$0xff]  ;;  %v4877_v19 = vld [vmem:[#allocation10 + $0x180] sm:$0xff] }
  0xb8   : > { %711 = vmatprep.mubr.f32.mxu1 %v4452_v9  ;;  %5869 = vst [vmem:[#allocation62_spill] sm:$0xff] %v4875_v18  ;;  %5870 = vst [vmem:[#allocation63_spill] sm:$0xff] %v4877_v19  ;;  %v4879_v20 = vld [vmem:[#allocation10 + $0x188] sm:$0xff]  ;;  %v4881_v21 = vld [vmem:[#allocation10 + $0x190] sm:$0xff] }
  0xb9   : > { %5871 = vst [vmem:[#allocation64_spill] sm:$0xff] %v4879_v20  ;;  %5872 = vst [vmem:[#allocation65_spill] sm:$0xff] %v4881_v21  ;;  %v4883_v22 = vld [vmem:[#allocation10 + $0x198] sm:$0xff]  ;;  %v4885_v23 = vld [vmem:[#allocation10 + $0x1a0] sm:$0xff]  ;;  %v459_v21 = vlaneseq }
  0xba   : > { %3128 = vmatmul.mubr.msk.f32.gmra.mrb[10].mxu0 %vm479_vm0, %v454_v32  ;;  %5873 = vst [vmem:[#allocation66_spill] sm:$0xff] %v4883_v22  ;;  %5874 = vst [vmem:[#allocation67_spill] sm:$0xff] %v4885_v23  ;;  %v4887_v24 = vld [vmem:[#allocation10 + $0x1a8] sm:$0xff]  ;;  %v4889_v25 = vld [vmem:[#allocation10 + $0x1b0] sm:$0xff] }
  0xbb   : > { %3136 = vmatmul.mubr.msk.f32.gmra.mrb[10].mxu1 %vm479_vm0, %v454_v32  ;;  %604 = vmatprep.mubr.f32.mxu0 %v4452_v9  ;;  %5875 = vst [vmem:[#allocation68_spill] sm:$0xff] %v4887_v24  ;;  %5876 = vst [vmem:[#allocation69_spill] sm:$0xff] %v4889_v25  ;;  %v4891_v26 = vld [vmem:[#allocation10 + $0x1b8] sm:$0xff]  ;;  %v4893_v27 = vld [vmem:[#allocation10 + $0x1c0] sm:$0xff]  ;;  %v460_v25 = vshrl.u32 %v459_v21, 7 }
  0xbc   : > { %717 = vmatprep.mubr.f32.mxu1 %v4452_v9  ;;  %5877 = vst [vmem:[#allocation70_spill] sm:$0xff] %v4891_v26  ;;  %5878 = vst [vmem:[#allocation71_spill] sm:$0xff] %v4893_v27  ;;  %v4895_v28 = vld [vmem:[#allocation10 + $0x1c8] sm:$0xff]  ;;  %v4897_v29 = vld [vmem:[#allocation10 + $0x1d0] sm:$0xff] }
  0xbd   : > { %5879 = vst [vmem:[#allocation72_spill] sm:$0xff] %v4895_v28  ;;  %5880 = vst [vmem:[#allocation73_spill] sm:$0xff] %v4897_v29  ;;  %v4899_v30 = vld [vmem:[#allocation10 + $0x1d8] sm:$0xff]  ;;  %v4901_v31 = vld [vmem:[#allocation10 + $0x1e0] sm:$0xff]  ;;  %v461_v23 = vsub.s32 0, %v460_v25  ;;  %v469_v26 = vsub.s32 2, %v460_v25 }
  0xbe   : > { %3129 = vmatmul.mubr.msk.f32.gmra.mrb[12].mxu0 %vm479_vm0, %v455_v33  ;;  %5881 = vst [vmem:[#allocation74_spill] sm:$0xff] %v4899_v30  ;;  %5882 = vst [vmem:[#allocation75_spill] sm:$0xff] %v4901_v31  ;;  %v4903_v32 = vld [vmem:[#allocation10 + $0x1e8] sm:$0xff]  ;;  %v457_v19 = vld [vmem:[#allocation11] sm:$0xf]  ;;  %v465_v27 = vsub.s32 1, %v460_v25 }
  0xbf   : > { %3137 = vmatmul.mubr.msk.f32.gmra.mrb[12].mxu1 %vm479_vm0, %v455_v33  ;;  %610 = vmatprep.mubr.f32.mxu0 %v4452_v9  ;;  %5883 = vst [vmem:[#allocation76_spill] sm:$0xff] %v4903_v32  ;;  %v4905_v33 = vld [vmem:[#allocation10 + $0x1f0] sm:$0xff]  ;;  %v473_v22 = vsub.s32 3, %v460_v25  ;;  %v4909_v28 = vrot.slane %v457_v19, %v461_v23  ;;  %v4911_v29 = vrot.slane %v457_v19, %v469_v26 }
  0xc0   : > { %723 = vmatprep.mubr.f32.mxu1 %v4452_v9  ;;  %v4857_v9 = vld [vmem:[#allocation10 + $0x130] sm:$0xff]  ;;  %5884 = vst [vmem:[#allocation77_spill] sm:$0xff] %v4905_v33  ;;  %v4913_v30 = vrot.slane %v457_v19, %v465_v27 }
  0xc1   : > { %5860 = vst [vmem:[#allocation53_spill] sm:$0xff] %v4857_v9  ;;  %v4915_v31 = vrot.slane %v457_v19, %v473_v22 }
  0xc2   : > { %3130 = vmatmul.mubr.msk.f32.gmra.mrb[14].mxu0 %vm479_vm0, %v456_v34 }
  0xc3   : > { %3138 = vmatmul.mubr.msk.f32.gmra.mrb[14].mxu1 %vm479_vm0, %v456_v34  ;;  %v4907_v34 = vld [vmem:[#allocation10 + $0x1f8] sm:$0xff] }
  0xc4   : > { %5885 = vst [vmem:[#allocation78_spill] sm:$0xff] %v4907_v34 }
 0x179   : > { %v570_v32 = vpop.f32.mrb[0].mxu0 }
 0x17a   : > { %v571_v33 = vadd.f32 %v570_v32, %v4909_v28  ;;  %v683_v17 = vpop.f32.mrb[0].mxu1  ;;  %v572_v34 = vpop.f32.mrb[1].mxu0 }
 0x17b   : > { %v684_v21 = vadd.f32 %v683_v17, %v4911_v29  ;;  %v573_v13 = vadd.f32 %v572_v34, %v4913_v30  ;;  %v685_v24 = vpop.f32.mrb[1].mxu1 }
 0x17c   : > { %730 = vst [vmem:[#allocation2] sm:$0xff] %v571_v33  ;;  %v686_v23 = vadd.f32 %v685_v24, %v4915_v31 }
 0x17d   : > { %732 = vst [vmem:[#allocation2 + $0x10] sm:$0xff] %v684_v21  ;;  %731 = vst [vmem:[#allocation2 + $0x8] sm:$0xff] %v573_v13  ;;  %v576_v25 = vpop.f32.mrb[2].mxu0 }
 0x17e   : > { %733 = vst [vmem:[#allocation2 + $0x18] sm:$0xff] %v686_v23  ;;  %v577_v19 = vadd.f32 %v576_v25, %v4909_v28  ;;  %v689_v22 = vpop.f32.mrb[2].mxu1  ;;  %v578_v26 = vpop.f32.mrb[3].mxu0 }
 0x17f   : > { %v690_v27 = vadd.f32 %v689_v22, %v4911_v29  ;;  %v579_v32 = vadd.f32 %v578_v26, %v4913_v30  ;;  %v691_v20 = vpop.f32.mrb[3].mxu1 }
 0x180   : > { %734 = vst [vmem:[#allocation2 + $0x20] sm:$0xff] %v577_v19  ;;  %v692_v17 = vadd.f32 %v691_v20, %v4915_v31 }
 0x181   : > { %736 = vst [vmem:[#allocation2 + $0x30] sm:$0xff] %v690_v27  ;;  %735 = vst [vmem:[#allocation2 + $0x28] sm:$0xff] %v579_v32  ;;  %v582_v33 = vpop.f32.mrb[4].mxu0 }
 0x182   : > { %737 = vst [vmem:[#allocation2 + $0x38] sm:$0xff] %v692_v17  ;;  %v583_v13 = vadd.f32 %v582_v33, %v4909_v28  ;;  %v695_v24 = vpop.f32.mrb[4].mxu1  ;;  %v584_v34 = vpop.f32.mrb[5].mxu0 }
 0x183   : > { %v696_v21 = vadd.f32 %v695_v24, %v4911_v29  ;;  %v585_v23 = vadd.f32 %v584_v34, %v4913_v30  ;;  %v697_v25 = vpop.f32.mrb[5].mxu1 }
 0x184   : > { %738 = vst [vmem:[#allocation2 + $0x40] sm:$0xff] %v583_v13  ;;  %v698_v22 = vadd.f32 %v697_v25, %v4915_v31 }
 0x185   : > { %740 = vst [vmem:[#allocation2 + $0x50] sm:$0xff] %v696_v21  ;;  %739 = vst [vmem:[#allocation2 + $0x48] sm:$0xff] %v585_v23  ;;  %v588_v19 = vpop.f32.mrb[6].mxu0 }
 0x186   : > { %741 = vst [vmem:[#allocation2 + $0x58] sm:$0xff] %v698_v22  ;;  %v589_v20 = vadd.f32 %v588_v19, %v4909_v28  ;;  %v701_v26 = vpop.f32.mrb[6].mxu1  ;;  %v590_v27 = vpop.f32.mrb[7].mxu0 }
 0x187   : > { %v702_v32 = vadd.f32 %v701_v26, %v4911_v29  ;;  %v591_v17 = vadd.f32 %v590_v27, %v4913_v30  ;;  %v703_v33 = vpop.f32.mrb[7].mxu1 }
 0x188   : > { %742 = vst [vmem:[#allocation2 + $0x60] sm:$0xff] %v589_v20  ;;  %v704_v24 = vadd.f32 %v703_v33, %v4915_v31 }
 0x189   : > { %744 = vst [vmem:[#allocation2 + $0x70] sm:$0xff] %v702_v32  ;;  %743 = vst [vmem:[#allocation2 + $0x68] sm:$0xff] %v591_v17  ;;  %v594_v13 = vpop.f32.mrb[8].mxu0 }
 0x18a   : > { %745 = vst [vmem:[#allocation2 + $0x78] sm:$0xff] %v704_v24  ;;  %v595_v34 = vadd.f32 %v594_v13, %v4909_v28  ;;  %v707_v21 = vpop.f32.mrb[8].mxu1  ;;  %v596_v23 = vpop.f32.mrb[9].mxu0 }
 0x18b   : > { %v708_v25 = vadd.f32 %v707_v21, %v4911_v29  ;;  %v597_v22 = vadd.f32 %v596_v23, %v4913_v30  ;;  %v709_v19 = vpop.f32.mrb[9].mxu1 }
 0x18c   : > { %746 = vst [vmem:[#allocation2 + $0x80] sm:$0xff] %v595_v34  ;;  %v710_v26 = vadd.f32 %v709_v19, %v4915_v31 }
 0x18d   : > { %748 = vst [vmem:[#allocation2 + $0x90] sm:$0xff] %v708_v25  ;;  %747 = vst [vmem:[#allocation2 + $0x88] sm:$0xff] %v597_v22  ;;  %v600_v20 = vpop.f32.mrb[10].mxu0 }
 0x18e   : > { %749 = vst [vmem:[#allocation2 + $0x98] sm:$0xff] %v710_v26  ;;  %v601_v27 = vadd.f32 %v600_v20, %v4909_v28  ;;  %v713_v32 = vpop.f32.mrb[10].mxu1  ;;  %v602_v17 = vpop.f32.mrb[11].mxu0 }
 0x18f   : > { %v714_v33 = vadd.f32 %v713_v32, %v4911_v29  ;;  %v603_v24 = vadd.f32 %v602_v17, %v4913_v30  ;;  %v715_v13 = vpop.f32.mrb[11].mxu1 }
 0x190   : > { %750 = vst [vmem:[#allocation2 + $0xa0] sm:$0xff] %v601_v27  ;;  %v716_v21 = vadd.f32 %v715_v13, %v4915_v31 }
 0x191   : > { %752 = vst [vmem:[#allocation2 + $0xb0] sm:$0xff] %v714_v33  ;;  %751 = vst [vmem:[#allocation2 + $0xa8] sm:$0xff] %v603_v24  ;;  %v606_v34 = vpop.f32.mrb[12].mxu0 }
 0x192   : > { %753 = vst [vmem:[#allocation2 + $0xb8] sm:$0xff] %v716_v21  ;;  %v607_v23 = vadd.f32 %v606_v34, %v4909_v28  ;;  %v719_v25 = vpop.f32.mrb[12].mxu1  ;;  %v608_v22 = vpop.f32.mrb[13].mxu0 }
 0x193   : > { %v720_v19 = vadd.f32 %v719_v25, %v4911_v29  ;;  %v609_v26 = vadd.f32 %v608_v22, %v4913_v30  ;;  %v721_v20 = vpop.f32.mrb[13].mxu1  ;;  %v4973_v22 = vpack.c.bf16 (!%p3139_p6), %v4811_v50, %v4803_v46 }
 0x194   : > { %754 = vst [vmem:[#allocation2 + $0xc0] sm:$0xff] %v607_v23  ;;  %v722_v32 = vadd.f32 %v721_v20, %v4915_v31  ;;  %830 = sbr.rel (%p3139_p6) target bundleno = 2432 (0x980), region = 68  ;;  %v4952_v23 = vpack.c.bf16 (!%p3139_p6), %v4791_v40, %v4783_v36  ;;  %v4989_v20 = vpack.c.bf16 (!%p3139_p6), %v4809_v49, %v4801_v45 }
 0x195   : > { %756 = vst [vmem:[#allocation2 + $0xd0] sm:$0xff] %v720_v19  ;;  %755 = vst [vmem:[#allocation2 + $0xc8] sm:$0xff] %v609_v26  ;;  %v612_v27 = vpop.f32.mrb[14].mxu0  ;;  %v4978_v19 = vpack.c.bf16 (!%p3139_p6), %v4805_v47, %v4797_v43  ;;  %v4985_v26 = vpack.c.bf16 (!%p3139_p6), %v4823_v56, %v4815_v52 }
 0x196   : > { %757 = vst [vmem:[#allocation2 + $0xd8] sm:$0xff] %v722_v32  ;;  %v613_v17 = vadd.f32 %v612_v27, %v4909_v28  ;;  %v725_v33 = vpop.f32.mrb[14].mxu1  ;;  %v614_v24 = vpop.f32.mrb[15].mxu0  ;;  %v4956_v28 = vpack.c.bf16 (!%p3139_p6), %v4789_v39, %v4781_v35  ;;  %3179 = vmatprep.subr.bf16.mxu0 (!%p3139_p6), %v4952_v23  ;;  %v4994_v32 = vpack.c.bf16 (!%p3139_p6), %v4827_v58, %v4819_v54  ;;  %v5774_v27 = vmov (!%p3139_p6), 0.0   ;;  %v836_v54 = vld [vmem:[#allocation2 + $0x18] sm:$0xff] (!%p3139_p6) }
 0x197   : > { %v726_v13 = vadd.f32 %v725_v33, %v4911_v29  ;;  %v615_v21 = vadd.f32 %v614_v24, %v4913_v30  ;;  %v727_v34 = vpop.f32.mrb[15].mxu1  ;;  %v4960_v29 = vpack.c.bf16 (!%p3139_p6), %v4807_v48, %v4799_v44  ;;  %v4964_v30 = vpack.c.bf16 (!%p3139_p6), %v4795_v42, %v4787_v38  ;;  %901 = vmatprep.mubr.f32.mxu0 (!%p3139_p6), %v5774_v27 }
 0x198   : > { %758 = vst [vmem:[#allocation2 + $0xe0] sm:$0xff] %v613_v17  ;;  %v728_v25 = vadd.f32 %v727_v34, %v4915_v31  ;;  %v4968_v31 = vpack.c.bf16 (!%p3139_p6), %v4793_v41, %v4785_v37  ;;  %3181 = vmatpush1.bf16.msra.mxu0 (!%p3139_p6), %v4956_v28  ;;  %v5000_v17 = vpack.c.bf16 (!%p3139_p6), %v4821_v55, %v4813_v51 }
 0x199   : > { %760 = vst [vmem:[#allocation2 + $0xf0] sm:$0xff] %v726_v13  ;;  %759 = vst [vmem:[#allocation2 + $0xe8] sm:$0xff] %v615_v21  ;;  %3211 = vmatprep.subr.bf16.mxu1 (!%p3139_p6), %v4964_v30  ;;  %3183 = vmatprep.subr.bf16.mxu0 (!%p3139_p6), %v4960_v29  ;;  %v5006_v33 = vpack.c.bf16 (!%p3139_p6), %v4839_v0, %v4831_v60  ;;  %v5010_v24 = vpack.c.bf16 (!%p3139_p6), %v4825_v57, %v4817_v53 }
 0x19a   : > { %761 = vst [vmem:[#allocation2 + $0xf8] sm:$0xff] %v728_v25  ;;  %3213 = vmatpush1.bf16.msra.mxu1 (!%p3139_p6), %v4968_v31  ;;  %v5015_v13 = vpack.c.bf16 (!%p3139_p6), %v4843_v2, %v4835_v62  ;;  %972 = vmatprep.mubr.f32.mxu1 (!%p3139_p6), %v5774_v27  ;;  %v5021_v21 = vpack.c.bf16 (!%p3139_p6), %v4837_v63, %v4829_v59  ;;  %v5897_v59 = vld [vmem:[#allocation69_spill] sm:$0xff] (!%p3139_p6) }
 0x19b   : > { %3215 = vmatprep.subr.bf16.mxu1 %v4973_v22  ;;  %v5027_v34 = vpack.c.bf16 %v4855_v8, %v4847_v4  ;;  %v5031_v25 = vpack.c.bf16 %v4841_v1, %v4833_v61  ;;  %v5036_v27 = vpack.c.bf16 %v4859_v10, %v4851_v6  ;;  %v5041_v63 = vpack.c.bf16 %v4853_v7, %v4845_v3  ;;  %v5889_v3 = vld [vmem:[#allocation61_spill] sm:$0xff] }
 0x19c   : > { %3185 = vmatpush1.bf16.msra.mxu0 %v4978_v19  ;;  %v5047_v1 = vpack.c.bf16 %v4871_v16, %v4863_v12  ;;  %v5051_v61 = vpack.c.bf16 %v4857_v9, %v4849_v5  ;;  %v5056_v10 = vpack.c.bf16 %v4875_v18, %v4867_v14  ;;  %v5061_v7 = vpack.c.bf16 %v4869_v15, %v4861_v11  ;;  %v5886_v16 = vld [vmem:[#allocation64_spill] sm:$0xff]  ;;  %v5888_v5 = vld [vmem:[#allocation57_spill] sm:$0xff]  ;;  %v5890_v18 = vld [vmem:[#allocation66_spill] sm:$0xff] }
 0x19d   : > { %3187 = vmatprep.subr.bf16.mxu0 %v4985_v26  ;;  %v5887_v12 = vld [vmem:[#allocation68_spill] sm:$0xff]  ;;  %v5071_v6 = vpack.c.bf16 %v5889_v3, %v5888_v5  ;;  %v5891_v14 = vld [vmem:[#allocation70_spill] sm:$0xff]  ;;  %v5892_v15 = vld [vmem:[#allocation63_spill] sm:$0xff] }
 0x19e   : > { %3217 = vmatpush1.bf16.msra.mxu1 %v4989_v20  ;;  %v5067_v9 = vpack.c.bf16 %v5887_v12, %v5886_v16  ;;  %v5076_v8 = vpack.c.bf16 %v5891_v14, %v5890_v18  ;;  %v5893_v11 = vld [vmem:[#allocation67_spill] sm:$0xff]  ;;  %v5894_v12 = vld [vmem:[#allocation72_spill] sm:$0xff]  ;;  %v5896_v5 = vld [vmem:[#allocation65_spill] sm:$0xff] }
 0x19f   : > { %3219 = vmatprep.subr.bf16.mxu1 %v4994_v32  ;;  %v5081_v4 = vpack.c.bf16 %v5893_v11, %v5892_v15  ;;  %v5895_v16 = vld [vmem:[#allocation76_spill] sm:$0xff]  ;;  %v5091_v2 = vpack.c.bf16 %v5897_v59, %v5896_v5  ;;  %v5898_v14 = vld [vmem:[#allocation74_spill] sm:$0xff]  ;;  %v5900_v11 = vld [vmem:[#allocation71_spill] sm:$0xff] }
 0x1a0   : > { %3189 = vmatpush1.bf16.msra.mxu0 %v5000_v17  ;;  %v5087_v3 = vpack.c.bf16 %v5895_v16, %v5894_v12  ;;  %v5899_v18 = vld [vmem:[#allocation78_spill] sm:$0xff]  ;;  %v5901_v15 = vld [vmem:[#allocation75_spill] sm:$0xff]  ;;  %v5902_v12 = vld [vmem:[#allocation73_spill] sm:$0xff] }
 0x1a1   : > { %3191 = vmatprep.subr.bf16.mxu0 %v5006_v33  ;;  %v5096_v62 = vpack.c.bf16 %v5899_v18, %v5898_v14  ;;  %v5101_v57 = vpack.c.bf16 %v5901_v15, %v5900_v11  ;;  %v5903_v16 = vld [vmem:[#allocation77_spill] sm:$0xff]  ;;  %v831_v5 = vld [vmem:[#allocation3] sm:$0xff]  ;;  %v5904_v14 = vmov 0.0  }
 0x1a2   : > { %3221 = vmatpush1.bf16.msra.mxu1 %v5010_v24  ;;  %v5107_v59 = vpack.c.bf16 %v5903_v16, %v5902_v12  ;;  %v833_v18 = vld [vmem:[#allocation2] sm:$0xff]  ;;  %v834_v11 = vld [vmem:[#allocation2 + $0x8] sm:$0xff]  ;;  %v835_v12 = vld [vmem:[#allocation2 + $0x10] sm:$0xff] }
 0x1a3   : > { %3223 = vmatprep.subr.bf16.mxu1 %v5015_v13 }
 0x1a4   : > { %3193 = vmatpush1.bf16.msra.mxu0 %v5021_v21 }
 0x1a5   : > { %3195 = vmatprep.subr.bf16.mxu0 %v5027_v34 }
 0x1a6   : > { %3225 = vmatpush1.bf16.msra.mxu1 %v5031_v25 }
 0x1a7   : > { %3227 = vmatprep.subr.bf16.mxu1 %v5036_v27 }
 0x1a8   : > { %3197 = vmatpush1.bf16.msra.mxu0 %v5041_v63 }
 0x1a9   : > { %3199 = vmatprep.subr.bf16.mxu0 %v5047_v1 }
 0x1aa   : > { %3229 = vmatpush1.bf16.msra.mxu1 %v5051_v61 }
 0x1ab   : > { %3231 = vmatprep.subr.bf16.mxu1 %v5056_v10 }
 0x1ac   : > { %3201 = vmatpush1.bf16.msra.mxu0 %v5061_v7 }
 0x1ad   : > { %3203 = vmatprep.subr.bf16.mxu0 %v5067_v9 }
 0x1ae   : > { %3233 = vmatpush1.bf16.msra.mxu1 %v5071_v6 }
 0x1af   : > { %3235 = vmatprep.subr.bf16.mxu1 %v5076_v8 }
 0x1b0   : > { %3205 = vmatpush1.bf16.msra.mxu0 %v5081_v4 }
 0x1b1   : > { %3207 = vmatprep.subr.bf16.mxu0 %v5087_v3 }
 0x1b2   : > { %3237 = vmatpush1.bf16.msra.mxu1 %v5091_v2 }
 0x1b3   : > { %3239 = vmatprep.subr.bf16.mxu1 %v5096_v62 }
 0x1b4   : > { %3209 = vmatpush1.bf16.msra.mxu0 %v5101_v57 }
 0x1b5   : > { %3243 = vmatprep.subr.bf16.mxu0 %v4952_v23 }
 0x1b6   : > { %3241 = vmatpush1.bf16.msra.mxu1 %v5107_v59 }
 0x1b7   : > { %3275 = vmatprep.subr.bf16.mxu1 %v4964_v30  ;;  %902 = vmatmul.mubr.f32.vlgmr.msra.gmra.mrb[0].mxu0 %v831_v5 }
 0x1b8   : > { %3245 = vmatpush1.bf16.msra.mxu0 %v4956_v28  ;;  %1071 = vmatprep.mubr.f32.mxu0 %v5904_v14 }
 0x1b9   : > { %973 = vmatmul.mubr.f32.vlgmr.msra.gmra.mrb[0].mxu1 %v831_v5  ;;  %3247 = vmatprep.subr.bf16.mxu0 %v4960_v29 }
 0x1ba   : > { %3277 = vmatpush1.bf16.msra.mxu1 %v4968_v31  ;;  %1142 = vmatprep.mubr.f32.mxu1 %v5904_v14 }
 0x1bb   : > { %3279 = vmatprep.subr.bf16.mxu1 %v4973_v22 }
 0x1bc   : > { %3249 = vmatpush1.bf16.msra.mxu0 %v4978_v19 }
 0x1bd   : > { %3251 = vmatprep.subr.bf16.mxu0 %v4985_v26 }
 0x1be   : > { %3281 = vmatpush1.bf16.msra.mxu1 %v4989_v20 }
 0x1bf   : > { %3283 = vmatprep.subr.bf16.mxu1 %v4994_v32 }
 0x1c0   : > { %3253 = vmatpush1.bf16.msra.mxu0 %v5000_v17 }
 0x1c1   : > { %3255 = vmatprep.subr.bf16.mxu0 %v5006_v33 }
 0x1c2   : > { %3285 = vmatpush1.bf16.msra.mxu1 %v5010_v24 }
 0x1c3   : > { %3287 = vmatprep.subr.bf16.mxu1 %v5015_v13 }
 0x1c4   : > { %3257 = vmatpush1.bf16.msra.mxu0 %v5021_v21 }
 0x1c5   : > { %3259 = vmatprep.subr.bf16.mxu0 %v5027_v34 }
 0x1c6   : > { %3289 = vmatpush1.bf16.msra.mxu1 %v5031_v25 }
 0x1c7   : > { %3291 = vmatprep.subr.bf16.mxu1 %v5036_v27 }
 0x1c8   : > { %3261 = vmatpush1.bf16.msra.mxu0 %v5041_v63 }
 0x1c9   : > { %3263 = vmatprep.subr.bf16.mxu0 %v5047_v1 }
 0x1ca   : > { %3293 = vmatpush1.bf16.msra.mxu1 %v5051_v61 }
 0x1cb   : > { %3295 = vmatprep.subr.bf16.mxu1 %v5056_v10 }
 0x1cc   : > { %3265 = vmatpush1.bf16.msra.mxu0 %v5061_v7 }
 0x1cd   : > { %3267 = vmatprep.subr.bf16.mxu0 %v5067_v9 }
 0x1ce   : > { %3297 = vmatpush1.bf16.msra.mxu1 %v5071_v6 }
 0x1cf   : > { %3299 = vmatprep.subr.bf16.mxu1 %v5076_v8 }
 0x1d0   : > { %3269 = vmatpush1.bf16.msra.mxu0 %v5081_v4 }
 0x1d1   : > { %3271 = vmatprep.subr.bf16.mxu0 %v5087_v3 }
 0x1d2   : > { %3301 = vmatpush1.bf16.msra.mxu1 %v5091_v2 }
 0x1d3   : > { %3303 = vmatprep.subr.bf16.mxu1 %v5096_v62 }
 0x1d4   : > { %3273 = vmatpush1.bf16.msra.mxu0 %v5101_v57 }
 0x1d5   : > { %3307 = vmatprep.subr.bf16.mxu0 %v4952_v23 }
 0x1d6   : > { %3305 = vmatpush1.bf16.msra.mxu1 %v5107_v59 }
 0x1d7   : > { %3339 = vmatprep.subr.bf16.mxu1 %v4964_v30 }
 0x28a   : > { %v903_v15 = vpop.f32.mrb[0].mxu0 }
 0x28b   : > { %v979_v16 = vadd.f32 %v903_v15, %v833_v18  ;;  %v905_v5 = vpop.f32.mrb[1].mxu0  ;;  %v832_v15 = vld [vmem:[#allocation4] sm:$0xff] }
 0x28c   : > { %v974_v53 = vpop.f32.mrb[0].mxu1  ;;  %v980_v0 = vadd.f32 %v905_v5, %v834_v11 }
 0x28d   : > { %v976_v60 = vpop.f32.mrb[1].mxu1  ;;  %v983_v55 = vmul.f32 0.5, %v979_v16  ;;  %v981_v51 = vadd.f32 %v974_v53, %v835_v12 }
 0x28e   : > { %v987_v58 = vmul.f32 0.5, %v980_v0  ;;  %v982_v49 = vadd.f32 %v976_v60, %v836_v54  ;;  %v1005_v0 = vld [vmem:[#allocation2 + $0x30] sm:$0xff] }
 0x28f   : > { %4062 = vtanh.f32 %v983_v55 }
 0x290   : > { %4064 = vtanh.f32 %v987_v58  ;;  %v992_v45 = vmul.f32 0.5, %v982_v49 }
 0x291   : > { %4066 = vtanh.f32 %v981_v51 }
 0x292   : > { %4068 = vtanh.f32 %v992_v45  ;;  %v1004_v45 = vld [vmem:[#allocation2 + $0x28] sm:$0xff] }
 0x299   : > { %v4063_v56 = vpop.eup %4062 }
 0x29a   : > { %v4065_v52 = vpop.eup %4064  ;;  %v985_v47 = vadd.f32 1.0, %v4063_v56 }
 0x29b   : > { %v4067_v43 = vpop.eup %4066  ;;  %v989_v50 = vadd.f32 1.0, %v4065_v52 }
 0x29c   : > { %v986_v18 = vmul.f32 0.5, %v985_v47  ;;  %v4069_v55 = vpop.eup %4068 }
 0x29d   : > { %v990_v11 = vmul.f32 0.5, %v989_v50  ;;  %v994_v51 = vadd.f32 1.0, %v4069_v55 }
 0x29e   : > { %v997_v5 = vmul.f32 %v4067_v43, %v986_v18  ;;  %v1003_v43 = vld [vmem:[#allocation2 + $0x20] sm:$0xff] }
 0x29f   : > { %v996_v16 = vmul.f32 %v990_v11, %v832_v15  ;;  %v995_v54 = vmul.f32 0.5, %v994_v51 }
 0x2a1   : > { %v5148_v53 = vadd.f32 %v997_v5, %v996_v16  ;;  %v1006_v5 = vld [vmem:[#allocation2 + $0x38] sm:$0xff] }
 0x2a3   : > { %4070 = vtanh.f32 %v5148_v53 }
 0x2ad   : > { %v4071_v49 = vpop.eup %4070 }
 0x2ae   : > { %v1000_v58 = vmul.f32 %v4071_v49, %v995_v54 }
 0x2b0   : > { %1001 = vst [vmem:[%s4732_s17] sm:$0xff] %v1000_v58  ;;  %1072 = vmatmul.mubr.f32.vlgmr.msra.gmra.mrb[2].mxu0 %v1000_v58  ;;  %1143 = vmatmul.mubr.f32.vlgmr.msra.gmra.mrb[2].mxu1 %v1000_v58 }
 0x2b1   : > { %3309 = vmatpush1.bf16.msra.mxu0 %v4956_v28  ;;  %3341 = vmatpush1.bf16.msra.mxu1 %v4968_v31 }
 0x2b2   : > { %3311 = vmatprep.subr.bf16.mxu0 %v4960_v29  ;;  %3343 = vmatprep.subr.bf16.mxu1 %v4973_v22 }
 0x2b3   : > { %1242 = vmatprep.mubr.f32.mxu0 %v5904_v14  ;;  %1313 = vmatprep.mubr.f32.mxu1 %v5904_v14 }
 0x2b5   : > { %3313 = vmatpush1.bf16.msra.mxu0 %v4978_v19  ;;  %3345 = vmatpush1.bf16.msra.mxu1 %v4989_v20 }
 0x2b6   : > { %3315 = vmatprep.subr.bf16.mxu0 %v4985_v26  ;;  %3347 = vmatprep.subr.bf16.mxu1 %v4994_v32 }
 0x2b9   : > { %3317 = vmatpush1.bf16.msra.mxu0 %v5000_v17  ;;  %3349 = vmatpush1.bf16.msra.mxu1 %v5010_v24 }
 0x2ba   : > { %3319 = vmatprep.subr.bf16.mxu0 %v5006_v33  ;;  %3351 = vmatprep.subr.bf16.mxu1 %v5015_v13 }
 0x2bd   : > { %3321 = vmatpush1.bf16.msra.mxu0 %v5021_v21  ;;  %3353 = vmatpush1.bf16.msra.mxu1 %v5031_v25 }
 0x2be   : > { %3323 = vmatprep.subr.bf16.mxu0 %v5027_v34  ;;  %3355 = vmatprep.subr.bf16.mxu1 %v5036_v27 }
 0x2c1   : > { %3325 = vmatpush1.bf16.msra.mxu0 %v5041_v63  ;;  %3357 = vmatpush1.bf16.msra.mxu1 %v5051_v61 }
 0x2c2   : > { %3327 = vmatprep.subr.bf16.mxu0 %v5047_v1  ;;  %3359 = vmatprep.subr.bf16.mxu1 %v5056_v10 }
 0x2c5   : > { %3329 = vmatpush1.bf16.msra.mxu0 %v5061_v7  ;;  %3361 = vmatpush1.bf16.msra.mxu1 %v5071_v6 }
 0x2c6   : > { %3331 = vmatprep.subr.bf16.mxu0 %v5067_v9  ;;  %3363 = vmatprep.subr.bf16.mxu1 %v5076_v8 }
 0x2c9   : > { %3333 = vmatpush1.bf16.msra.mxu0 %v5081_v4  ;;  %3365 = vmatpush1.bf16.msra.mxu1 %v5091_v2 }
 0x2ca   : > { %3335 = vmatprep.subr.bf16.mxu0 %v5087_v3  ;;  %3367 = vmatprep.subr.bf16.mxu1 %v5096_v62 }
 0x2cd   : > { %3337 = vmatpush1.bf16.msra.mxu0 %v5101_v57  ;;  %3369 = vmatpush1.bf16.msra.mxu1 %v5107_v59 }
 0x2ce   : > { %3371 = vmatprep.subr.bf16.mxu0 %v4952_v23  ;;  %3403 = vmatprep.subr.bf16.mxu1 %v4964_v30 }
 0x383   : > { %v1073_v47 = vpop.f32.mrb[2].mxu0  ;;  %v1144_v50 = vpop.f32.mrb[2].mxu1 }
 0x384   : > { %v1149_v52 = vadd.f32 %v1073_v47, %v1003_v43  ;;  %v1075_v56 = vpop.f32.mrb[3].mxu0  ;;  %v1146_v60 = vpop.f32.mrb[3].mxu1  ;;  %v1151_v11 = vadd.f32 %v1144_v50, %v1005_v0 }
 0x385   : > { %v1150_v12 = vadd.f32 %v1075_v56, %v1004_v45  ;;  %v1152_v16 = vadd.f32 %v1146_v60, %v1006_v5 }
 0x386   : > { %v1153_v18 = vmul.f32 0.5, %v1149_v52 }
 0x387   : > { %v1157_v15 = vmul.f32 0.5, %v1150_v12  ;;  %v1162_v55 = vmul.f32 0.5, %v1152_v16  ;;  %v1176_v16 = vld [vmem:[#allocation2 + $0x50] sm:$0xff] }
 0x388   : > { %4072 = vtanh.f32 %v1153_v18 }
 0x389   : > { %4074 = vtanh.f32 %v1157_v15 }
 0x38a   : > { %4076 = vtanh.f32 %v1151_v11 }
 0x38b   : > { %4078 = vtanh.f32 %v1162_v55 }
 0x392   : > { %v4073_v51 = vpop.eup %4072 }
 0x393   : > { %v4075_v54 = vpop.eup %4074  ;;  %v1155_v49 = vadd.f32 1.0, %v4073_v51 }
 0x394   : > { %v1159_v58 = vadd.f32 1.0, %v4075_v54  ;;  %v4077_v47 = vpop.eup %4076 }
 0x395   : > { %v1156_v43 = vmul.f32 0.5, %v1155_v49  ;;  %v4079_v50 = vpop.eup %4078 }
 0x396   : > { %v1160_v46 = vmul.f32 0.5, %v1159_v58  ;;  %v1164_v56 = vadd.f32 1.0, %v4079_v50  ;;  %v1177_v58 = vld [vmem:[#allocation2 + $0x58] sm:$0xff] }
 0x397   : > { %v1167_v41 = vmul.f32 %v4077_v47, %v1156_v43 }
 0x398   : > { %v1166_v45 = vmul.f32 %v1160_v46, %v5148_v53  ;;  %v1165_v60 = vmul.f32 0.5, %v1164_v56  ;;  %v1175_v46 = vld [vmem:[#allocation2 + $0x48] sm:$0xff] }
 0x39a   : > { %v5187_v52 = vadd.f32 %v1167_v41, %v1166_v45  ;;  %v1174_v41 = vld [vmem:[#allocation2 + $0x40] sm:$0xff] }
 0x39c   : > { %4080 = vtanh.f32 %v5187_v52 }
 0x3a6   : > { %v4081_v0 = vpop.eup %4080 }
 0x3a7   : > { %v1170_v12 = vmul.f32 %v4081_v0, %v1165_v60 }
 0x3a9   : > { %3140 = vst [vmem:[%s4732_s17 + $0x8] sm:$0xff] %v1170_v12  ;;  %1243 = vmatmul.mubr.f32.vlgmr.msra.gmra.mrb[4].mxu0 %v1170_v12  ;;  %1314 = vmatmul.mubr.f32.vlgmr.msra.gmra.mrb[4].mxu1 %v1170_v12 }
 0x3aa   : > { %3373 = vmatpush1.bf16.msra.mxu0 %v4956_v28  ;;  %3405 = vmatpush1.bf16.msra.mxu1 %v4968_v31 }
 0x3ab   : > { %3375 = vmatprep.subr.bf16.mxu0 %v4960_v29  ;;  %3407 = vmatprep.subr.bf16.mxu1 %v4973_v22 }
 0x3ac   : > { %1413 = vmatprep.mubr.f32.mxu0 %v5904_v14  ;;  %1484 = vmatprep.mubr.f32.mxu1 %v5904_v14 }
 0x3ae   : > { %3377 = vmatpush1.bf16.msra.mxu0 %v4978_v19  ;;  %3409 = vmatpush1.bf16.msra.mxu1 %v4989_v20 }
 0x3af   : > { %3379 = vmatprep.subr.bf16.mxu0 %v4985_v26  ;;  %3411 = vmatprep.subr.bf16.mxu1 %v4994_v32 }
 0x3b2   : > { %3381 = vmatpush1.bf16.msra.mxu0 %v5000_v17  ;;  %3413 = vmatpush1.bf16.msra.mxu1 %v5010_v24 }
 0x3b3   : > { %3383 = vmatprep.subr.bf16.mxu0 %v5006_v33  ;;  %3415 = vmatprep.subr.bf16.mxu1 %v5015_v13 }
 0x3b6   : > { %3385 = vmatpush1.bf16.msra.mxu0 %v5021_v21  ;;  %3417 = vmatpush1.bf16.msra.mxu1 %v5031_v25 }
 0x3b7   : > { %3387 = vmatprep.subr.bf16.mxu0 %v5027_v34  ;;  %3419 = vmatprep.subr.bf16.mxu1 %v5036_v27 }
 0x3ba   : > { %3389 = vmatpush1.bf16.msra.mxu0 %v5041_v63  ;;  %3421 = vmatpush1.bf16.msra.mxu1 %v5051_v61 }
 0x3bb   : > { %3391 = vmatprep.subr.bf16.mxu0 %v5047_v1  ;;  %3423 = vmatprep.subr.bf16.mxu1 %v5056_v10 }
 0x3be   : > { %3393 = vmatpush1.bf16.msra.mxu0 %v5061_v7  ;;  %3425 = vmatpush1.bf16.msra.mxu1 %v5071_v6 }
 0x3bf   : > { %3395 = vmatprep.subr.bf16.mxu0 %v5067_v9  ;;  %3427 = vmatprep.subr.bf16.mxu1 %v5076_v8 }
 0x3c2   : > { %3397 = vmatpush1.bf16.msra.mxu0 %v5081_v4  ;;  %3429 = vmatpush1.bf16.msra.mxu1 %v5091_v2 }
 0x3c3   : > { %3399 = vmatprep.subr.bf16.mxu0 %v5087_v3  ;;  %3431 = vmatprep.subr.bf16.mxu1 %v5096_v62 }
 0x3c6   : > { %3401 = vmatpush1.bf16.msra.mxu0 %v5101_v57  ;;  %3433 = vmatpush1.bf16.msra.mxu1 %v5107_v59 }
 0x3c7   : > { %3435 = vmatprep.subr.bf16.mxu0 %v4952_v23  ;;  %3467 = vmatprep.subr.bf16.mxu1 %v4964_v30 }
 0x47c   : > { %v1244_v53 = vpop.f32.mrb[4].mxu0  ;;  %v1315_v18 = vpop.f32.mrb[4].mxu1 }
 0x47d   : > { %v1320_v15 = vadd.f32 %v1244_v53, %v1174_v41  ;;  %v1246_v11 = vpop.f32.mrb[5].mxu0  ;;  %v1317_v5 = vpop.f32.mrb[5].mxu1  ;;  %v1322_v49 = vadd.f32 %v1315_v18, %v1176_v16 }
 0x47e   : > { %v1321_v55 = vadd.f32 %v1246_v11, %v1175_v46  ;;  %v1323_v43 = vadd.f32 %v1317_v5, %v1177_v58 }
 0x47f   : > { %v1324_v51 = vmul.f32 0.5, %v1320_v15 }
 0x480   : > { %v1328_v54 = vmul.f32 0.5, %v1321_v55  ;;  %v1333_v47 = vmul.f32 0.5, %v1323_v43 }
 0x481   : > { %4082 = vtanh.f32 %v1324_v51  ;;  %v1346_v51 = vld [vmem:[#allocation2 + $0x68] sm:$0xff] }
 0x482   : > { %4084 = vtanh.f32 %v1328_v54 }
 0x483   : > { %4086 = vtanh.f32 %v1322_v49 }
 0x484   : > { %4088 = vtanh.f32 %v1333_v47 }
 0x48b   : > { %v4083_v45 = vpop.eup %4082 }
 0x48c   : > { %v4085_v50 = vpop.eup %4084  ;;  %v1326_v56 = vadd.f32 1.0, %v4083_v45  ;;  %v1347_v45 = vld [vmem:[#allocation2 + $0x70] sm:$0xff] }
 0x48d   : > { %v1330_v60 = vadd.f32 1.0, %v4085_v50  ;;  %v4087_v12 = vpop.eup %4086 }
 0x48e   : > { %v1327_v0 = vmul.f32 0.5, %v1326_v56  ;;  %v4089_v18 = vpop.eup %4088 }
 0x48f   : > { %v1331_v41 = vmul.f32 0.5, %v1330_v60  ;;  %v1335_v11 = vadd.f32 1.0, %v4089_v18 }
 0x490   : > { %v1338_v53 = vmul.f32 %v4087_v12, %v1327_v0  ;;  %v1348_v12 = vld [vmem:[#allocation2 + $0x78] sm:$0xff] }
 0x491   : > { %v1337_v46 = vmul.f32 %v1331_v41, %v5187_v52  ;;  %v1336_v5 = vmul.f32 0.5, %v1335_v11  ;;  %v1345_v52 = vld [vmem:[#allocation2 + $0x60] sm:$0xff] }
 0x493   : > { %v5226_v15 = vadd.f32 %v1338_v53, %v1337_v46 }
 0x495   : > { %4090 = vtanh.f32 %v5226_v15 }
 0x49f   : > { %v4091_v16 = vpop.eup %4090 }
 0x4a0   : > { %v1341_v55 = vmul.f32 %v4091_v16, %v1336_v5 }
 0x4a2   : > { %3141 = vst [vmem:[%s4732_s17 + $0x10] sm:$0xff] %v1341_v55  ;;  %1414 = vmatmul.mubr.f32.vlgmr.msra.gmra.mrb[6].mxu0 %v1341_v55  ;;  %1485 = vmatmul.mubr.f32.vlgmr.msra.gmra.mrb[6].mxu1 %v1341_v55 }
 0x4a3   : > { %3437 = vmatpush1.bf16.msra.mxu0 %v4956_v28  ;;  %3469 = vmatpush1.bf16.msra.mxu1 %v4968_v31 }
 0x4a4   : > { %3439 = vmatprep.subr.bf16.mxu0 %v4960_v29  ;;  %3471 = vmatprep.subr.bf16.mxu1 %v4973_v22 }
 0x4a5   : > { %1584 = vmatprep.mubr.f32.mxu0 %v5904_v14  ;;  %1655 = vmatprep.mubr.f32.mxu1 %v5904_v14 }
 0x4a7   : > { %3441 = vmatpush1.bf16.msra.mxu0 %v4978_v19  ;;  %3473 = vmatpush1.bf16.msra.mxu1 %v4989_v20 }
 0x4a8   : > { %3443 = vmatprep.subr.bf16.mxu0 %v4985_v26  ;;  %3475 = vmatprep.subr.bf16.mxu1 %v4994_v32 }
 0x4ab   : > { %3445 = vmatpush1.bf16.msra.mxu0 %v5000_v17  ;;  %3477 = vmatpush1.bf16.msra.mxu1 %v5010_v24 }
 0x4ac   : > { %3447 = vmatprep.subr.bf16.mxu0 %v5006_v33  ;;  %3479 = vmatprep.subr.bf16.mxu1 %v5015_v13 }
 0x4af   : > { %3449 = vmatpush1.bf16.msra.mxu0 %v5021_v21  ;;  %3481 = vmatpush1.bf16.msra.mxu1 %v5031_v25 }
 0x4b0   : > { %3451 = vmatprep.subr.bf16.mxu0 %v5027_v34  ;;  %3483 = vmatprep.subr.bf16.mxu1 %v5036_v27 }
 0x4b3   : > { %3453 = vmatpush1.bf16.msra.mxu0 %v5041_v63  ;;  %3485 = vmatpush1.bf16.msra.mxu1 %v5051_v61 }
 0x4b4   : > { %3455 = vmatprep.subr.bf16.mxu0 %v5047_v1  ;;  %3487 = vmatprep.subr.bf16.mxu1 %v5056_v10 }
 0x4b7   : > { %3457 = vmatpush1.bf16.msra.mxu0 %v5061_v7  ;;  %3489 = vmatpush1.bf16.msra.mxu1 %v5071_v6 }
 0x4b8   : > { %3459 = vmatprep.subr.bf16.mxu0 %v5067_v9  ;;  %3491 = vmatprep.subr.bf16.mxu1 %v5076_v8 }
 0x4bb   : > { %3461 = vmatpush1.bf16.msra.mxu0 %v5081_v4  ;;  %3493 = vmatpush1.bf16.msra.mxu1 %v5091_v2 }
 0x4bc   : > { %3463 = vmatprep.subr.bf16.mxu0 %v5087_v3  ;;  %3495 = vmatprep.subr.bf16.mxu1 %v5096_v62 }
 0x4bf   : > { %3465 = vmatpush1.bf16.msra.mxu0 %v5101_v57  ;;  %3497 = vmatpush1.bf16.msra.mxu1 %v5107_v59 }
 0x4c0   : > { %3499 = vmatprep.subr.bf16.mxu0 %v4952_v23  ;;  %3531 = vmatprep.subr.bf16.mxu1 %v4964_v30 }
 0x575   : > { %v1415_v54 = vpop.f32.mrb[6].mxu0  ;;  %v1486_v49 = vpop.f32.mrb[6].mxu1 }
 0x576   : > { %v1491_v58 = vadd.f32 %v1415_v54, %v1345_v52  ;;  %v1417_v43 = vpop.f32.mrb[7].mxu0  ;;  %v1488_v47 = vpop.f32.mrb[7].mxu1  ;;  %v1493_v0 = vadd.f32 %v1486_v49, %v1347_v45 }
 0x577   : > { %v1492_v50 = vadd.f32 %v1417_v43, %v1346_v51  ;;  %v1494_v41 = vadd.f32 %v1488_v47, %v1348_v12 }
 0x578   : > { %v1495_v56 = vmul.f32 0.5, %v1491_v58 }
 0x579   : > { %v1499_v60 = vmul.f32 0.5, %v1492_v50  ;;  %v1504_v53 = vmul.f32 0.5, %v1494_v41 }
 0x57a   : > { %4092 = vtanh.f32 %v1495_v56  ;;  %v1517_v56 = vld [vmem:[#allocation2 + $0x88] sm:$0xff] }
 0x57b   : > { %4094 = vtanh.f32 %v1499_v60 }
 0x57c   : > { %4096 = vtanh.f32 %v1493_v0 }
 0x57d   : > { %4098 = vtanh.f32 %v1504_v53 }
 0x584   : > { %v4093_v46 = vpop.eup %4092 }
 0x585   : > { %v4095_v18 = vpop.eup %4094  ;;  %v1497_v11 = vadd.f32 1.0, %v4093_v46  ;;  %v1518_v46 = vld [vmem:[#allocation2 + $0x90] sm:$0xff] }
 0x586   : > { %v1501_v5 = vadd.f32 1.0, %v4095_v18  ;;  %v4097_v55 = vpop.eup %4096 }
 0x587   : > { %v1498_v16 = vmul.f32 0.5, %v1497_v11  ;;  %v4099_v49 = vpop.eup %4098 }
 0x588   : > { %v1502_v52 = vmul.f32 0.5, %v1501_v5  ;;  %v1506_v43 = vadd.f32 1.0, %v4099_v49 }
 0x589   : > { %v1509_v54 = vmul.f32 %v4097_v55, %v1498_v16  ;;  %v1519_v55 = vld [vmem:[#allocation2 + $0x98] sm:$0xff] }
 0x58a   : > { %v1508_v51 = vmul.f32 %v1502_v52, %v5226_v15  ;;  %v1507_v47 = vmul.f32 0.5, %v1506_v43  ;;  %v1516_v15 = vld [vmem:[#allocation2 + $0x80] sm:$0xff] }
 0x58c   : > { %v5265_v58 = vadd.f32 %v1509_v54, %v1508_v51 }
 0x58e   : > { %4100 = vtanh.f32 %v5265_v58 }
 0x598   : > { %v4101_v45 = vpop.eup %4100 }
 0x599   : > { %v1512_v50 = vmul.f32 %v4101_v45, %v1507_v47 }
 0x59b   : > { %3142 = vst [vmem:[%s4732_s17 + $0x18] sm:$0xff] %v1512_v50  ;;  %1585 = vmatmul.mubr.f32.vlgmr.msra.gmra.mrb[8].mxu0 %v1512_v50  ;;  %1656 = vmatmul.mubr.f32.vlgmr.msra.gmra.mrb[8].mxu1 %v1512_v50 }
 0x59c   : > { %3501 = vmatpush1.bf16.msra.mxu0 %v4956_v28  ;;  %3533 = vmatpush1.bf16.msra.mxu1 %v4968_v31 }
 0x59d   : > { %3503 = vmatprep.subr.bf16.mxu0 %v4960_v29  ;;  %3535 = vmatprep.subr.bf16.mxu1 %v4973_v22 }
 0x59e   : > { %1755 = vmatprep.mubr.f32.mxu0 %v5904_v14  ;;  %1826 = vmatprep.mubr.f32.mxu1 %v5904_v14 }
 0x5a0   : > { %3505 = vmatpush1.bf16.msra.mxu0 %v4978_v19  ;;  %3537 = vmatpush1.bf16.msra.mxu1 %v4989_v20 }
 0x5a1   : > { %3507 = vmatprep.subr.bf16.mxu0 %v4985_v26  ;;  %3539 = vmatprep.subr.bf16.mxu1 %v4994_v32 }
 0x5a4   : > { %3509 = vmatpush1.bf16.msra.mxu0 %v5000_v17  ;;  %3541 = vmatpush1.bf16.msra.mxu1 %v5010_v24 }
 0x5a5   : > { %3511 = vmatprep.subr.bf16.mxu0 %v5006_v33  ;;  %3543 = vmatprep.subr.bf16.mxu1 %v5015_v13 }
 0x5a8   : > { %3513 = vmatpush1.bf16.msra.mxu0 %v5021_v21  ;;  %3545 = vmatpush1.bf16.msra.mxu1 %v5031_v25 }
 0x5a9   : > { %3515 = vmatprep.subr.bf16.mxu0 %v5027_v34  ;;  %3547 = vmatprep.subr.bf16.mxu1 %v5036_v27 }
 0x5ac   : > { %3517 = vmatpush1.bf16.msra.mxu0 %v5041_v63  ;;  %3549 = vmatpush1.bf16.msra.mxu1 %v5051_v61 }
 0x5ad   : > { %3519 = vmatprep.subr.bf16.mxu0 %v5047_v1  ;;  %3551 = vmatprep.subr.bf16.mxu1 %v5056_v10 }
 0x5b0   : > { %3521 = vmatpush1.bf16.msra.mxu0 %v5061_v7  ;;  %3553 = vmatpush1.bf16.msra.mxu1 %v5071_v6 }
 0x5b1   : > { %3523 = vmatprep.subr.bf16.mxu0 %v5067_v9  ;;  %3555 = vmatprep.subr.bf16.mxu1 %v5076_v8 }
 0x5b4   : > { %3525 = vmatpush1.bf16.msra.mxu0 %v5081_v4  ;;  %3557 = vmatpush1.bf16.msra.mxu1 %v5091_v2 }
 0x5b5   : > { %3527 = vmatprep.subr.bf16.mxu0 %v5087_v3  ;;  %3559 = vmatprep.subr.bf16.mxu1 %v5096_v62 }
 0x5b8   : > { %3529 = vmatpush1.bf16.msra.mxu0 %v5101_v57  ;;  %3561 = vmatpush1.bf16.msra.mxu1 %v5107_v59 }
 0x5b9   : > { %3563 = vmatprep.subr.bf16.mxu0 %v4952_v23  ;;  %3595 = vmatprep.subr.bf16.mxu1 %v4964_v30 }
 0x66e   : > { %v1586_v60 = vpop.f32.mrb[8].mxu0  ;;  %v1657_v0 = vpop.f32.mrb[8].mxu1 }
 0x66f   : > { %v1662_v12 = vadd.f32 %v1586_v60, %v1516_v15  ;;  %v1588_v41 = vpop.f32.mrb[9].mxu0  ;;  %v1659_v53 = vpop.f32.mrb[9].mxu1  ;;  %v1664_v16 = vadd.f32 %v1657_v0, %v1518_v46 }
 0x670   : > { %v1663_v18 = vadd.f32 %v1588_v41, %v1517_v56  ;;  %v1665_v52 = vadd.f32 %v1659_v53, %v1519_v55 }
 0x671   : > { %v1666_v11 = vmul.f32 0.5, %v1662_v12 }
 0x672   : > { %v1670_v5 = vmul.f32 0.5, %v1663_v18  ;;  %v1675_v54 = vmul.f32 0.5, %v1665_v52 }
 0x673   : > { %4102 = vtanh.f32 %v1666_v11  ;;  %v1688_v11 = vld [vmem:[#allocation2 + $0xa8] sm:$0xff] }
 0x674   : > { %4104 = vtanh.f32 %v1670_v5 }
 0x675   : > { %4106 = vtanh.f32 %v1664_v16 }
 0x676   : > { %4108 = vtanh.f32 %v1675_v54 }
 0x67d   : > { %v4103_v51 = vpop.eup %4102 }
 0x67e   : > { %v4105_v49 = vpop.eup %4104  ;;  %v1668_v43 = vadd.f32 1.0, %v4103_v51  ;;  %v1689_v51 = vld [vmem:[#allocation2 + $0xb0] sm:$0xff] }
 0x67f   : > { %v1672_v47 = vadd.f32 1.0, %v4105_v49  ;;  %v4107_v50 = vpop.eup %4106 }
 0x680   : > { %v1669_v45 = vmul.f32 0.5, %v1668_v43  ;;  %v4109_v0 = vpop.eup %4108 }
 0x681   : > { %v1673_v15 = vmul.f32 0.5, %v1672_v47  ;;  %v1677_v41 = vadd.f32 1.0, %v4109_v0 }
 0x682   : > { %v1680_v60 = vmul.f32 %v4107_v50, %v1669_v45  ;;  %v1690_v50 = vld [vmem:[#allocation2 + $0xb8] sm:$0xff] }
 0x683   : > { %v1679_v56 = vmul.f32 %v1673_v15, %v5265_v58  ;;  %v1678_v53 = vmul.f32 0.5, %v1677_v41  ;;  %v1687_v58 = vld [vmem:[#allocation2 + $0xa0] sm:$0xff] }
 0x685   : > { %v5304_v12 = vadd.f32 %v1680_v60, %v1679_v56 }
 0x687   : > { %4110 = vtanh.f32 %v5304_v12 }
 0x691   : > { %v4111_v46 = vpop.eup %4110 }
 0x692   : > { %v1683_v18 = vmul.f32 %v4111_v46, %v1678_v53 }
 0x694   : > { %3143 = vst [vmem:[%s4732_s17 + $0x20] sm:$0xff] %v1683_v18  ;;  %1756 = vmatmul.mubr.f32.vlgmr.msra.gmra.mrb[10].mxu0 %v1683_v18  ;;  %1827 = vmatmul.mubr.f32.vlgmr.msra.gmra.mrb[10].mxu1 %v1683_v18 }
 0x695   : > { %3565 = vmatpush1.bf16.msra.mxu0 %v4956_v28  ;;  %3597 = vmatpush1.bf16.msra.mxu1 %v4968_v31 }
 0x696   : > { %3567 = vmatprep.subr.bf16.mxu0 %v4960_v29  ;;  %3599 = vmatprep.subr.bf16.mxu1 %v4973_v22 }
 0x697   : > { %1926 = vmatprep.mubr.f32.mxu0 %v5904_v14  ;;  %1997 = vmatprep.mubr.f32.mxu1 %v5904_v14 }
 0x699   : > { %3569 = vmatpush1.bf16.msra.mxu0 %v4978_v19  ;;  %3601 = vmatpush1.bf16.msra.mxu1 %v4989_v20 }
 0x69a   : > { %3571 = vmatprep.subr.bf16.mxu0 %v4985_v26  ;;  %3603 = vmatprep.subr.bf16.mxu1 %v4994_v32 }
 0x69d   : > { %3573 = vmatpush1.bf16.msra.mxu0 %v5000_v17  ;;  %3605 = vmatpush1.bf16.msra.mxu1 %v5010_v24 }
 0x69e   : > { %3575 = vmatprep.subr.bf16.mxu0 %v5006_v33  ;;  %3607 = vmatprep.subr.bf16.mxu1 %v5015_v13 }
 0x6a1   : > { %3577 = vmatpush1.bf16.msra.mxu0 %v5021_v21  ;;  %3609 = vmatpush1.bf16.msra.mxu1 %v5031_v25 }
 0x6a2   : > { %3579 = vmatprep.subr.bf16.mxu0 %v5027_v34  ;;  %3611 = vmatprep.subr.bf16.mxu1 %v5036_v27 }
 0x6a5   : > { %3581 = vmatpush1.bf16.msra.mxu0 %v5041_v63  ;;  %3613 = vmatpush1.bf16.msra.mxu1 %v5051_v61 }
 0x6a6   : > { %3583 = vmatprep.subr.bf16.mxu0 %v5047_v1  ;;  %3615 = vmatprep.subr.bf16.mxu1 %v5056_v10 }
 0x6a9   : > { %3585 = vmatpush1.bf16.msra.mxu0 %v5061_v7  ;;  %3617 = vmatpush1.bf16.msra.mxu1 %v5071_v6 }
 0x6aa   : > { %3587 = vmatprep.subr.bf16.mxu0 %v5067_v9  ;;  %3619 = vmatprep.subr.bf16.mxu1 %v5076_v8 }
 0x6ad   : > { %3589 = vmatpush1.bf16.msra.mxu0 %v5081_v4  ;;  %3621 = vmatpush1.bf16.msra.mxu1 %v5091_v2 }
 0x6ae   : > { %3591 = vmatprep.subr.bf16.mxu0 %v5087_v3  ;;  %3623 = vmatprep.subr.bf16.mxu1 %v5096_v62 }
 0x6b1   : > { %3593 = vmatpush1.bf16.msra.mxu0 %v5101_v57  ;;  %3625 = vmatpush1.bf16.msra.mxu1 %v5107_v59 }
 0x6b2   : > { %3627 = vmatprep.subr.bf16.mxu0 %v4952_v23  ;;  %3659 = vmatprep.subr.bf16.mxu1 %v4964_v30 }
 0x767   : > { %v1757_v5 = vpop.f32.mrb[10].mxu0  ;;  %v1828_v16 = vpop.f32.mrb[10].mxu1 }
 0x768   : > { %v1833_v55 = vadd.f32 %v1757_v5, %v1687_v58  ;;  %v1759_v52 = vpop.f32.mrb[11].mxu0  ;;  %v1830_v54 = vpop.f32.mrb[11].mxu1  ;;  %v1835_v45 = vadd.f32 %v1828_v16, %v1689_v51 }
 0x769   : > { %v1834_v49 = vadd.f32 %v1759_v52, %v1688_v11  ;;  %v1836_v15 = vadd.f32 %v1830_v54, %v1690_v50  ;;  %v2031_v50 = vld [vmem:[#allocation2 + $0xf0] sm:$0xff] }
 0x76a   : > { %v1837_v43 = vmul.f32 0.5, %v1833_v55 }
 0x76b   : > { %v1841_v47 = vmul.f32 0.5, %v1834_v49  ;;  %v1846_v23 = vmul.f32 0.5, %v1836_v15 }
 0x76c   : > { %4112 = vtanh.f32 %v1837_v43 }
 0x76d   : > { %4114 = vtanh.f32 %v1841_v47 }
 0x76e   : > { %4116 = vtanh.f32 %v1835_v45 }
 0x76f   : > { %4118 = vtanh.f32 %v1846_v23 }
 0x776   : > { %v4113_v60 = vpop.eup %4112 }
 0x777   : > { %v4115_v30 = vpop.eup %4114  ;;  %v1839_v56 = vadd.f32 1.0, %v4113_v60 }
 0x778   : > { %v1843_v0 = vadd.f32 1.0, %v4115_v30  ;;  %v4117_v53 = vpop.eup %4116 }
 0x779   : > { %v1840_v41 = vmul.f32 0.5, %v1839_v56  ;;  %v4119_v5 = vpop.eup %4118  ;;  %v2032_v56 = vld [vmem:[#allocation2 + $0xf8] sm:$0xff] }
 0x77a   : > { %v1844_v46 = vmul.f32 0.5, %v1843_v0  ;;  %v1848_v16 = vadd.f32 1.0, %v4119_v5 }
 0x77b   : > { %v1851_v18 = vmul.f32 %v4117_v53, %v1840_v41 }
 0x77c   : > { %v1850_v58 = vmul.f32 %v1844_v46, %v5304_v12  ;;  %v1849_v55 = vmul.f32 0.5, %v1848_v16  ;;  %v2030_v12 = vld [vmem:[#allocation2 + $0xe8] sm:$0xff] }
 0x77e   : > { %v5343_v11 = vadd.f32 %v1851_v18, %v1850_v58 }
 0x780   : > { %4120 = vtanh.f32 %v5343_v11 }
 0x78a   : > { %v4121_v52 = vpop.eup %4120 }
 0x78b   : > { %v1854_v54 = vmul.f32 %v4121_v52, %v1849_v55 }
 0x78d   : > { %3144 = vst [vmem:[%s4732_s17 + $0x28] sm:$0xff] %v1854_v54  ;;  %1927 = vmatmul.mubr.f32.vlgmr.msra.gmra.mrb[12].mxu0 %v1854_v54  ;;  %1998 = vmatmul.mubr.f32.vlgmr.msra.gmra.mrb[12].mxu1 %v1854_v54 }
 0x78e   : > { %3629 = vmatpush1.bf16.msra.mxu0 %v4956_v28  ;;  %3661 = vmatpush1.bf16.msra.mxu1 %v4968_v31  ;;  %v1861_v31 = vld [vmem:[#allocation2 + $0xd8] sm:$0xff] }
 0x78f   : > { %3631 = vmatprep.subr.bf16.mxu0 %v4960_v29  ;;  %3663 = vmatprep.subr.bf16.mxu1 %v4973_v22 }
 0x790   : > { %2097 = vmatprep.mubr.f32.mxu0 %v5904_v14  ;;  %2168 = vmatprep.mubr.f32.mxu1 %v5904_v14  ;;  %v2029_v14 = vld [vmem:[#allocation2 + $0xe0] sm:$0xff] }
 0x792   : > { %3633 = vmatpush1.bf16.msra.mxu0 %v4978_v19  ;;  %3665 = vmatpush1.bf16.msra.mxu1 %v4989_v20 }
 0x793   : > { %3635 = vmatprep.subr.bf16.mxu0 %v4985_v26  ;;  %3667 = vmatprep.subr.bf16.mxu1 %v4994_v32 }
 0x796   : > { %3637 = vmatpush1.bf16.msra.mxu0 %v5000_v17  ;;  %3669 = vmatpush1.bf16.msra.mxu1 %v5010_v24 }
 0x797   : > { %3639 = vmatprep.subr.bf16.mxu0 %v5006_v33  ;;  %3671 = vmatprep.subr.bf16.mxu1 %v5015_v13 }
 0x79a   : > { %3641 = vmatpush1.bf16.msra.mxu0 %v5021_v21  ;;  %3673 = vmatpush1.bf16.msra.mxu1 %v5031_v25 }
 0x79b   : > { %3643 = vmatprep.subr.bf16.mxu0 %v5027_v34  ;;  %3675 = vmatprep.subr.bf16.mxu1 %v5036_v27 }
 0x79e   : > { %3645 = vmatpush1.bf16.msra.mxu0 %v5041_v63  ;;  %3677 = vmatpush1.bf16.msra.mxu1 %v5051_v61  ;;  %v1858_v61 = vld [vmem:[#allocation2 + $0xc0] sm:$0xff]  ;;  %v1859_v63 = vld [vmem:[#allocation2 + $0xc8] sm:$0xff] }
 0x79f   : > { %3647 = vmatprep.subr.bf16.mxu0 %v5047_v1  ;;  %3679 = vmatprep.subr.bf16.mxu1 %v5056_v10 }
 0x7a2   : > { %3649 = vmatpush1.bf16.msra.mxu0 %v5061_v7  ;;  %3681 = vmatpush1.bf16.msra.mxu1 %v5071_v6 }
 0x7a3   : > { %3651 = vmatprep.subr.bf16.mxu0 %v5067_v9  ;;  %3683 = vmatprep.subr.bf16.mxu1 %v5076_v8  ;;  %v1860_v8 = vld [vmem:[#allocation2 + $0xd0] sm:$0xff] }
 0x7a6   : > { %3653 = vmatpush1.bf16.msra.mxu0 %v5081_v4  ;;  %3685 = vmatpush1.bf16.msra.mxu1 %v5091_v2 }
 0x7a7   : > { %3655 = vmatprep.subr.bf16.mxu0 %v5087_v3  ;;  %3687 = vmatprep.subr.bf16.mxu1 %v5096_v62 }
 0x7aa   : > { %3657 = vmatpush1.bf16.msra.mxu0 %v5101_v57  ;;  %3689 = vmatpush1.bf16.msra.mxu1 %v5107_v59 }
 0x860   : > { %v1928_v1 = vpop.f32.mrb[12].mxu0  ;;  %v1999_v6 = vpop.f32.mrb[12].mxu1 }
 0x861   : > { %v2004_v7 = vadd.f32 %v1928_v1, %v1858_v61  ;;  %v1930_v9 = vpop.f32.mrb[13].mxu0  ;;  %v2001_v10 = vpop.f32.mrb[13].mxu1  ;;  %v2006_v2 = vadd.f32 %v1999_v6, %v1860_v8 }
 0x862   : > { %v2005_v28 = vadd.f32 %v1930_v9, %v1859_v63  ;;  %v2007_v62 = vadd.f32 %v2001_v10, %v1861_v31 }
 0x863   : > { %v2008_v4 = vmul.f32 0.5, %v2004_v7 }
 0x864   : > { %v2012_v29 = vmul.f32 0.5, %v2005_v28  ;;  %v2017_v57 = vmul.f32 0.5, %v2007_v62 }
 0x865   : > { %4122 = vtanh.f32 %v2008_v4 }
 0x866   : > { %4124 = vtanh.f32 %v2012_v29 }
 0x867   : > { %4126 = vtanh.f32 %v2006_v2 }
 0x868   : > { %4128 = vtanh.f32 %v2017_v57 }
 0x86f   : > { %v4123_v22 = vpop.eup %4122 }
 0x870   : > { %v4125_v19 = vpop.eup %4124  ;;  %v2010_v26 = vadd.f32 1.0, %v4123_v22 }
 0x871   : > { %v2014_v20 = vadd.f32 1.0, %v4125_v19  ;;  %v4127_v27 = vpop.eup %4126 }
 0x872   : > { %v2011_v32 = vmul.f32 0.5, %v2010_v26  ;;  %v4129_v21 = vpop.eup %4128 }
 0x873   : > { %v2015_v17 = vmul.f32 0.5, %v2014_v20  ;;  %v2019_v34 = vadd.f32 1.0, %v4129_v21 }
 0x874   : > { %v2022_v33 = vmul.f32 %v4127_v27, %v2011_v32 }
 0x875   : > { %v2021_v24 = vmul.f32 %v2015_v17, %v5343_v11  ;;  %v2020_v25 = vmul.f32 0.5, %v2019_v34 }
 0x877   : > { %v2023_v13 = vadd.f32 %v2022_v33, %v2021_v24 }
 0x879   : > { %4130 = vtanh.f32 %v2023_v13 }
 0x883   : > { %v4131_v3 = vpop.eup %4130 }
 0x884   : > { %v2025_v59 = vmul.f32 %v4131_v3, %v2020_v25 }
 0x886   : > { %3145 = vst [vmem:[%s4732_s17 + $0x30] sm:$0xff] %v2025_v59  ;;  %2098 = vmatmul.mubr.f32.vlgmr.msra.gmra.mrb[14].mxu0 %v2025_v59  ;;  %2169 = vmatmul.mubr.f32.vlgmr.msra.gmra.mrb[14].mxu1 %v2025_v59 }
 0x959   : > { %v2099_v51 = vpop.f32.mrb[14].mxu0  ;;  %v2170_v49 = vpop.f32.mrb[14].mxu1 }
 0x95a   : > { %v2175_v43 = vadd.f32 %v2099_v51, %v2029_v14  ;;  %v2101_v47 = vpop.f32.mrb[15].mxu0  ;;  %v2172_v45 = vpop.f32.mrb[15].mxu1  ;;  %v2177_v30 = vadd.f32 %v2170_v49, %v2031_v50 }
 0x95b   : > { %v2176_v15 = vadd.f32 %v2101_v47, %v2030_v12  ;;  %v2178_v0 = vadd.f32 %v2172_v45, %v2032_v56 }
 0x95c   : > { %v2179_v23 = vmul.f32 0.5, %v2175_v43 }
 0x95d   : > { %v2183_v60 = vmul.f32 0.5, %v2176_v15  ;;  %v2188_v41 = vmul.f32 0.5, %v2178_v0 }
 0x95e   : > { %4132 = vtanh.f32 %v2179_v23 }
 0x95f   : > { %4134 = vtanh.f32 %v2183_v60 }
 0x960   : > { %4136 = vtanh.f32 %v2177_v30 }
 0x961   : > { %4138 = vtanh.f32 %v2188_v41 }
 0x968   : > { %v4133_v53 = vpop.eup %4132 }
 0x969   : > { %v4135_v46 = vpop.eup %4134  ;;  %v2181_v18 = vadd.f32 1.0, %v4133_v53 }
 0x96a   : > { %v2185_v58 = vadd.f32 1.0, %v4135_v46  ;;  %v4137_v5 = vpop.eup %4136 }
 0x96b   : > { %v2182_v11 = vmul.f32 0.5, %v2181_v18  ;;  %v4139_v61 = vpop.eup %4138 }
 0x96c   : > { %v2186_v16 = vmul.f32 0.5, %v2185_v58  ;;  %v2190_v63 = vadd.f32 1.0, %v4139_v61 }
 0x96d   : > { %v2193_v55 = vmul.f32 %v4137_v5, %v2182_v11 }
 0x96e   : > { %v2192_v52 = vmul.f32 %v2186_v16, %v2023_v13  ;;  %v2191_v1 = vmul.f32 0.5, %v2190_v63 }
 0x970   : > { %v2194_v54 = vadd.f32 %v2193_v55, %v2192_v52 }
 0x972   : > { %4140 = vtanh.f32 %v2194_v54  ;;  %2200 = vst [vmem:[#allocation4] sm:$0xff] %v2194_v54 }
 0x97c   : > { %v4141_v6 = vpop.eup %4140 }
 0x97d   : > { %v2196_v7 = vmul.f32 %v4141_v6, %v2191_v1 }
 0x97f   : > { %3146 = vst [vmem:[%s4732_s17 + $0x38] sm:$0xff] %v2196_v7  ;;  %2199 = vst [vmem:[#allocation3] sm:$0xff] %v2196_v7 }
 0x980 PF: > { %p3147_p3 = scmp.ne.s32.totalorder %s4434_s30, 1 }
 0x981   : > { %v5385_v9 = vpack.c.bf16 (!%p3147_p3), %v4791_v40, %v4783_v36  ;;  %v5389_v10 = vpack.c.bf16 (!%p3147_p3), %v4789_v39, %v4781_v35  ;;  %v5393_v8 = vpack.c.bf16 (!%p3147_p3), %v4807_v48, %v4799_v44  ;;  %v5397_v28 = vpack.c.bf16 (!%p3147_p3), %v4795_v42, %v4787_v38  ;;  %v5905_v4 = vld [vmem:[#allocation24_spill] sm:$0xff] (!%p3147_p3)  ;;  %v5906_v36 = vld [vmem:[#allocation27_spill] sm:$0xff] (!%p3147_p3)  ;;  %v5907_v40 = vld [vmem:[#allocation30_spill] sm:$0xff] (!%p3147_p3) }
 0x982   : > { %2203 = sbr.rel (%p3147_p3) target bundleno = 3465 (0xd89), region = 72  ;;  %v5401_v29 = vpack.c.bf16 (!%p3147_p3), %v5905_v4, %v4785_v37  ;;  %v5406_v2 = vpack.c.bf16 (!%p3147_p3), %v5907_v40, %v5906_v36  ;;  %v5908_v35 = vld [vmem:[#allocation25_spill] sm:$0xff] (!%p3147_p3)  ;;  %v5909_v39 = vld [vmem:[#allocation28_spill] sm:$0xff] (!%p3147_p3)  ;;  %v5912_v48 = vld [vmem:[#allocation26_spill] sm:$0xff] (!%p3147_p3)  ;;  %v4454_v26 = vmov (!%p3147_p3), 0.0  }
 0x983   : > { %3691 = vmatprep.subr.bf16.mxu0 (!%p3147_p3), %v5385_v9  ;;  %v5411_v44 = vpack.c.bf16 (!%p3147_p3), %v5909_v39, %v5908_v35  ;;  %3723 = vmatprep.subr.bf16.mxu1 (!%p3147_p3), %v5397_v28  ;;  %v5910_v37 = vld [vmem:[#allocation32_spill] sm:$0xff] (!%p3147_p3)  ;;  %v5913_v31 = vld [vmem:[#allocation29_spill] sm:$0xff] (!%p3147_p3)  ;;  %v5914_v57 = vld [vmem:[#allocation34_spill] sm:$0xff] (!%p3147_p3) }
 0x984   : > { %3693 = vmatpush1.bf16.msra.mxu0 (!%p3147_p3), %v5389_v10  ;;  %3725 = vmatpush1.bf16.msra.mxu1 (!%p3147_p3), %v5401_v29  ;;  %v5911_v38 = vld [vmem:[#allocation36_spill] sm:$0xff] (!%p3147_p3)  ;;  %v5422_v62 = vpack.c.bf16 (!%p3147_p3), %v5913_v31, %v5912_v48  ;;  %v5915_v22 = vld [vmem:[#allocation38_spill] sm:$0xff] (!%p3147_p3)  ;;  %v5916_v20 = vld [vmem:[#allocation31_spill] sm:$0xff] (!%p3147_p3) }
 0x985   : > { %3695 = vmatprep.subr.bf16.mxu0 (!%p3147_p3), %v5393_v8  ;;  %v5418_v42 = vpack.c.bf16 (!%p3147_p3), %v5911_v38, %v5910_v37  ;;  %3727 = vmatprep.subr.bf16.mxu1 (!%p3147_p3), %v5406_v2  ;;  %v5427_v19 = vpack.c.bf16 (!%p3147_p3), %v5915_v22, %v5914_v57  ;;  %v5917_v32 = vld [vmem:[#allocation35_spill] sm:$0xff] (!%p3147_p3)  ;;  %v5918_v17 = vld [vmem:[#allocation40_spill] sm:$0xff] (!%p3147_p3)  ;;  %v5920_v13 = vld [vmem:[#allocation33_spill] sm:$0xff] (!%p3147_p3) }
 0x986   : > { %2274 = vmatprep.mubr.f32.mxu0 (!%p3147_p3), %v4454_v26  ;;  %v5433_v27 = vpack.c.bf16 (!%p3147_p3), %v5917_v32, %v5916_v20  ;;  %v5919_v33 = vld [vmem:[#allocation44_spill] sm:$0xff] (!%p3147_p3)  ;;  %v5921_v21 = vld [vmem:[#allocation37_spill] sm:$0xff] (!%p3147_p3)  ;;  %v5922_v25 = vld [vmem:[#allocation42_spill] sm:$0xff] (!%p3147_p3)  ;;  %2345 = vmatprep.mubr.f32.mxu1 (!%p3147_p3), %v4454_v26 }
 0x987   : > { %v5439_v24 = vpack.c.bf16 (!%p3147_p3), %v5919_v33, %v5918_v17  ;;  %v5443_v34 = vpack.c.bf16 (!%p3147_p3), %v5921_v21, %v5920_v13  ;;  %v5923_v3 = vld [vmem:[#allocation46_spill] sm:$0xff] (!%p3147_p3)  ;;  %v5924_v14 = vld [vmem:[#allocation39_spill] sm:$0xff] (!%p3147_p3)  ;;  %v5926_v49 = vld [vmem:[#allocation48_spill] sm:$0xff] (!%p3147_p3) }
 0x988   : > { %3697 = vmatpush1.bf16.msra.mxu0 (!%p3147_p3), %v5411_v44  ;;  %3729 = vmatpush1.bf16.msra.mxu1 (!%p3147_p3), %v5422_v62  ;;  %v5448_v59 = vpack.c.bf16 (!%p3147_p3), %v5923_v3, %v5922_v25  ;;  %v5925_v12 = vld [vmem:[#allocation43_spill] sm:$0xff] (!%p3147_p3)  ;;  %v5927_v43 = vld [vmem:[#allocation52_spill] sm:$0xff] (!%p3147_p3)  ;;  %v5928_v45 = vld [vmem:[#allocation41_spill] sm:$0xff] (!%p3147_p3) }
 0x989   : > { %3699 = vmatprep.subr.bf16.mxu0 %v5418_v42  ;;  %3731 = vmatprep.subr.bf16.mxu1 %v5427_v19  ;;  %v5454_v51 = vpack.c.bf16 %v5925_v12, %v5924_v14  ;;  %v5460_v47 = vpack.c.bf16 %v5927_v43, %v5926_v49  ;;  %v5929_v50 = vld [vmem:[#allocation45_spill] sm:$0xff]  ;;  %v5930_v23 = vld [vmem:[#allocation50_spill] sm:$0xff]  ;;  %v5932_v56 = vld [vmem:[#allocation47_spill] sm:$0xff] }
 0x98a   : > { %v5464_v15 = vpack.c.bf16 %v5929_v50, %v5928_v45  ;;  %v5931_v60 = vld [vmem:[#allocation54_spill] sm:$0xff]  ;;  %v5933_v0 = vld [vmem:[#allocation51_spill] sm:$0xff]  ;;  %v5934_v53 = vld [vmem:[#allocation56_spill] sm:$0xff] }
 0x98b   : > { %v5469_v30 = vpack.c.bf16 %v5931_v60, %v5930_v23  ;;  %v5474_v41 = vpack.c.bf16 %v5933_v0, %v5932_v56  ;;  %v5935_v46 = vld [vmem:[#allocation60_spill] sm:$0xff]  ;;  %v5936_v58 = vld [vmem:[#allocation49_spill] sm:$0xff]  ;;  %v5938_v16 = vld [vmem:[#allocation58_spill] sm:$0xff] }
 0x98c   : > { %3701 = vmatpush1.bf16.msra.mxu0 %v5433_v27  ;;  %3733 = vmatpush1.bf16.msra.mxu1 %v5443_v34  ;;  %v5480_v18 = vpack.c.bf16 %v5935_v46, %v5934_v53  ;;  %v5937_v11 = vld [vmem:[#allocation53_spill] sm:$0xff]  ;;  %v5939_v55 = vld [vmem:[#allocation62_spill] sm:$0xff]  ;;  %v5940_v54 = vld [vmem:[#allocation55_spill] sm:$0xff] }
 0x98d   : > { %3703 = vmatprep.subr.bf16.mxu0 %v5439_v24  ;;  %3735 = vmatprep.subr.bf16.mxu1 %v5448_v59  ;;  %v5484_v5 = vpack.c.bf16 %v5937_v11, %v5936_v58  ;;  %v5489_v52 = vpack.c.bf16 %v5939_v55, %v5938_v16  ;;  %v5941_v61 = vld [vmem:[#allocation59_spill] sm:$0xff]  ;;  %v5942_v1 = vld [vmem:[#allocation64_spill] sm:$0xff]  ;;  %v5944_v4 = vld [vmem:[#allocation57_spill] sm:$0xff] }
 0x98e   : > { %v5494_v63 = vpack.c.bf16 %v5941_v61, %v5940_v54  ;;  %v5943_v6 = vld [vmem:[#allocation68_spill] sm:$0xff]  ;;  %v5945_v36 = vld [vmem:[#allocation61_spill] sm:$0xff]  ;;  %v5946_v35 = vld [vmem:[#allocation66_spill] sm:$0xff] }
 0x98f   : > { %v5500_v7 = vpack.c.bf16 %v5943_v6, %v5942_v1  ;;  %v5504_v40 = vpack.c.bf16 %v5945_v36, %v5944_v4  ;;  %v5947_v39 = vld [vmem:[#allocation70_spill] sm:$0xff]  ;;  %v5948_v38 = vld [vmem:[#allocation63_spill] sm:$0xff]  ;;  %v5950_v57 = vld [vmem:[#allocation72_spill] sm:$0xff] }
 0x990   : > { %3705 = vmatpush1.bf16.msra.mxu0 %v5454_v51  ;;  %3737 = vmatpush1.bf16.msra.mxu1 %v5464_v15  ;;  %v5509_v37 = vpack.c.bf16 %v5947_v39, %v5946_v35  ;;  %v5949_v48 = vld [vmem:[#allocation67_spill] sm:$0xff]  ;;  %v5951_v22 = vld [vmem:[#allocation76_spill] sm:$0xff]  ;;  %v5952_v32 = vld [vmem:[#allocation65_spill] sm:$0xff] }
 0x991   : > { %3707 = vmatprep.subr.bf16.mxu0 %v5460_v47  ;;  %3739 = vmatprep.subr.bf16.mxu1 %v5469_v30  ;;  %v5514_v31 = vpack.c.bf16 %v5949_v48, %v5948_v38  ;;  %v5520_v20 = vpack.c.bf16 %v5951_v22, %v5950_v57  ;;  %v5953_v17 = vld [vmem:[#allocation69_spill] sm:$0xff]  ;;  %v5954_v13 = vld [vmem:[#allocation74_spill] sm:$0xff]  ;;  %v5956_v3 = vld [vmem:[#allocation71_spill] sm:$0xff] }
 0x992   : > { %v5524_v33 = vpack.c.bf16 %v5953_v17, %v5952_v32  ;;  %v5955_v21 = vld [vmem:[#allocation78_spill] sm:$0xff]  ;;  %v5957_v14 = vld [vmem:[#allocation75_spill] sm:$0xff]  ;;  %v5958_v49 = vld [vmem:[#allocation73_spill] sm:$0xff] }
 0x993   : > { %v5529_v25 = vpack.c.bf16 %v5955_v21, %v5954_v13  ;;  %v5534_v12 = vpack.c.bf16 %v5957_v14, %v5956_v3  ;;  %v5959_v43 = vld [vmem:[#allocation77_spill] sm:$0xff]  ;;  %v2204_v50 = vld [vmem:[#allocation3] sm:$0xff]  ;;  %v2209_v1 = vld [vmem:[#allocation2 + $0x18] sm:$0xff] }
 0x994   : > { %3709 = vmatpush1.bf16.msra.mxu0 %v5474_v41  ;;  %3741 = vmatpush1.bf16.msra.mxu1 %v5484_v5  ;;  %v5540_v45 = vpack.c.bf16 %v5959_v43, %v5958_v49  ;;  %v2206_v23 = vld [vmem:[#allocation2] sm:$0xff]  ;;  %v2207_v60 = vld [vmem:[#allocation2 + $0x8] sm:$0xff]  ;;  %v2208_v0 = vld [vmem:[#allocation2 + $0x10] sm:$0xff] }
 0x995   : > { %3711 = vmatprep.subr.bf16.mxu0 %v5480_v18  ;;  %3743 = vmatprep.subr.bf16.mxu1 %v5489_v52  ;;  %v2205_v22 = vld [vmem:[#allocation4] sm:$0xff] }
 0x998   : > { %3713 = vmatpush1.bf16.msra.mxu0 %v5494_v63  ;;  %3745 = vmatpush1.bf16.msra.mxu1 %v5504_v40 }
 0x999   : > { %3715 = vmatprep.subr.bf16.mxu0 %v5500_v7  ;;  %3747 = vmatprep.subr.bf16.mxu1 %v5509_v37 }
 0x99c   : > { %3717 = vmatpush1.bf16.msra.mxu0 %v5514_v31  ;;  %3749 = vmatpush1.bf16.msra.mxu1 %v5524_v33 }
 0x99d   : > { %3719 = vmatprep.subr.bf16.mxu0 %v5520_v20  ;;  %3751 = vmatprep.subr.bf16.mxu1 %v5529_v25 }
 0x9a0   : > { %3721 = vmatpush1.bf16.msra.mxu0 %v5534_v12  ;;  %3753 = vmatpush1.bf16.msra.mxu1 %v5540_v45 }
 0x9a1   : > { %3755 = vmatprep.subr.bf16.mxu0 %v5385_v9  ;;  %3787 = vmatprep.subr.bf16.mxu1 %v5397_v28 }
 0x9a3   : > { %2275 = vmatmul.mubr.f32.vlgmr.msra.gmra.mrb[0].mxu0 %v2204_v50  ;;  %2346 = vmatmul.mubr.f32.vlgmr.msra.gmra.mrb[0].mxu1 %v2204_v50 }
 0x9a4   : > { %3757 = vmatpush1.bf16.msra.mxu0 %v5389_v10  ;;  %3789 = vmatpush1.bf16.msra.mxu1 %v5401_v29 }
 0x9a5   : > { %3759 = vmatprep.subr.bf16.mxu0 %v5393_v8  ;;  %3791 = vmatprep.subr.bf16.mxu1 %v5406_v2 }
 0x9a6   : > { %2444 = vmatprep.mubr.f32.mxu0 %v4454_v26  ;;  %2515 = vmatprep.mubr.f32.mxu1 %v4454_v26 }
 0x9a8   : > { %3761 = vmatpush1.bf16.msra.mxu0 %v5411_v44  ;;  %3793 = vmatpush1.bf16.msra.mxu1 %v5422_v62 }
 0x9a9   : > { %3763 = vmatprep.subr.bf16.mxu0 %v5418_v42  ;;  %3795 = vmatprep.subr.bf16.mxu1 %v5427_v19 }
 0x9ac   : > { %3765 = vmatpush1.bf16.msra.mxu0 %v5433_v27  ;;  %3797 = vmatpush1.bf16.msra.mxu1 %v5443_v34 }
 0x9ad   : > { %3767 = vmatprep.subr.bf16.mxu0 %v5439_v24  ;;  %3799 = vmatprep.subr.bf16.mxu1 %v5448_v59 }
 0x9b0   : > { %3769 = vmatpush1.bf16.msra.mxu0 %v5454_v51  ;;  %3801 = vmatpush1.bf16.msra.mxu1 %v5464_v15 }
 0x9b1   : > { %3771 = vmatprep.subr.bf16.mxu0 %v5460_v47  ;;  %3803 = vmatprep.subr.bf16.mxu1 %v5469_v30 }
 0x9b4   : > { %3773 = vmatpush1.bf16.msra.mxu0 %v5474_v41  ;;  %3805 = vmatpush1.bf16.msra.mxu1 %v5484_v5 }
 0x9b5   : > { %3775 = vmatprep.subr.bf16.mxu0 %v5480_v18  ;;  %3807 = vmatprep.subr.bf16.mxu1 %v5489_v52 }
 0x9b8   : > { %3777 = vmatpush1.bf16.msra.mxu0 %v5494_v63  ;;  %3809 = vmatpush1.bf16.msra.mxu1 %v5504_v40 }
 0x9b9   : > { %3779 = vmatprep.subr.bf16.mxu0 %v5500_v7  ;;  %3811 = vmatprep.subr.bf16.mxu1 %v5509_v37 }
 0x9bc   : > { %3781 = vmatpush1.bf16.msra.mxu0 %v5514_v31  ;;  %3813 = vmatpush1.bf16.msra.mxu1 %v5524_v33 }
 0x9bd   : > { %3783 = vmatprep.subr.bf16.mxu0 %v5520_v20  ;;  %3815 = vmatprep.subr.bf16.mxu1 %v5529_v25 }
 0x9c0   : > { %3785 = vmatpush1.bf16.msra.mxu0 %v5534_v12  ;;  %3817 = vmatpush1.bf16.msra.mxu1 %v5540_v45 }
 0x9c1   : > { %3819 = vmatprep.subr.bf16.mxu0 %v5385_v9  ;;  %3851 = vmatprep.subr.bf16.mxu1 %v5397_v28 }
 0xa76   : > { %v2276_v56 = vpop.f32.mrb[0].mxu0  ;;  %v2347_v58 = vpop.f32.mrb[0].mxu1 }
 0xa77   : > { %v2352_v53 = vadd.f32 %v2276_v56, %v2206_v23  ;;  %v2278_v46 = vpop.f32.mrb[1].mxu0  ;;  %v2349_v16 = vpop.f32.mrb[1].mxu1  ;;  %v2354_v54 = vadd.f32 %v2347_v58, %v2208_v0  ;;  %v2376_v23 = vld [vmem:[#allocation2 + $0x20] sm:$0xff] }
 0xa78   : > { %v2353_v11 = vadd.f32 %v2278_v46, %v2207_v60  ;;  %v2355_v6 = vadd.f32 %v2349_v16, %v2209_v1  ;;  %v2377_v60 = vld [vmem:[#allocation2 + $0x28] sm:$0xff]  ;;  %v2379_v1 = vld [vmem:[#allocation2 + $0x38] sm:$0xff] }
 0xa79   : > { %v2356_v55 = vmul.f32 0.5, %v2352_v53 }
 0xa7a   : > { %v2360_v61 = vmul.f32 0.5, %v2353_v11  ;;  %v2365_v4 = vmul.f32 0.5, %v2355_v6  ;;  %v2378_v11 = vld [vmem:[#allocation2 + $0x30] sm:$0xff] }
 0xa7b   : > { %4142 = vtanh.f32 %v2356_v55 }
 0xa7c   : > { %4144 = vtanh.f32 %v2360_v61 }
 0xa7d   : > { %4146 = vtanh.f32 %v2354_v54 }
 0xa7e   : > { %4148 = vtanh.f32 %v2365_v4 }
 0xa85   : > { %v4143_v36 = vpop.eup %4142 }
 0xa86   : > { %v4145_v35 = vpop.eup %4144  ;;  %v2358_v39 = vadd.f32 1.0, %v4143_v36 }
 0xa87   : > { %v4147_v38 = vpop.eup %4146  ;;  %v2362_v48 = vadd.f32 1.0, %v4145_v35 }
 0xa88   : > { %v2359_v57 = vmul.f32 0.5, %v2358_v39  ;;  %v4149_v3 = vpop.eup %4148 }
 0xa89   : > { %v2363_v32 = vmul.f32 0.5, %v2362_v48  ;;  %v2367_v14 = vadd.f32 1.0, %v4149_v3 }
 0xa8a   : > { %v2370_v17 = vmul.f32 %v4147_v38, %v2359_v57 }
 0xa8b   : > { %v2369_v13 = vmul.f32 %v2363_v32, %v2205_v22  ;;  %v2368_v49 = vmul.f32 0.5, %v2367_v14 }
 0xa8d   : > { %v5581_v21 = vadd.f32 %v2370_v17, %v2369_v13 }
 0xa8f   : > { %4150 = vtanh.f32 %v5581_v21 }
 0xa99   : > { %v4151_v43 = vpop.eup %4150 }
 0xa9a   : > { %v2373_v50 = vmul.f32 %v4151_v43, %v2368_v49 }
 0xa9c   : > { %2374 = vst [vmem:[%s4732_s17] sm:$0xff] %v2373_v50  ;;  %2445 = vmatmul.mubr.f32.vlgmr.msra.gmra.mrb[2].mxu0 %v2373_v50  ;;  %2516 = vmatmul.mubr.f32.vlgmr.msra.gmra.mrb[2].mxu1 %v2373_v50 }
 0xa9d   : > { %3821 = vmatpush1.bf16.msra.mxu0 %v5389_v10  ;;  %3853 = vmatpush1.bf16.msra.mxu1 %v5401_v29 }
 0xa9e   : > { %3823 = vmatprep.subr.bf16.mxu0 %v5393_v8  ;;  %3855 = vmatprep.subr.bf16.mxu1 %v5406_v2 }
 0xa9f   : > { %2615 = vmatprep.mubr.f32.mxu0 %v4454_v26  ;;  %2686 = vmatprep.mubr.f32.mxu1 %v4454_v26 }
 0xaa1   : > { %3825 = vmatpush1.bf16.msra.mxu0 %v5411_v44  ;;  %3857 = vmatpush1.bf16.msra.mxu1 %v5422_v62 }
 0xaa2   : > { %3827 = vmatprep.subr.bf16.mxu0 %v5418_v42  ;;  %3859 = vmatprep.subr.bf16.mxu1 %v5427_v19 }
 0xaa5   : > { %3829 = vmatpush1.bf16.msra.mxu0 %v5433_v27  ;;  %3861 = vmatpush1.bf16.msra.mxu1 %v5443_v34 }
 0xaa6   : > { %3831 = vmatprep.subr.bf16.mxu0 %v5439_v24  ;;  %3863 = vmatprep.subr.bf16.mxu1 %v5448_v59 }
 0xaa9   : > { %3833 = vmatpush1.bf16.msra.mxu0 %v5454_v51  ;;  %3865 = vmatpush1.bf16.msra.mxu1 %v5464_v15 }
 0xaaa   : > { %3835 = vmatprep.subr.bf16.mxu0 %v5460_v47  ;;  %3867 = vmatprep.subr.bf16.mxu1 %v5469_v30 }
 0xaad   : > { %3837 = vmatpush1.bf16.msra.mxu0 %v5474_v41  ;;  %3869 = vmatpush1.bf16.msra.mxu1 %v5484_v5 }
 0xaae   : > { %3839 = vmatprep.subr.bf16.mxu0 %v5480_v18  ;;  %3871 = vmatprep.subr.bf16.mxu1 %v5489_v52 }
 0xab1   : > { %3841 = vmatpush1.bf16.msra.mxu0 %v5494_v63  ;;  %3873 = vmatpush1.bf16.msra.mxu1 %v5504_v40 }
 0xab2   : > { %3843 = vmatprep.subr.bf16.mxu0 %v5500_v7  ;;  %3875 = vmatprep.subr.bf16.mxu1 %v5509_v37 }
 0xab5   : > { %3845 = vmatpush1.bf16.msra.mxu0 %v5514_v31  ;;  %3877 = vmatpush1.bf16.msra.mxu1 %v5524_v33 }
 0xab6   : > { %3847 = vmatprep.subr.bf16.mxu0 %v5520_v20  ;;  %3879 = vmatprep.subr.bf16.mxu1 %v5529_v25 }
 0xab9   : > { %3849 = vmatpush1.bf16.msra.mxu0 %v5534_v12  ;;  %3881 = vmatpush1.bf16.msra.mxu1 %v5540_v45 }
 0xaba   : > { %3883 = vmatprep.subr.bf16.mxu0 %v5385_v9  ;;  %3915 = vmatprep.subr.bf16.mxu1 %v5397_v28 }
 0xb6f   : > { %v2446_v56 = vpop.f32.mrb[2].mxu0  ;;  %v2517_v0 = vpop.f32.mrb[2].mxu1 }
 0xb70   : > { %v2522_v53 = vadd.f32 %v2446_v56, %v2376_v23  ;;  %v2448_v46 = vpop.f32.mrb[3].mxu0  ;;  %v2519_v58 = vpop.f32.mrb[3].mxu1  ;;  %v2524_v61 = vadd.f32 %v2517_v0, %v2378_v11  ;;  %v2720_v0 = vld [vmem:[#allocation2 + $0x70] sm:$0xff] }
 0xb71   : > { %v2523_v16 = vadd.f32 %v2448_v46, %v2377_v60  ;;  %v2525_v6 = vadd.f32 %v2519_v58, %v2379_v1 }
 0xb72   : > { %v2526_v55 = vmul.f32 0.5, %v2522_v53 }
 0xb73   : > { %v2530_v54 = vmul.f32 0.5, %v2523_v16  ;;  %v2535_v9 = vmul.f32 0.5, %v2525_v6  ;;  %v2721_v16 = vld [vmem:[#allocation2 + $0x78] sm:$0xff] }
 0xb74   : > { %4152 = vtanh.f32 %v2526_v55 }
 0xb75   : > { %4154 = vtanh.f32 %v2530_v54 }
 0xb76   : > { %4156 = vtanh.f32 %v2524_v61 }
 0xb77   : > { %4158 = vtanh.f32 %v2535_v9 }
 0xb7e   : > { %v4153_v4 = vpop.eup %4152 }
 0xb7f   : > { %v4155_v28 = vpop.eup %4154  ;;  %v2528_v36 = vadd.f32 1.0, %v4153_v4 }
 0xb80   : > { %v2532_v35 = vadd.f32 1.0, %v4155_v28  ;;  %v4157_v38 = vpop.eup %4156 }
 0xb81   : > { %v2529_v39 = vmul.f32 0.5, %v2528_v36  ;;  %v4159_v17 = vpop.eup %4158 }
 0xb82   : > { %v2533_v48 = vmul.f32 0.5, %v2532_v35  ;;  %v2537_v13 = vadd.f32 1.0, %v4159_v17 }
 0xb83   : > { %v2540_v57 = vmul.f32 %v4157_v38, %v2529_v39 }
 0xb84   : > { %v2539_v22 = vmul.f32 %v2533_v48, %v5581_v21  ;;  %v2538_v3 = vmul.f32 0.5, %v2537_v13  ;;  %v2719_v21 = vld [vmem:[#allocation2 + $0x68] sm:$0xff] }
 0xb86   : > { %v5620_v32 = vadd.f32 %v2540_v57, %v2539_v22 }
 0xb88   : > { %4160 = vtanh.f32 %v5620_v32 }
 0xb92   : > { %v4161_v14 = vpop.eup %4160 }
 0xb93   : > { %v2543_v49 = vmul.f32 %v4161_v14, %v2538_v3 }
 0xb95   : > { %3148 = vst [vmem:[%s4732_s17 + $0x8] sm:$0xff] %v2543_v49  ;;  %2616 = vmatmul.mubr.f32.vlgmr.msra.gmra.mrb[4].mxu0 %v2543_v49  ;;  %2687 = vmatmul.mubr.f32.vlgmr.msra.gmra.mrb[4].mxu1 %v2543_v49 }
 0xb96   : > { %3885 = vmatpush1.bf16.msra.mxu0 %v5389_v10  ;;  %3917 = vmatpush1.bf16.msra.mxu1 %v5401_v29  ;;  %v2547_v10 = vld [vmem:[#allocation2 + $0x40] sm:$0xff] }
 0xb97   : > { %3887 = vmatprep.subr.bf16.mxu0 %v5393_v8  ;;  %3919 = vmatprep.subr.bf16.mxu1 %v5406_v2  ;;  %v2548_v8 = vld [vmem:[#allocation2 + $0x48] sm:$0xff] }
 0xb98   : > { %2786 = vmatprep.mubr.f32.mxu0 %v4454_v26  ;;  %2857 = vmatprep.mubr.f32.mxu1 %v4454_v26 }
 0xb9a   : > { %3889 = vmatpush1.bf16.msra.mxu0 %v5411_v44  ;;  %3921 = vmatpush1.bf16.msra.mxu1 %v5422_v62 }
 0xb9b   : > { %3891 = vmatprep.subr.bf16.mxu0 %v5418_v42  ;;  %3923 = vmatprep.subr.bf16.mxu1 %v5427_v19  ;;  %v2549_v19 = vld [vmem:[#allocation2 + $0x50] sm:$0xff] }
 0xb9e   : > { %3893 = vmatpush1.bf16.msra.mxu0 %v5433_v27  ;;  %3925 = vmatpush1.bf16.msra.mxu1 %v5443_v34 }
 0xb9f   : > { %3895 = vmatprep.subr.bf16.mxu0 %v5439_v24  ;;  %3927 = vmatprep.subr.bf16.mxu1 %v5448_v59  ;;  %v2550_v59 = vld [vmem:[#allocation2 + $0x58] sm:$0xff] }
 0xba2   : > { %3897 = vmatpush1.bf16.msra.mxu0 %v5454_v51  ;;  %3929 = vmatpush1.bf16.msra.mxu1 %v5464_v15 }
 0xba3   : > { %3899 = vmatprep.subr.bf16.mxu0 %v5460_v47  ;;  %3931 = vmatprep.subr.bf16.mxu1 %v5469_v30 }
 0xba6   : > { %3901 = vmatpush1.bf16.msra.mxu0 %v5474_v41  ;;  %3933 = vmatpush1.bf16.msra.mxu1 %v5484_v5 }
 0xba7   : > { %3903 = vmatprep.subr.bf16.mxu0 %v5480_v18  ;;  %3935 = vmatprep.subr.bf16.mxu1 %v5489_v52 }
 0xbaa   : > { %3905 = vmatpush1.bf16.msra.mxu0 %v5494_v63  ;;  %3937 = vmatpush1.bf16.msra.mxu1 %v5504_v40 }
 0xbab   : > { %3907 = vmatprep.subr.bf16.mxu0 %v5500_v7  ;;  %3939 = vmatprep.subr.bf16.mxu1 %v5509_v37 }
 0xbae   : > { %3909 = vmatpush1.bf16.msra.mxu0 %v5514_v31  ;;  %3941 = vmatpush1.bf16.msra.mxu1 %v5524_v33 }
 0xbaf   : > { %3911 = vmatprep.subr.bf16.mxu0 %v5520_v20  ;;  %3943 = vmatprep.subr.bf16.mxu1 %v5529_v25 }
 0xbb2   : > { %3913 = vmatpush1.bf16.msra.mxu0 %v5534_v12  ;;  %3945 = vmatpush1.bf16.msra.mxu1 %v5540_v45  ;;  %v2718_v45 = vld [vmem:[#allocation2 + $0x60] sm:$0xff] }
 0xc68   : > { %v2617_v29 = vpop.f32.mrb[4].mxu0  ;;  %v2688_v2 = vpop.f32.mrb[4].mxu1 }
 0xc69   : > { %v2693_v44 = vadd.f32 %v2617_v29, %v2547_v10  ;;  %v2619_v42 = vpop.f32.mrb[5].mxu0  ;;  %v2690_v62 = vpop.f32.mrb[5].mxu1  ;;  %v2695_v34 = vadd.f32 %v2688_v2, %v2549_v19 }
 0xc6a   : > { %v2694_v26 = vadd.f32 %v2619_v42, %v2548_v8  ;;  %v2696_v51 = vadd.f32 %v2690_v62, %v2550_v59 }
 0xc6b   : > { %v2697_v27 = vmul.f32 0.5, %v2693_v44 }
 0xc6c   : > { %v2701_v24 = vmul.f32 0.5, %v2694_v26  ;;  %v2706_v47 = vmul.f32 0.5, %v2696_v51 }
 0xc6d   : > { %4162 = vtanh.f32 %v2697_v27 }
 0xc6e   : > { %4164 = vtanh.f32 %v2701_v24 }
 0xc6f   : > { %4166 = vtanh.f32 %v2695_v34 }
 0xc70   : > { %4168 = vtanh.f32 %v2706_v47 }
 0xc77   : > { %v4163_v15 = vpop.eup %4162 }
 0xc78   : > { %v4165_v30 = vpop.eup %4164  ;;  %v2699_v41 = vadd.f32 1.0, %v4163_v15 }
 0xc79   : > { %v2703_v18 = vadd.f32 1.0, %v4165_v30  ;;  %v4167_v52 = vpop.eup %4166 }
 0xc7a   : > { %v2700_v5 = vmul.f32 0.5, %v2699_v41  ;;  %v4169_v31 = vpop.eup %4168 }
 0xc7b   : > { %v2704_v63 = vmul.f32 0.5, %v2703_v18  ;;  %v2708_v20 = vadd.f32 1.0, %v4169_v31 }
 0xc7c   : > { %v2711_v7 = vmul.f32 %v4167_v52, %v2700_v5 }
 0xc7d   : > { %v2710_v40 = vmul.f32 %v2704_v63, %v5620_v32  ;;  %v2709_v33 = vmul.f32 0.5, %v2708_v20 }
 0xc7f   : > { %v2712_v37 = vadd.f32 %v2711_v7, %v2710_v40 }
 0xc81   : > { %4170 = vtanh.f32 %v2712_v37 }
 0xc8b   : > { %v4171_v25 = vpop.eup %4170 }
 0xc8c   : > { %v2714_v12 = vmul.f32 %v4171_v25, %v2709_v33 }
 0xc8e   : > { %3149 = vst [vmem:[%s4732_s17 + $0x10] sm:$0xff] %v2714_v12  ;;  %2787 = vmatmul.mubr.f32.vlgmr.msra.gmra.mrb[6].mxu0 %v2714_v12  ;;  %2858 = vmatmul.mubr.f32.vlgmr.msra.gmra.mrb[6].mxu1 %v2714_v12 }
 0xd61   : > { %v2788_v43 = vpop.f32.mrb[6].mxu0  ;;  %v2859_v50 = vpop.f32.mrb[6].mxu1 }
 0xd62   : > { %v2864_v23 = vadd.f32 %v2788_v43, %v2718_v45  ;;  %v2790_v60 = vpop.f32.mrb[7].mxu0  ;;  %v2861_v56 = vpop.f32.mrb[7].mxu1  ;;  %v2866_v11 = vadd.f32 %v2859_v50, %v2720_v0 }
 0xd63   : > { %v2865_v53 = vadd.f32 %v2790_v60, %v2719_v21  ;;  %v2867_v55 = vadd.f32 %v2861_v56, %v2721_v16 }
 0xd64   : > { %v2868_v46 = vmul.f32 0.5, %v2864_v23 }
 0xd65   : > { %v2872_v58 = vmul.f32 0.5, %v2865_v53  ;;  %v2877_v54 = vmul.f32 0.5, %v2867_v55 }
 0xd66   : > { %4172 = vtanh.f32 %v2868_v46 }
 0xd67   : > { %4174 = vtanh.f32 %v2872_v58 }
 0xd68   : > { %4176 = vtanh.f32 %v2866_v11 }
 0xd69   : > { %4178 = vtanh.f32 %v2877_v54 }
 0xd70   : > { %v4173_v61 = vpop.eup %4172 }
 0xd71   : > { %v4175_v1 = vpop.eup %4174  ;;  %v2870_v6 = vadd.f32 1.0, %v4173_v61 }
 0xd72   : > { %v2874_v9 = vadd.f32 1.0, %v4175_v1  ;;  %v4177_v28 = vpop.eup %4176 }
 0xd73   : > { %v2871_v4 = vmul.f32 0.5, %v2870_v6  ;;  %v4179_v48 = vpop.eup %4178 }
 0xd74   : > { %v2875_v36 = vmul.f32 0.5, %v2874_v9  ;;  %v2879_v57 = vadd.f32 1.0, %v4179_v48 }
 0xd75   : > { %v2882_v35 = vmul.f32 %v4177_v28, %v2871_v4 }
 0xd76   : > { %v2881_v39 = vmul.f32 %v2875_v36, %v2712_v37  ;;  %v2880_v22 = vmul.f32 0.5, %v2879_v57 }
 0xd78   : > { %v2883_v38 = vadd.f32 %v2882_v35, %v2881_v39 }
 0xd7a   : > { %4180 = vtanh.f32 %v2883_v38  ;;  %2889 = vst [vmem:[#allocation4] sm:$0xff] %v2883_v38  ;;  %2893 = vst [vmem:[#allocation16] sm:$0xff] %v2883_v38 }
 0xd84   : > { %v4181_v32 = vpop.eup %4180 }
 0xd85   : > { %v2885_v17 = vmul.f32 %v4181_v32, %v2880_v22 }
 0xd87   : > { %3150 = vst [vmem:[%s4732_s17 + $0x18] sm:$0xff] %v2885_v17  ;;  %2888 = vst [vmem:[#allocation3] sm:$0xff] %v2885_v17 }
 0xd88   : > { %2891 = vst [vmem:[#allocation14] sm:$0xff] %v2885_v17 }
 0xd89 PF: > { %s4455_s13 = smov [#allocation14]   ;;  %s3161_s18 = sshll.u32 %s4434_s30, 10 }
 0xd8a   : > { %s2925_s22 = sshll.u32 %s4455_s13, 4  ;;  %p5960_p7 = scmp.ne.s32.totalorder %s5818_s14, 0  ;;  %s2926_s22 = int_to_ptr.vmem [resolvable:$true] %s2925_s22 }
 0xd8b   : > { %s4296_s23 = scalar_lea.vmem %s2926_s22, 128  ;;  %p4303_p4 = scmp.lt.s32.totalorder %s2926_s22, %s2926_s22 }
 0xd8c   : > { %p4297_p5 = scmp.ne.s32.totalorder %s2926_s22, %s4296_s23  ;;  %p4304_p2 = scmp.lt.s32.totalorder %s4296_s23, %s4296_s23 }
 0xd8e   : > { %p4298_p9 = pnand %p4297_p5, %p5960_p7  ;;  %p4305_p8 = por %p4304_p2, %p4303_p4 }
 0xd90   : > { %p4299_p0 = pneg %p4298_p9 }
 0xd92   : > { %p4306_p12 = pnand %p4305_p8, %p4299_p0 }
 0xd94   : > { %4309 = shalt.err (!%p4306_p12)
}
 0xd95   : > { %s5961_s7 = sld [smem:[#allocation80_spill]] }
 0xd9b   : > { %s4310_s8 = scalar_lea.hbm %s5961_s7, 128 }
 0xd9c   : > { %p4311_p1 = scmp.ne.s32.totalorder %s5961_s7, %s4310_s8  ;;  %p4316_p6 = scmp.lt.u32.totalorder %s4310_s8, %s5961_s7 }
 0xd9e   : > { %p4312_p11 = pnand %p4311_p1, %p5960_p7 }
 0xda0   : > { %p4313_p13 = pneg %p4312_p11 }
 0xda2   : > { %p4318_p3 = pnand %p4316_p6, %p4313_p13 }
 0xda4   : > { %4321 = shalt.err (!%p4318_p3)
}
 0xda5   : > { %3962 = dma.vmem_to_hbm [thread:$0]  (%p5960_p7), %s2926_s22, 128, %s5961_s7, [#allocation15]  }
 0xda6   : > { %s5962_s23 = sld [smem:[#allocation79_spill]]  ;;  %s2909_s26 = sshll.u32 %s4732_s17, 4  ;;  %s5684_s26 = int_to_ptr.vmem [resolvable:$true] %s2909_s26 }
 0xda7   : > { %s2895_s8 = scalar_lea.sflag [#allocation7], %s4714_s24  ;;  %s4322_s12 = scalar_lea.vmem %s5684_s26, 1024 }
 0xda8   : > { %p4323_p5 = scmp.ne.s32.totalorder %s5684_s26, %s4322_s12  ;;  %s4456_s6 = smov [#allocation13]  }
 0xda9   : > { %s4326_s30 = sshll.u32 %s4456_s6, 4  ;;  %s4327_s30 = int_to_ptr.vmem [resolvable:$false] %s4326_s30 }
 0xdaa   : > { %p4324_p9 = pnand %p4323_p5, %p4656_p10  ;;  %s4328_s22 = scalar_lea.vmem %s4327_s30, 2048 }
 0xdab   : > { %p4329_p4 = scmp.lt.s32.totalorder %s5684_s26, %s4327_s30  ;;  %p4330_p2 = scmp.lt.s32.totalorder %s4328_s22, %s4322_s12 }
 0xdac   : > { %s5681_s16 = scalar_lea.hbm %s5962_s23, %s3161_s18  ;;  %p4325_p0 = pneg %p4324_p9 }
 0xdad   : > { %p4331_p8 = por %p4330_p2, %p4329_p4 }
 0xdaf   : > { %p4332_p12 = pnand %p4331_p8, %p4325_p0 }
 0xdb1   : > { %4335 = shalt.err (!%p4332_p12)
}
 0xdb2   : > { %s4336_s17 = scalar_lea.hbm %s5681_s16, 1024  ;;  %s4340_s15 = scalar_lea.hbm %s5962_s23, 2048 }
 0xdb3   : > { %p4337_p1 = scmp.ne.s32.totalorder %s5681_s16, %s4336_s17  ;;  %p4341_p6 = scmp.lt.u32.totalorder %s5681_s16, %s5962_s23 }
 0xdb4   : > { %p4342_p3 = scmp.lt.u32.totalorder %s4340_s15, %s4336_s17  ;;  %p4344_p9 = scmp.lt.u32.totalorder %s4336_s17, %s5681_s16 }
 0xdb5   : > { %p4338_p11 = pnand %p4337_p1, %p4656_p10 }
 0xdb6   : > { %p4343_p5 = por %p4342_p3, %p4341_p6 }
 0xdb7   : > { %p4339_p13 = pneg %p4338_p11 }
 0xdb8   : > { %p4345_p0 = por %p4344_p9, %p4343_p5 }
 0xdba   : > { %p4346_p4 = pnand %p4345_p0, %p4339_p13 }
 0xdbc   : > { %4349 = shalt.err (!%p4346_p4)
}
 0xdbd   : > { %s4457_s13 = smov 128   ;;  %s4458_s12 = smov 8  }
 0xdbe   : > { %3960 = dma.vmem_to_hbm [thread:$0]  (%p4656_p10), %s5684_s26, 1024, %s5681_s16, %s2895_s8, %s4457_s13, %s4457_s13, %s4458_s12  }
 0xdbf   : > { %s4459_s6 = smov [#allocation16]  }
 0xdc0   : > { %s2938_s30 = sshll.u32 %s4459_s6, 4  ;;  %s2939_s30 = int_to_ptr.vmem [resolvable:$true] %s2938_s30 }
 0xdc1   : > { %s4350_s22 = scalar_lea.vmem %s2939_s30, 128  ;;  %p4357_p1 = scmp.lt.s32.totalorder %s2939_s30, %s2939_s30 }
 0xdc2   : > { %p4351_p2 = scmp.ne.s32.totalorder %s2939_s30, %s4350_s22  ;;  %p4358_p11 = scmp.lt.s32.totalorder %s4350_s22, %s4350_s22 }
 0xdc4   : > { %p4352_p8 = pnand %p4351_p2, %p5960_p7  ;;  %p4359_p13 = por %p4358_p11, %p4357_p1 }
 0xdc6   : > { %p4353_p12 = pneg %p4352_p8 }
 0xdc8   : > { %p4360_p6 = pnand %p4359_p13, %p4353_p12 }
 0xdca   : > { %4363 = shalt.err (!%p4360_p6)
}
 0xdcb   : > { %s5963_s21 = sld [smem:[#allocation81_spill]] }
 0xdd1   : > { %s4364_s20 = scalar_lea.hbm %s5963_s21, 128 }
 0xdd2   : > { %p4365_p10 = scmp.ne.s32.totalorder %s5963_s21, %s4364_s20  ;;  %p4370_p9 = scmp.lt.u32.totalorder %s4364_s20, %s5963_s21 }
 0xdd4   : > { %p4366_p3 = pnand %p4365_p10, %p5960_p7 }
 0xdd6   : > { %p4367_p5 = pneg %p4366_p3 }
 0xdd8   : > { %p4372_p0 = pnand %p4370_p9, %p4367_p5 }
 0xdda   : > { %4375 = shalt.err (!%p4372_p0)
}
 0xddb   : > { %3964 = dma.vmem_to_hbm [thread:$0]  (%p5960_p7), %s2939_s30, 128, %s5963_s21, [#allocation15]  }
 0xddc   : > { %4413 = dma.done.wait (%p5960_p7), [#allocation15], 256  }
 0xddd   : > { %4415 = vsyncadd (%p5960_p7), [#allocation15], 4294967040 }
 0xdde PF: > { %s5964_s19 = sld [smem:[#allocation22_spill]]  ;;  %s5965_s13 = sld [smem:[#allocation23_spill]] }
 0xddf   : > { %p5967_p2 = scmp.ge.s32.totalorder %s4442_s10, 2 }
 0xde4   : > { %s2958_s12 = sand.u32 1, %s5964_s19   ;;  %p5966_p4 = scmp.ne.s32.totalorder %s5965_s13, 0 }
 0xde5   : > { %s2959_s6 = scalar_lea.sflag [#allocation7], %s2958_s12 }
 0xde6   : > { %p3985_p8 = pnand %p5967_p2, %p5966_p4 }
 0xde8   : > { %4417 = dma.done.wait (!%p3985_p8), %s2959_s6, 1024  }
 0xde9   : > { %4419 = vsyncadd (!%p3985_p8), %s2959_s6, 4294966272  ;;  %s28_s10 = sadd.s32 1, %s4442_s10   ;;  %s5968_s30 = smov %s4668_s27 }
 0xdea   : > { %p25_p12 = scmp.ge.s32.totalorder %s28_s10, 4   ;;  %s5969_s27 = smov %s4426_s28 }
 0xdeb   : > { %s5970_s28 = smov %s4430_s29  ;;  %s5971_s29 = smov %s5968_s30 }
 0xdec   : > { %s5972_s30 = smov %s4438_s9  ;;  %s5973_s9 = smov %s5975_s11 }
 0xded   :  { %27 = sbr.rel (!%p25_p12) target bundleno = 13 (0xd), region = 157 }
 0xdf4   :  { %2964 = vsyncpa [#allocation6], 1 }
 0xdf5   :  { %2966 = vsyncpa [#allocation6 + $0x1], 1 }
 0xdf6   :  { %2967 = vsyncpa [#allocation9], 1 }
 0xdf7   :  { %2968 = vsyncpa [#allocation12], 1 }
 0xdf8   :  { %2969 = vsyncpa [#allocation7], 1 }
 0xdf9   :  { %2971 = vsyncpa [#allocation7 + $0x1], 1 }
 0xdfa   :  { %2972 = vsyncpa [#allocation15], 1 }

</bundles_post_ra>
